<compile_context>
chip_gen: v6e
topology: v6e:2x2x1
jax: 0.10.0
libtpu: 0.0.40
codegen_flags: <defaults>
</compile_context>

<pallas_src>
import jax
import jax.numpy as jnp
from jax.experimental import pallas as pl
from jax.experimental.pallas import tpu as pltpu

LANE = 128


def _round_up(x, m):
    return (x + m - 1) // m * m


# ------------------------------- Pallas kernel -------------------------------


def _conv_block_kernel(n_phase, B, PR, PW, Ho, Wo, TAIL, CpI, taps):
    """Fused eval-BN -> ReLU -> 3x3 conv for one (batch-tile, Cout-tile) step."""
    ACC = B * PR  # rows of the flattened padded plane(s) == matmul M dim

    def kernel(x_ref, scale_ref, shift_ref, mask_ref, w_ref, o_ref, pad_ref):
        co = pl.program_id(1)

        # Fill the bf16 activation scratch once per batch tile; it is reused
        # unchanged across all Cout tiles (and x is only DMA'd when the batch
        # tile changes, since its index_map ignores `co`).
        @pl.when(co == 0)
        def _fill():
            # Tail rows are only read by garbage accumulator rows that are
            # dropped at the output; zero them once so they stay finite.
            pad_ref[:, ACC:, :] = jnp.zeros((n_phase, TAIL, CpI), jnp.bfloat16)
            scale = scale_ref[...]                       # (1, CpI)
            # mask is 1 on interior plane positions, 0 on the zero-pad border,
            # so relu(x*scale + shift*mask) is exactly 0 on the border.
            sm = shift_ref[...] * mask_ref[...]          # (PR, CpI)
            for b in range(B):
                for p in range(n_phase):
                    xb = x_ref[b, p].astype(jnp.float32)            # (PR, CpI)
                    act = jnp.maximum(xb * scale + sm, 0.0)
                    pad_ref[p, b * PR:(b + 1) * PR, :] = act.astype(jnp.bfloat16)

        # 3x3 conv as 9 MXU matmuls; every tap LHS is one contiguous static
        # slice of the flattened padded plane.  bf16 x bf16 -> f32 accumulate.
        acc = None
        for (t, p, off) in taps:
            d = jnp.dot(pad_ref[p, off:off + ACC, :], w_ref[t],
                        preferred_element_type=jnp.float32)
            acc = d if acc is None else acc + d

        # Drop the garbage rows/columns of the flattened-plane accumulator and
        # store the dense (B, Ho, Wo, TCO) output block (lane-dense stores).
        for b in range(B):
            for y in range(Ho):
                r0 = b * PR + y * PW
                o_ref[b, y, :, :] = acc[r0:r0 + Wo, :].astype(o_ref.dtype)

    return kernel


# ------------------------------ kernel wrapper --------------------------------


def conv_block(x_nhwc_p, gamma, beta, mean, var, w_oihw, stride):
    """eval-BN -> ReLU -> Conv2d(k=3, pad=1, stride, bias=False).

    x_nhwc_p: channel-padded NHWC float32 input (N, H, W, CpI), CpI % 128 == 0.
    Returns channel-padded NHWC float32 output (N, Ho, Wo, CpO).
    """
    N, H, W, CpI = x_nhwc_p.shape
    Cout, Cin = int(w_oihw.shape[0]), int(w_oihw.shape[1])
    assert Cin <= CpI and CpI % LANE == 0
    CpO = _round_up(Cout, LANE)
    eps = 1e-5

    # Per-channel eval-BN affine; padded channels get scale=shift=0 so their
    # activation is exactly 0 (their weights are zero-padded too).
    scale = (gamma / jnp.sqrt(var + eps)).astype(jnp.float32)
    shift = (beta - mean * scale).astype(jnp.float32)
    scale_p = jnp.zeros((1, CpI), jnp.float32).at[0, :Cin].set(scale)
    shift_p = jnp.zeros((1, CpI), jnp.float32).at[0, :Cin].set(shift)

    # OIHW -> (ky*3+kx, Cin, Cout), zero-padded, bf16 for the MXU.
    w = jnp.transpose(w_oihw, (2, 3, 1, 0)).reshape(9, Cin, Cout)
    w_p = jnp.zeros((9, CpI, CpO), jnp.bfloat16)
    w_p = w_p.at[:, :Cin, :Cout].set(w.astype(jnp.bfloat16))

    # --- layout prep (pure XLA reshuffles, fused by the compiler) ---
    if stride == 2:
        assert H % 2 == 0 and W % 2 == 0, "stride-2 path assumes even H, W"
        Ho, Wo = H // 2, W // 2
        PH, PW = Ho + 1, Wo + 1      # per-phase plane, 1 zero pad row/col (top/left)
        n_phase = 4
        # Pad 2 at top/left, then parity-split:
        #   x_prep[n, py*2+px, r*PW+c, :] = xpad2[n, 2r+py, 2c+px, :]
        xq = jnp.pad(x_nhwc_p, ((0, 0), (2, 0), (2, 0), (0, 0)))
        x_prep = (xq.reshape(N, PH, 2, PW, 2, CpI)
                  .transpose(0, 2, 4, 1, 3, 5)
                  .reshape(N, 4, PH * PW, CpI))
    else:
        assert stride == 1
        Ho, Wo = H, W
        PH, PW = Ho + 2, Wo + 2      # 1 zero-pad pixel on every side
        n_phase = 1
        xq = jnp.pad(x_nhwc_p, ((0, 0), (1, 1), (1, 1), (0, 0)))
        x_prep = xq.reshape(N, 1, PH * PW, CpI)

    PR = PH * PW

    # The 9 taps: (weight index, phase, flat row offset into the padded plane).
    taps = []
    for ky in range(3):
        for kx in range(3):
            if stride == 1:
                p, off = 0, ky * PW + kx
            else:
                p = ((ky + 1) % 2) * 2 + (kx + 1) % 2
                off = (0 if ky == 0 else 1) * PW + (0 if kx == 0 else 1)
            taps.append((ky * 3 + kx, p, off))
    off_max = max(off for _, _, off in taps)
    TAIL = _round_up(off_max + 1, 8)

    # Interior mask of the flattened plane (1 on data, 0 on the pad border).
    ridx = jnp.arange(PR, dtype=jnp.int32)[:, None] // PW
    cidx = jnp.arange(PR, dtype=jnp.int32)[:, None] % PW
    mask = ((ridx >= 1) & (ridx <= Ho) & (cidx >= 1) & (cidx <= Wo)).astype(
        jnp.float32)                                           # (PR, 1)

    # Cout tile (lane-dense multiple of 128).
    if CpO <= 512:
        TCO = CpO
    elif CpO % 256 == 0:
        TCO = 256
    else:
        TCO = LANE
    n_co = CpO // TCO

    # Batch tile: biggest divisor of N that keeps the working set comfortably
    # inside ~24 MiB (safe for v7x's 64 MiB VMEM with double buffering).
    def _vmem_est(bt):
        x_b = 2 * bt * n_phase * PR * CpI * 4          # input block (dbl-buffered)
        pad_b = n_phase * (bt * PR + TAIL) * CpI * 2   # bf16 activation scratch
        acc_b = bt * PR * TCO * 4                      # f32 accumulator value
        out_b = 2 * bt * Ho * Wo * TCO * 4             # output block (dbl-buffered)
        w_b = 2 * 9 * CpI * TCO * 2                    # bf16 weights (dbl-buffered)
        return x_b + pad_b + acc_b + out_b + w_b

    B_tile = 1
    for bt in range(1, N + 1):
        if N % bt == 0 and _vmem_est(bt) <= 24 * 1024 * 1024:
            B_tile = bt
    n_b = N // B_tile

    vmem_limit = int(min(48 * 1024 * 1024,
                         max(32 * 1024 * 1024, 2 * _vmem_est(B_tile))))

    kernel = _conv_block_kernel(n_phase, B_tile, PR, PW, Ho, Wo, TAIL, CpI, taps)

    flops = 2 * N * PR * 9 * CpI * CpO
    bytes_accessed = (4 * x_prep.size + 2 * w_p.size + 4 * N * Ho * Wo * CpO
                      + 4 * (2 * CpI + PR))

    out = pl.pallas_call(
        kernel,
        out_shape=jax.ShapeDtypeStruct((N, Ho, Wo, CpO), jnp.float32),
        grid=(n_b, n_co),
        in_specs=[
            pl.BlockSpec((B_tile, n_phase, PR, CpI), lambda b, co: (b, 0, 0, 0)),
            pl.BlockSpec((1, CpI), lambda b, co: (0, 0)),
            pl.BlockSpec((1, CpI), lambda b, co: (0, 0)),
            pl.BlockSpec((PR, 1), lambda b, co: (0, 0)),
            pl.BlockSpec((9, CpI, TCO), lambda b, co: (0, 0, co)),
        ],
        out_specs=pl.BlockSpec((B_tile, Ho, Wo, TCO), lambda b, co: (b, 0, 0, co)),
        scratch_shapes=[
            pltpu.VMEM((n_phase, B_tile * PR + TAIL, CpI), jnp.bfloat16),
        ],
        compiler_params=pltpu.CompilerParams(
            dimension_semantics=("parallel", "arbitrary"),
            vmem_limit_bytes=vmem_limit,
        ),
        cost_estimate=pl.CostEstimate(
            flops=flops, transcendentals=0, bytes_accessed=bytes_accessed),
    )(x_prep, scale_p, shift_p, mask, w_p)

    return out


def bottleneck_forward(x_nchw, params):
    N, Cin, H, W = x_nchw.shape
    g1, b1, m1, v1, w1 = params["block1"]
    g2, b2, m2, v2, w2 = params["block2"]

    CpI = _round_up(Cin, LANE)
    x = jnp.transpose(x_nchw, (0, 2, 3, 1)).astype(jnp.float32)   # NCHW -> NHWC
    x = jnp.pad(x, ((0, 0), (0, 0), (0, 0), (0, CpI - Cin)))      # lane-dense C

    y = conv_block(x, g1, b1, m1, v1, w1, stride=2)   # (N, H/2, W/2, CpO)
    y = conv_block(y, g2, b2, m2, v2, w2, stride=1)   # (N, H/2, W/2, CpO)

    Cout = int(w2.shape[0])
    y = y[..., :Cout]
    return jnp.transpose(y, (0, 3, 1, 2)).astype(x_nchw.dtype)    # NHWC -> NCHW


# --------------------------- pure-JAX reference -------------------------------


def ref_conv_block(x_nchw, gamma, beta, mean, var, w, stride):
    eps = 1e-5
    xn = (x_nchw - mean[None, :, None, None]) * (
        1.0 / jnp.sqrt(var + eps))[None, :, None, None]
    xn = xn * gamma[None, :, None, None] + beta[None, :, None, None]
    xr = jnp.maximum(xn, 0.0)
    return jax.lax.conv_general_dilated(
        xr, w, (stride, stride), ((1, 1), (1, 1)),
        dimension_numbers=("NCHW", "OIHW", "NCHW"))


def ref_forward(x_nchw, params):
    y = ref_conv_block(x_nchw, *params["block1"], stride=2)
    y = ref_conv_block(y, *params["block2"], stride=1)
    return y


# ----------------------------------- main -------------------------------------


def init_params(key, in_channels):
    out_channels = 2 * in_channels
    ks = jax.random.split(key, 4)

    def norm_params(k, c):
        k1, k2, k3, k4 = jax.random.split(k, 4)
        gamma = 1.0 + 0.1 * jax.random.normal(k1, (c,), jnp.float32)
        beta = 0.1 * jax.random.normal(k2, (c,), jnp.float32)
        mean = 0.1 * jax.random.normal(k3, (c,), jnp.float32)
        var = 1.0 + jnp.abs(0.1 * jax.random.normal(k4, (c,), jnp.float32))
        return gamma, beta, mean, var

    g1, b1, m1, v1 = norm_params(ks[0], in_channels)
    w1 = 0.1 * jax.random.normal(ks[1], (out_channels, in_channels, 3, 3),
                                 jnp.float32)
    g2, b2, m2, v2 = norm_params(ks[2], out_channels)
    w2 = 0.1 * jax.random.normal(ks[3], (out_channels, out_channels, 3, 3),
                                 jnp.float32)
    return {
        "block1": (g1, b1, m1, v1, w1),
        "block2": (g2, b2, m2, v2, w2),
    }


if __name__ == "__main__":
    key = jax.random.PRNGKey(0)
    kx, kp = jax.random.split(key)

    N, Cin, H, W = 2, 4, 16, 16
    x = jax.random.normal(kx, (N, Cin, H, W), jnp.float32)
    params = init_params(kp, Cin)

    out = jax.jit(bottleneck_forward)(x, params)
    out = jax.block_until_ready(out)

    expected_shape = (N, 2 * Cin, H // 2, W // 2)
    assert out.shape == expected_shape, (out.shape, expected_shape)

    # Tolerance accounts for bf16 MXU feeds (activations + weights) with f32
    # accumulation vs. the all-f32 XLA reference.
    ref = jax.block_until_ready(ref_forward(x, params))
    assert jnp.allclose(out, ref, rtol=2e-2, atol=1e-2), (
        float(jnp.max(jnp.abs(out - ref))))

    print("KERNEL_OK")
</pallas_src>

<mosaic_0001>
module attributes {stable_mosaic.version = 11 : i64} {
  func.func @kernel(%arg0: i32, %arg1: i32, %arg2: memref<2x4x81x128xf32, #tpu.memory_space<vmem>>, %arg3: memref<1x128xf32, #tpu.memory_space<vmem>>, %arg4: memref<1x128xf32, #tpu.memory_space<vmem>>, %arg5: memref<81x1xf32, #tpu.memory_space<vmem>>, %arg6: memref<9x128x128xbf16, #tpu.memory_space<vmem>>, %arg7: memref<2x8x8x128xf32, #tpu.memory_space<vmem>>, %arg8: memref<4x178x128xbf16, #tpu.memory_space<vmem>>) attributes {dimension_semantics = [#tpu.dimension_semantics<parallel>, #tpu.dimension_semantics<arbitrary>], iteration_bounds = array<i64: 1, 1>, scalar_prefetch = 0 : i64, scratch_operands = 1 : i64, tpu.core_type = #tpu.core_type<tc>, window_params = [{transform_indices = @transform_0, window_bounds = array<i64: 2, 4, 81, 128>}, {pipeline_mode = #tpu.pipeline_mode<synchronous>, transform_indices = @transform_1, window_bounds = array<i64: 1, 128>}, {pipeline_mode = #tpu.pipeline_mode<synchronous>, transform_indices = @transform_2, window_bounds = array<i64: 1, 128>}, {pipeline_mode = #tpu.pipeline_mode<synchronous>, transform_indices = @transform_3, window_bounds = array<i64: 81, 1>}, {transform_indices = @transform_4, window_bounds = array<i64: 9, 128, 128>}, {transform_indices = @transform_5, window_bounds = array<i64: 2, 8, 8, 128>}]} {
    %c0_i32 = arith.constant 0 : i32
    %0 = arith.cmpi eq, %arg1, %c0_i32 : i32
    %1 = arith.extui %0 : i1 to i32
    %c0_i32_0 = arith.constant 0 : i32
    %2 = arith.cmpi ne, %1, %c0_i32_0 : i32
    scf.if %2 {
      %cst_116 = arith.constant 0.000000e+00 : bf16
      %120 = vector.broadcast %cst_116 : bf16 to vector<4x16x128xbf16>
      %c0_117 = arith.constant 0 : index
      %c162 = arith.constant 162 : index
      %c0_118 = arith.constant 0 : index
      %121 = vector.load %arg8[%c0_117, %c162, %c0_118] : memref<4x178x128xbf16, #tpu.memory_space<vmem>>, vector<4x16x128xbf16>
      tpu.vector_store %arg8[%c0_117, %c162, %c0_118], %120 {strides = array<i32>} : memref<4x178x128xbf16, #tpu.memory_space<vmem>>, vector<4x16x128xbf16>,
      %c0_119 = arith.constant 0 : index
      %c0_120 = arith.constant 0 : index
      %122 = vector.load %arg3[%c0_119, %c0_120] : memref<1x128xf32, #tpu.memory_space<vmem>>, vector<1x128xf32>
      %c0_121 = arith.constant 0 : index
      %c0_122 = arith.constant 0 : index
      %123 = vector.load %arg4[%c0_121, %c0_122] : memref<1x128xf32, #tpu.memory_space<vmem>>, vector<1x128xf32>
      %c0_123 = arith.constant 0 : index
      %c0_124 = arith.constant 0 : index
      %124 = vector.load %arg5[%c0_123, %c0_124] : memref<81x1xf32, #tpu.memory_space<vmem>>, vector<81x1xf32>
      %125 = vector.broadcast %123 : vector<1x128xf32> to vector<81x128xf32>
      %126 = vector.broadcast %124 : vector<81x1xf32> to vector<81x128xf32>
      %127 = arith.mulf %125, %126 : vector<81x128xf32>
      %c0_125 = arith.constant 0 : index
      %c0_126 = arith.constant 0 : index
      %c0_127 = arith.constant 0 : index
      %c0_128 = arith.constant 0 : index
      %128 = vector.load %arg2[%c0_125, %c0_126, %c0_127, %c0_128] : memref<2x4x81x128xf32, #tpu.memory_space<vmem>>, vector<1x1x81x128xf32>
      %129 = vector.shape_cast %128 : vector<1x1x81x128xf32> to vector<81x128xf32>
      %130 = vector.broadcast %122 : vector<1x128xf32> to vector<81x128xf32>
      %131 = arith.mulf %129, %130 : vector<81x128xf32>
      %132 = arith.addf %131, %127 : vector<81x128xf32>
      %cst_129 = arith.constant 0.000000e+00 : f32
      %133 = vector.broadcast %cst_129 : f32 to vector<81x128xf32>
      %134 = arith.maximumf %132, %133 : vector<81x128xf32>
      %135 = arith.truncf %134 : vector<81x128xf32> to vector<81x128xbf16>
      %c0_130 = arith.constant 0 : index
      %c0_131 = arith.constant 0 : index
      %c0_132 = arith.constant 0 : index
      %136 = vector.load %arg8[%c0_130, %c0_131, %c0_132] : memref<4x178x128xbf16, #tpu.memory_space<vmem>>, vector<1x81x128xbf16>
      %137 = vector.shape_cast %136 : vector<1x81x128xbf16> to vector<81x128xbf16>
      %138 = vector.shape_cast %135 : vector<81x128xbf16> to vector<1x81x128xbf16>
      tpu.vector_store %arg8[%c0_130, %c0_131, %c0_132], %138 {strides = array<i32>} : memref<4x178x128xbf16, #tpu.memory_space<vmem>>, vector<1x81x128xbf16>,
      %c0_133 = arith.constant 0 : index
      %c1_134 = arith.constant 1 : index
      %c0_135 = arith.constant 0 : index
      %c0_136 = arith.constant 0 : index
      %139 = vector.load %arg2[%c0_133, %c1_134, %c0_135, %c0_136] : memref<2x4x81x128xf32, #tpu.memory_space<vmem>>, vector<1x1x81x128xf32>
      %140 = vector.shape_cast %139 : vector<1x1x81x128xf32> to vector<81x128xf32>
      %141 = vector.broadcast %122 : vector<1x128xf32> to vector<81x128xf32>
      %142 = arith.mulf %140, %141 : vector<81x128xf32>
      %143 = arith.addf %142, %127 : vector<81x128xf32>
      %cst_137 = arith.constant 0.000000e+00 : f32
      %144 = vector.broadcast %cst_137 : f32 to vector<81x128xf32>
      %145 = arith.maximumf %143, %144 : vector<81x128xf32>
      %146 = arith.truncf %145 : vector<81x128xf32> to vector<81x128xbf16>
      %c1_138 = arith.constant 1 : index
      %c0_139 = arith.constant 0 : index
      %c0_140 = arith.constant 0 : index
      %147 = vector.load %arg8[%c1_138, %c0_139, %c0_140] : memref<4x178x128xbf16, #tpu.memory_space<vmem>>, vector<1x81x128xbf16>
      %148 = vector.shape_cast %147 : vector<1x81x128xbf16> to vector<81x128xbf16>
      %149 = vector.shape_cast %146 : vector<81x128xbf16> to vector<1x81x128xbf16>
      tpu.vector_store %arg8[%c1_138, %c0_139, %c0_140], %149 {strides = array<i32>} : memref<4x178x128xbf16, #tpu.memory_space<vmem>>, vector<1x81x128xbf16>,
      %c0_141 = arith.constant 0 : index
      %c2_142 = arith.constant 2 : index
      %c0_143 = arith.constant 0 : index
      %c0_144 = arith.constant 0 : index
      %150 = vector.load %arg2[%c0_141, %c2_142, %c0_143, %c0_144] : memref<2x4x81x128xf32, #tpu.memory_space<vmem>>, vector<1x1x81x128xf32>
      %151 = vector.shape_cast %150 : vector<1x1x81x128xf32> to vector<81x128xf32>
      %152 = vector.broadcast %122 : vector<1x128xf32> to vector<81x128xf32>
      %153 = arith.mulf %151, %152 : vector<81x128xf32>
      %154 = arith.addf %153, %127 : vector<81x128xf32>
      %cst_145 = arith.constant 0.000000e+00 : f32
      %155 = vector.broadcast %cst_145 : f32 to vector<81x128xf32>
      %156 = arith.maximumf %154, %155 : vector<81x128xf32>
      %157 = arith.truncf %156 : vector<81x128xf32> to vector<81x128xbf16>
      %c2_146 = arith.constant 2 : index
      %c0_147 = arith.constant 0 : index
      %c0_148 = arith.constant 0 : index
      %158 = vector.load %arg8[%c2_146, %c0_147, %c0_148] : memref<4x178x128xbf16, #tpu.memory_space<vmem>>, vector<1x81x128xbf16>
      %159 = vector.shape_cast %158 : vector<1x81x128xbf16> to vector<81x128xbf16>
      %160 = vector.shape_cast %157 : vector<81x128xbf16> to vector<1x81x128xbf16>
      tpu.vector_store %arg8[%c2_146, %c0_147, %c0_148], %160 {strides = array<i32>} : memref<4x178x128xbf16, #tpu.memory_space<vmem>>, vector<1x81x128xbf16>,
      %c0_149 = arith.constant 0 : index
      %c3_150 = arith.constant 3 : index
      %c0_151 = arith.constant 0 : index
      %c0_152 = arith.constant 0 : index
      %161 = vector.load %arg2[%c0_149, %c3_150, %c0_151, %c0_152] : memref<2x4x81x128xf32, #tpu.memory_space<vmem>>, vector<1x1x81x128xf32>
      %162 = vector.shape_cast %161 : vector<1x1x81x128xf32> to vector<81x128xf32>
      %163 = vector.broadcast %122 : vector<1x128xf32> to vector<81x128xf32>
      %164 = arith.mulf %162, %163 : vector<81x128xf32>
      %165 = arith.addf %164, %127 : vector<81x128xf32>
      %cst_153 = arith.constant 0.000000e+00 : f32
      %166 = vector.broadcast %cst_153 : f32 to vector<81x128xf32>
      %167 = arith.maximumf %165, %166 : vector<81x128xf32>
      %168 = arith.truncf %167 : vector<81x128xf32> to vector<81x128xbf16>
      %c3_154 = arith.constant 3 : index
      %c0_155 = arith.constant 0 : index
      %c0_156 = arith.constant 0 : index
      %169 = vector.load %arg8[%c3_154, %c0_155, %c0_156] : memref<4x178x128xbf16, #tpu.memory_space<vmem>>, vector<1x81x128xbf16>
      %170 = vector.shape_cast %169 : vector<1x81x128xbf16> to vector<81x128xbf16>
      %171 = vector.shape_cast %168 : vector<81x128xbf16> to vector<1x81x128xbf16>
      tpu.vector_store %arg8[%c3_154, %c0_155, %c0_156], %171 {strides = array<i32>} : memref<4x178x128xbf16, #tpu.memory_space<vmem>>, vector<1x81x128xbf16>,
      %c1_157 = arith.constant 1 : index
      %c0_158 = arith.constant 0 : index
      %c0_159 = arith.constant 0 : index
      %c0_160 = arith.constant 0 : index
      %172 = vector.load %arg2[%c1_157, %c0_158, %c0_159, %c0_160] : memref<2x4x81x128xf32, #tpu.memory_space<vmem>>, vector<1x1x81x128xf32>
      %173 = vector.shape_cast %172 : vector<1x1x81x128xf32> to vector<81x128xf32>
      %174 = vector.broadcast %122 : vector<1x128xf32> to vector<81x128xf32>
      %175 = arith.mulf %173, %174 : vector<81x128xf32>
      %176 = arith.addf %175, %127 : vector<81x128xf32>
      %cst_161 = arith.constant 0.000000e+00 : f32
      %177 = vector.broadcast %cst_161 : f32 to vector<81x128xf32>
      %178 = arith.maximumf %176, %177 : vector<81x128xf32>
      %179 = arith.truncf %178 : vector<81x128xf32> to vector<81x128xbf16>
      %c0_162 = arith.constant 0 : index
      %c81 = arith.constant 81 : index
      %c0_163 = arith.constant 0 : index
      %180 = vector.load %arg8[%c0_162, %c81, %c0_163] : memref<4x178x128xbf16, #tpu.memory_space<vmem>>, vector<1x81x128xbf16>
      %181 = vector.shape_cast %180 : vector<1x81x128xbf16> to vector<81x128xbf16>
      %182 = vector.shape_cast %179 : vector<81x128xbf16> to vector<1x81x128xbf16>
      tpu.vector_store %arg8[%c0_162, %c81, %c0_163], %182 {strides = array<i32>} : memref<4x178x128xbf16, #tpu.memory_space<vmem>>, vector<1x81x128xbf16>,
      %c1_164 = arith.constant 1 : index
      %c1_165 = arith.constant 1 : index
      %c0_166 = arith.constant 0 : index
      %c0_167 = arith.constant 0 : index
      %183 = vector.load %arg2[%c1_164, %c1_165, %c0_166, %c0_167] : memref<2x4x81x128xf32, #tpu.memory_space<vmem>>, vector<1x1x81x128xf32>
      %184 = vector.shape_cast %183 : vector<1x1x81x128xf32> to vector<81x128xf32>
      %185 = vector.broadcast %122 : vector<1x128xf32> to vector<81x128xf32>
      %186 = arith.mulf %184, %185 : vector<81x128xf32>
      %187 = arith.addf %186, %127 : vector<81x128xf32>
      %cst_168 = arith.constant 0.000000e+00 : f32
      %188 = vector.broadcast %cst_168 : f32 to vector<81x128xf32>
      %189 = arith.maximumf %187, %188 : vector<81x128xf32>
      %190 = arith.truncf %189 : vector<81x128xf32> to vector<81x128xbf16>
      %c1_169 = arith.constant 1 : index
      %c81_170 = arith.constant 81 : index
      %c0_171 = arith.constant 0 : index
      %191 = vector.load %arg8[%c1_169, %c81_170, %c0_171] : memref<4x178x128xbf16, #tpu.memory_space<vmem>>, vector<1x81x128xbf16>
      %192 = vector.shape_cast %191 : vector<1x81x128xbf16> to vector<81x128xbf16>
      %193 = vector.shape_cast %190 : vector<81x128xbf16> to vector<1x81x128xbf16>
      tpu.vector_store %arg8[%c1_169, %c81_170, %c0_171], %193 {strides = array<i32>} : memref<4x178x128xbf16, #tpu.memory_space<vmem>>, vector<1x81x128xbf16>,
      %c1_172 = arith.constant 1 : index
      %c2_173 = arith.constant 2 : index
      %c0_174 = arith.constant 0 : index
      %c0_175 = arith.constant 0 : index
      %194 = vector.load %arg2[%c1_172, %c2_173, %c0_174, %c0_175] : memref<2x4x81x128xf32, #tpu.memory_space<vmem>>, vector<1x1x81x128xf32>
      %195 = vector.shape_cast %194 : vector<1x1x81x128xf32> to vector<81x128xf32>
      %196 = vector.broadcast %122 : vector<1x128xf32> to vector<81x128xf32>
      %197 = arith.mulf %195, %196 : vector<81x128xf32>
      %198 = arith.addf %197, %127 : vector<81x128xf32>
      %cst_176 = arith.constant 0.000000e+00 : f32
      %199 = vector.broadcast %cst_176 : f32 to vector<81x128xf32>
      %200 = arith.maximumf %198, %199 : vector<81x128xf32>
      %201 = arith.truncf %200 : vector<81x128xf32> to vector<81x128xbf16>
      %c2_177 = arith.constant 2 : index
      %c81_178 = arith.constant 81 : index
      %c0_179 = arith.constant 0 : index
      %202 = vector.load %arg8[%c2_177, %c81_178, %c0_179] : memref<4x178x128xbf16, #tpu.memory_space<vmem>>, vector<1x81x128xbf16>
      %203 = vector.shape_cast %202 : vector<1x81x128xbf16> to vector<81x128xbf16>
      %204 = vector.shape_cast %201 : vector<81x128xbf16> to vector<1x81x128xbf16>
      tpu.vector_store %arg8[%c2_177, %c81_178, %c0_179], %204 {strides = array<i32>} : memref<4x178x128xbf16, #tpu.memory_space<vmem>>, vector<1x81x128xbf16>,
      %c1_180 = arith.constant 1 : index
      %c3_181 = arith.constant 3 : index
      %c0_182 = arith.constant 0 : index
      %c0_183 = arith.constant 0 : index
      %205 = vector.load %arg2[%c1_180, %c3_181, %c0_182, %c0_183] : memref<2x4x81x128xf32, #tpu.memory_space<vmem>>, vector<1x1x81x128xf32>
      %206 = vector.shape_cast %205 : vector<1x1x81x128xf32> to vector<81x128xf32>
      %207 = vector.broadcast %122 : vector<1x128xf32> to vector<81x128xf32>
      %208 = arith.mulf %206, %207 : vector<81x128xf32>
      %209 = arith.addf %208, %127 : vector<81x128xf32>
      %cst_184 = arith.constant 0.000000e+00 : f32
      %210 = vector.broadcast %cst_184 : f32 to vector<81x128xf32>
      %211 = arith.maximumf %209, %210 : vector<81x128xf32>
      %212 = arith.truncf %211 : vector<81x128xf32> to vector<81x128xbf16>
      %c3_185 = arith.constant 3 : index
      %c81_186 = arith.constant 81 : index
      %c0_187 = arith.constant 0 : index
      %213 = vector.load %arg8[%c3_185, %c81_186, %c0_187] : memref<4x178x128xbf16, #tpu.memory_space<vmem>>, vector<1x81x128xbf16>
      %214 = vector.shape_cast %213 : vector<1x81x128xbf16> to vector<81x128xbf16>
      %215 = vector.shape_cast %212 : vector<81x128xbf16> to vector<1x81x128xbf16>
      tpu.vector_store %arg8[%c3_185, %c81_186, %c0_187], %215 {strides = array<i32>} : memref<4x178x128xbf16, #tpu.memory_space<vmem>>, vector<1x81x128xbf16>,
    } else {
    }
    %c3 = arith.constant 3 : index
    %c0 = arith.constant 0 : index
    %c0_1 = arith.constant 0 : index
    %3 = vector.load %arg8[%c3, %c0, %c0_1] : memref<4x178x128xbf16, #tpu.memory_space<vmem>>, vector<1x162x128xbf16>
    %4 = vector.shape_cast %3 : vector<1x162x128xbf16> to vector<162x128xbf16>
    %c0_2 = arith.constant 0 : index
    %c0_3 = arith.constant 0 : index
    %c0_4 = arith.constant 0 : index
    %5 = vector.load %arg6[%c0_2, %c0_3, %c0_4] : memref<9x128x128xbf16, #tpu.memory_space<vmem>>, vector<1x128x128xbf16>
    %6 = vector.shape_cast %5 : vector<1x128x128xbf16> to vector<128x128xbf16>
    %cst = arith.constant dense<0.000000e+00> : vector<162x128xf32>
    %7 = tpu.matmul %4, %6, %cst {dimension_numbers = #tpu.dot_dimension_numbers<[1], [0], [0], [1], [0, 0, 1, 1], [], []>} : vector<162x128xbf16>, vector<128x128xbf16>, vector<162x128xf32> -> vector<162x128xf32>
    %c2 = arith.constant 2 : index
    %c1 = arith.constant 1 : index
    %c0_5 = arith.constant 0 : index
    %8 = vector.load %arg8[%c2, %c1, %c0_5] : memref<4x178x128xbf16, #tpu.memory_space<vmem>>, vector<1x162x128xbf16>
    %9 = vector.shape_cast %8 : vector<1x162x128xbf16> to vector<162x128xbf16>
    %c1_6 = arith.constant 1 : index
    %c0_7 = arith.constant 0 : index
    %c0_8 = arith.constant 0 : index
    %10 = vector.load %arg6[%c1_6, %c0_7, %c0_8] : memref<9x128x128xbf16, #tpu.memory_space<vmem>>, vector<1x128x128xbf16>
    %11 = vector.shape_cast %10 : vector<1x128x128xbf16> to vector<128x128xbf16>
    %cst_9 = arith.constant dense<0.000000e+00> : vector<162x128xf32>
    %12 = tpu.matmul %9, %11, %cst_9 {dimension_numbers = #tpu.dot_dimension_numbers<[1], [0], [0], [1], [0, 0, 1, 1], [], []>} : vector<162x128xbf16>, vector<128x128xbf16>, vector<162x128xf32> -> vector<162x128xf32>
    %13 = arith.addf %7, %12 : vector<162x128xf32>
    %c3_10 = arith.constant 3 : index
    %c1_11 = arith.constant 1 : index
    %c0_12 = arith.constant 0 : index
    %14 = vector.load %arg8[%c3_10, %c1_11, %c0_12] : memref<4x178x128xbf16, #tpu.memory_space<vmem>>, vector<1x162x128xbf16>
    %15 = vector.shape_cast %14 : vector<1x162x128xbf16> to vector<162x128xbf16>
    %c2_13 = arith.constant 2 : index
    %c0_14 = arith.constant 0 : index
    %c0_15 = arith.constant 0 : index
    %16 = vector.load %arg6[%c2_13, %c0_14, %c0_15] : memref<9x128x128xbf16, #tpu.memory_space<vmem>>, vector<1x128x128xbf16>
    %17 = vector.shape_cast %16 : vector<1x128x128xbf16> to vector<128x128xbf16>
    %cst_16 = arith.constant dense<0.000000e+00> : vector<162x128xf32>
    %18 = tpu.matmul %15, %17, %cst_16 {dimension_numbers = #tpu.dot_dimension_numbers<[1], [0], [0], [1], [0, 0, 1, 1], [], []>} : vector<162x128xbf16>, vector<128x128xbf16>, vector<162x128xf32> -> vector<162x128xf32>
    %19 = arith.addf %13, %18 : vector<162x128xf32>
    %c1_17 = arith.constant 1 : index
    %c9 = arith.constant 9 : index
    %c0_18 = arith.constant 0 : index
    %20 = vector.load %arg8[%c1_17, %c9, %c0_18] : memref<4x178x128xbf16, #tpu.memory_space<vmem>>, vector<1x162x128xbf16>
    %21 = vector.shape_cast %20 : vector<1x162x128xbf16> to vector<162x128xbf16>
    %c3_19 = arith.constant 3 : index
    %c0_20 = arith.constant 0 : index
    %c0_21 = arith.constant 0 : index
    %22 = vector.load %arg6[%c3_19, %c0_20, %c0_21] : memref<9x128x128xbf16, #tpu.memory_space<vmem>>, vector<1x128x128xbf16>
    %23 = vector.shape_cast %22 : vector<1x128x128xbf16> to vector<128x128xbf16>
    %cst_22 = arith.constant dense<0.000000e+00> : vector<162x128xf32>
    %24 = tpu.matmul %21, %23, %cst_22 {dimension_numbers = #tpu.dot_dimension_numbers<[1], [0], [0], [1], [0, 0, 1, 1], [], []>} : vector<162x128xbf16>, vector<128x128xbf16>, vector<162x128xf32> -> vector<162x128xf32>
    %25 = arith.addf %19, %24 : vector<162x128xf32>
    %c0_23 = arith.constant 0 : index
    %c10 = arith.constant 10 : index
    %c0_24 = arith.constant 0 : index
    %26 = vector.load %arg8[%c0_23, %c10, %c0_24] : memref<4x178x128xbf16, #tpu.memory_space<vmem>>, vector<1x162x128xbf16>
    %27 = vector.shape_cast %26 : vector<1x162x128xbf16> to vector<162x128xbf16>
    %c4 = arith.constant 4 : index
    %c0_25 = arith.constant 0 : index
    %c0_26 = arith.constant 0 : index
    %28 = vector.load %arg6[%c4, %c0_25, %c0_26] : memref<9x128x128xbf16, #tpu.memory_space<vmem>>, vector<1x128x128xbf16>
    %29 = vector.shape_cast %28 : vector<1x128x128xbf16> to vector<128x128xbf16>
    %cst_27 = arith.constant dense<0.000000e+00> : vector<162x128xf32>
    %30 = tpu.matmul %27, %29, %cst_27 {dimension_numbers = #tpu.dot_dimension_numbers<[1], [0], [0], [1], [0, 0, 1, 1], [], []>} : vector<162x128xbf16>, vector<128x128xbf16>, vector<162x128xf32> -> vector<162x128xf32>
    %31 = arith.addf %25, %30 : vector<162x128xf32>
    %c1_28 = arith.constant 1 : index
    %c10_29 = arith.constant 10 : index
    %c0_30 = arith.constant 0 : index
    %32 = vector.load %arg8[%c1_28, %c10_29, %c0_30] : memref<4x178x128xbf16, #tpu.memory_space<vmem>>, vector<1x162x128xbf16>
    %33 = vector.shape_cast %32 : vector<1x162x128xbf16> to vector<162x128xbf16>
    %c5 = arith.constant 5 : index
    %c0_31 = arith.constant 0 : index
    %c0_32 = arith.constant 0 : index
    %34 = vector.load %arg6[%c5, %c0_31, %c0_32] : memref<9x128x128xbf16, #tpu.memory_space<vmem>>, vector<1x128x128xbf16>
    %35 = vector.shape_cast %34 : vector<1x128x128xbf16> to vector<128x128xbf16>
    %cst_33 = arith.constant dense<0.000000e+00> : vector<162x128xf32>
    %36 = tpu.matmul %33, %35, %cst_33 {dimension_numbers = #tpu.dot_dimension_numbers<[1], [0], [0], [1], [0, 0, 1, 1], [], []>} : vector<162x128xbf16>, vector<128x128xbf16>, vector<162x128xf32> -> vector<162x128xf32>
    %37 = arith.addf %31, %36 : vector<162x128xf32>
    %c3_34 = arith.constant 3 : index
    %c9_35 = arith.constant 9 : index
    %c0_36 = arith.constant 0 : index
    %38 = vector.load %arg8[%c3_34, %c9_35, %c0_36] : memref<4x178x128xbf16, #tpu.memory_space<vmem>>, vector<1x162x128xbf16>
    %39 = vector.shape_cast %38 : vector<1x162x128xbf16> to vector<162x128xbf16>
    %c6 = arith.constant 6 : index
    %c0_37 = arith.constant 0 : index
    %c0_38 = arith.constant 0 : index
    %40 = vector.load %arg6[%c6, %c0_37, %c0_38] : memref<9x128x128xbf16, #tpu.memory_space<vmem>>, vector<1x128x128xbf16>
    %41 = vector.shape_cast %40 : vector<1x128x128xbf16> to vector<128x128xbf16>
    %cst_39 = arith.constant dense<0.000000e+00> : vector<162x128xf32>
    %42 = tpu.matmul %39, %41, %cst_39 {dimension_numbers = #tpu.dot_dimension_numbers<[1], [0], [0], [1], [0, 0, 1, 1], [], []>} : vector<162x128xbf16>, vector<128x128xbf16>, vector<162x128xf32> -> vector<162x128xf32>
    %43 = arith.addf %37, %42 : vector<162x128xf32>
    %c2_40 = arith.constant 2 : index
    %c10_41 = arith.constant 10 : index
    %c0_42 = arith.constant 0 : index
    %44 = vector.load %arg8[%c2_40, %c10_41, %c0_42] : memref<4x178x128xbf16, #tpu.memory_space<vmem>>, vector<1x162x128xbf16>
    %45 = vector.shape_cast %44 : vector<1x162x128xbf16> to vector<162x128xbf16>
    %c7 = arith.constant 7 : index
    %c0_43 = arith.constant 0 : index
    %c0_44 = arith.constant 0 : index
    %46 = vector.load %arg6[%c7, %c0_43, %c0_44] : memref<9x128x128xbf16, #tpu.memory_space<vmem>>, vector<1x128x128xbf16>
    %47 = vector.shape_cast %46 : vector<1x128x128xbf16> to vector<128x128xbf16>
    %cst_45 = arith.constant dense<0.000000e+00> : vector<162x128xf32>
    %48 = tpu.matmul %45, %47, %cst_45 {dimension_numbers = #tpu.dot_dimension_numbers<[1], [0], [0], [1], [0, 0, 1, 1], [], []>} : vector<162x128xbf16>, vector<128x128xbf16>, vector<162x128xf32> -> vector<162x128xf32>
    %49 = arith.addf %43, %48 : vector<162x128xf32>
    %c3_46 = arith.constant 3 : index
    %c10_47 = arith.constant 10 : index
    %c0_48 = arith.constant 0 : index
    %50 = vector.load %arg8[%c3_46, %c10_47, %c0_48] : memref<4x178x128xbf16, #tpu.memory_space<vmem>>, vector<1x162x128xbf16>
    %51 = vector.shape_cast %50 : vector<1x162x128xbf16> to vector<162x128xbf16>
    %c8 = arith.constant 8 : index
    %c0_49 = arith.constant 0 : index
    %c0_50 = arith.constant 0 : index
    %52 = vector.load %arg6[%c8, %c0_49, %c0_50] : memref<9x128x128xbf16, #tpu.memory_space<vmem>>, vector<1x128x128xbf16>
    %53 = vector.shape_cast %52 : vector<1x128x128xbf16> to vector<128x128xbf16>
    %cst_51 = arith.constant dense<0.000000e+00> : vector<162x128xf32>
    %54 = tpu.matmul %51, %53, %cst_51 {dimension_numbers = #tpu.dot_dimension_numbers<[1], [0], [0], [1], [0, 0, 1, 1], [], []>} : vector<162x128xbf16>, vector<128x128xbf16>, vector<162x128xf32> -> vector<162x128xf32>
    %55 = arith.addf %49, %54 : vector<162x128xf32>
    %56 = vector.extract_strided_slice %55 {offsets = [0, 0], sizes = [8, 128], strides = [1, 1]} : vector<162x128xf32> to vector<8x128xf32>
    %c0_52 = arith.constant 0 : index
    %c0_53 = arith.constant 0 : index
    %c0_54 = arith.constant 0 : index
    %c0_55 = arith.constant 0 : index
    %57 = vector.load %arg7[%c0_52, %c0_53, %c0_54, %c0_55] : memref<2x8x8x128xf32, #tpu.memory_space<vmem>>, vector<1x1x8x128xf32>
    %58 = vector.shape_cast %57 : vector<1x1x8x128xf32> to vector<8x128xf32>
    %59 = vector.shape_cast %56 : vector<8x128xf32> to vector<1x1x8x128xf32>
    tpu.vector_store %arg7[%c0_52, %c0_53, %c0_54, %c0_55], %59 {strides = array<i32>} : memref<2x8x8x128xf32, #tpu.memory_space<vmem>>, vector<1x1x8x128xf32>,
    %60 = vector.extract_strided_slice %55 {offsets = [9, 0], sizes = [8, 128], strides = [1, 1]} : vector<162x128xf32> to vector<8x128xf32>
    %c0_56 = arith.constant 0 : index
    %c1_57 = arith.constant 1 : index
    %c0_58 = arith.constant 0 : index
    %c0_59 = arith.constant 0 : index
    %61 = vector.load %arg7[%c0_56, %c1_57, %c0_58, %c0_59] : memref<2x8x8x128xf32, #tpu.memory_space<vmem>>, vector<1x1x8x128xf32>
    %62 = vector.shape_cast %61 : vector<1x1x8x128xf32> to vector<8x128xf32>
    %63 = vector.shape_cast %60 : vector<8x128xf32> to vector<1x1x8x128xf32>
    tpu.vector_store %arg7[%c0_56, %c1_57, %c0_58, %c0_59], %63 {strides = array<i32>} : memref<2x8x8x128xf32, #tpu.memory_space<vmem>>, vector<1x1x8x128xf32>,
    %64 = vector.extract_strided_slice %55 {offsets = [18, 0], sizes = [8, 128], strides = [1, 1]} : vector<162x128xf32> to vector<8x128xf32>
    %c0_60 = arith.constant 0 : index
    %c2_61 = arith.constant 2 : index
    %c0_62 = arith.constant 0 : index
    %c0_63 = arith.constant 0 : index
    %65 = vector.load %arg7[%c0_60, %c2_61, %c0_62, %c0_63] : memref<2x8x8x128xf32, #tpu.memory_space<vmem>>, vector<1x1x8x128xf32>
    %66 = vector.shape_cast %65 : vector<1x1x8x128xf32> to vector<8x128xf32>
    %67 = vector.shape_cast %64 : vector<8x128xf32> to vector<1x1x8x128xf32>
    tpu.vector_store %arg7[%c0_60, %c2_61, %c0_62, %c0_63], %67 {strides = array<i32>} : memref<2x8x8x128xf32, #tpu.memory_space<vmem>>, vector<1x1x8x128xf32>,
    %68 = vector.extract_strided_slice %55 {offsets = [27, 0], sizes = [8, 128], strides = [1, 1]} : vector<162x128xf32> to vector<8x128xf32>
    %c0_64 = arith.constant 0 : index
    %c3_65 = arith.constant 3 : index
    %c0_66 = arith.constant 0 : index
    %c0_67 = arith.constant 0 : index
    %69 = vector.load %arg7[%c0_64, %c3_65, %c0_66, %c0_67] : memref<2x8x8x128xf32, #tpu.memory_space<vmem>>, vector<1x1x8x128xf32>
    %70 = vector.shape_cast %69 : vector<1x1x8x128xf32> to vector<8x128xf32>
    %71 = vector.shape_cast %68 : vector<8x128xf32> to vector<1x1x8x128xf32>
    tpu.vector_store %arg7[%c0_64, %c3_65, %c0_66, %c0_67], %71 {strides = array<i32>} : memref<2x8x8x128xf32, #tpu.memory_space<vmem>>, vector<1x1x8x128xf32>,
    %72 = vector.extract_strided_slice %55 {offsets = [36, 0], sizes = [8, 128], strides = [1, 1]} : vector<162x128xf32> to vector<8x128xf32>
    %c0_68 = arith.constant 0 : index
    %c4_69 = arith.constant 4 : index
    %c0_70 = arith.constant 0 : index
    %c0_71 = arith.constant 0 : index
    %73 = vector.load %arg7[%c0_68, %c4_69, %c0_70, %c0_71] : memref<2x8x8x128xf32, #tpu.memory_space<vmem>>, vector<1x1x8x128xf32>
    %74 = vector.shape_cast %73 : vector<1x1x8x128xf32> to vector<8x128xf32>
    %75 = vector.shape_cast %72 : vector<8x128xf32> to vector<1x1x8x128xf32>
    tpu.vector_store %arg7[%c0_68, %c4_69, %c0_70, %c0_71], %75 {strides = array<i32>} : memref<2x8x8x128xf32, #tpu.memory_space<vmem>>, vector<1x1x8x128xf32>,
    %76 = vector.extract_strided_slice %55 {offsets = [45, 0], sizes = [8, 128], strides = [1, 1]} : vector<162x128xf32> to vector<8x128xf32>
    %c0_72 = arith.constant 0 : index
    %c5_73 = arith.constant 5 : index
    %c0_74 = arith.constant 0 : index
    %c0_75 = arith.constant 0 : index
    %77 = vector.load %arg7[%c0_72, %c5_73, %c0_74, %c0_75] : memref<2x8x8x128xf32, #tpu.memory_space<vmem>>, vector<1x1x8x128xf32>
    %78 = vector.shape_cast %77 : vector<1x1x8x128xf32> to vector<8x128xf32>
    %79 = vector.shape_cast %76 : vector<8x128xf32> to vector<1x1x8x128xf32>
    tpu.vector_store %arg7[%c0_72, %c5_73, %c0_74, %c0_75], %79 {strides = array<i32>} : memref<2x8x8x128xf32, #tpu.memory_space<vmem>>, vector<1x1x8x128xf32>,
    %80 = vector.extract_strided_slice %55 {offsets = [54, 0], sizes = [8, 128], strides = [1, 1]} : vector<162x128xf32> to vector<8x128xf32>
    %c0_76 = arith.constant 0 : index
    %c6_77 = arith.constant 6 : index
    %c0_78 = arith.constant 0 : index
    %c0_79 = arith.constant 0 : index
    %81 = vector.load %arg7[%c0_76, %c6_77, %c0_78, %c0_79] : memref<2x8x8x128xf32, #tpu.memory_space<vmem>>, vector<1x1x8x128xf32>
    %82 = vector.shape_cast %81 : vector<1x1x8x128xf32> to vector<8x128xf32>
    %83 = vector.shape_cast %80 : vector<8x128xf32> to vector<1x1x8x128xf32>
    tpu.vector_store %arg7[%c0_76, %c6_77, %c0_78, %c0_79], %83 {strides = array<i32>} : memref<2x8x8x128xf32, #tpu.memory_space<vmem>>, vector<1x1x8x128xf32>,
    %84 = vector.extract_strided_slice %55 {offsets = [63, 0], sizes = [8, 128], strides = [1, 1]} : vector<162x128xf32> to vector<8x128xf32>
    %c0_80 = arith.constant 0 : index
    %c7_81 = arith.constant 7 : index
    %c0_82 = arith.constant 0 : index
    %c0_83 = arith.constant 0 : index
    %85 = vector.load %arg7[%c0_80, %c7_81, %c0_82, %c0_83] : memref<2x8x8x128xf32, #tpu.memory_space<vmem>>, vector<1x1x8x128xf32>
    %86 = vector.shape_cast %85 : vector<1x1x8x128xf32> to vector<8x128xf32>
    %87 = vector.shape_cast %84 : vector<8x128xf32> to vector<1x1x8x128xf32>
    tpu.vector_store %arg7[%c0_80, %c7_81, %c0_82, %c0_83], %87 {strides = array<i32>} : memref<2x8x8x128xf32, #tpu.memory_space<vmem>>, vector<1x1x8x128xf32>,
    %88 = vector.extract_strided_slice %55 {offsets = [81, 0], sizes = [8, 128], strides = [1, 1]} : vector<162x128xf32> to vector<8x128xf32>
    %c1_84 = arith.constant 1 : index
    %c0_85 = arith.constant 0 : index
    %c0_86 = arith.constant 0 : index
    %c0_87 = arith.constant 0 : index
    %89 = vector.load %arg7[%c1_84, %c0_85, %c0_86, %c0_87] : memref<2x8x8x128xf32, #tpu.memory_space<vmem>>, vector<1x1x8x128xf32>
    %90 = vector.shape_cast %89 : vector<1x1x8x128xf32> to vector<8x128xf32>
    %91 = vector.shape_cast %88 : vector<8x128xf32> to vector<1x1x8x128xf32>
    tpu.vector_store %arg7[%c1_84, %c0_85, %c0_86, %c0_87], %91 {strides = array<i32>} : memref<2x8x8x128xf32, #tpu.memory_space<vmem>>, vector<1x1x8x128xf32>,
    %92 = vector.extract_strided_slice %55 {offsets = [90, 0], sizes = [8, 128], strides = [1, 1]} : vector<162x128xf32> to vector<8x128xf32>
    %c1_88 = arith.constant 1 : index
    %c1_89 = arith.constant 1 : index
    %c0_90 = arith.constant 0 : index
    %c0_91 = arith.constant 0 : index
    %93 = vector.load %arg7[%c1_88, %c1_89, %c0_90, %c0_91] : memref<2x8x8x128xf32, #tpu.memory_space<vmem>>, vector<1x1x8x128xf32>
    %94 = vector.shape_cast %93 : vector<1x1x8x128xf32> to vector<8x128xf32>
    %95 = vector.shape_cast %92 : vector<8x128xf32> to vector<1x1x8x128xf32>
    tpu.vector_store %arg7[%c1_88, %c1_89, %c0_90, %c0_91], %95 {strides = array<i32>} : memref<2x8x8x128xf32, #tpu.memory_space<vmem>>, vector<1x1x8x128xf32>,
    %96 = vector.extract_strided_slice %55 {offsets = [99, 0], sizes = [8, 128], strides = [1, 1]} : vector<162x128xf32> to vector<8x128xf32>
    %c1_92 = arith.constant 1 : index
    %c2_93 = arith.constant 2 : index
    %c0_94 = arith.constant 0 : index
    %c0_95 = arith.constant 0 : index
    %97 = vector.load %arg7[%c1_92, %c2_93, %c0_94, %c0_95] : memref<2x8x8x128xf32, #tpu.memory_space<vmem>>, vector<1x1x8x128xf32>
    %98 = vector.shape_cast %97 : vector<1x1x8x128xf32> to vector<8x128xf32>
    %99 = vector.shape_cast %96 : vector<8x128xf32> to vector<1x1x8x128xf32>
    tpu.vector_store %arg7[%c1_92, %c2_93, %c0_94, %c0_95], %99 {strides = array<i32>} : memref<2x8x8x128xf32, #tpu.memory_space<vmem>>, vector<1x1x8x128xf32>,
    %100 = vector.extract_strided_slice %55 {offsets = [108, 0], sizes = [8, 128], strides = [1, 1]} : vector<162x128xf32> to vector<8x128xf32>
    %c1_96 = arith.constant 1 : index
    %c3_97 = arith.constant 3 : index
    %c0_98 = arith.constant 0 : index
    %c0_99 = arith.constant 0 : index
    %101 = vector.load %arg7[%c1_96, %c3_97, %c0_98, %c0_99] : memref<2x8x8x128xf32, #tpu.memory_space<vmem>>, vector<1x1x8x128xf32>
    %102 = vector.shape_cast %101 : vector<1x1x8x128xf32> to vector<8x128xf32>
    %103 = vector.shape_cast %100 : vector<8x128xf32> to vector<1x1x8x128xf32>
    tpu.vector_store %arg7[%c1_96, %c3_97, %c0_98, %c0_99], %103 {strides = array<i32>} : memref<2x8x8x128xf32, #tpu.memory_space<vmem>>, vector<1x1x8x128xf32>,
    %104 = vector.extract_strided_slice %55 {offsets = [117, 0], sizes = [8, 128], strides = [1, 1]} : vector<162x128xf32> to vector<8x128xf32>
    %c1_100 = arith.constant 1 : index
    %c4_101 = arith.constant 4 : index
    %c0_102 = arith.constant 0 : index
    %c0_103 = arith.constant 0 : index
    %105 = vector.load %arg7[%c1_100, %c4_101, %c0_102, %c0_103] : memref<2x8x8x128xf32, #tpu.memory_space<vmem>>, vector<1x1x8x128xf32>
    %106 = vector.shape_cast %105 : vector<1x1x8x128xf32> to vector<8x128xf32>
    %107 = vector.shape_cast %104 : vector<8x128xf32> to vector<1x1x8x128xf32>
    tpu.vector_store %arg7[%c1_100, %c4_101, %c0_102, %c0_103], %107 {strides = array<i32>} : memref<2x8x8x128xf32, #tpu.memory_space<vmem>>, vector<1x1x8x128xf32>,
    %108 = vector.extract_strided_slice %55 {offsets = [126, 0], sizes = [8, 128], strides = [1, 1]} : vector<162x128xf32> to vector<8x128xf32>
    %c1_104 = arith.constant 1 : index
    %c5_105 = arith.constant 5 : index
    %c0_106 = arith.constant 0 : index
    %c0_107 = arith.constant 0 : index
    %109 = vector.load %arg7[%c1_104, %c5_105, %c0_106, %c0_107] : memref<2x8x8x128xf32, #tpu.memory_space<vmem>>, vector<1x1x8x128xf32>
    %110 = vector.shape_cast %109 : vector<1x1x8x128xf32> to vector<8x128xf32>
    %111 = vector.shape_cast %108 : vector<8x128xf32> to vector<1x1x8x128xf32>
    tpu.vector_store %arg7[%c1_104, %c5_105, %c0_106, %c0_107], %111 {strides = array<i32>} : memref<2x8x8x128xf32, #tpu.memory_space<vmem>>, vector<1x1x8x128xf32>,
    %112 = vector.extract_strided_slice %55 {offsets = [135, 0], sizes = [8, 128], strides = [1, 1]} : vector<162x128xf32> to vector<8x128xf32>
    %c1_108 = arith.constant 1 : index
    %c6_109 = arith.constant 6 : index
    %c0_110 = arith.constant 0 : index
    %c0_111 = arith.constant 0 : index
    %113 = vector.load %arg7[%c1_108, %c6_109, %c0_110, %c0_111] : memref<2x8x8x128xf32, #tpu.memory_space<vmem>>, vector<1x1x8x128xf32>
    %114 = vector.shape_cast %113 : vector<1x1x8x128xf32> to vector<8x128xf32>
    %115 = vector.shape_cast %112 : vector<8x128xf32> to vector<1x1x8x128xf32>
    tpu.vector_store %arg7[%c1_108, %c6_109, %c0_110, %c0_111], %115 {strides = array<i32>} : memref<2x8x8x128xf32, #tpu.memory_space<vmem>>, vector<1x1x8x128xf32>,
    %116 = vector.extract_strided_slice %55 {offsets = [144, 0], sizes = [8, 128], strides = [1, 1]} : vector<162x128xf32> to vector<8x128xf32>
    %c1_112 = arith.constant 1 : index
    %c7_113 = arith.constant 7 : index
    %c0_114 = arith.constant 0 : index
    %c0_115 = arith.constant 0 : index
    %117 = vector.load %arg7[%c1_112, %c7_113, %c0_114, %c0_115] : memref<2x8x8x128xf32, #tpu.memory_space<vmem>>, vector<1x1x8x128xf32>
    %118 = vector.shape_cast %117 : vector<1x1x8x128xf32> to vector<8x128xf32>
    %119 = vector.shape_cast %116 : vector<8x128xf32> to vector<1x1x8x128xf32>
    tpu.vector_store %arg7[%c1_112, %c7_113, %c0_114, %c0_115], %119 {strides = array<i32>} : memref<2x8x8x128xf32, #tpu.memory_space<vmem>>, vector<1x1x8x128xf32>,
    return
  }
  func.func @transform_0(%arg0: i32, %arg1: i32) -> (i32, i32, i32, i32) {
    %c0_i32 = arith.constant 0 : i32
    %c0_i32_0 = arith.constant 0 : i32
    %c0_i32_1 = arith.constant 0 : i32
    %c0_i32_2 = arith.constant 0 : i32
    return %arg0, %c0_i32, %c0_i32_0, %c0_i32_1 : i32, i32, i32, i32
  }
  func.func @transform_1(%arg0: i32, %arg1: i32) -> (i32, i32) {
    %c0_i32 = arith.constant 0 : i32
    %c0_i32_0 = arith.constant 0 : i32
    %c0_i32_1 = arith.constant 0 : i32
    return %c0_i32, %c0_i32_0 : i32, i32
  }
  func.func @transform_2(%arg0: i32, %arg1: i32) -> (i32, i32) {
    %c0_i32 = arith.constant 0 : i32
    %c0_i32_0 = arith.constant 0 : i32
    %c0_i32_1 = arith.constant 0 : i32
    return %c0_i32, %c0_i32_0 : i32, i32
  }
  func.func @transform_3(%arg0: i32, %arg1: i32) -> (i32, i32) {
    %c0_i32 = arith.constant 0 : i32
    %c0_i32_0 = arith.constant 0 : i32
    %c0_i32_1 = arith.constant 0 : i32
    return %c0_i32, %c0_i32_0 : i32, i32
  }
  func.func @transform_4(%arg0: i32, %arg1: i32) -> (i32, i32, i32) {
    %c0_i32 = arith.constant 0 : i32
    %c0_i32_0 = arith.constant 0 : i32
    %c0_i32_1 = arith.constant 0 : i32
    return %c0_i32, %c0_i32_0, %arg1 : i32, i32, i32
  }
  func.func @transform_5(%arg0: i32, %arg1: i32) -> (i32, i32, i32, i32) {
    %c0_i32 = arith.constant 0 : i32
    %c0_i32_0 = arith.constant 0 : i32
    %c0_i32_1 = arith.constant 0 : i32
    return %arg0, %c0_i32, %c0_i32_0, %arg1 : i32, i32, i32, i32
  }
}

module attributes {stable_mosaic.version = 11 : i64} {
  func.func @kernel(%arg0: i32, %arg1: i32, %arg2: memref<2x1x100x128xf32, #tpu.memory_space<vmem>>, %arg3: memref<1x128xf32, #tpu.memory_space<vmem>>, %arg4: memref<1x128xf32, #tpu.memory_space<vmem>>, %arg5: memref<100x1xf32, #tpu.memory_space<vmem>>, %arg6: memref<9x128x128xbf16, #tpu.memory_space<vmem>>, %arg7: memref<2x8x8x128xf32, #tpu.memory_space<vmem>>, %arg8: memref<1x224x128xbf16, #tpu.memory_space<vmem>>) attributes {dimension_semantics = [#tpu.dimension_semantics<parallel>, #tpu.dimension_semantics<arbitrary>], iteration_bounds = array<i64: 1, 1>, scalar_prefetch = 0 : i64, scratch_operands = 1 : i64, tpu.core_type = #tpu.core_type<tc>, window_params = [{transform_indices = @transform_0, window_bounds = array<i64: 2, 1, 100, 128>}, {pipeline_mode = #tpu.pipeline_mode<synchronous>, transform_indices = @transform_1, window_bounds = array<i64: 1, 128>}, {pipeline_mode = #tpu.pipeline_mode<synchronous>, transform_indices = @transform_2, window_bounds = array<i64: 1, 128>}, {pipeline_mode = #tpu.pipeline_mode<synchronous>, transform_indices = @transform_3, window_bounds = array<i64: 100, 1>}, {transform_indices = @transform_4, window_bounds = array<i64: 9, 128, 128>}, {transform_indices = @transform_5, window_bounds = array<i64: 2, 8, 8, 128>}]} {
    %c0_i32 = arith.constant 0 : i32
    %0 = arith.cmpi eq, %arg1, %c0_i32 : i32
    %1 = arith.extui %0 : i1 to i32
    %c0_i32_0 = arith.constant 0 : i32
    %2 = arith.cmpi ne, %1, %c0_i32_0 : i32
    scf.if %2 {
      %cst_112 = arith.constant 0.000000e+00 : bf16
      %120 = vector.broadcast %cst_112 : bf16 to vector<1x24x128xbf16>
      %c0_113 = arith.constant 0 : index
      %c200 = arith.constant 200 : index
      %c0_114 = arith.constant 0 : index
      %121 = vector.load %arg8[%c0_113, %c200, %c0_114] : memref<1x224x128xbf16, #tpu.memory_space<vmem>>, vector<1x24x128xbf16>
      tpu.vector_store %arg8[%c0_113, %c200, %c0_114], %120 {strides = array<i32>} : memref<1x224x128xbf16, #tpu.memory_space<vmem>>, vector<1x24x128xbf16>,
      %c0_115 = arith.constant 0 : index
      %c0_116 = arith.constant 0 : index
      %122 = vector.load %arg3[%c0_115, %c0_116] : memref<1x128xf32, #tpu.memory_space<vmem>>, vector<1x128xf32>
      %c0_117 = arith.constant 0 : index
      %c0_118 = arith.constant 0 : index
      %123 = vector.load %arg4[%c0_117, %c0_118] : memref<1x128xf32, #tpu.memory_space<vmem>>, vector<1x128xf32>
      %c0_119 = arith.constant 0 : index
      %c0_120 = arith.constant 0 : index
      %124 = vector.load %arg5[%c0_119, %c0_120] : memref<100x1xf32, #tpu.memory_space<vmem>>, vector<100x1xf32>
      %125 = vector.broadcast %123 : vector<1x128xf32> to vector<100x128xf32>
      %126 = vector.broadcast %124 : vector<100x1xf32> to vector<100x128xf32>
      %127 = arith.mulf %125, %126 : vector<100x128xf32>
      %c0_121 = arith.constant 0 : index
      %c0_122 = arith.constant 0 : index
      %c0_123 = arith.constant 0 : index
      %c0_124 = arith.constant 0 : index
      %128 = vector.load %arg2[%c0_121, %c0_122, %c0_123, %c0_124] : memref<2x1x100x128xf32, #tpu.memory_space<vmem>>, vector<1x1x100x128xf32>
      %129 = vector.shape_cast %128 : vector<1x1x100x128xf32> to vector<100x128xf32>
      %130 = vector.broadcast %122 : vector<1x128xf32> to vector<100x128xf32>
      %131 = arith.mulf %129, %130 : vector<100x128xf32>
      %132 = arith.addf %131, %127 : vector<100x128xf32>
      %cst_125 = arith.constant 0.000000e+00 : f32
      %133 = vector.broadcast %cst_125 : f32 to vector<100x128xf32>
      %134 = arith.maximumf %132, %133 : vector<100x128xf32>
      %135 = arith.truncf %134 : vector<100x128xf32> to vector<100x128xbf16>
      %c0_126 = arith.constant 0 : index
      %c0_127 = arith.constant 0 : index
      %c0_128 = arith.constant 0 : index
      %136 = vector.load %arg8[%c0_126, %c0_127, %c0_128] : memref<1x224x128xbf16, #tpu.memory_space<vmem>>, vector<1x100x128xbf16>
      %137 = vector.shape_cast %136 : vector<1x100x128xbf16> to vector<100x128xbf16>
      %138 = vector.shape_cast %135 : vector<100x128xbf16> to vector<1x100x128xbf16>
      tpu.vector_store %arg8[%c0_126, %c0_127, %c0_128], %138 {strides = array<i32>} : memref<1x224x128xbf16, #tpu.memory_space<vmem>>, vector<1x100x128xbf16>,
      %c1_129 = arith.constant 1 : index
      %c0_130 = arith.constant 0 : index
      %c0_131 = arith.constant 0 : index
      %c0_132 = arith.constant 0 : index
      %139 = vector.load %arg2[%c1_129, %c0_130, %c0_131, %c0_132] : memref<2x1x100x128xf32, #tpu.memory_space<vmem>>, vector<1x1x100x128xf32>
      %140 = vector.shape_cast %139 : vector<1x1x100x128xf32> to vector<100x128xf32>
      %141 = vector.broadcast %122 : vector<1x128xf32> to vector<100x128xf32>
      %142 = arith.mulf %140, %141 : vector<100x128xf32>
      %143 = arith.addf %142, %127 : vector<100x128xf32>
      %cst_133 = arith.constant 0.000000e+00 : f32
      %144 = vector.broadcast %cst_133 : f32 to vector<100x128xf32>
      %145 = arith.maximumf %143, %144 : vector<100x128xf32>
      %146 = arith.truncf %145 : vector<100x128xf32> to vector<100x128xbf16>
      %c0_134 = arith.constant 0 : index
      %c100 = arith.constant 100 : index
      %c0_135 = arith.constant 0 : index
      %147 = vector.load %arg8[%c0_134, %c100, %c0_135] : memref<1x224x128xbf16, #tpu.memory_space<vmem>>, vector<1x100x128xbf16>
      %148 = vector.shape_cast %147 : vector<1x100x128xbf16> to vector<100x128xbf16>
      %149 = vector.shape_cast %146 : vector<100x128xbf16> to vector<1x100x128xbf16>
      tpu.vector_store %arg8[%c0_134, %c100, %c0_135], %149 {strides = array<i32>} : memref<1x224x128xbf16, #tpu.memory_space<vmem>>, vector<1x100x128xbf16>,
    } else {
    }
    %c0 = arith.constant 0 : index
    %c0_1 = arith.constant 0 : index
    %c0_2 = arith.constant 0 : index
    %3 = vector.load %arg8[%c0, %c0_1, %c0_2] : memref<1x224x128xbf16, #tpu.memory_space<vmem>>, vector<1x200x128xbf16>
    %4 = vector.shape_cast %3 : vector<1x200x128xbf16> to vector<200x128xbf16>
    %c0_3 = arith.constant 0 : index
    %c0_4 = arith.constant 0 : index
    %c0_5 = arith.constant 0 : index
    %5 = vector.load %arg6[%c0_3, %c0_4, %c0_5] : memref<9x128x128xbf16, #tpu.memory_space<vmem>>, vector<1x128x128xbf16>
    %6 = vector.shape_cast %5 : vector<1x128x128xbf16> to vector<128x128xbf16>
    %cst = arith.constant dense<0.000000e+00> : vector<200x128xf32>
    %7 = tpu.matmul %4, %6, %cst {dimension_numbers = #tpu.dot_dimension_numbers<[1], [0], [0], [1], [0, 0, 1, 1], [], []>} : vector<200x128xbf16>, vector<128x128xbf16>, vector<200x128xf32> -> vector<200x128xf32>
    %c0_6 = arith.constant 0 : index
    %c1 = arith.constant 1 : index
    %c0_7 = arith.constant 0 : index
    %8 = vector.load %arg8[%c0_6, %c1, %c0_7] : memref<1x224x128xbf16, #tpu.memory_space<vmem>>, vector<1x200x128xbf16>
    %9 = vector.shape_cast %8 : vector<1x200x128xbf16> to vector<200x128xbf16>
    %c1_8 = arith.constant 1 : index
    %c0_9 = arith.constant 0 : index
    %c0_10 = arith.constant 0 : index
    %10 = vector.load %arg6[%c1_8, %c0_9, %c0_10] : memref<9x128x128xbf16, #tpu.memory_space<vmem>>, vector<1x128x128xbf16>
    %11 = vector.shape_cast %10 : vector<1x128x128xbf16> to vector<128x128xbf16>
    %cst_11 = arith.constant dense<0.000000e+00> : vector<200x128xf32>
    %12 = tpu.matmul %9, %11, %cst_11 {dimension_numbers = #tpu.dot_dimension_numbers<[1], [0], [0], [1], [0, 0, 1, 1], [], []>} : vector<200x128xbf16>, vector<128x128xbf16>, vector<200x128xf32> -> vector<200x128xf32>
    %13 = arith.addf %7, %12 : vector<200x128xf32>
    %c0_12 = arith.constant 0 : index
    %c2 = arith.constant 2 : index
    %c0_13 = arith.constant 0 : index
    %14 = vector.load %arg8[%c0_12, %c2, %c0_13] : memref<1x224x128xbf16, #tpu.memory_space<vmem>>, vector<1x200x128xbf16>
    %15 = vector.shape_cast %14 : vector<1x200x128xbf16> to vector<200x128xbf16>
    %c2_14 = arith.constant 2 : index
    %c0_15 = arith.constant 0 : index
    %c0_16 = arith.constant 0 : index
    %16 = vector.load %arg6[%c2_14, %c0_15, %c0_16] : memref<9x128x128xbf16, #tpu.memory_space<vmem>>, vector<1x128x128xbf16>
    %17 = vector.shape_cast %16 : vector<1x128x128xbf16> to vector<128x128xbf16>
    %cst_17 = arith.constant dense<0.000000e+00> : vector<200x128xf32>
    %18 = tpu.matmul %15, %17, %cst_17 {dimension_numbers = #tpu.dot_dimension_numbers<[1], [0], [0], [1], [0, 0, 1, 1], [], []>} : vector<200x128xbf16>, vector<128x128xbf16>, vector<200x128xf32> -> vector<200x128xf32>
    %19 = arith.addf %13, %18 : vector<200x128xf32>
    %c0_18 = arith.constant 0 : index
    %c10 = arith.constant 10 : index
    %c0_19 = arith.constant 0 : index
    %20 = vector.load %arg8[%c0_18, %c10, %c0_19] : memref<1x224x128xbf16, #tpu.memory_space<vmem>>, vector<1x200x128xbf16>
    %21 = vector.shape_cast %20 : vector<1x200x128xbf16> to vector<200x128xbf16>
    %c3 = arith.constant 3 : index
    %c0_20 = arith.constant 0 : index
    %c0_21 = arith.constant 0 : index
    %22 = vector.load %arg6[%c3, %c0_20, %c0_21] : memref<9x128x128xbf16, #tpu.memory_space<vmem>>, vector<1x128x128xbf16>
    %23 = vector.shape_cast %22 : vector<1x128x128xbf16> to vector<128x128xbf16>
    %cst_22 = arith.constant dense<0.000000e+00> : vector<200x128xf32>
    %24 = tpu.matmul %21, %23, %cst_22 {dimension_numbers = #tpu.dot_dimension_numbers<[1], [0], [0], [1], [0, 0, 1, 1], [], []>} : vector<200x128xbf16>, vector<128x128xbf16>, vector<200x128xf32> -> vector<200x128xf32>
    %25 = arith.addf %19, %24 : vector<200x128xf32>
    %c0_23 = arith.constant 0 : index
    %c11 = arith.constant 11 : index
    %c0_24 = arith.constant 0 : index
    %26 = vector.load %arg8[%c0_23, %c11, %c0_24] : memref<1x224x128xbf16, #tpu.memory_space<vmem>>, vector<1x200x128xbf16>
    %27 = vector.shape_cast %26 : vector<1x200x128xbf16> to vector<200x128xbf16>
    %c4 = arith.constant 4 : index
    %c0_25 = arith.constant 0 : index
    %c0_26 = arith.constant 0 : index
    %28 = vector.load %arg6[%c4, %c0_25, %c0_26] : memref<9x128x128xbf16, #tpu.memory_space<vmem>>, vector<1x128x128xbf16>
    %29 = vector.shape_cast %28 : vector<1x128x128xbf16> to vector<128x128xbf16>
    %cst_27 = arith.constant dense<0.000000e+00> : vector<200x128xf32>
    %30 = tpu.matmul %27, %29, %cst_27 {dimension_numbers = #tpu.dot_dimension_numbers<[1], [0], [0], [1], [0, 0, 1, 1], [], []>} : vector<200x128xbf16>, vector<128x128xbf16>, vector<200x128xf32> -> vector<200x128xf32>
    %31 = arith.addf %25, %30 : vector<200x128xf32>
    %c0_28 = arith.constant 0 : index
    %c12 = arith.constant 12 : index
    %c0_29 = arith.constant 0 : index
    %32 = vector.load %arg8[%c0_28, %c12, %c0_29] : memref<1x224x128xbf16, #tpu.memory_space<vmem>>, vector<1x200x128xbf16>
    %33 = vector.shape_cast %32 : vector<1x200x128xbf16> to vector<200x128xbf16>
    %c5 = arith.constant 5 : index
    %c0_30 = arith.constant 0 : index
    %c0_31 = arith.constant 0 : index
    %34 = vector.load %arg6[%c5, %c0_30, %c0_31] : memref<9x128x128xbf16, #tpu.memory_space<vmem>>, vector<1x128x128xbf16>
    %35 = vector.shape_cast %34 : vector<1x128x128xbf16> to vector<128x128xbf16>
    %cst_32 = arith.constant dense<0.000000e+00> : vector<200x128xf32>
    %36 = tpu.matmul %33, %35, %cst_32 {dimension_numbers = #tpu.dot_dimension_numbers<[1], [0], [0], [1], [0, 0, 1, 1], [], []>} : vector<200x128xbf16>, vector<128x128xbf16>, vector<200x128xf32> -> vector<200x128xf32>
    %37 = arith.addf %31, %36 : vector<200x128xf32>
    %c0_33 = arith.constant 0 : index
    %c20 = arith.constant 20 : index
    %c0_34 = arith.constant 0 : index
    %38 = vector.load %arg8[%c0_33, %c20, %c0_34] : memref<1x224x128xbf16, #tpu.memory_space<vmem>>, vector<1x200x128xbf16>
    %39 = vector.shape_cast %38 : vector<1x200x128xbf16> to vector<200x128xbf16>
    %c6 = arith.constant 6 : index
    %c0_35 = arith.constant 0 : index
    %c0_36 = arith.constant 0 : index
    %40 = vector.load %arg6[%c6, %c0_35, %c0_36] : memref<9x128x128xbf16, #tpu.memory_space<vmem>>, vector<1x128x128xbf16>
    %41 = vector.shape_cast %40 : vector<1x128x128xbf16> to vector<128x128xbf16>
    %cst_37 = arith.constant dense<0.000000e+00> : vector<200x128xf32>
    %42 = tpu.matmul %39, %41, %cst_37 {dimension_numbers = #tpu.dot_dimension_numbers<[1], [0], [0], [1], [0, 0, 1, 1], [], []>} : vector<200x128xbf16>, vector<128x128xbf16>, vector<200x128xf32> -> vector<200x128xf32>
    %43 = arith.addf %37, %42 : vector<200x128xf32>
    %c0_38 = arith.constant 0 : index
    %c21 = arith.constant 21 : index
    %c0_39 = arith.constant 0 : index
    %44 = vector.load %arg8[%c0_38, %c21, %c0_39] : memref<1x224x128xbf16, #tpu.memory_space<vmem>>, vector<1x200x128xbf16>
    %45 = vector.shape_cast %44 : vector<1x200x128xbf16> to vector<200x128xbf16>
    %c7 = arith.constant 7 : index
    %c0_40 = arith.constant 0 : index
    %c0_41 = arith.constant 0 : index
    %46 = vector.load %arg6[%c7, %c0_40, %c0_41] : memref<9x128x128xbf16, #tpu.memory_space<vmem>>, vector<1x128x128xbf16>
    %47 = vector.shape_cast %46 : vector<1x128x128xbf16> to vector<128x128xbf16>
    %cst_42 = arith.constant dense<0.000000e+00> : vector<200x128xf32>
    %48 = tpu.matmul %45, %47, %cst_42 {dimension_numbers = #tpu.dot_dimension_numbers<[1], [0], [0], [1], [0, 0, 1, 1], [], []>} : vector<200x128xbf16>, vector<128x128xbf16>, vector<200x128xf32> -> vector<200x128xf32>
    %49 = arith.addf %43, %48 : vector<200x128xf32>
    %c0_43 = arith.constant 0 : index
    %c22 = arith.constant 22 : index
    %c0_44 = arith.constant 0 : index
    %50 = vector.load %arg8[%c0_43, %c22, %c0_44] : memref<1x224x128xbf16, #tpu.memory_space<vmem>>, vector<1x200x128xbf16>
    %51 = vector.shape_cast %50 : vector<1x200x128xbf16> to vector<200x128xbf16>
    %c8 = arith.constant 8 : index
    %c0_45 = arith.constant 0 : index
    %c0_46 = arith.constant 0 : index
    %52 = vector.load %arg6[%c8, %c0_45, %c0_46] : memref<9x128x128xbf16, #tpu.memory_space<vmem>>, vector<1x128x128xbf16>
    %53 = vector.shape_cast %52 : vector<1x128x128xbf16> to vector<128x128xbf16>
    %cst_47 = arith.constant dense<0.000000e+00> : vector<200x128xf32>
    %54 = tpu.matmul %51, %53, %cst_47 {dimension_numbers = #tpu.dot_dimension_numbers<[1], [0], [0], [1], [0, 0, 1, 1], [], []>} : vector<200x128xbf16>, vector<128x128xbf16>, vector<200x128xf32> -> vector<200x128xf32>
    %55 = arith.addf %49, %54 : vector<200x128xf32>
    %56 = vector.extract_strided_slice %55 {offsets = [0, 0], sizes = [8, 128], strides = [1, 1]} : vector<200x128xf32> to vector<8x128xf32>
    %c0_48 = arith.constant 0 : index
    %c0_49 = arith.constant 0 : index
    %c0_50 = arith.constant 0 : index
    %c0_51 = arith.constant 0 : index
    %57 = vector.load %arg7[%c0_48, %c0_49, %c0_50, %c0_51] : memref<2x8x8x128xf32, #tpu.memory_space<vmem>>, vector<1x1x8x128xf32>
    %58 = vector.shape_cast %57 : vector<1x1x8x128xf32> to vector<8x128xf32>
    %59 = vector.shape_cast %56 : vector<8x128xf32> to vector<1x1x8x128xf32>
    tpu.vector_store %arg7[%c0_48, %c0_49, %c0_50, %c0_51], %59 {strides = array<i32>} : memref<2x8x8x128xf32, #tpu.memory_space<vmem>>, vector<1x1x8x128xf32>,
    %60 = vector.extract_strided_slice %55 {offsets = [10, 0], sizes = [8, 128], strides = [1, 1]} : vector<200x128xf32> to vector<8x128xf32>
    %c0_52 = arith.constant 0 : index
    %c1_53 = arith.constant 1 : index
    %c0_54 = arith.constant 0 : index
    %c0_55 = arith.constant 0 : index
    %61 = vector.load %arg7[%c0_52, %c1_53, %c0_54, %c0_55] : memref<2x8x8x128xf32, #tpu.memory_space<vmem>>, vector<1x1x8x128xf32>
    %62 = vector.shape_cast %61 : vector<1x1x8x128xf32> to vector<8x128xf32>
    %63 = vector.shape_cast %60 : vector<8x128xf32> to vector<1x1x8x128xf32>
    tpu.vector_store %arg7[%c0_52, %c1_53, %c0_54, %c0_55], %63 {strides = array<i32>} : memref<2x8x8x128xf32, #tpu.memory_space<vmem>>, vector<1x1x8x128xf32>,
    %64 = vector.extract_strided_slice %55 {offsets = [20, 0], sizes = [8, 128], strides = [1, 1]} : vector<200x128xf32> to vector<8x128xf32>
    %c0_56 = arith.constant 0 : index
    %c2_57 = arith.constant 2 : index
    %c0_58 = arith.constant 0 : index
    %c0_59 = arith.constant 0 : index
    %65 = vector.load %arg7[%c0_56, %c2_57, %c0_58, %c0_59] : memref<2x8x8x128xf32, #tpu.memory_space<vmem>>, vector<1x1x8x128xf32>
    %66 = vector.shape_cast %65 : vector<1x1x8x128xf32> to vector<8x128xf32>
    %67 = vector.shape_cast %64 : vector<8x128xf32> to vector<1x1x8x128xf32>
    tpu.vector_store %arg7[%c0_56, %c2_57, %c0_58, %c0_59], %67 {strides = array<i32>} : memref<2x8x8x128xf32, #tpu.memory_space<vmem>>, vector<1x1x8x128xf32>,
    %68 = vector.extract_strided_slice %55 {offsets = [30, 0], sizes = [8, 128], strides = [1, 1]} : vector<200x128xf32> to vector<8x128xf32>
    %c0_60 = arith.constant 0 : index
    %c3_61 = arith.constant 3 : index
    %c0_62 = arith.constant 0 : index
    %c0_63 = arith.constant 0 : index
    %69 = vector.load %arg7[%c0_60, %c3_61, %c0_62, %c0_63] : memref<2x8x8x128xf32, #tpu.memory_space<vmem>>, vector<1x1x8x128xf32>
    %70 = vector.shape_cast %69 : vector<1x1x8x128xf32> to vector<8x128xf32>
    %71 = vector.shape_cast %68 : vector<8x128xf32> to vector<1x1x8x128xf32>
    tpu.vector_store %arg7[%c0_60, %c3_61, %c0_62, %c0_63], %71 {strides = array<i32>} : memref<2x8x8x128xf32, #tpu.memory_space<vmem>>, vector<1x1x8x128xf32>,
    %72 = vector.extract_strided_slice %55 {offsets = [40, 0], sizes = [8, 128], strides = [1, 1]} : vector<200x128xf32> to vector<8x128xf32>
    %c0_64 = arith.constant 0 : index
    %c4_65 = arith.constant 4 : index
    %c0_66 = arith.constant 0 : index
    %c0_67 = arith.constant 0 : index
    %73 = vector.load %arg7[%c0_64, %c4_65, %c0_66, %c0_67] : memref<2x8x8x128xf32, #tpu.memory_space<vmem>>, vector<1x1x8x128xf32>
    %74 = vector.shape_cast %73 : vector<1x1x8x128xf32> to vector<8x128xf32>
    %75 = vector.shape_cast %72 : vector<8x128xf32> to vector<1x1x8x128xf32>
    tpu.vector_store %arg7[%c0_64, %c4_65, %c0_66, %c0_67], %75 {strides = array<i32>} : memref<2x8x8x128xf32, #tpu.memory_space<vmem>>, vector<1x1x8x128xf32>,
    %76 = vector.extract_strided_slice %55 {offsets = [50, 0], sizes = [8, 128], strides = [1, 1]} : vector<200x128xf32> to vector<8x128xf32>
    %c0_68 = arith.constant 0 : index
    %c5_69 = arith.constant 5 : index
    %c0_70 = arith.constant 0 : index
    %c0_71 = arith.constant 0 : index
    %77 = vector.load %arg7[%c0_68, %c5_69, %c0_70, %c0_71] : memref<2x8x8x128xf32, #tpu.memory_space<vmem>>, vector<1x1x8x128xf32>
    %78 = vector.shape_cast %77 : vector<1x1x8x128xf32> to vector<8x128xf32>
    %79 = vector.shape_cast %76 : vector<8x128xf32> to vector<1x1x8x128xf32>
    tpu.vector_store %arg7[%c0_68, %c5_69, %c0_70, %c0_71], %79 {strides = array<i32>} : memref<2x8x8x128xf32, #tpu.memory_space<vmem>>, vector<1x1x8x128xf32>,
    %80 = vector.extract_strided_slice %55 {offsets = [60, 0], sizes = [8, 128], strides = [1, 1]} : vector<200x128xf32> to vector<8x128xf32>
    %c0_72 = arith.constant 0 : index
    %c6_73 = arith.constant 6 : index
    %c0_74 = arith.constant 0 : index
    %c0_75 = arith.constant 0 : index
    %81 = vector.load %arg7[%c0_72, %c6_73, %c0_74, %c0_75] : memref<2x8x8x128xf32, #tpu.memory_space<vmem>>, vector<1x1x8x128xf32>
    %82 = vector.shape_cast %81 : vector<1x1x8x128xf32> to vector<8x128xf32>
    %83 = vector.shape_cast %80 : vector<8x128xf32> to vector<1x1x8x128xf32>
    tpu.vector_store %arg7[%c0_72, %c6_73, %c0_74, %c0_75], %83 {strides = array<i32>} : memref<2x8x8x128xf32, #tpu.memory_space<vmem>>, vector<1x1x8x128xf32>,
    %84 = vector.extract_strided_slice %55 {offsets = [70, 0], sizes = [8, 128], strides = [1, 1]} : vector<200x128xf32> to vector<8x128xf32>
    %c0_76 = arith.constant 0 : index
    %c7_77 = arith.constant 7 : index
    %c0_78 = arith.constant 0 : index
    %c0_79 = arith.constant 0 : index
    %85 = vector.load %arg7[%c0_76, %c7_77, %c0_78, %c0_79] : memref<2x8x8x128xf32, #tpu.memory_space<vmem>>, vector<1x1x8x128xf32>
    %86 = vector.shape_cast %85 : vector<1x1x8x128xf32> to vector<8x128xf32>
    %87 = vector.shape_cast %84 : vector<8x128xf32> to vector<1x1x8x128xf32>
    tpu.vector_store %arg7[%c0_76, %c7_77, %c0_78, %c0_79], %87 {strides = array<i32>} : memref<2x8x8x128xf32, #tpu.memory_space<vmem>>, vector<1x1x8x128xf32>,
    %88 = vector.extract_strided_slice %55 {offsets = [100, 0], sizes = [8, 128], strides = [1, 1]} : vector<200x128xf32> to vector<8x128xf32>
    %c1_80 = arith.constant 1 : index
    %c0_81 = arith.constant 0 : index
    %c0_82 = arith.constant 0 : index
    %c0_83 = arith.constant 0 : index
    %89 = vector.load %arg7[%c1_80, %c0_81, %c0_82, %c0_83] : memref<2x8x8x128xf32, #tpu.memory_space<vmem>>, vector<1x1x8x128xf32>
    %90 = vector.shape_cast %89 : vector<1x1x8x128xf32> to vector<8x128xf32>
    %91 = vector.shape_cast %88 : vector<8x128xf32> to vector<1x1x8x128xf32>
    tpu.vector_store %arg7[%c1_80, %c0_81, %c0_82, %c0_83], %91 {strides = array<i32>} : memref<2x8x8x128xf32, #tpu.memory_space<vmem>>, vector<1x1x8x128xf32>,
    %92 = vector.extract_strided_slice %55 {offsets = [110, 0], sizes = [8, 128], strides = [1, 1]} : vector<200x128xf32> to vector<8x128xf32>
    %c1_84 = arith.constant 1 : index
    %c1_85 = arith.constant 1 : index
    %c0_86 = arith.constant 0 : index
    %c0_87 = arith.constant 0 : index
    %93 = vector.load %arg7[%c1_84, %c1_85, %c0_86, %c0_87] : memref<2x8x8x128xf32, #tpu.memory_space<vmem>>, vector<1x1x8x128xf32>
    %94 = vector.shape_cast %93 : vector<1x1x8x128xf32> to vector<8x128xf32>
    %95 = vector.shape_cast %92 : vector<8x128xf32> to vector<1x1x8x128xf32>
    tpu.vector_store %arg7[%c1_84, %c1_85, %c0_86, %c0_87], %95 {strides = array<i32>} : memref<2x8x8x128xf32, #tpu.memory_space<vmem>>, vector<1x1x8x128xf32>,
    %96 = vector.extract_strided_slice %55 {offsets = [120, 0], sizes = [8, 128], strides = [1, 1]} : vector<200x128xf32> to vector<8x128xf32>
    %c1_88 = arith.constant 1 : index
    %c2_89 = arith.constant 2 : index
    %c0_90 = arith.constant 0 : index
    %c0_91 = arith.constant 0 : index
    %97 = vector.load %arg7[%c1_88, %c2_89, %c0_90, %c0_91] : memref<2x8x8x128xf32, #tpu.memory_space<vmem>>, vector<1x1x8x128xf32>
    %98 = vector.shape_cast %97 : vector<1x1x8x128xf32> to vector<8x128xf32>
    %99 = vector.shape_cast %96 : vector<8x128xf32> to vector<1x1x8x128xf32>
    tpu.vector_store %arg7[%c1_88, %c2_89, %c0_90, %c0_91], %99 {strides = array<i32>} : memref<2x8x8x128xf32, #tpu.memory_space<vmem>>, vector<1x1x8x128xf32>,
    %100 = vector.extract_strided_slice %55 {offsets = [130, 0], sizes = [8, 128], strides = [1, 1]} : vector<200x128xf32> to vector<8x128xf32>
    %c1_92 = arith.constant 1 : index
    %c3_93 = arith.constant 3 : index
    %c0_94 = arith.constant 0 : index
    %c0_95 = arith.constant 0 : index
    %101 = vector.load %arg7[%c1_92, %c3_93, %c0_94, %c0_95] : memref<2x8x8x128xf32, #tpu.memory_space<vmem>>, vector<1x1x8x128xf32>
    %102 = vector.shape_cast %101 : vector<1x1x8x128xf32> to vector<8x128xf32>
    %103 = vector.shape_cast %100 : vector<8x128xf32> to vector<1x1x8x128xf32>
    tpu.vector_store %arg7[%c1_92, %c3_93, %c0_94, %c0_95], %103 {strides = array<i32>} : memref<2x8x8x128xf32, #tpu.memory_space<vmem>>, vector<1x1x8x128xf32>,
    %104 = vector.extract_strided_slice %55 {offsets = [140, 0], sizes = [8, 128], strides = [1, 1]} : vector<200x128xf32> to vector<8x128xf32>
    %c1_96 = arith.constant 1 : index
    %c4_97 = arith.constant 4 : index
    %c0_98 = arith.constant 0 : index
    %c0_99 = arith.constant 0 : index
    %105 = vector.load %arg7[%c1_96, %c4_97, %c0_98, %c0_99] : memref<2x8x8x128xf32, #tpu.memory_space<vmem>>, vector<1x1x8x128xf32>
    %106 = vector.shape_cast %105 : vector<1x1x8x128xf32> to vector<8x128xf32>
    %107 = vector.shape_cast %104 : vector<8x128xf32> to vector<1x1x8x128xf32>
    tpu.vector_store %arg7[%c1_96, %c4_97, %c0_98, %c0_99], %107 {strides = array<i32>} : memref<2x8x8x128xf32, #tpu.memory_space<vmem>>, vector<1x1x8x128xf32>,
    %108 = vector.extract_strided_slice %55 {offsets = [150, 0], sizes = [8, 128], strides = [1, 1]} : vector<200x128xf32> to vector<8x128xf32>
    %c1_100 = arith.constant 1 : index
    %c5_101 = arith.constant 5 : index
    %c0_102 = arith.constant 0 : index
    %c0_103 = arith.constant 0 : index
    %109 = vector.load %arg7[%c1_100, %c5_101, %c0_102, %c0_103] : memref<2x8x8x128xf32, #tpu.memory_space<vmem>>, vector<1x1x8x128xf32>
    %110 = vector.shape_cast %109 : vector<1x1x8x128xf32> to vector<8x128xf32>
    %111 = vector.shape_cast %108 : vector<8x128xf32> to vector<1x1x8x128xf32>
    tpu.vector_store %arg7[%c1_100, %c5_101, %c0_102, %c0_103], %111 {strides = array<i32>} : memref<2x8x8x128xf32, #tpu.memory_space<vmem>>, vector<1x1x8x128xf32>,
    %112 = vector.extract_strided_slice %55 {offsets = [160, 0], sizes = [8, 128], strides = [1, 1]} : vector<200x128xf32> to vector<8x128xf32>
    %c1_104 = arith.constant 1 : index
    %c6_105 = arith.constant 6 : index
    %c0_106 = arith.constant 0 : index
    %c0_107 = arith.constant 0 : index
    %113 = vector.load %arg7[%c1_104, %c6_105, %c0_106, %c0_107] : memref<2x8x8x128xf32, #tpu.memory_space<vmem>>, vector<1x1x8x128xf32>
    %114 = vector.shape_cast %113 : vector<1x1x8x128xf32> to vector<8x128xf32>
    %115 = vector.shape_cast %112 : vector<8x128xf32> to vector<1x1x8x128xf32>
    tpu.vector_store %arg7[%c1_104, %c6_105, %c0_106, %c0_107], %115 {strides = array<i32>} : memref<2x8x8x128xf32, #tpu.memory_space<vmem>>, vector<1x1x8x128xf32>,
    %116 = vector.extract_strided_slice %55 {offsets = [170, 0], sizes = [8, 128], strides = [1, 1]} : vector<200x128xf32> to vector<8x128xf32>
    %c1_108 = arith.constant 1 : index
    %c7_109 = arith.constant 7 : index
    %c0_110 = arith.constant 0 : index
    %c0_111 = arith.constant 0 : index
    %117 = vector.load %arg7[%c1_108, %c7_109, %c0_110, %c0_111] : memref<2x8x8x128xf32, #tpu.memory_space<vmem>>, vector<1x1x8x128xf32>
    %118 = vector.shape_cast %117 : vector<1x1x8x128xf32> to vector<8x128xf32>
    %119 = vector.shape_cast %116 : vector<8x128xf32> to vector<1x1x8x128xf32>
    tpu.vector_store %arg7[%c1_108, %c7_109, %c0_110, %c0_111], %119 {strides = array<i32>} : memref<2x8x8x128xf32, #tpu.memory_space<vmem>>, vector<1x1x8x128xf32>,
    return
  }
  func.func @transform_0(%arg0: i32, %arg1: i32) -> (i32, i32, i32, i32) {
    %c0_i32 = arith.constant 0 : i32
    %c0_i32_0 = arith.constant 0 : i32
    %c0_i32_1 = arith.constant 0 : i32
    %c0_i32_2 = arith.constant 0 : i32
    return %arg0, %c0_i32, %c0_i32_0, %c0_i32_1 : i32, i32, i32, i32
  }
  func.func @transform_1(%arg0: i32, %arg1: i32) -> (i32, i32) {
    %c0_i32 = arith.constant 0 : i32
    %c0_i32_0 = arith.constant 0 : i32
    %c0_i32_1 = arith.constant 0 : i32
    return %c0_i32, %c0_i32_0 : i32, i32
  }
  func.func @transform_2(%arg0: i32, %arg1: i32) -> (i32, i32) {
    %c0_i32 = arith.constant 0 : i32
    %c0_i32_0 = arith.constant 0 : i32
    %c0_i32_1 = arith.constant 0 : i32
    return %c0_i32, %c0_i32_0 : i32, i32
  }
  func.func @transform_3(%arg0: i32, %arg1: i32) -> (i32, i32) {
    %c0_i32 = arith.constant 0 : i32
    %c0_i32_0 = arith.constant 0 : i32
    %c0_i32_1 = arith.constant 0 : i32
    return %c0_i32, %c0_i32_0 : i32, i32
  }
  func.func @transform_4(%arg0: i32, %arg1: i32) -> (i32, i32, i32) {
    %c0_i32 = arith.constant 0 : i32
    %c0_i32_0 = arith.constant 0 : i32
    %c0_i32_1 = arith.constant 0 : i32
    return %c0_i32, %c0_i32_0, %arg1 : i32, i32, i32
  }
  func.func @transform_5(%arg0: i32, %arg1: i32) -> (i32, i32, i32, i32) {
    %c0_i32 = arith.constant 0 : i32
    %c0_i32_0 = arith.constant 0 : i32
    %c0_i32_1 = arith.constant 0 : i32
    return %arg0, %c0_i32, %c0_i32_0, %arg1 : i32, i32, i32, i32
  }
}

</mosaic_0001>

<bundles_post_ra>
// kernel: bottleneck_forward.3
= control target key start
LH: loop header
LB: loop body
LE: loop exit
PB: predicated region body
PF: predicated region fallthrough
CT: control target
= control target key end

     0   :  { %v4578_v0 = vmov 0   ;;  %v6194_v5 = vmov 0.0   ;;  %vm4580_vm0 = vmmov 0   ;;  %vm344_vm1 = vcmask 1041408   ;;  %s6184_s3 = inlined_call_operand.vmem [shape: f32[100,1], index: 3, kind: input, shape index: {}]   ;;  %s6185_s4 = inlined_call_operand.vmem [shape: bf16[9,128,128], index: 4, kind: input, shape index: {}]   ;;  %s6186_s1 = inlined_call_operand.vmem [shape: f32[1,128], index: 1, kind: input, shape index: {}]   ;;  %s6187_s0 = inlined_call_operand.vmem [shape: f32[2,1,100,128], index: 0, kind: input, shape index: {}]   ;;  %s6188_s2 = inlined_call_operand.vmem [shape: f32[1,128], index: 2, kind: input, shape index: {}]   ;;  %s6189_s5 = inlined_call_operand.vmem [shape: f32[2,8,8,128], index: 5, kind: output, shape index: {}]  }
   0x1   :  { %4448 = vset.pattern.permute.xlu1 %v4578_v0  ;;  %25 = vst [vmem:[#allocation2 + $0x64] sm:$0xf] %v4578_v0  ;;  %26 = vst [vmem:[#allocation2 + $0x68] sm:$0xf] %v4578_v0  ;;  %4447 = vset.pattern.permute.xlu0 %v4578_v0  ;;  %v32_v1 = vld [vmem:[%s6184_s3 + $0x10] sm:$0xff]  ;;  %v30_v2 = vld [vmem:[%s6184_s3] sm:$0xff] }
   0x2   :  { %27 = vst [vmem:[#allocation2 + $0x6c] sm:$0xf] %v4578_v0  ;;  %61 = vperm.xlu1 %4448, %v32_v1   ;;  %51 = vperm.xlu0 %4447, %v30_v2   ;;  %v33_v3 = vld [vmem:[%s6184_s3 + $0x18] sm:$0xff]  ;;  %v31_v4 = vld [vmem:[%s6184_s3 + $0x8] sm:$0xff]  ;;  %v34_v8 = vld [vmem:[%s6184_s3 + $0x20] sm:$0xff]  ;;  %vm345_vm2 = vcmask 1045508  }
   0x3   :  { %3816 = vmatprep.subr.bf16.mxu0 %v6194_v5  ;;  %4428 = vmatprep.subr.bf16.mxu1 %v6194_v5  ;;  %v4449_v6 = vld [vmem:[%s6185_s4 + $0x78] sm:$0xff]   ;;  %v35_v7 = vld [vmem:[%s6184_s3 + $0x28] sm:$0xff]  ;;  %v4450_v9 = vld [vmem:[%s6185_s4 + $0x70] sm:$0xff]   ;;  %vm534_vm4 = vsmask.f32 7424  ;;  %vm1046_vm5 = vcmask 1046528  }
   0x4   :  { %3817 = vmatpush3.bf16.msra.mxu0 %v4449_v6  ;;  %4436 = vmatpush3.bf16.msra.mxu1 %v4449_v6  ;;  %v37_v10 = vld [vmem:[%s6184_s3 + $0x38] sm:$0xff]  ;;  %v36_v11 = vld [vmem:[%s6184_s3 + $0x30] sm:$0xff]  ;;  %v4451_v12 = vld [vmem:[%s6185_s4 + $0x68] sm:$0xff]   ;;  %vm2006_vm6 = vcmask 1045504   ;;  %vm2966_vm7 = vcmask 1044480  }
   0x5   :  { %3818 = vmatprep.subr.bf16.mxu0 %v6194_v5  ;;  %4429 = vmatprep.subr.bf16.mxu1 %v6194_v5  ;;  %v39_v13 = vld [vmem:[%s6184_s3 + $0x48] sm:$0xff]  ;;  %v38_v14 = vld [vmem:[%s6184_s3 + $0x40] sm:$0xff]  ;;  %v41_v16 = vld [vmem:[%s6184_s3 + $0x58] sm:$0xff]  ;;  %vm2614_vm8 = vsmask.f32 5376 }
   0x6   :  { %66 = vperm.xlu1 %4448, %v33_v3   ;;  %56 = vperm.xlu0 %4447, %v31_v4   ;;  %v4452_v15 = vld [vmem:[%s6185_s4 + $0x60] sm:$0xff]   ;;  %v40_v17 = vld [vmem:[%s6184_s3 + $0x50] sm:$0xff]  ;;  %v4453_v18 = vld [vmem:[%s6185_s4 + $0x58] sm:$0xff]   ;;  %vm1654_vm9 = vsmask.f32 6400 }
   0x7   :  { %v42_v19 = vld [vmem:[%s6184_s3 + $0x60] sm:$0xf]  ;;  %v4454_v20 = vld [vmem:[%s6185_s4 + $0x50] sm:$0xff]   ;;  %v4455_v21 = vld [vmem:[%s6185_s4 + $0x48] sm:$0xff]   ;;  %3832 = vmatprep.mubr.msk.bf16.mxu0 %vm4580_vm0, %v6194_v5  ;;  %3860 = vmatprep.mubr.msk.bf16.mxu1 %vm4580_vm0, %v6194_v5 }
   0x8   :  { %3819 = vmatpush3.bf16.msra.mxu0 %v4450_v9  ;;  %4437 = vmatpush3.bf16.msra.mxu1 %v4450_v9  ;;  %v4456_v22 = vld [vmem:[%s6185_s4 + $0x40] sm:$0xff]   ;;  %v129_v24 = vld [vmem:[%s6187_s0 + $0x10] sm:$0xff]  ;;  %v3270_v25 = vld [vmem:[%s6187_s0 + $0x78] sm:$0xff] }
   0x9   :  { %3820 = vmatprep.subr.bf16.mxu0 %v6194_v5  ;;  %4430 = vmatprep.subr.bf16.mxu1 %v6194_v5  ;;  %v4699_v23 = vld [vmem:[%s6186_s1] ss:$0 sm:$0xff]  ;;  %v3268_v27 = vld [vmem:[%s6187_s0 + $0x68] sm:$0xff]  ;;  %v130_v29 = vld [vmem:[%s6187_s0 + $0x18] sm:$0xff] }
   0xa   :  { %76 = vperm.xlu1 %4448, %v35_v7   ;;  %71 = vperm.xlu0 %4447, %v34_v8   ;;  %v127_v26 = vld [vmem:[%s6187_s0] sm:$0xff]  ;;  %v128_v31 = vld [vmem:[%s6187_s0 + $0x8] sm:$0xff]  ;;  %v3269_v32 = vld [vmem:[%s6187_s0 + $0x70] sm:$0xff]  ;;  %v148_v35 = vmul.f32 %v4699_v23, %v129_v24  ;;  %v267_v36 = vmul.f32 %v3270_v25, %v4699_v23  ;;  %v265_v41 = vmul.f32 %v3268_v27, %v4699_v23 }
   0xb   :  { %v4716_v28 = vld [vmem:[%s6188_s2] ss:$0 sm:$0xff]  ;;  %v132_v33 = vld [vmem:[%s6187_s0 + $0x28] sm:$0xff]  ;;  %v3273_v34 = vld [vmem:[%s6187_s0 + $0x90] sm:$0xff]  ;;  %v146_v40 = vmul.f32 %v4699_v23, %v127_v26  ;;  %v149_v42 = vmul.f32 %v4699_v23, %v130_v29  ;;  %v147_v49 = vmul.f32 %v4699_v23, %v128_v31  ;;  %v266_v50 = vmul.f32 %v3269_v32, %v4699_v23 }
   0xc   :  { %3821 = vmatpush3.bf16.msra.mxu0 %v4451_v12  ;;  %4438 = vmatpush3.bf16.msra.mxu1 %v4451_v12  ;;  %v3271_v30 = vld [vmem:[%s6187_s0 + $0x80] sm:$0xff]  ;;  %v3272_v38 = vld [vmem:[%s6187_s0 + $0x88] sm:$0xff]  ;;  %v134_v39 = vld [vmem:[%s6187_s0 + $0x38] sm:$0xff]  ;;  %v151_v51 = vmul.f32 %v4699_v23, %v132_v33  ;;  %v270_v52 = vmul.f32 %v3273_v34, %v4699_v23 }
   0xd   :  { %3822 = vmatprep.subr.bf16.mxu0 %v6194_v5  ;;  %4431 = vmatprep.subr.bf16.mxu1 %v6194_v5  ;;  %v131_v37 = vld [vmem:[%s6187_s0 + $0x20] sm:$0xff]  ;;  %v268_v43 = vmul.f32 %v3271_v30, %v4699_v23  ;;  %v133_v45 = vld [vmem:[%s6187_s0 + $0x30] sm:$0xff]  ;;  %v3274_v46 = vld [vmem:[%s6187_s0 + $0x98] sm:$0xff]  ;;  %v4773_v57 = vmul.f32 %v3272_v38, %v4699_v23  ;;  %v4785_v61 = vmul.f32 %v4699_v23, %v134_v39 }
   0xe   :  { %86 = vperm.xlu1 %4448, %v37_v10   ;;  %81 = vperm.xlu0 %4447, %v36_v11   ;;  %v3275_v44 = vld [vmem:[%s6187_s0 + $0xa0] sm:$0xff]  ;;  %v136_v53 = vld [vmem:[%s6187_s0 + $0x48] sm:$0xff]  ;;  %v4770_v56 = vmul.f32 %v4699_v23, %v131_v37  ;;  %v3277_v58 = vld [vmem:[%s6187_s0 + $0xb0] sm:$0xff]  ;;  %v4791_v63 = vmul.f32 %v4699_v23, %v133_v45  ;;  %v4794_v0 = vmul.f32 %v3274_v46, %v4699_v23 }
   0xf   :  { %v135_v59 = vld [vmem:[%s6187_s0 + $0x40] sm:$0xff]  ;;  %v3276_v60 = vld [vmem:[%s6187_s0 + $0xa8] sm:$0xff]  ;;  %v4788_v62 = vmul.f32 %v3275_v44, %v4699_v23  ;;  %v138_v1 = vld [vmem:[%s6187_s0 + $0x58] sm:$0xff]  ;;  %v4809_v12 = vmul.f32 %v4699_v23, %v136_v53 }
  0x10   :  { %3823 = vmatpush3.bf16.msra.mxu0 %v4452_v15  ;;  %4439 = vmatpush3.bf16.msra.mxu1 %v4452_v15  ;;  %v3279_v2 = vld [vmem:[%s6187_s0 + $0xc0] sm:$0xff]  ;;  %v137_v8 = vld [vmem:[%s6187_s0 + $0x50] sm:$0xff]  ;;  %v3278_v9 = vld [vmem:[%s6187_s0 + $0xb8] sm:$0xff]  ;;  %v4818_v15 = vmul.f32 %v3276_v60, %v4699_v23 }
  0x11   :  { %3824 = vmatprep.subr.bf16.mxu0 %v6194_v5  ;;  %4432 = vmatprep.subr.bf16.mxu1 %v6194_v5  ;;  %v4832_v24 = vmul.f32 %v3278_v9, %v4699_v23  ;;  %vm4841_vm3 = vmor %vm344_vm1, %vm345_vm2 }
  0x12   :  { %96 = vperm.xlu1 %4448, %v39_v13   ;;  %91 = vperm.xlu0 %4447, %v38_v14   ;;  %v4812_v13 = vmul.f32 %v3277_v58, %v4699_v23  ;;  %v4815_v14 = vmul.f32 %v4699_v23, %v135_v59  ;;  %v139_v58 = vld [vmem:[%s6187_s0 + $0x60] sm:$0xf] }
  0x14   :  { %3825 = vmatpush3.bf16.msra.mxu0 %v4453_v18  ;;  %4440 = vmatpush3.bf16.msra.mxu1 %v4453_v18  ;;  %v4821_v18 = vmul.f32 %v4699_v23, %v138_v1 }
  0x15   :  { %3826 = vmatprep.subr.bf16.mxu0 %v6194_v5  ;;  %4433 = vmatprep.subr.bf16.mxu1 %v6194_v5 }
  0x16   :  { %106 = vperm.xlu1 %4448, %v41_v16   ;;  %101 = vperm.xlu0 %4447, %v40_v17  }
  0x18   :  { %3827 = vmatpush3.bf16.msra.mxu0 %v4454_v20  ;;  %4441 = vmatpush3.bf16.msra.mxu1 %v4454_v20 }
  0x19   :  { %3828 = vmatprep.subr.bf16.mxu0 %v6194_v5  ;;  %4434 = vmatprep.subr.bf16.mxu1 %v6194_v5 }
  0x1a   :  { %111 = vperm.xlu0 %4447, %v42_v19   ;;  %v4824_v19 = vmul.f32 %v3279_v2, %v4699_v23 }
  0x1c   :  { %3829 = vmatpush3.bf16.msra.mxu0 %v4455_v21  ;;  %4442 = vmatpush3.bf16.msra.mxu1 %v4455_v21 }
  0x1d   :  { %3830 = vmatprep.subr.bf16.mxu0 %v6194_v5  ;;  %4435 = vmatprep.subr.bf16.mxu1 %v6194_v5 }
  0x20   :  { %3831 = vmatpush3.bf16.msra.mxu0 %v4456_v22  ;;  %4443 = vmatpush3.bf16.msra.mxu1 %v4456_v22  ;;  %v4829_v22 = vmul.f32 %v4699_v23, %v137_v8 }
  0x21   :  { %3952 = vmatprep.subr.bf16.mxu0 %v6194_v5  ;;  %3884 = vmatprep.subr.bf16.mxu1 %v6194_v5 }
  0x7d   :  { %v62_v47 = vpop.permute.xlu1 %61  ;;  %v52_v48 = vpop.permute.xlu0 %51 }
  0x7e   :  { %v116_v54 = vmul.f32 %v4716_v28, %v62_v47  ;;  %v114_v55 = vmul.f32 %v4716_v28, %v52_v48 }
  0x80   :  { %v161_v3 = vadd.f32 %v148_v35, %v116_v54  ;;  %v280_v4 = vadd.f32 %v267_v36, %v116_v54  ;;  %v159_v6 = vadd.f32 %v146_v40, %v114_v55  ;;  %v278_v7 = vadd.f32 %v265_v41, %v114_v55 }
  0x81   :  { %v67_v10 = vpop.permute.xlu1 %66  ;;  %v57_v11 = vpop.permute.xlu0 %56 }
  0x82   :  { %v293_v16 = vmax.f32 %v280_v4, 0.0  ;;  %v291_v17 = vmax.f32 %v278_v7, 0.0  ;;  %v117_v20 = vmul.f32 %v4716_v28, %v67_v10  ;;  %v115_v21 = vmul.f32 %v4716_v28, %v57_v11 }
  0x83   :  { %v174_v25 = vmax.f32 %v161_v3, 0.0  ;;  %v172_v27 = vmax.f32 %v159_v6, 0.0  ;;  %v4850_v10 = vmul.f32 %v4699_v23, %v139_v58 }
  0x84   :  { %v3581_v26 = vpack.c.bf16 %v293_v16, %v293_v16  ;;  %v3579_v29 = vpack.c.bf16 %v291_v17, %v291_v17  ;;  %v162_v30 = vadd.f32 %v149_v42, %v117_v20  ;;  %v281_v31 = vadd.f32 %v268_v43, %v117_v20 }
  0x85   :  { %v160_v32 = vadd.f32 %v147_v49, %v115_v21  ;;  %v279_v33 = vadd.f32 %v266_v50, %v115_v21  ;;  %v77_v34 = vpop.permute.xlu1 %76  ;;  %v72_v35 = vpop.permute.xlu0 %71 }
  0x86   :  { %v352_v36 = vrot.slane %v3581_v26, 6  ;;  %v347_v37 = vrot.slane %v3579_v29, 6  ;;  %v119_v38 = vmul.f32 %v4716_v28, %v77_v34  ;;  %v118_v39 = vmul.f32 %v4716_v28, %v72_v35 }
  0x87   :  { %v175_v40 = vmax.f32 %v162_v30, 0.0  ;;  %v294_v41 = vmax.f32 %v281_v31, 0.0  ;;  %v173_v44 = vmax.f32 %v160_v32, 0.0  ;;  %v292_v45 = vmax.f32 %v279_v33, 0.0 }
  0x88   :  { %v354_v46 = vrot.slane %v352_v36, 4  ;;  %v348_v47 = vrot.slane %v347_v37, 4  ;;  %397 = vst [vmem:[#allocation2 + $0x30] sm:$0xc] %v347_v37  ;;  %v164_v48 = vadd.f32 %v151_v51, %v119_v38  ;;  %v283_v42 = vadd.f32 %v270_v52, %v119_v38 }
  0x89   :  { %v3600_v43 = vpack.c.bf16 %v175_v40, %v174_v25  ;;  %v3582_v49 = vpack.c.bf16 %v294_v41, %v294_v41  ;;  %v3595_v50 = vpack.c.bf16 %v173_v44, %v172_v27  ;;  %v3580_v53 = vpack.c.bf16 %v292_v45, %v292_v45  ;;  %v87_v54 = vpop.permute.xlu1 %86  ;;  %v82_v55 = vpop.permute.xlu0 %81 }
  0x8a   :  { %v177_v60 = vmax.f32 %v164_v48, 0.0  ;;  %v296_v1 = vmax.f32 %v283_v42, 0.0  ;;  %v163_v51 = vadd.f32 %v4770_v56, %v118_v39  ;;  %v282_v52 = vadd.f32 %v4773_v57, %v118_v39 }
  0x8b   :  { %3622 = vst [vmem:[#allocation2 + $0x8] sm:$0xff] %v3600_v43   ;;  %v355_v2 = vrot.slane %v3582_v49, 6  ;;  %3596 = vst [vmem:[#allocation2] sm:$0xff] %v3595_v50   ;;  %v349_v3 = vrot.slane %v3580_v53, 6  ;;  %v121_v4 = vmul.f32 %v4716_v28, %v87_v54  ;;  %v120_v6 = vmul.f32 %v4716_v28, %v82_v55 }
  0x8c   :  { %v3584_v7 = vpack.c.bf16 %v296_v1, %v296_v1  ;;  %v176_v8 = vmax.f32 %v163_v51, 0.0  ;;  %v295_v9 = vmax.f32 %v282_v52, 0.0 }
  0x8d   :  { %v356_v11 = vsel %vm4841_vm3, %v354_v46, %v355_v2  ;;  %v357_v56 = vrot.slane %v355_v2, 4  ;;  %v350_v57 = vsel %vm4841_vm3, %v348_v47, %v349_v3  ;;  %v351_v16 = vrot.slane %v349_v3, 4  ;;  %v97_v17 = vpop.permute.xlu1 %96  ;;  %v92_v20 = vpop.permute.xlu0 %91 }
  0x8e   :  { %400 = vst [vmem:[#allocation2 + $0x3c] sm:$0xf] %v356_v11  ;;  %398 = vst [vmem:[#allocation2 + $0x34] sm:$0xf] %v350_v57  ;;  %v361_v21 = vrot.slane %v3584_v7, 6  ;;  %v3605_v25 = vpack.c.bf16 %v177_v60, %v176_v8  ;;  %v3583_v26 = vpack.c.bf16 %v295_v9, %v295_v9  ;;  %v166_v27 = vadd.f32 %v4785_v61, %v121_v4 }
  0x8f   :  { %v353_v29 = vsel %vm4841_vm3, %v351_v16, %v352_v36  ;;  %v285_v30 = vadd.f32 %v4788_v62, %v121_v4  ;;  %v165_v31 = vadd.f32 %v4791_v63, %v120_v6  ;;  %v284_v32 = vadd.f32 %v4794_v0, %v120_v6 }
  0x90   :  { %399 = vst [vmem:[#allocation2 + $0x38] sm:$0xf] %v353_v29  ;;  %v363_v33 = vrot.slane %v361_v21, 4  ;;  %3623 = vst [vmem:[#allocation2 + $0x10] sm:$0xff] %v3605_v25   ;;  %v358_v34 = vrot.slane %v3583_v26, 6  ;;  %v179_v35 = vmax.f32 %v166_v27, 0.0  ;;  %v123_v37 = vmul.f32 %v4716_v28, %v97_v17 }
  0x91   :  { %v298_v38 = vmax.f32 %v285_v30, 0.0  ;;  %v178_v39 = vmax.f32 %v165_v31, 0.0  ;;  %v297_v40 = vmax.f32 %v284_v32, 0.0  ;;  %v122_v61 = vmul.f32 %v4716_v28, %v92_v20  ;;  %v102_v41 = vpop.permute.xlu0 %101  ;;  %v107_v44 = vpop.permute.xlu1 %106 }
  0x92   :  { %v359_v62 = vsel %vm4841_vm3, %v357_v56, %v358_v34  ;;  %v360_v36 = vrot.slane %v358_v34, 4  ;;  %v168_v63 = vadd.f32 %v4809_v12, %v123_v37  ;;  %v287_v0 = vadd.f32 %v4812_v13, %v123_v37  ;;  %v3280_v12 = vld [vmem:[%s6187_s0 + $0xc8] sm:$0xf]  ;;  %v410_v4 = vld [vmem:[#allocation2] sm:$0xf] }
  0x93   :  { %401 = vst [vmem:[#allocation2 + $0x40] sm:$0xf] %v359_v62  ;;  %v3586_v45 = vpack.c.bf16 %v298_v38, %v298_v38  ;;  %v3610_v46 = vpack.c.bf16 %v179_v35, %v178_v39  ;;  %v3585_v47 = vpack.c.bf16 %v297_v40, %v297_v40  ;;  %v167_v48 = vadd.f32 %v4815_v14, %v122_v61  ;;  %v4881_v6 = vld [vmem:[#allocation2 + $0x4] sm:$0xf]  ;;  %v4890_v16 = vld [vmem:[#allocation2 + $0x8] sm:$0xff]  }
  0x94   :  { %v362_v42 = vsel %vm4841_vm3, %v360_v36, %v361_v21  ;;  %v181_v43 = vmax.f32 %v168_v63, 0.0  ;;  %v300_v49 = vmax.f32 %v287_v0, 0.0  ;;  %v286_v50 = vadd.f32 %v4818_v15, %v122_v61 }
  0x95   :  { %402 = vst [vmem:[#allocation2 + $0x44] sm:$0xf] %v362_v42  ;;  %v367_v13 = vrot.slane %v3586_v45, 6  ;;  %3624 = vst [vmem:[#allocation2 + $0x18] sm:$0xff] %v3610_v46   ;;  %v364_v53 = vrot.slane %v3585_v47, 6  ;;  %v180_v54 = vmax.f32 %v167_v48, 0.0  ;;  %v125_v55 = vmul.f32 %v4716_v28, %v107_v44  ;;  %v112_v58 = vpop.permute.xlu0 %111 }
  0x96   :  { %v3588_v14 = vpack.c.bf16 %v300_v49, %v300_v49  ;;  %v299_v60 = vmax.f32 %v286_v50, 0.0  ;;  %v124_v1 = vmul.f32 %v4716_v28, %v102_v41  ;;  %v126_v51 = vmul.f32 %v4716_v28, %v112_v58 }
  0x97   :  { %v365_v15 = vsel %vm4841_vm3, %v363_v33, %v364_v53  ;;  %v366_v52 = vrot.slane %v364_v53, 4  ;;  %v3615_v2 = vpack.c.bf16 %v181_v43, %v180_v54  ;;  %v277_v3 = vmul.f32 %v3280_v12, %v4699_v23  ;;  %v4892_v29 = vld [vmem:[#allocation2 + $0x38] sm:$0xff]   ;;  %v4906_v63 = vld [vmem:[#allocation2 + $0x10] sm:$0xff]  }
  0x98   :  { %v369_v7 = vrot.slane %v367_v13, 4  ;;  %403 = vst [vmem:[#allocation2 + $0x48] sm:$0xf] %v365_v15  ;;  %v3587_v8 = vpack.c.bf16 %v299_v60, %v299_v60  ;;  %v170_v9 = vadd.f32 %v4821_v18, %v125_v55  ;;  %v289_v11 = vadd.f32 %v4824_v19, %v125_v55  ;;  %v4459_v43 = vld [vmem:[%s6185_s4 + $0xb8] sm:$0xff]   ;;  %v4462_v15 = vld [vmem:[%s6185_s4 + $0xb0] sm:$0xff]  }
  0x99   :  { %v368_v28 = vsel %vm4841_vm3, %v366_v52, %v367_v13  ;;  %3625 = vst [vmem:[#allocation2 + $0x20] sm:$0xff] %v3615_v2   ;;  %v169_v56 = vadd.f32 %v4829_v22, %v124_v1  ;;  %v288_v57 = vadd.f32 %v4832_v24, %v124_v1  ;;  %v171_v23 = vadd.f32 %v4850_v10, %v126_v51 }
  0x9a   :  { %404 = vst [vmem:[#allocation2 + $0x4c] sm:$0xf] %v368_v28  ;;  %v373_v17 = vrot.slane %v3588_v14, 6  ;;  %v370_v20 = vrot.slane %v3587_v8, 6  ;;  %v183_v21 = vmax.f32 %v170_v9, 0.0  ;;  %v302_v18 = vmax.f32 %v289_v11, 0.0 }
  0x9b   :  { %v182_v25 = vmax.f32 %v169_v56, 0.0  ;;  %v301_v19 = vmax.f32 %v288_v57, 0.0  ;;  %v184_v26 = vmax.f32 %v171_v23, 0.0  ;;  %v290_v27 = vadd.f32 %v277_v3, %v126_v51  ;;  %v4464_v51 = vld [vmem:[%s6185_s4 + $0x38] sm:$0xff]   ;;  %v4466_v11 = vld [vmem:[%s6185_s4 + $0xa8] sm:$0xff]  }
  0x9c   :  { %v371_v22 = vsel %vm4841_vm3, %v369_v7, %v370_v20  ;;  %v372_v24 = vrot.slane %v370_v20, 4  ;;  %v3590_v30 = vpack.c.bf16 %v302_v18, %v302_v18  ;;  %v4897_v10 = vcombine.low %v410_v4, %v4881_v6  ;;  %v4899_v31 = vld [vmem:[#allocation2 + $0x40] sm:$0xff]   ;;  %v4465_v4 = vld [vmem:[%s6185_s4 + $0x30] sm:$0xff]   ;;  %v4944_v7 = vld [vmem:[#allocation2 + $0x18] sm:$0xff]  }
  0x9d   :  { %405 = vst [vmem:[#allocation2 + $0x50] sm:$0xf] %v371_v22  ;;  %v3620_v32 = vpack.c.bf16 %v183_v21, %v182_v25  ;;  %v3589_v33 = vpack.c.bf16 %v301_v19, %v301_v19  ;;  %v3578_v34 = vpack.c.bf16 %v184_v26, %v184_v26  ;;  %v303_v35 = vmax.f32 %v290_v27, 0.0  ;;  %v4469_v20 = vld [vmem:[%s6185_s4 + $0x28] sm:$0xff]   ;;  %v4470_v21 = vld [vmem:[%s6185_s4 + $0xa0] sm:$0xff]  }
  0x9e   :  { %v375_v37 = vrot.slane %v373_v17, 4  ;;  %v374_v38 = vsel %vm4841_vm3, %v372_v24, %v373_v17  ;;  %v379_v39 = vrot.slane %v3590_v30, 6  ;;  %v538_v40 = vshll.u32 %v4897_v10, 16  ;;  %v451_v25 = vld [vmem:[#allocation2 + $0x64] sm:$0x1] }
  0x9f   :  { %406 = vst [vmem:[#allocation2 + $0x54] sm:$0xf] %v374_v38  ;;  %3626 = vst [vmem:[#allocation2 + $0x28] sm:$0xff] %v3620_v32   ;;  %v376_v61 = vrot.slane %v3589_v33, 6  ;;  %v3591_v41 = vpack.c.bf16 %v303_v35, %v303_v35  ;;  %v543_v62 = vshll.u32 %v4890_v16, 16  ;;  %v591_v36 = vshll.u32 %v4892_v29, 16 }
  0xa0   :  { %250 = vst [vmem:[#allocation2 + $0x30] sm:$0x3] %v3578_v34  ;;  %v381_v0 = vrot.slane %v379_v39, 4  ;;  %v536_v44 = vshrl.u32 %v4897_v10, 16  ;;  %v540_v45 = vrot.slane %v538_v40, 1  ;;  %v599_v46 = vshll.u32 %v4899_v31, 16 }
  0xa1   :  { %v377_v47 = vsel %vm4841_vm3, %v375_v37, %v376_v61  ;;  %v378_v48 = vrot.slane %v376_v61, 4  ;;  %v382_v42 = vrot.slane %v3591_v41, 6  ;;  %v595_v49 = vshrl.u32 %v4892_v29, 16  ;;  %v4918_v54 = vld [vmem:[#allocation2 + $0x48] sm:$0xff]   ;;  %v4473_v27 = vld [vmem:[%s6185_s4 + $0x20] sm:$0xff]   ;;  %v4474_v32 = vld [vmem:[%s6185_s4 + $0x98] sm:$0xff]  }
  0xa2   :  { %407 = vst [vmem:[#allocation2 + $0x58] sm:$0xf] %v377_v47  ;;  %v541_v50 = vor.u32 %v540_v45, %v536_v44  ;;  %v545_v12 = vrot.slane %v543_v62, 1  ;;  %v4916_v13 = vrot.slane %v591_v36, 1  ;;  %v601_v53 = vrot.slane %v599_v46, 1  ;;  %v4976_v30 = vld [vmem:[#allocation2 + $0x20] sm:$0xff]  }
  0xa3   :  { %v380_v55 = vsel %vm4841_vm3, %v378_v48, %v379_v39  ;;  %v383_v58 = vsel %vm4841_vm3, %v381_v0, %v382_v42  ;;  %v551_v1 = vshll.u32 %v4906_v63, 16  ;;  %v607_v52 = vshll.u32 %v4918_v54, 16  ;;  %v4477_v41 = vld [vmem:[%s6185_s4 + $0x18] sm:$0xff]   ;;  %v4478_v45 = vld [vmem:[%s6185_s4 + $0x90] sm:$0xff]  }
  0xa4   :  { %408 = vst [vmem:[#allocation2 + $0x5c] sm:$0xf] %v380_v55  ;;  %409 = vst [vmem:[#allocation2 + $0x60] sm:$0xf] %v383_v58  ;;  %v546_v14 = vsel %vm534_vm4, %v541_v50, %v545_v12  ;;  %v597_v60 = vor.u32 %v595_v49, %v4916_v13  ;;  %v547_v2 = vshrl.u32 %v4890_v16, 16  ;;  %v603_v28 = vshrl.u32 %v4899_v31, 16 }
  0xa5   :  { %3833 = vmatmul.mubr.bf16.vlgmr.msra.gmra.mxu0 %v546_v14  ;;  %v553_v3 = vrot.slane %v551_v1, 1  ;;  %v609_v56 = vrot.slane %v607_v52, 1  ;;  %v559_v17 = vshll.u32 %v4944_v7, 16  ;;  %v555_v22 = vshrl.u32 %v4906_v63, 16 }
  0xa6   :  { %3953 = vmatpush3.bf16.msra.mxu0 %v4459_v43  ;;  %3836 = vmatprep.mubr.msk.bf16.mxu0 %vm4580_vm0, %v6194_v5  ;;  %v602_v59 = vsel %vm534_vm4, %v597_v60, %v601_v53  ;;  %v4947_v8 = vld [vmem:[#allocation2 + $0x50] sm:$0xff]   ;;  %v549_v9 = vor.u32 %v547_v2, %v545_v12  ;;  %v605_v23 = vor.u32 %v603_v28, %v601_v53  ;;  %v611_v37 = vshrl.u32 %v4918_v54, 16  ;;  %v5015_v42 = vld [vmem:[#allocation2 + $0x28] sm:$0xff]  }
  0xa7   :  { %3954 = vmatprep.subr.bf16.mxu0 %v6194_v5  ;;  %3861 = vmatmul.mubr.bf16.vlgmr.msra.gmra.mxu1 %v602_v59  ;;  %v615_v18 = vshll.u32 %v4947_v8, 16  ;;  %v561_v24 = vrot.slane %v559_v17, 1  ;;  %v557_v35 = vor.u32 %v555_v22, %v553_v3  ;;  %v567_v61 = vshll.u32 %v4976_v30, 16  ;;  %v4479_v43 = vld [vmem:[%s6185_s4 + $0x10] sm:$0xff]   ;;  %v4482_v53 = vld [vmem:[%s6185_s4 + $0x88] sm:$0xff]   ;;  %v4484_v59 = vld [vmem:[%s6185_s4 + $0x80] sm:$0xff]  }
  0xa8   :  { %3885 = vmatpush3.bf16.msra.mxu1 %v4464_v51  ;;  %3864 = vmatprep.mubr.msk.bf16.mxu1 %vm4580_vm0, %v6194_v5  ;;  %v554_v57 = vsel %vm534_vm4, %v549_v9, %v553_v3  ;;  %v610_v19 = vsel %vm534_vm4, %v605_v23, %v609_v56  ;;  %v613_v40 = vor.u32 %v611_v37, %v609_v56  ;;  %v563_v47 = vshrl.u32 %v4944_v7, 16  ;;  %v4483_v60 = vld [vmem:[%s6185_s4 + $0x8] sm:$0xff]   ;;  %v5043_v2 = vld [vmem:[#allocation2 + $0x30] sm:$0xff]   ;;  %v1985_v22 = vld [vmem:[#allocation2 + $0x4] sm:$0xc] }
  0xa9   :  { %3886 = vmatprep.subr.bf16.mxu1 %v6194_v5  ;;  %v617_v38 = vrot.slane %v615_v18, 1  ;;  %v562_v39 = vsel %vm534_vm4, %v557_v35, %v561_v24  ;;  %v569_v48 = vrot.slane %v567_v61, 1  ;;  %v619_v50 = vshrl.u32 %v4947_v8, 16  ;;  %v5060_v18 = vld [vmem:[#allocation2 + $0xc] sm:$0xff]   ;;  %v5068_v35 = vld [vmem:[#allocation2 + $0x1c] sm:$0xff]  }
  0xaa   :  { %3955 = vmatpush3.bf16.msra.mxu0 %v4462_v15  ;;  %v565_v49 = vor.u32 %v563_v47, %v561_v24  ;;  %v575_v14 = vshll.u32 %v5015_v42, 16  ;;  %v4485_v15 = vld [vmem:[%s6185_s4] sm:$0xff]   ;;  %v571_v52 = vshrl.u32 %v4976_v30, 16  ;;  %v579_v17 = vshrl.u32 %v5015_v42, 16  ;;  %v2270_v37 = vld [vmem:[#allocation2 + $0x68] sm:$0xf] }
  0xab   :  { %3956 = vmatprep.subr.bf16.mxu0 %v6194_v5  ;;  %v4967_v26 = vld [vmem:[#allocation2 + $0x60] sm:$0xf]  ;;  %v4981_v33 = vld [vmem:[#allocation2 + $0x58] sm:$0xff]   ;;  %v618_v0 = vsel %vm534_vm4, %v613_v40, %v617_v38  ;;  %v621_v58 = vor.u32 %v619_v50, %v617_v38  ;;  %v587_v38 = vshrl.u32 %v5043_v2, 16  ;;  %v2008_v61 = vrot.slane %v5060_v18, 2  ;;  %v5080_v47 = vld [vmem:[#allocation2 + $0x2c] sm:$0xff]  }
  0xac   :  { %3887 = vmatpush3.bf16.msra.mxu1 %v4465_v4  ;;  %v4985_v34 = vcombine.low %v4967_v26, %v451_v25  ;;  %v6191_v62 = vrot.slane %v4981_v33, 1  ;;  %v623_v44 = vshll.u32 %v4981_v33, 16  ;;  %v570_v55 = vsel %vm534_vm4, %v565_v49, %v569_v48  ;;  %v5084_v49 = vld [vmem:[#allocation2 + $0x34] sm:$0xff]   ;;  %v5086_v50 = vld [vmem:[#allocation2 + $0x3c] sm:$0xff]  }
  0xad   :  { %3837 = vmatmul.mubr.bf16.gmra.mxu0 %v554_v57  ;;  %3888 = vmatprep.subr.bf16.mxu1 %v6194_v5  ;;  %v577_v3 = vrot.slane %v575_v14, 1  ;;  %v627_v4 = vshrl.u32 %v4981_v33, 16  ;;  %v573_v9 = vor.u32 %v571_v52, %v569_v48  ;;  %v583_v57 = vshll.u32 %v5043_v2, 16  ;;  %v5082_v48 = vld [vmem:[#allocation2 + $0x64] sm:$0xf] }
  0xae   :  { %3957 = vmatpush3.bf16.msra.mxu0 %v4466_v11  ;;  %3840 = vmatprep.mubr.msk.bf16.mxu0 %vm4580_vm0, %v6194_v5  ;;  %v6190_v36 = vrot.slane %v4985_v34, 1  ;;  %v625_v12 = vrot.slane %v623_v44, 1  ;;  %v631_v51 = vshll.u32 %v4985_v34, 16  ;;  %v635_v25 = vshrl.u32 %v4985_v34, 16 }
  0xaf   :  { %3865 = vmatmul.mubr.bf16.gmra.mxu1 %v610_v19  ;;  %3958 = vmatprep.subr.bf16.mxu0 %v6194_v5  ;;  %v578_v56 = vsel %vm534_vm4, %v573_v9, %v577_v3  ;;  %v5063_v19 = vld [vmem:[#allocation2 + $0x8] sm:$0xf] }
  0xb0   :  { %3889 = vmatpush3.bf16.msra.mxu1 %v4469_v20  ;;  %3868 = vmatprep.mubr.msk.bf16.mxu1 %vm4580_vm0, %v6194_v5  ;;  %v5010_v46 = vsel %vm1046_vm5, %v6191_v62, %v6190_v36  ;;  %v626_v1 = vsel %vm534_vm4, %v621_v58, %v625_v12  ;;  %v629_v11 = vor.u32 %v627_v4, %v625_v12  ;;  %v633_v28 = vrot.slane %v631_v51, 1  ;;  %v1633_v12 = vld [vmem:[#allocation2 + $0x68] sm:$0x3]  ;;  %v5111_v4 = vld [vmem:[#allocation2 + $0x4c] sm:$0xff]  }
  0xb1   :  { %3890 = vmatprep.subr.bf16.mxu1 %v6194_v5  ;;  %v585_v20 = vrot.slane %v583_v57, 1  ;;  %v3443_v40 = vcombine.low %v1985_v22, %v5063_v19  ;;  %v5114_v9 = vcombine.low %v5082_v48, %v1633_v12  ;;  %v5122_v57 = vld [vmem:[#allocation2 + $0x5c] sm:$0xff]  }
  0xb2   :  { %3959 = vmatpush3.bf16.msra.mxu0 %v4470_v21  ;;  %v634_v23 = vsel %vm534_vm4, %v629_v11, %v633_v28  ;;  %v581_v21 = vor.u32 %v579_v17, %v577_v3 }
  0xb3   :  { %3960 = vmatprep.subr.bf16.mxu0 %v6194_v5 }
  0xb4   :  { %3891 = vmatpush3.bf16.msra.mxu1 %v4473_v27  ;;  %v5065_v27 = vld [vmem:[#allocation2 + $0x14] sm:$0xff]   ;;  %v586_v24 = vsel %vm534_vm4, %v581_v21, %v585_v20 }
  0xb5   :  { %3841 = vmatmul.mubr.bf16.gmra.mxu0 %v562_v39  ;;  %3892 = vmatprep.subr.bf16.mxu1 %v6194_v5  ;;  %v5073_v39 = vld [vmem:[#allocation2 + $0x24] sm:$0xff]   ;;  %v2010_v44 = vrot.slane %v5065_v27, 2 }
  0xb6   :  { %3844 = vmatprep.mubr.msk.bf16.mxu0 %vm4580_vm0, %v6194_v5  ;;  %3961 = vmatpush3.bf16.msra.mxu0 %v4474_v32  ;;  %v637_v32 = vor.u32 %v635_v25, %v633_v28  ;;  %v2014_v51 = vrot.slane %v5073_v39, 2  ;;  %v2016_v28 = vrot.slane %v5080_v47, 2 }
  0xb7   :  { %3869 = vmatmul.mubr.bf16.gmra.mxu1 %v618_v0  ;;  %3962 = vmatprep.subr.bf16.mxu0 %v6194_v5  ;;  %v1025_v0 = vld [vmem:[#allocation2] sm:$0xe] }
  0xb8   :  { %3872 = vmatprep.mubr.msk.bf16.mxu1 %vm4580_vm0, %v6194_v5  ;;  %3893 = vmatpush3.bf16.msra.mxu1 %v4477_v41  ;;  %v2593_v41 = vld [vmem:[#allocation2 + $0x6c] sm:$0x7]  ;;  %v3356_v14 = vcombine.low %v1025_v0, %v4881_v6  ;;  %v4487_v6 = vld [vmem:[%s6185_s4 + $0xf8] sm:$0xff]   ;;  %v5134_v22 = vsel %vm2006_vm6, %v2014_v51, %v2016_v28  ;;  %v2024_v0 = vrot.slane %v5111_v4, 2 }
  0xb9   :  { %3894 = vmatprep.subr.bf16.mxu1 %v6194_v5  ;;  %v5092_v58 = vcombine.low %v2270_v37, %v2593_v41  ;;  %v1050_v37 = vrot.slane %v4906_v63, 1 }
  0xba   :  { %3963 = vmatpush3.bf16.msra.mxu0 %v4478_v45  ;;  %v589_v45 = vor.u32 %v587_v38, %v585_v20  ;;  %v1047_v21 = vrot.slane %v3356_v14, 1 }
  0xbb   :  { %3964 = vmatprep.subr.bf16.mxu0 %v6194_v5  ;;  %v2723_v17 = vshrl.u32 %v5092_v58, 16  ;;  %v2726_v20 = vshll.u32 %v5092_v58, 16 }
  0xbc   :  { %3895 = vmatpush3.bf16.msra.mxu1 %v4479_v43  ;;  %v2007_v43 = vrot.slane %v3443_v40, 2  ;;  %v594_v3 = vsel %vm534_vm4, %v589_v45, %v4916_v13  ;;  %v2018_v13 = vrot.slane %v5084_v49, 2  ;;  %v4488_v45 = vld [vmem:[%s6185_s4 + $0x138] sm:$0xff]  }
  0xbd   :  { %3845 = vmatmul.mubr.bf16.gmra.mxu0 %v570_v55  ;;  %3896 = vmatprep.subr.bf16.mxu1 %v6194_v5  ;;  %v2012_v55 = vrot.slane %v5068_v35, 2  ;;  %v5163_v14 = vrot.slane %v2723_v17, 2  ;;  %v5177_v17 = vld [vmem:[#allocation2 + $0x20] sm:$0xff]  }
  0xbe   :  { %3848 = vmatprep.mubr.msk.bf16.mxu0 %vm4580_vm0, %v6194_v5  ;;  %3965 = vmatpush3.bf16.msra.mxu0 %v4482_v53  ;;  %v5089_v53 = vsel %vm2006_vm6, %v2008_v61, %v2010_v44  ;;  %v5141_v38 = vsel %vm2006_vm6, %v2016_v28, %v2018_v13 }
  0xbf   :  { %3873 = vmatmul.mubr.bf16.gmra.mxu1 %v626_v1  ;;  %3966 = vmatprep.subr.bf16.mxu0 %v6194_v5  ;;  %v5098_v1 = vsel %vm2006_vm6, %v2007_v43, %v2008_v61  ;;  %v5104_v52 = vsel %vm2006_vm6, %v2010_v44, %v2012_v55  ;;  %v5117_v11 = vsel %vm2006_vm6, %v2012_v55, %v2014_v51  ;;  %v4489_v61 = vld [vmem:[%s6185_s4 + $0xf0] sm:$0xff]   ;;  %v6193_v44 = vrot.slane %v5114_v9, 2 }
  0xc0   :  { %3876 = vmatprep.mubr.msk.bf16.mxu1 %vm4580_vm0, %v6194_v5  ;;  %3897 = vmatpush3.bf16.msra.mxu1 %v4483_v60  ;;  %v5095_v60 = vld [vmem:[#allocation2 + $0x44] sm:$0xff]   ;;  %v4536_v43 = vld [vmem:[#allocation2 + $0x10] sm:$0xff]   ;;  %v2028_v55 = vrot.slane %v5122_v57, 2 }
  0xc1   :  { %3898 = vmatprep.subr.bf16.mxu1 %v6194_v5 }
  0xc2   :  { %3967 = vmatpush3.bf16.msra.mxu0 %v4484_v59  ;;  %v2246_v59 = vld [vmem:[#allocation2 + $0x8] sm:$0xc] }
  0xc3   :  { %4088 = vmatprep.subr.bf16.mxu0 %v6194_v5 }
  0xc4   :  { %3899 = vmatpush3.bf16.msra.mxu1 %v4485_v15  ;;  %v5101_v15 = vld [vmem:[#allocation2 + $0xc] sm:$0xf] }
  0xc5   :  { %3849 = vmatmul.mubr.bf16.gmra.mxu0 %v578_v56  ;;  %4020 = vmatprep.subr.bf16.mxu1 %v6194_v5  ;;  %v5120_v56 = vld [vmem:[#allocation2 + $0x54] sm:$0xff]   ;;  %v5131_v25 = vcombine.low %v2246_v59, %v5101_v15 }
  0xc6   :  { %3852 = vmatprep.mubr.msk.bf16.mxu0 %vm4580_vm0, %v6194_v5  ;;  %v2026_v12 = vrot.slane %v5120_v56, 2 }
  0xc7   :  { %3877 = vmatmul.mubr.bf16.gmra.mxu1 %v634_v23  ;;  %v2020_v23 = vrot.slane %v5086_v50, 2  ;;  %v2616_v28 = vshrl.u32 %v5131_v25, 16 }
  0xc8   :  { %3880 = vmatprep.mubr.msk.bf16.mxu1 %vm4580_vm0, %v6194_v5  ;;  %v5180_v51 = vsel %vm2006_vm6, %v2024_v0, %v2026_v12  ;;  %v5183_v59 = vsel %vm2006_vm6, %v2026_v12, %v2028_v55  ;;  %v2627_v12 = vshll.u32 %v4536_v43, 16 }
  0xc9   :  { %v5144_v40 = vsel %vm2006_vm6, %v2018_v13, %v2020_v23  ;;  %v2945_v13 = vld [vmem:[#allocation2 + $0x8] sm:$0x8]  ;;  %6201 = vst [vmem:[#allocation6_spill] sm:$0xff] %v5180_v51  ;;  %6202 = vst [vmem:[#allocation7_spill] sm:$0xff] %v5183_v59  ;;  %v2642_v51 = vshrl.u32 %v5177_v17, 16 }
  0xca   :  { %6198 = vst [vmem:[#allocation3_spill] sm:$0xff] %v5144_v40  ;;  %v2645_v40 = vshll.u32 %v5177_v17, 16 }
  0xcd   :  { %3853 = vmatmul.mubr.bf16.gmra.mxu0 %v586_v24  ;;  %v2022_v24 = vrot.slane %v5095_v60, 2 }
  0xce   :  { %3856 = vmatprep.mubr.msk.bf16.mxu0 %vm4580_vm0, %v6194_v5 }
  0xcf   :  { %3881 = vmatmul.mubr.bf16.gmra.mxu1 %v637_v32  ;;  %v1048_v32 = vrot.slane %v4890_v16, 1  ;;  %v5153_v41 = vsel %vm2006_vm6, %v2020_v23, %v2022_v24  ;;  %v5173_v23 = vrot.slane %v2726_v20, 3  ;;  %v4491_v20 = vld [vmem:[%s6185_s4 + $0xe8] sm:$0xff]  }
  0xd0   :  { %3900 = vmatprep.mubr.msk.bf16.mxu1 %vm4580_vm0, %v6194_v5  ;;  %6199 = vst [vmem:[#allocation4_spill] sm:$0xff] %v5153_v41 }
  0xd1   :  { %v1049_v36 = vsel %vm1046_vm5, %v1047_v21, %v1048_v32  ;;  %v1051_v62 = vsel %vm1046_vm5, %v1048_v32, %v1050_v37  ;;  %v5196_v21 = vsel %vm2006_vm6, %v2028_v55, %v6193_v44  ;;  %v2618_v32 = vrot.slane %v2616_v28, 2  ;;  %v4490_v55 = vld [vmem:[%s6185_s4 + $0x130] sm:$0xff]   ;;  %v5206_v44 = vld [vmem:[#allocation2 + $0x28] sm:$0xff]  }
  0xd2   :  { %6203 = vst [vmem:[#allocation8_spill] sm:$0xff] %v5196_v21 }
  0xd5   :  { %3857 = vmatmul.mubr.bf16.gmra.mxu0 %v594_v3  ;;  %v5167_v3 = vld [vmem:[#allocation2 + $0x18] sm:$0xff]  }
  0xd6   :  { %3968 = vmatprep.mubr.msk.bf16.mxu0 %vm4580_vm0, %v6194_v5  ;;  %v2636_v21 = vshll.u32 %v5167_v3, 16  ;;  %v2970_v59 = vrot.slane %v5167_v3, 3 }
  0xd7   :  { %3901 = vmatmul.mubr.bf16.vlgmr.msra.gmra.mxu1 %v4897_v10  ;;  %v6192_v10 = vrot.slane %v4944_v7, 1 }
  0xd8   :  { %4021 = vmatpush3.bf16.msra.mxu1 %v4487_v6  ;;  %3904 = vmatprep.mubr.msk.bf16.mxu1 %vm4580_vm0, %v6194_v5  ;;  %v5170_v6 = vsel %vm2006_vm6, %v2022_v24, %v2024_v0  ;;  %v2619_v0 = vshll.u32 %v5131_v25, 16 }
  0xd9   :  { %4022 = vmatprep.subr.bf16.mxu1 %v6194_v5  ;;  %6200 = vst [vmem:[#allocation5_spill] sm:$0xff] %v5170_v6  ;;  %v5188_v24 = vsel %vm1046_vm5, %v1050_v37, %v6192_v10  ;;  %v3530_v37 = vcombine.low %v2945_v13, %v5101_v15  ;;  %v2968_v10 = vrot.slane %v4536_v43, 3  ;;  %v5213_v15 = vld [vmem:[#allocation2 + $0x30] sm:$0xff]  }
  0xda   :  { %v2621_v28 = vrot.slane %v2619_v0, 3  ;;  %v4493_v0 = vld [vmem:[%s6185_s4 + $0xe0] sm:$0xff]  }
  0xdb   :  { %v2967_v13 = vrot.slane %v3530_v37, 3  ;;  %v5222_v41 = vsel %vm2966_vm7, %v2968_v10, %v2970_v59  ;;  %v2644_v37 = vrot.slane %v2642_v51, 2 }
  0xdc   :  { %4023 = vmatpush3.bf16.msra.mxu1 %v4489_v61  ;;  %v2624_v61 = vshrl.u32 %v4536_v43, 16  ;;  %v2629_v43 = vrot.slane %v2627_v12, 3  ;;  %6204 = vst [vmem:[#allocation9_spill] sm:$0xff] %v5222_v41 }
  0xdd   :  { %3969 = vmatmul.mubr.bf16.vlgmr.msra.gmra.mxu0 %v1049_v36  ;;  %4024 = vmatprep.subr.bf16.mxu1 %v6194_v5  ;;  %v2633_v36 = vshrl.u32 %v5167_v3, 16  ;;  %v2622_v3 = vor.u32 %v2621_v28, %v2618_v32  ;;  %v5226_v12 = vsel %vm2966_vm7, %v2967_v13, %v2968_v10  ;;  %v5232_v32 = vld [vmem:[#allocation2 + $0x38] sm:$0xff]   ;;  %v2972_v28 = vrot.slane %v5177_v17, 3  ;;  %v5238_v10 = vld [vmem:[#allocation2 + $0x40] sm:$0xff]  }
  0xde   :  { %4089 = vmatpush3.bf16.msra.mxu0 %v4488_v45  ;;  %3972 = vmatprep.mubr.msk.bf16.mxu0 %vm4580_vm0, %v6194_v5  ;;  %v2626_v45 = vrot.slane %v2624_v61, 2  ;;  %6205 = vst [vmem:[#allocation10_spill] sm:$0xff] %v5226_v12  ;;  %v2660_v13 = vshrl.u32 %v5213_v15, 16  ;;  %v2663_v12 = vshll.u32 %v5213_v15, 16 }
  0xdf   :  { %3905 = vmatmul.mubr.bf16.gmra.mxu1 %v4890_v16  ;;  %4090 = vmatprep.subr.bf16.mxu0 %v6194_v5  ;;  %v2635_v6 = vrot.slane %v2633_v36, 2  ;;  %v2638_v16 = vrot.slane %v2636_v21, 3  ;;  %v2651_v36 = vshrl.u32 %v5206_v44, 16 }
  0xe0   :  { %3908 = vmatprep.mubr.msk.bf16.mxu1 %vm4580_vm0, %v6194_v5  ;;  %4025 = vmatpush3.bf16.msra.mxu1 %v4491_v20  ;;  %v2630_v61 = vor.u32 %v2629_v43, %v2626_v45  ;;  %v4492_v20 = vld [vmem:[%s6185_s4 + $0x128] sm:$0xff]   ;;  %v2654_v45 = vshll.u32 %v5206_v44, 16  ;;  %v2974_v43 = vrot.slane %v5206_v44, 3 }
  0xe1   :  { %4026 = vmatprep.subr.bf16.mxu1 %v6194_v5  ;;  %v2639_v21 = vor.u32 %v2638_v16, %v2635_v6  ;;  %v4495_v6 = vld [vmem:[%s6185_s4 + $0xd8] sm:$0xff]   ;;  %v5252_v16 = vsel %vm2966_vm7, %v2970_v59, %v2972_v28  ;;  %v4494_v59 = vld [vmem:[%s6185_s4 + $0x120] sm:$0xff]  }
  0xe2   :  { %4091 = vmatpush3.bf16.msra.mxu0 %v4490_v55  ;;  %v5241_v51 = vsel %vm2614_vm8, %v2622_v3, %v2630_v61  ;;  %v2647_v55 = vrot.slane %v2645_v40, 3  ;;  %6206 = vst [vmem:[#allocation11_spill] sm:$0xff] %v5252_v16  ;;  %v2656_v41 = vrot.slane %v2654_v45, 3  ;;  %v6207_v3 = vmov 0.0   ;;  %v5271_v45 = vld [vmem:[#allocation2 + $0x50] sm:$0xff]  }
  0xe3   :  { %4092 = vmatprep.subr.bf16.mxu0 %v6194_v5  ;;  %v5249_v17 = vsel %vm2614_vm8, %v2630_v61, %v2639_v21  ;;  %v2653_v5 = vrot.slane %v2651_v36, 2  ;;  %v5256_v44 = vsel %vm2966_vm7, %v2972_v28, %v2974_v43  ;;  %v5264_v61 = vld [vmem:[#allocation2 + $0x48] sm:$0xff]   ;;  %v2976_v36 = vrot.slane %v5213_v15, 3 }
  0xe4   :  { %4027 = vmatpush3.bf16.msra.mxu1 %v4493_v0  ;;  %v2648_v40 = vor.u32 %v2647_v55, %v2644_v37  ;;  %6208 = vst [vmem:[#allocation12_spill] sm:$0xff] %v5256_v44  ;;  %v2662_v0 = vrot.slane %v2660_v13, 2  ;;  %v2669_v37 = vshrl.u32 %v5232_v32, 16  ;;  %v2672_v28 = vshll.u32 %v5232_v32, 16 }
  0xe5   :  { %3973 = vmatmul.mubr.bf16.gmra.mxu0 %v1051_v62  ;;  %4028 = vmatprep.subr.bf16.mxu1 %v6207_v3  ;;  %v2657_v62 = vor.u32 %v2656_v41, %v2653_v5  ;;  %v2665_v55 = vrot.slane %v2663_v12, 3  ;;  %v2978_v13 = vrot.slane %v5232_v32, 3  ;;  %v2678_v5 = vshrl.u32 %v5238_v10, 16 }
  0xe6   :  { %3976 = vmatprep.mubr.msk.bf16.mxu0 %vm4580_vm0, %v6207_v3  ;;  %4093 = vmatpush3.bf16.msra.mxu0 %v4492_v20  ;;  %v5274_v20 = vsel %vm2614_vm8, %v2639_v21, %v2648_v40  ;;  %v5287_v15 = vsel %vm2966_vm7, %v2974_v43, %v2976_v36  ;;  %v2671_v21 = vrot.slane %v2669_v37, 2  ;;  %v2674_v12 = vrot.slane %v2672_v28, 3 }
  0xe7   :  { %3909 = vmatmul.mubr.bf16.gmra.mxu1 %v4906_v63  ;;  %4094 = vmatprep.subr.bf16.mxu0 %v6207_v3  ;;  %6209 = vst [vmem:[#allocation13_spill] sm:$0xff] %v5274_v20  ;;  %v4497_v63 = vld [vmem:[%s6185_s4 + $0xd0] sm:$0xff]   ;;  %v5284_v41 = vsel %vm2614_vm8, %v2648_v40, %v2657_v62  ;;  %6211 = vst [vmem:[#allocation15_spill] sm:$0xff] %v5287_v15  ;;  %v2666_v32 = vor.u32 %v2665_v55, %v2662_v0  ;;  %v2680_v16 = vrot.slane %v2678_v5, 2  ;;  %v4496_v40 = vld [vmem:[%s6185_s4 + $0x118] sm:$0xff]  }
  0xe8   :  { %3912 = vmatprep.mubr.msk.bf16.mxu1 %vm4580_vm0, %v6207_v3  ;;  %4029 = vmatpush3.bf16.msra.mxu1 %v4495_v6  ;;  %6210 = vst [vmem:[#allocation14_spill] sm:$0xff] %v5284_v41  ;;  %v5291_v44 = vsel %vm2966_vm7, %v2976_v36, %v2978_v13  ;;  %v2681_v6 = vshll.u32 %v5238_v10, 16  ;;  %v4557_v41 = vld [vmem:[#allocation2 + $0x58] sm:$0xff]   ;;  %v2675_v20 = vor.u32 %v2674_v12, %v2671_v21  ;;  %v2980_v43 = vrot.slane %v5238_v10, 3  ;;  %v4560_v0 = vld [vmem:[#allocation2 + $0x60] sm:$0xff]   ;;  %v4499_v10 = vld [vmem:[%s6185_s4 + $0xc8] sm:$0xff]  }
  0xe9   :  { %4030 = vmatprep.subr.bf16.mxu1 %v6207_v3  ;;  %6212 = vst [vmem:[#allocation16_spill] sm:$0xff] %v5291_v44  ;;  %v2687_v37 = vshrl.u32 %v5264_v61, 16  ;;  %v2690_v28 = vshll.u32 %v5264_v61, 16  ;;  %v5302_v36 = vsel %vm2614_vm8, %v2657_v62, %v2666_v32  ;;  %v2696_v5 = vshrl.u32 %v5271_v45, 16 }
  0xea   :  { %4095 = vmatpush3.bf16.msra.mxu0 %v4494_v59  ;;  %v2683_v55 = vrot.slane %v2681_v6, 3  ;;  %v2982_v59 = vrot.slane %v5264_v61, 3  ;;  %v5310_v21 = vsel %vm2614_vm8, %v2666_v32, %v2675_v20  ;;  %v5313_v12 = vsel %vm2966_vm7, %v2978_v13, %v2980_v43  ;;  %v4498_v13 = vld [vmem:[%s6185_s4 + $0x110] sm:$0xff]  }
  0xeb   :  { %4096 = vmatprep.subr.bf16.mxu0 %v6207_v3  ;;  %6213 = vst [vmem:[#allocation17_spill] sm:$0xff] %v5313_v12  ;;  %v2689_v44 = vrot.slane %v2687_v37, 2  ;;  %v2692_v15 = vrot.slane %v2690_v28, 3  ;;  %v2699_v6 = vshll.u32 %v5271_v45, 16  ;;  %v2705_v37 = vshrl.u32 %v4557_v41, 16  ;;  %v4500_v12 = vld [vmem:[%s6185_s4 + $0x108] sm:$0xff]  }
  0xec   :  { %4031 = vmatpush3.bf16.msra.mxu1 %v4497_v63  ;;  %v2684_v61 = vor.u32 %v2683_v55, %v2680_v16  ;;  %v5318_v62 = vsel %vm2966_vm7, %v2980_v43, %v2982_v59  ;;  %v2698_v63 = vrot.slane %v2696_v5, 2  ;;  %v2708_v28 = vshll.u32 %v4557_v41, 16 }
  0xed   :  { %3977 = vmatmul.mubr.bf16.gmra.mxu0 %v5188_v24  ;;  %4032 = vmatprep.subr.bf16.mxu1 %v6207_v3  ;;  %6214 = vst [vmem:[#allocation18_spill] sm:$0xff] %v5318_v62  ;;  %v2693_v32 = vor.u32 %v2692_v15, %v2689_v44  ;;  %v2984_v24 = vrot.slane %v5271_v45, 3  ;;  %v2701_v43 = vrot.slane %v2699_v6, 3  ;;  %v2986_v55 = vrot.slane %v4557_v41, 3  ;;  %v4501_v44 = vld [vmem:[%s6185_s4 + $0xc0] sm:$0xff]  }
  0xee   :  { %3980 = vmatprep.mubr.msk.bf16.mxu0 %vm4580_vm0, %v6207_v3  ;;  %4097 = vmatpush3.bf16.msra.mxu0 %v4496_v40  ;;  %v5330_v16 = vsel %vm2614_vm8, %v2675_v20, %v2684_v61  ;;  %v2714_v5 = vshrl.u32 %v4560_v0, 16  ;;  %v2707_v40 = vrot.slane %v2705_v37, 2  ;;  %v2710_v20 = vrot.slane %v2708_v28, 3 }
  0xef   :  { %3913 = vmatmul.mubr.bf16.gmra.mxu1 %v4944_v7  ;;  %4098 = vmatprep.subr.bf16.mxu0 %v6207_v3  ;;  %v5338_v45 = vsel %vm2614_vm8, %v2684_v61, %v2693_v32  ;;  %v5341_v15 = vsel %vm2966_vm7, %v2982_v59, %v2984_v24  ;;  %v2702_v41 = vor.u32 %v2701_v43, %v2698_v63 }
  0xf0   :  { %3916 = vmatprep.mubr.msk.bf16.mxu1 %vm4580_vm0, %v6207_v3  ;;  %4033 = vmatpush3.bf16.msra.mxu1 %v4499_v10  ;;  %6215 = vst [vmem:[#allocation19_spill] sm:$0xff] %v5338_v45  ;;  %v5345_v6 = vsel %vm2966_vm7, %v2984_v24, %v2986_v55  ;;  %v2716_v62 = vrot.slane %v2714_v5, 2  ;;  %v2717_v10 = vshll.u32 %v4560_v0, 16  ;;  %v2711_v61 = vor.u32 %v2710_v20, %v2707_v40 }
  0xf1   :  { %4034 = vmatprep.subr.bf16.mxu1 %v6207_v3  ;;  %v2988_v45 = vrot.slane %v4560_v0, 3  ;;  %v5352_v59 = vsel %vm2614_vm8, %v2693_v32, %v2702_v41  ;;  %v5356_v63 = vor.u32 %v5173_v23, %v5163_v14  ;;  %v6216_v24 = vrot.slane %v4976_v30, 1 }
  0xf2   :  { %4099 = vmatpush3.bf16.msra.mxu0 %v4498_v13  ;;  %v2719_v37 = vrot.slane %v2717_v10, 3  ;;  %v6217_v13 = vrot.slane %v4944_v7, 1  ;;  %v5364_v43 = vsel %vm2614_vm8, %v2702_v41, %v2711_v61  ;;  %v6218_v32 = vrot.slane %v5092_v58, 3  ;;  %v4502_v7 = vld [vmem:[%s6185_s4 + $0x100] sm:$0xff]  }
  0xf3   :  { %4100 = vmatprep.subr.bf16.mxu0 %v6207_v3  ;;  %v5367_v0 = vsel %vm2966_vm7, %v2986_v55, %v2988_v45  ;;  %v1062_v20 = vrot.slane %v4899_v31, 1  ;;  %v1064_v41 = vrot.slane %v4918_v54, 1  ;;  %v1066_v10 = vrot.slane %v4947_v8, 1 }
  0xf4   :  { %v1055_v28 = vsel %vm1046_vm5, %v6217_v13, %v6216_v24  ;;  %4035 = vmatpush3.bf16.msra.mxu1 %v4501_v44  ;;  %v5372_v5 = vsel %vm2966_vm7, %v2988_v45, %v6218_v32  ;;  %v2720_v14 = vor.u32 %v2719_v37, %v2716_v62  ;;  %v1056_v62 = vrot.slane %v5015_v42, 1  ;;  %v1286_v37 = vld [vmem:[#allocation2 + $0x4] sm:$0xe] }
  0xf5   :  { %3981 = vmatmul.mubr.bf16.gmra.mxu0 %v1055_v28  ;;  %4156 = vmatprep.subr.bf16.mxu1 %v6207_v3  ;;  %v1058_v45 = vrot.slane %v5043_v2, 1  ;;  %v1667_v13 = vshll.u32 %v5060_v18, 16  ;;  %v1395_v28 = vrot.slane %v5060_v18, 1 }
  0xf6   :  { %3984 = vmatprep.mubr.msk.bf16.mxu0 %vm4580_vm0, %v6207_v3  ;;  %4101 = vmatpush3.bf16.msra.mxu0 %v4500_v12  ;;  %v5383_v23 = vsel %vm2614_vm8, %v2711_v61, %v2720_v14  ;;  %v5387_v55 = vsel %vm2614_vm8, %v2720_v14, %v5356_v63  ;;  %v6219_v12 = vmov %v6216_v24  ;;  %v6220_v61 = vrot.slane %v4981_v33, 1 }
  0xf7   :  { %3917 = vmatmul.mubr.bf16.gmra.mxu1 %v4976_v30  ;;  %4102 = vmatprep.subr.bf16.mxu0 %v6207_v3  ;;  %v1057_v44 = vsel %vm1046_vm5, %v6219_v12, %v1056_v62  ;;  %v1059_v40 = vsel %vm1046_vm5, %v1056_v62, %v1058_v45  ;;  %v1060_v30 = vrot.slane %v4892_v29, 1  ;;  %v3381_v24 = vcombine.low %v1286_v37, %v5063_v19  ;;  %v4506_v62 = vld [vmem:[%s6185_s4 + $0x178] sm:$0xff]  }
  0xf8   :  { %3920 = vmatprep.mubr.msk.bf16.mxu1 %vm4580_vm0, %v6207_v3  ;;  %v6221_v19 = vrot.slane %v4985_v34, 1  ;;  %v4509_v34 = vld [vmem:[%s6185_s4 + $0x170] sm:$0xff]   ;;  %v1682_v37 = vshrl.u32 %v5068_v35, 16 }
  0xf9   :  { %v1656_v32 = vshrl.u32 %v3381_v24, 16  ;;  %v1394_v14 = vrot.slane %v3381_v24, 1 }
  0xfa   :  { %4103 = vmatpush3.bf16.msra.mxu0 %v4502_v7 }
  0xfb   :  { %4224 = vmatprep.subr.bf16.mxu0 %v6207_v3  ;;  %v1396_v12 = vsel %vm1046_vm5, %v1394_v14, %v1395_v28  ;;  %v4520_v14 = vld [vmem:[%s6185_s4 + $0x158] sm:$0xff]  }
  0xfd   :  { %3985 = vmatmul.mubr.bf16.gmra.mxu0 %v1057_v44  ;;  %v1658_v44 = vrot.slane %v1656_v32, 1  ;;  %v1684_v32 = vrot.slane %v1682_v37, 1 }
  0xfe   :  { %3988 = vmatprep.mubr.msk.bf16.mxu0 %vm4580_vm0, %v6207_v3 }
  0xff   :  { %3921 = vmatmul.mubr.bf16.gmra.mxu1 %v5015_v42  ;;  %v1061_v42 = vsel %vm1046_vm5, %v1058_v45, %v1060_v30 }
 0x100   :  { %3924 = vmatprep.mubr.msk.bf16.mxu1 %vm4580_vm0, %v6207_v3 }
 0x105   :  { %3989 = vmatmul.mubr.bf16.gmra.mxu0 %v1059_v40  ;;  %v1673_v40 = vshrl.u32 %v5065_v27, 16 }
 0x106   :  { %3992 = vmatprep.mubr.msk.bf16.mxu0 %vm4580_vm0, %v6207_v3 }
 0x107   :  { %3925 = vmatmul.mubr.bf16.gmra.mxu1 %v5043_v2  ;;  %v1063_v2 = vsel %vm1046_vm5, %v1060_v30, %v1062_v20  ;;  %v1676_v30 = vshll.u32 %v5065_v27, 16 }
 0x108   :  { %3928 = vmatprep.mubr.msk.bf16.mxu1 %vm4580_vm0, %v6207_v3 }
 0x10d   :  { %3993 = vmatmul.mubr.bf16.gmra.mxu0 %v1061_v42 }
 0x10e   :  { %3996 = vmatprep.mubr.msk.bf16.mxu0 %vm4580_vm0, %v6207_v3 }
 0x10f   :  { %3929 = vmatmul.mubr.bf16.gmra.mxu1 %v4892_v29  ;;  %v1065_v29 = vsel %vm1046_vm5, %v1062_v20, %v1064_v41  ;;  %v4507_v20 = vld [vmem:[%s6185_s4 + $0x1b8] sm:$0xff]  }
 0x110   :  { %3932 = vmatprep.mubr.msk.bf16.mxu1 %vm4580_vm0, %v6207_v3 }
 0x115   :  { %3997 = vmatmul.mubr.bf16.gmra.mxu0 %v1063_v2  ;;  %v1397_v2 = vrot.slane %v5065_v27, 1  ;;  %v4510_v27 = vld [vmem:[%s6185_s4 + $0x1b0] sm:$0xff]  }
 0x116   :  { %4000 = vmatprep.mubr.msk.bf16.mxu0 %vm4580_vm0, %v6207_v3 }
 0x117   :  { %3933 = vmatmul.mubr.bf16.gmra.mxu1 %v4899_v31  ;;  %v1067_v31 = vsel %vm1046_vm5, %v1064_v41, %v1066_v10 }
 0x118   :  { %3936 = vmatprep.mubr.msk.bf16.mxu1 %vm4580_vm0, %v6207_v3 }
 0x11d   :  { %4001 = vmatmul.mubr.bf16.gmra.mxu0 %v1065_v29  ;;  %v1675_v29 = vrot.slane %v1673_v40, 1 }
 0x11e   :  { %4004 = vmatprep.mubr.msk.bf16.mxu0 %vm4580_vm0, %v6207_v3 }
 0x11f   :  { %3937 = vmatmul.mubr.bf16.gmra.mxu1 %v4918_v54  ;;  %v1069_v54 = vsel %vm1046_vm5, %v1066_v10, %v6220_v61  ;;  %v1678_v10 = vrot.slane %v1676_v30, 2  ;;  %v1398_v61 = vsel %vm1046_vm5, %v1395_v28, %v1397_v2 }
 0x120   :  { %3940 = vmatprep.mubr.msk.bf16.mxu1 %vm4580_vm0, %v6207_v3 }
 0x125   :  { %4005 = vmatmul.mubr.bf16.gmra.mxu0 %v1067_v31  ;;  %v4513_v31 = vld [vmem:[%s6185_s4 + $0x168] sm:$0xff]  }
 0x126   :  { %4008 = vmatprep.mubr.msk.bf16.mxu0 %vm4580_vm0, %v6207_v3 }
 0x127   :  { %3941 = vmatmul.mubr.bf16.gmra.mxu1 %v4947_v8  ;;  %v3331_v8 = vcombine.low %v4967_v26, %v4967_v26  ;;  %v1669_v26 = vrot.slane %v1667_v13, 2  ;;  %v4514_v13 = vld [vmem:[%s6185_s4 + $0x1a8] sm:$0xff]  }
 0x128   :  { %3944 = vmatprep.mubr.msk.bf16.mxu1 %vm4580_vm0, %v6207_v3 }
 0x12d   :  { %4009 = vmatmul.mubr.bf16.gmra.mxu0 %v1069_v54  ;;  %v1679_v54 = vor.u32 %v1678_v10, %v1675_v29  ;;  %v4532_v29 = vld [vmem:[%s6185_s4 + $0x140] sm:$0xff]   ;;  %v1403_v10 = vrot.slane %v5080_v47, 1 }
 0x12e   :  { %4012 = vmatprep.mubr.msk.bf16.mxu0 %vm4580_vm0, %v6207_v3 }
 0x12f   :  { %3945 = vmatmul.mubr.bf16.gmra.mxu1 %v4981_v33  ;;  %v1664_v33 = vshrl.u32 %v5060_v18, 16 }
 0x130   :  { %3948 = vmatprep.mubr.msk.bf16.mxu1 %vm4580_vm0, %v6207_v3 }
 0x131   :  { %v1666_v7 = vrot.slane %v1664_v33, 1  ;;  %v1399_v33 = vrot.slane %v5068_v35, 1 }
 0x133   :  { %v1670_v18 = vor.u32 %v1669_v26, %v1666_v7  ;;  %v4518_v7 = vld [vmem:[%s6185_s4 + $0x1a0] sm:$0xff]  }
 0x135   :  { %4013 = vmatmul.mubr.bf16.gmra.mxu0 %v5010_v46  ;;  %v1659_v46 = vshll.u32 %v3381_v24, 16  ;;  %v4517_v24 = vld [vmem:[%s6185_s4 + $0x160] sm:$0xff]   ;;  %v1680_v28 = vsel %vm1654_vm9, %v1670_v18, %v1679_v54 }
 0x136   :  { %4016 = vmatprep.mubr.msk.bf16.mxu0 %vm4580_vm0, %v6207_v3 }
 0x137   :  { %3949 = vmatmul.mubr.bf16.gmra.mxu1 %v3331_v8  ;;  %v1661_v45 = vrot.slane %v1659_v46, 2  ;;  %v1685_v8 = vshll.u32 %v5068_v35, 16  ;;  %v1400_v35 = vsel %vm1046_vm5, %v1397_v2, %v1399_v33  ;;  %v1700_v2 = vshrl.u32 %v5080_v47, 16 }
 0x138   :  { %4036 = vmatprep.mubr.msk.bf16.mxu1 %vm4580_vm0, %v6207_v3 }
 0x139   :  { %v1662_v42 = vor.u32 %v1661_v45, %v1658_v44  ;;  %v1687_v46 = vrot.slane %v1685_v8, 2  ;;  %v1401_v44 = vrot.slane %v5073_v39, 1  ;;  %v4521_v45 = vld [vmem:[%s6185_s4 + $0x198] sm:$0xff]  }
 0x13b   :  { %v1671_v41 = vsel %vm1654_vm9, %v1662_v42, %v1670_v18  ;;  %v1688_v26 = vor.u32 %v1687_v46, %v1684_v32  ;;  %v4525_v42 = vld [vmem:[%s6185_s4 + $0x190] sm:$0xff]   ;;  %v1404_v37 = vsel %vm1046_vm5, %v1401_v44, %v1403_v10 }
 0x13d   :  { %4017 = vmatmul.mubr.bf16.gmra.mxu0 %v6221_v19  ;;  %v1694_v19 = vshll.u32 %v5073_v39, 16  ;;  %v1689_v18 = vsel %vm1654_vm9, %v1679_v54, %v1688_v26 }
 0x13e   :  { %4104 = vmatprep.mubr.msk.bf16.mxu0 %vm4580_vm0, %v6207_v3 }
 0x13f   :  { %4037 = vmatmul.mubr.bf16.vlgmr.msra.gmra.mxu1 %v1396_v12  ;;  %v4524_v12 = vld [vmem:[%s6185_s4 + $0x150] sm:$0xff]   ;;  %v1696_v30 = vrot.slane %v1694_v19, 2 }
 0x140   :  { %4157 = vmatpush3.bf16.msra.mxu1 %v4506_v62  ;;  %4040 = vmatprep.mubr.msk.bf16.mxu1 %vm4580_vm0, %v6207_v3  ;;  %v1691_v62 = vshrl.u32 %v5073_v39, 16  ;;  %v1402_v39 = vsel %vm1046_vm5, %v1399_v33, %v1401_v44  ;;  %v1712_v33 = vshll.u32 %v5084_v49, 16 }
 0x141   :  { %4158 = vmatprep.subr.bf16.mxu1 %v6207_v3 }
 0x142   :  { %v1693_v40 = vrot.slane %v1691_v62, 1  ;;  %v1718_v62 = vshrl.u32 %v5086_v50, 16 }
 0x144   :  { %4159 = vmatpush3.bf16.msra.mxu1 %v4509_v34  ;;  %v4527_v34 = vld [vmem:[%s6185_s4 + $0x148] sm:$0xff]  }
 0x145   :  { %4105 = vmatmul.mubr.bf16.vlgmr.msra.gmra.mxu0 %v1671_v41  ;;  %4160 = vmatprep.subr.bf16.mxu1 %v6207_v3  ;;  %v1703_v41 = vshll.u32 %v5080_v47, 16  ;;  %v4533_v47 = vld [vmem:[%s6185_s4 + $0x180] sm:$0xff]  }
 0x146   :  { %4225 = vmatpush3.bf16.msra.mxu0 %v4507_v20  ;;  %4108 = vmatprep.mubr.msk.bf16.mxu0 %vm4580_vm0, %v6207_v3  ;;  %v1697_v20 = vor.u32 %v1696_v30, %v1693_v40 }
 0x147   :  { %4041 = vmatmul.mubr.bf16.gmra.mxu1 %v1398_v61  ;;  %4226 = vmatprep.subr.bf16.mxu0 %v6207_v3  ;;  %v1705_v54 = vrot.slane %v1703_v41, 2 }
 0x148   :  { %4044 = vmatprep.mubr.msk.bf16.mxu1 %vm4580_vm0, %v6207_v3  ;;  %4161 = vmatpush3.bf16.msra.mxu1 %v4513_v31  ;;  %v4528_v31 = vld [vmem:[%s6185_s4 + $0x188] sm:$0xff]   ;;  %v1698_v61 = vsel %vm1654_vm9, %v1688_v26, %v1697_v20 }
 0x149   :  { %4162 = vmatprep.subr.bf16.mxu1 %v6207_v3 }
 0x14a   :  { %4227 = vmatpush3.bf16.msra.mxu0 %v4510_v27  ;;  %v1702_v27 = vrot.slane %v1700_v2, 1 }
 0x14b   :  { %4228 = vmatprep.subr.bf16.mxu0 %v6207_v3 }
 0x14c   :  { %4163 = vmatpush3.bf16.msra.mxu1 %v4517_v24  ;;  %v1706_v8 = vor.u32 %v1705_v54, %v1702_v27  ;;  %v1709_v24 = vshrl.u32 %v5084_v49, 16  ;;  %v1409_v54 = vrot.slane %v5095_v60, 1 }
 0x14d   :  { %4109 = vmatmul.mubr.bf16.gmra.mxu0 %v1680_v28  ;;  %4164 = vmatprep.subr.bf16.mxu1 %v6207_v3  ;;  %v1405_v28 = vrot.slane %v5084_v49, 1  ;;  %v1721_v49 = vshll.u32 %v5086_v50, 16 }
 0x14e   :  { %4112 = vmatprep.mubr.msk.bf16.mxu0 %vm4580_vm0, %v6207_v3  ;;  %4229 = vmatpush3.bf16.msra.mxu0 %v4514_v13  ;;  %v1707_v13 = vsel %vm1654_vm9, %v1697_v20, %v1706_v8 }
 0x14f   :  { %4045 = vmatmul.mubr.bf16.gmra.mxu1 %v1400_v35  ;;  %4230 = vmatprep.subr.bf16.mxu0 %v6207_v3  ;;  %v1406_v46 = vsel %vm1046_vm5, %v1403_v10, %v1405_v28  ;;  %v1714_v35 = vrot.slane %v1712_v33, 2  ;;  %v1727_v10 = vshrl.u32 %v5095_v60, 16 }
 0x150   :  { %4048 = vmatprep.mubr.msk.bf16.mxu1 %vm4580_vm0, %v6207_v3  ;;  %4165 = vmatpush3.bf16.msra.mxu1 %v4520_v14  ;;  %v1711_v14 = vrot.slane %v1709_v24, 1 }
 0x151   :  { %4166 = vmatprep.subr.bf16.mxu1 %v6207_v3  ;;  %v1729_v24 = vrot.slane %v1727_v10, 1 }
 0x152   :  { %4231 = vmatpush3.bf16.msra.mxu0 %v4518_v7  ;;  %v1715_v44 = vor.u32 %v1714_v35, %v1711_v14 }
 0x153   :  { %4232 = vmatprep.subr.bf16.mxu0 %v6207_v3 }
 0x154   :  { %4167 = vmatpush3.bf16.msra.mxu1 %v4524_v12  ;;  %v1716_v30 = vsel %vm1654_vm9, %v1706_v8, %v1715_v44 }
 0x155   :  { %4113 = vmatmul.mubr.bf16.gmra.mxu0 %v1689_v18  ;;  %4168 = vmatprep.subr.bf16.mxu1 %v6207_v3 }
 0x156   :  { %4116 = vmatprep.mubr.msk.bf16.mxu0 %vm4580_vm0, %v6207_v3  ;;  %4233 = vmatpush3.bf16.msra.mxu0 %v4521_v45  ;;  %v1407_v45 = vrot.slane %v5086_v50, 1 }
 0x157   :  { %4049 = vmatmul.mubr.bf16.gmra.mxu1 %v1402_v39  ;;  %4234 = vmatprep.subr.bf16.mxu0 %v6207_v3  ;;  %v1723_v39 = vrot.slane %v1721_v49, 2 }
 0x158   :  { %4052 = vmatprep.mubr.msk.bf16.mxu1 %vm4580_vm0, %v6207_v3  ;;  %4169 = vmatpush3.bf16.msra.mxu1 %v4527_v34  ;;  %v1720_v34 = vrot.slane %v1718_v62, 1  ;;  %v1408_v2 = vsel %vm1046_vm5, %v1405_v28, %v1407_v45  ;;  %v1739_v62 = vshll.u32 %v5111_v4, 16 }
 0x159   :  { %4170 = vmatprep.subr.bf16.mxu1 %v6207_v3 }
 0x15a   :  { %4235 = vmatpush3.bf16.msra.mxu0 %v4525_v42  ;;  %v1724_v50 = vor.u32 %v1723_v39, %v1720_v34  ;;  %v1741_v39 = vrot.slane %v1739_v62, 2 }
 0x15b   :  { %4236 = vmatprep.subr.bf16.mxu0 %v6207_v3 }
 0x15c   :  { %4171 = vmatpush3.bf16.msra.mxu1 %v4532_v29  ;;  %v1725_v8 = vsel %vm1654_vm9, %v1715_v44, %v1724_v50  ;;  %v1411_v44 = vrot.slane %v5111_v4, 1 }
 0x15d   :  { %4117 = vmatmul.mubr.bf16.gmra.mxu0 %v1698_v61  ;;  %4292 = vmatprep.subr.bf16.mxu1 %v6207_v3 }
 0x15e   :  { %4120 = vmatprep.mubr.msk.bf16.mxu0 %vm4580_vm0, %v6207_v3  ;;  %4237 = vmatpush3.bf16.msra.mxu0 %v4528_v31  ;;  %v1730_v31 = vshll.u32 %v5095_v60, 16 }
 0x15f   :  { %4053 = vmatmul.mubr.bf16.gmra.mxu1 %v1404_v37  ;;  %4238 = vmatprep.subr.bf16.mxu0 %v6207_v3 }
 0x160   :  { %4056 = vmatprep.mubr.msk.bf16.mxu1 %vm4580_vm0, %v6207_v3  ;;  %v1732_v33 = vrot.slane %v1730_v31, 2 }
 0x162   :  { %4239 = vmatpush3.bf16.msra.mxu0 %v4533_v47  ;;  %v1733_v60 = vor.u32 %v1732_v33, %v1729_v24 }
 0x163   :  { %4360 = vmatprep.subr.bf16.mxu0 %v6207_v3 }
 0x165   :  { %v5566_v32 = vpop.f32.mrf.mxu0  ;;  %4121 = vmatmul.mubr.bf16.gmra.mxu0 %v1707_v13 }
 0x166   :  { %4124 = vmatprep.mubr.msk.bf16.mxu0 %vm4580_vm0, %v6207_v3 }
 0x167   :  { %v3834_v7 = vpop.f32.mrf.mxu0  ;;  %v5571_v26 = vpop.f32.mrf.mxu1  ;;  %4057 = vmatmul.mubr.bf16.gmra.mxu1 %v1406_v46  ;;  %v1410_v46 = vsel %vm1046_vm5, %v1407_v45, %v1409_v54 }
 0x168   :  { %4060 = vmatprep.mubr.msk.bf16.mxu1 %vm4580_vm0, %v6207_v3  ;;  %v1736_v7 = vshrl.u32 %v5111_v4, 16 }
 0x169   :  { %v5577_v19 = vpop.f32.mrf.mxu0  ;;  %v3862_v12 = vpop.f32.mrf.mxu1 }
 0x16a   :  { %v1738_v34 = vrot.slane %v1736_v7, 1 }
 0x16b   :  { %v3835_v18 = vpop.f32.mrf.mxu0  ;;  %v5580_v40 = vpop.f32.mrf.mxu1 }
 0x16c   :  { %v1742_v4 = vor.u32 %v1741_v39, %v1738_v34  ;;  %v1757_v34 = vshll.u32 %v5122_v57, 16 }
 0x16d   :  { %v5583_v42 = vpop.f32.mrf.mxu0  ;;  %4125 = vmatmul.mubr.bf16.gmra.mxu0 %v1716_v30  ;;  %v3863_v20 = vpop.f32.mrf.mxu1  ;;  %v1734_v30 = vsel %vm1654_vm9, %v1724_v50, %v1733_v60  ;;  %v1745_v50 = vshrl.u32 %v5120_v56, 16 }
 0x16e   :  { %4128 = vmatprep.mubr.msk.bf16.mxu0 %vm4580_vm0, %v6207_v3 }
 0x16f   :  { %v3838_v41 = vpop.f32.mrf.mxu0  ;;  %v5588_v29 = vpop.f32.mrf.mxu1  ;;  %4061 = vmatmul.mubr.bf16.gmra.mxu1 %v1408_v2 }
 0x170   :  { %4064 = vmatprep.mubr.msk.bf16.mxu1 %vm4580_vm0, %v6207_v3  ;;  %v1412_v41 = vsel %vm1046_vm5, %v1409_v54, %v1411_v44  ;;  %v1413_v54 = vrot.slane %v5120_v56, 1 }
 0x171   :  { %v5594_v61 = vpop.f32.mrf.mxu0  ;;  %v3866_v27 = vpop.f32.mrf.mxu1 }
 0x172   :  { %v1748_v27 = vshll.u32 %v5120_v56, 16 }
 0x173   :  { %v3839_v37 = vpop.f32.mrf.mxu0  ;;  %v5597_v47 = vpop.f32.mrf.mxu1 }
 0x175   :  { %v5600_v13 = vpop.f32.mrf.mxu0  ;;  %4129 = vmatmul.mubr.bf16.gmra.mxu0 %v1725_v8  ;;  %v3867_v28 = vpop.f32.mrf.mxu1 }
 0x176   :  { %4132 = vmatprep.mubr.msk.bf16.mxu0 %vm4580_vm0, %v6207_v3  ;;  %v1743_v28 = vsel %vm1654_vm9, %v1733_v60, %v1742_v4  ;;  %v1754_v60 = vshrl.u32 %v5122_v57, 16 }
 0x177   :  { %v3842_v14 = vpop.f32.mrf.mxu0  ;;  %v5605_v35 = vpop.f32.mrf.mxu1  ;;  %4065 = vmatmul.mubr.bf16.gmra.mxu1 %v1410_v46  ;;  %v1747_v46 = vrot.slane %v1745_v50, 1  ;;  %v1311_v50 = vld [vmem:[#allocation2 + $0x68] sm:$0x1] }
 0x178   :  { %4068 = vmatprep.mubr.msk.bf16.mxu1 %vm4580_vm0, %v6207_v3  ;;  %v1750_v14 = vrot.slane %v1748_v27, 2 }
 0x179   :  { %v5611_v49 = vpop.f32.mrf.mxu0  ;;  %v3870_v12 = vpop.f32.mrf.mxu1 }
 0x17a   :  { %v1414_v12 = vsel %vm1046_vm5, %v1411_v44, %v1413_v54  ;;  %v1751_v56 = vor.u32 %v1750_v14, %v1747_v46  ;;  %v1415_v44 = vrot.slane %v5122_v57, 1 }
 0x17b   :  { %v3843_v45 = vpop.f32.mrf.mxu0  ;;  %v5614_v18 = vpop.f32.mrf.mxu1 }
 0x17c   :  { %v1752_v27 = vsel %vm1654_vm9, %v1742_v4, %v1751_v56  ;;  %v1416_v14 = vsel %vm1046_vm5, %v1413_v54, %v1415_v44  ;;  %v1763_v4 = vshrl.u32 %v5114_v9, 16 }
 0x17d   :  { %v5617_v20 = vpop.f32.mrf.mxu0  ;;  %4133 = vmatmul.mubr.bf16.gmra.mxu0 %v1734_v30  ;;  %v3871_v2 = vpop.f32.mrf.mxu1 }
 0x17e   :  { %4136 = vmatprep.mubr.msk.bf16.mxu0 %vm4580_vm0, %v6207_v3 }
 0x17f   :  { %v3846_v10 = vpop.f32.mrf.mxu0  ;;  %v5622_v31 = vpop.f32.mrf.mxu1  ;;  %4069 = vmatmul.mubr.bf16.gmra.mxu1 %v1412_v41 }
 0x180   :  { %4072 = vmatprep.mubr.msk.bf16.mxu1 %vm4580_vm0, %v6207_v3 }
 0x181   :  { %v5628_v37 = vpop.f32.mrf.mxu0  ;;  %v3874_v8 = vpop.f32.mrf.mxu1 }
 0x182   :  { %v1756_v8 = vrot.slane %v1754_v60, 1  ;;  %v1766_v60 = vshll.u32 %v5114_v9, 16 }
 0x183   :  { %v3847_v24 = vpop.f32.mrf.mxu0  ;;  %v5631_v33 = vpop.f32.mrf.mxu1 }
 0x184   :  { %v1759_v24 = vrot.slane %v1757_v34, 2 }
 0x185   :  { %v5634_v7 = vpop.f32.mrf.mxu0  ;;  %4137 = vmatmul.mubr.bf16.gmra.mxu0 %v1743_v28  ;;  %v3875_v62 = vpop.f32.mrf.mxu1 }
 0x186   :  { %4140 = vmatprep.mubr.msk.bf16.mxu0 %vm4580_vm0, %v6207_v3  ;;  %v3393_v62 = vcombine.low %v5082_v48, %v1311_v50  ;;  %v1760_v57 = vor.u32 %v1759_v24, %v1756_v8  ;;  %v1768_v48 = vrot.slane %v1766_v60, 2 }
 0x187   :  { %v3850_v45 = vpop.f32.mrf.mxu0  ;;  %v5639_v30 = vpop.f32.mrf.mxu1  ;;  %4073 = vmatmul.mubr.bf16.gmra.mxu1 %v1414_v12 }
 0x188   :  { %4076 = vmatprep.mubr.msk.bf16.mxu1 %vm4580_vm0, %v6207_v3 }
 0x189   :  { %v5645_v39 = vpop.f32.mrf.mxu0  ;;  %v3878_v2 = vpop.f32.mrf.mxu1 }
 0x18b   :  { %v3851_v41 = vpop.f32.mrf.mxu0  ;;  %v822_v10 = vpop.f32.mrf.mxu1 }
 0x18c   :  { %v1417_v41 = vrot.slane %v3393_v62, 1 }
 0x18d   :  { %v773_v28 = vpop.f32.mrf.mxu0  ;;  %4141 = vmatmul.mubr.bf16.gmra.mxu0 %v1752_v27  ;;  %v3879_v46 = vpop.f32.mrf.mxu1  ;;  %v1761_v27 = vsel %vm1654_vm9, %v1751_v56, %v1760_v57 }
 0x18e   :  { %4144 = vmatprep.mubr.msk.bf16.mxu0 %vm4580_vm0, %v6207_v3  ;;  %v1765_v28 = vrot.slane %v1763_v4, 1  ;;  %v1418_v24 = vsel %vm1046_vm5, %v1415_v44, %v1417_v41 }
 0x18f   :  { %v3854_v12 = vpop.f32.mrf.mxu0  ;;  %v826_v45 = vpop.f32.mrf.mxu1  ;;  %4077 = vmatmul.mubr.bf16.gmra.mxu1 %v1416_v14 }
 0x190   :  { %4080 = vmatprep.mubr.msk.bf16.mxu1 %vm4580_vm0, %v6207_v3  ;;  %v1769_v12 = vor.u32 %v1768_v48, %v1765_v28 }
 0x191   :  { %v775_v34 = vpop.f32.mrf.mxu0  ;;  %v3882_v2 = vpop.f32.mrf.mxu1 }
 0x192   :  { %v1770_v34 = vsel %vm1654_vm9, %v1760_v57, %v1769_v12 }
 0x193   :  { %v3855_v54 = vpop.f32.mrf.mxu0  ;;  %v828_v10 = vpop.f32.mrf.mxu1 }
 0x195   :  { %v5658_v50 = vpop.f32.mrf.mxu0  ;;  %4145 = vmatmul.mubr.bf16.gmra.mxu0 %v1761_v27  ;;  %v3883_v8 = vpop.f32.mrf.mxu1 }
 0x196   :  { %4148 = vmatprep.mubr.msk.bf16.mxu0 %vm4580_vm0, %v6207_v3 }
 0x197   :  { %v3858_v46 = vpop.f32.mrf.mxu0  ;;  %v927_v14 = vpop.f32.mrf.mxu1  ;;  %4081 = vmatmul.mubr.bf16.gmra.mxu1 %v1418_v24 }
 0x198   :  { %v928_v62 = vadd.f32 %v927_v14, %v5566_v32  ;;  %4084 = vmatprep.mubr.msk.bf16.mxu1 %vm4580_vm0, %v6207_v3  ;;  %v4537_v14 = vld [vmem:[%s6185_s4 + $0x1f8] sm:$0xff]  }
 0x199   :  { %v5666_v56 = vpop.f32.mrf.mxu0  ;;  %v3902_v45 = vpop.f32.mrf.mxu1 }
 0x19b   :  { %v3859_v4 = vpop.f32.mrf.mxu0  ;;  %v930_v60 = vpop.f32.mrf.mxu1 }
 0x19c   :  { %v931_v44 = vadd.f32 %v930_v60, %v5577_v19 }
 0x19d   :  { %v1167_v2 = vpop.f32.mrf.mxu0  ;;  %4149 = vmatmul.mubr.bf16.gmra.mxu0 %v1770_v34  ;;  %v3903_v54 = vpop.f32.mrf.mxu1  ;;  %v4566_v34 = vld [vmem:[#allocation2 + $0x10] sm:$0xff]  }
 0x19e   :  { %v5670_v10 = vadd.f32 %v1167_v2, %v928_v62  ;;  %4152 = vmatprep.mubr.msk.bf16.mxu0 %vm4580_vm0, %v6207_v3 }
 0x19f   :  { %v3970_v32 = vpop.f32.mrf.mxu0  ;;  %v935_v27 = vpop.f32.mrf.mxu1  ;;  %4085 = vmatmul.mubr.bf16.gmra.mxu1 %v1417_v41 }
 0x1a0   :  { %v936_v28 = vadd.f32 %v935_v27, %v5583_v42  ;;  %4172 = vmatprep.mubr.msk.bf16.mxu1 %vm4580_vm0, %v6207_v3 }
 0x1a1   :  { %v1170_v48 = vpop.f32.mrf.mxu0  ;;  %v3906_v57 = vpop.f32.mrf.mxu1 }
 0x1a2   :  { %v5677_v8 = vadd.f32 %v1170_v48, %v931_v44  ;;  %v4544_v57 = vld [vmem:[%s6185_s4 + $0x1e8] sm:$0xff]  }
 0x1a3   :  { %v3971_v19 = vpop.f32.mrf.mxu0  ;;  %v938_v24 = vpop.f32.mrf.mxu1 }
 0x1a4   :  { %v939_v46 = vadd.f32 %v938_v24, %v5594_v61  ;;  %v2355_v61 = vrot.slane %v4566_v34, 2 }
 0x1a5   :  { %v1175_v62 = vpop.f32.mrf.mxu0  ;;  %4153 = vmatmul.mubr.bf16.gmra.mxu0 %v1769_v12  ;;  %v3907_v41 = vpop.f32.mrf.mxu1  ;;  %v4540_v12 = vld [vmem:[%s6185_s4 + $0x1f0] sm:$0xff]  }
 0x1a6   :  { %v5683_v45 = vadd.f32 %v1175_v62, %v936_v28  ;;  %4240 = vmatprep.mubr.msk.bf16.mxu0 %vm4580_vm0, %v6207_v3  ;;  %v4567_v41 = vld [vmem:[#allocation2 + $0x18] sm:$0xff]  }
 0x1a7   :  { %v3974_v42 = vpop.f32.mrf.mxu0  ;;  %v943_v4 = vpop.f32.mrf.mxu1  ;;  %4173 = vmatmul.mubr.bf16.vlgmr.msra.gmra.mxu1 %v5098_v1  ;;  %v2354_v1 = vrot.slane %v5131_v25, 2 }
 0x1a8   :  { %v944_v60 = vadd.f32 %v943_v4, %v5600_v13  ;;  %4293 = vmatpush3.bf16.msra.mxu1 %v4537_v14  ;;  %4176 = vmatprep.mubr.msk.bf16.mxu1 %vm4580_vm0, %v6207_v3  ;;  %v4538_v13 = vld [vmem:[%s6185_s4 + $0x238] sm:$0xff]   ;;  %v2357_v42 = vrot.slane %v4567_v41, 2  ;;  %v4547_v4 = vld [vmem:[%s6185_s4 + $0x1e0] sm:$0xff]  }
 0x1a9   :  { %v1178_v44 = vpop.f32.mrf.mxu0  ;;  %v3910_v2 = vpop.f32.mrf.mxu1  ;;  %4294 = vmatprep.subr.bf16.mxu1 %v6207_v3  ;;  %v2356_v28 = vsel %vm2006_vm6, %v2354_v1, %v2355_v61 }
 0x1aa   :  { %v5695_v54 = vadd.f32 %v1178_v44, %v939_v46  ;;  %v2358_v2 = vsel %vm2006_vm6, %v2355_v61, %v2357_v42 }
 0x1ab   :  { %v3975_v32 = vpop.f32.mrf.mxu0  ;;  %v946_v27 = vpop.f32.mrf.mxu1 }
 0x1ac   :  { %v947_v48 = vadd.f32 %v946_v27, %v5611_v49  ;;  %4295 = vmatpush3.bf16.msra.mxu1 %v4540_v12  ;;  %v4541_v49 = vld [vmem:[%s6185_s4 + $0x230] sm:$0xff]  }
 0x1ad   :  { %v1183_v19 = vpop.f32.mrf.mxu0  ;;  %4241 = vmatmul.mubr.bf16.vlgmr.msra.gmra.mxu0 %v2356_v28  ;;  %v3911_v24 = vpop.f32.mrf.mxu1  ;;  %4296 = vmatprep.subr.bf16.mxu1 %v6207_v3 }
 0x1ae   :  { %v5707_v25 = vadd.f32 %v1183_v19, %v944_v60  ;;  %4361 = vmatpush3.bf16.msra.mxu0 %v4538_v13  ;;  %4244 = vmatprep.mubr.msk.bf16.mxu0 %vm4580_vm0, %v6207_v3  ;;  %v4551_v13 = vld [vmem:[%s6185_s4 + $0x1d8] sm:$0xff]   ;;  %v4568_v19 = vld [vmem:[#allocation2 + $0x20] sm:$0xff]  }
 0x1af   :  { %v3978_v46 = vpop.f32.mrf.mxu0  ;;  %v951_v14 = vpop.f32.mrf.mxu1  ;;  %4177 = vmatmul.mubr.bf16.gmra.mxu1 %v5089_v53  ;;  %4362 = vmatprep.subr.bf16.mxu0 %v6207_v3  ;;  %v4545_v53 = vld [vmem:[%s6185_s4 + $0x228] sm:$0xff]   ;;  %v2359_v24 = vrot.slane %v4568_v19, 2 }
 0x1b0   :  { %v952_v62 = vadd.f32 %v951_v14, %v5617_v20  ;;  %4180 = vmatprep.mubr.msk.bf16.mxu1 %vm4580_vm0, %v6207_v3  ;;  %4297 = vmatpush3.bf16.msra.mxu1 %v4544_v57 }
 0x1b1   :  { %v1186_v60 = vpop.f32.mrf.mxu0  ;;  %v3914_v34 = vpop.f32.mrf.mxu1  ;;  %4298 = vmatprep.subr.bf16.mxu1 %v6207_v3 }
 0x1b2   :  { %v5723_v12 = vadd.f32 %v1186_v60, %v947_v48  ;;  %4363 = vmatpush3.bf16.msra.mxu0 %v4541_v49  ;;  %v4555_v49 = vld [vmem:[%s6185_s4 + $0x1d0] sm:$0xff]   ;;  %v4558_v34 = vld [vmem:[%s6185_s4 + $0x1c8] sm:$0xff]  }
 0x1b3   :  { %v3979_v20 = vpop.f32.mrf.mxu0  ;;  %v954_v44 = vpop.f32.mrf.mxu1  ;;  %4364 = vmatprep.subr.bf16.mxu0 %v6207_v3 }
 0x1b4   :  { %v955_v1 = vadd.f32 %v954_v44, %v5628_v37  ;;  %4299 = vmatpush3.bf16.msra.mxu1 %v4547_v4  ;;  %v4548_v37 = vld [vmem:[%s6185_s4 + $0x220] sm:$0xff]   ;;  %v2360_v4 = vsel %vm2006_vm6, %v2357_v42, %v2359_v24 }
 0x1b5   :  { %v1191_v32 = vpop.f32.mrf.mxu0  ;;  %4245 = vmatmul.mubr.bf16.gmra.mxu0 %v2358_v2  ;;  %v3915_v27 = vpop.f32.mrf.mxu1  ;;  %4300 = vmatprep.subr.bf16.mxu1 %v6207_v3 }
 0x1b6   :  { %v5735_v28 = vadd.f32 %v1191_v32, %v952_v62  ;;  %4248 = vmatprep.mubr.msk.bf16.mxu0 %vm4580_vm0, %v6207_v3  ;;  %4365 = vmatpush3.bf16.msra.mxu0 %v4545_v53  ;;  %v4563_v32 = vld [vmem:[%s6185_s4 + $0x1c0] sm:$0xff]  }
 0x1b7   :  { %v3982_v61 = vpop.f32.mrf.mxu0  ;;  %v959_v48 = vpop.f32.mrf.mxu1  ;;  %4181 = vmatmul.mubr.bf16.gmra.mxu1 %v5104_v52  ;;  %4366 = vmatprep.subr.bf16.mxu0 %v6207_v3  ;;  %v4552_v52 = vld [vmem:[%s6185_s4 + $0x218] sm:$0xff]  }
 0x1b8   :  { %v960_v57 = vadd.f32 %v959_v48, %v5634_v7  ;;  %4184 = vmatprep.mubr.msk.bf16.mxu1 %vm4580_vm0, %v6207_v3  ;;  %4301 = vmatpush3.bf16.msra.mxu1 %v4551_v13 }
 0x1b9   :  { %v1194_v46 = vpop.f32.mrf.mxu0  ;;  %v3918_v14 = vpop.f32.mrf.mxu1  ;;  %4302 = vmatprep.subr.bf16.mxu1 %v6207_v3 }
 0x1ba   :  { %v5751_v62 = vadd.f32 %v1194_v46, %v955_v1  ;;  %4367 = vmatpush3.bf16.msra.mxu0 %v4548_v37  ;;  %v4569_v1 = vld [vmem:[#allocation2 + $0x28] sm:$0xff]   ;;  %v4564_v14 = vld [vmem:[%s6185_s4 + $0x200] sm:$0xff]  }
 0x1bb   :  { %v3983_v7 = vpop.f32.mrf.mxu0  ;;  %v962_v41 = vpop.f32.mrf.mxu1  ;;  %4368 = vmatprep.subr.bf16.mxu0 %v6207_v3  ;;  %v2361_v13 = vrot.slane %v4569_v1, 2 }
 0x1bc   :  { %v963_v60 = vadd.f32 %v962_v41, %v5645_v39  ;;  %4303 = vmatpush3.bf16.msra.mxu1 %v4555_v49  ;;  %v4556_v39 = vld [vmem:[%s6185_s4 + $0x210] sm:$0xff]  }
 0x1bd   :  { %v1199_v53 = vpop.f32.mrf.mxu0  ;;  %4249 = vmatmul.mubr.bf16.gmra.mxu0 %v2360_v4  ;;  %v3919_v20 = vpop.f32.mrf.mxu1  ;;  %4304 = vmatprep.subr.bf16.mxu1 %v6207_v3  ;;  %v2362_v19 = vsel %vm2006_vm6, %v2359_v24, %v2361_v13  ;;  %v4570_v41 = vld [vmem:[#allocation2 + $0x30] sm:$0xff]  }
 0x1be   :  { %v5763_v44 = vadd.f32 %v1199_v53, %v960_v57  ;;  %4252 = vmatprep.mubr.msk.bf16.mxu0 %vm4580_vm0, %v6207_v3  ;;  %4369 = vmatpush3.bf16.msra.mxu0 %v4552_v52  ;;  %v2363_v4 = vrot.slane %v4570_v41, 2  ;;  %v6222_v41 = vld [vmem:[#allocation3_spill] sm:$0xff] }
 0x1bf   :  { %v3986_v42 = vpop.f32.mrf.mxu0  ;;  %v967_v2 = vpop.f32.mrf.mxu1  ;;  %4185 = vmatmul.mubr.bf16.gmra.mxu1 %v5117_v11  ;;  %4370 = vmatprep.subr.bf16.mxu0 %v6207_v3  ;;  %v4559_v11 = vld [vmem:[%s6185_s4 + $0x208] sm:$0xff]  }
 0x1c0   :  { %4188 = vmatprep.mubr.msk.bf16.mxu1 %vm4580_vm0, %v6207_v3  ;;  %4305 = vmatpush3.bf16.msra.mxu1 %v4558_v34 }
 0x1c1   :  { %v1202_v27 = vpop.f32.mrf.mxu0  ;;  %v3922_v37 = vpop.f32.mrf.mxu1  ;;  %4306 = vmatprep.subr.bf16.mxu1 %v6207_v3 }
 0x1c2   :  { %v5778_v61 = vadd.f32 %v1202_v27, %v963_v60  ;;  %4371 = vmatpush3.bf16.msra.mxu0 %v4556_v39  ;;  %v2364_v39 = vsel %vm2006_vm6, %v2361_v13, %v2363_v4 }
 0x1c3   :  { %v3987_v48 = vpop.f32.mrf.mxu0  ;;  %v969_v57 = vpop.f32.mrf.mxu1  ;;  %4372 = vmatprep.subr.bf16.mxu0 %v6207_v3 }
 0x1c4   :  { %4307 = vmatpush3.bf16.msra.mxu1 %v4563_v32 }
 0x1c5   :  { %v1207_v49 = vpop.f32.mrf.mxu0  ;;  %4253 = vmatmul.mubr.bf16.gmra.mxu0 %v2362_v19  ;;  %v3923_v46 = vpop.f32.mrf.mxu1 }
 0x1c6   :  { %4256 = vmatprep.mubr.msk.bf16.mxu0 %vm4580_vm0, %v6207_v3  ;;  %4373 = vmatpush3.bf16.msra.mxu0 %v4559_v11  ;;  %v4571_v11 = vld [vmem:[#allocation2 + $0x38] sm:$0xff]  }
 0x1c7   :  { %v3990_v52 = vpop.f32.mrf.mxu0  ;;  %v973_v7 = vpop.f32.mrf.mxu1  ;;  %4189 = vmatmul.mubr.bf16.gmra.mxu1 %v5134_v22  ;;  %4374 = vmatprep.subr.bf16.mxu0 %v6207_v3  ;;  %v2365_v48 = vrot.slane %v4571_v11, 2  ;;  %v4573_v11 = vld [vmem:[#allocation2 + $0x48] sm:$0xff]  }
 0x1c8   :  { %v974_v24 = vadd.f32 %v973_v7, %v5658_v50  ;;  %4192 = vmatprep.mubr.msk.bf16.mxu1 %vm4580_vm0, %v6207_v3 }
 0x1c9   :  { %v1209_v60 = vpop.f32.mrf.mxu0  ;;  %v3926_v34 = vpop.f32.mrf.mxu1  ;;  %v2366_v49 = vsel %vm2006_vm6, %v2363_v4, %v2365_v48 }
 0x1ca   :  { %4375 = vmatpush3.bf16.msra.mxu0 %v4564_v14 }
 0x1cb   :  { %v3991_v53 = vpop.f32.mrf.mxu0  ;;  %v976_v20 = vpop.f32.mrf.mxu1 }
 0x1cc   :  { %v977_v42 = vadd.f32 %v976_v20, %v5666_v56 }
 0x1cd   :  { %v1213_v2 = vpop.f32.mrf.mxu0  ;;  %4257 = vmatmul.mubr.bf16.gmra.mxu0 %v2364_v39  ;;  %v3927_v22 = vpop.f32.mrf.mxu1 }
 0x1ce   :  { %v5797_v1 = vadd.f32 %v1213_v2, %v974_v24  ;;  %4260 = vmatprep.mubr.msk.bf16.mxu0 %vm4580_vm0, %v6207_v3 }
 0x1cf   :  { %v3994_v50 = vpop.f32.mrf.mxu0  ;;  %v981_v32 = vpop.f32.mrf.mxu1  ;;  %4193 = vmatmul.mubr.bf16.gmra.mxu1 %v5141_v38 }
 0x1d0   :  { %4196 = vmatprep.mubr.msk.bf16.mxu1 %vm4580_vm0, %v6207_v3  ;;  %v982_v56 = vadd.f32 %v981_v32, %v5571_v26  ;;  %v4572_v26 = vld [vmem:[#allocation2 + $0x40] sm:$0xff]  }
 0x1d1   :  { %v1216_v27 = vpop.f32.mrf.mxu0  ;;  %v3930_v37 = vpop.f32.mrf.mxu1  ;;  %v2367_v60 = vrot.slane %v4572_v26, 2 }
 0x1d2   :  { %v5804_v13 = vadd.f32 %v1216_v27, %v977_v42 }
 0x1d3   :  { %v3995_v57 = vpop.f32.mrf.mxu0  ;;  %v984_v19 = vpop.f32.mrf.mxu1  ;;  %v2368_v42 = vsel %vm2006_vm6, %v2365_v48, %v2367_v60 }
 0x1d4   :  { %v985_v38 = vadd.f32 %v984_v19, %v5580_v40 }
 0x1d5   :  { %v1221_v46 = vpop.f32.mrf.mxu0  ;;  %4261 = vmatmul.mubr.bf16.gmra.mxu0 %v2366_v49  ;;  %v3931_v14 = vpop.f32.mrf.mxu1 }
 0x1d6   :  { %v5808_v52 = vadd.f32 %v1221_v46, %v982_v56  ;;  %4264 = vmatprep.mubr.msk.bf16.mxu0 %vm4580_vm0, %v6207_v3  ;;  %v6223_v56 = vld [vmem:[#allocation4_spill] sm:$0xff] }
 0x1d7   :  { %v3998_v7 = vpop.f32.mrf.mxu0  ;;  %v989_v24 = vpop.f32.mrf.mxu1  ;;  %4197 = vmatmul.mubr.bf16.gmra.mxu1 %v6222_v41 }
 0x1d8   :  { %4200 = vmatprep.mubr.msk.bf16.mxu1 %vm4580_vm0, %v6207_v3  ;;  %v990_v20 = vadd.f32 %v989_v24, %v5588_v29  ;;  %v2369_v29 = vrot.slane %v4573_v11, 2 }
 0x1d9   :  { %v1224_v4 = vpop.f32.mrf.mxu0  ;;  %v3934_v34 = vpop.f32.mrf.mxu1 }
 0x1da   :  { %v5816_v53 = vadd.f32 %v1224_v4, %v985_v38  ;;  %v2370_v14 = vsel %vm2006_vm6, %v2367_v60, %v2369_v29  ;;  %v6224_v34 = vld [vmem:[#allocation5_spill] sm:$0xff] }
 0x1db   :  { %v3999_v39 = vpop.f32.mrf.mxu0  ;;  %v992_v40 = vpop.f32.mrf.mxu1 }
 0x1dc   :  { %v993_v32 = vadd.f32 %v992_v40, %v5597_v47 }
 0x1dd   :  { %v1229_v2 = vpop.f32.mrf.mxu0  ;;  %4265 = vmatmul.mubr.bf16.gmra.mxu0 %v2368_v42  ;;  %v3935_v22 = vpop.f32.mrf.mxu1 }
 0x1de   :  { %v5820_v50 = vadd.f32 %v1229_v2, %v990_v20  ;;  %4268 = vmatprep.mubr.msk.bf16.mxu0 %vm4580_vm0, %v6207_v3  ;;  %v4574_v20 = vld [vmem:[#allocation2 + $0x50] sm:$0xff]  }
 0x1df   :  { %v4002_v27 = vpop.f32.mrf.mxu0  ;;  %v997_v37 = vpop.f32.mrf.mxu1  ;;  %4201 = vmatmul.mubr.bf16.gmra.mxu1 %v6223_v56 }
 0x1e0   :  { %4204 = vmatprep.mubr.msk.bf16.mxu1 %vm4580_vm0, %v6207_v3  ;;  %v998_v49 = vadd.f32 %v997_v37, %v5605_v35  ;;  %v2371_v35 = vrot.slane %v4574_v20, 2 }
 0x1e1   :  { %v1232_v48 = vpop.f32.mrf.mxu0  ;;  %v3938_v57 = vpop.f32.mrf.mxu1 }
 0x1e2   :  { %v5828_v19 = vadd.f32 %v1232_v48, %v993_v32  ;;  %v2372_v22 = vsel %vm2006_vm6, %v2369_v29, %v2371_v35  ;;  %v6225_v57 = vld [vmem:[#allocation6_spill] sm:$0xff] }
 0x1e3   :  { %v4003_v46 = vpop.f32.mrf.mxu0  ;;  %v1000_v47 = vpop.f32.mrf.mxu1 }
 0x1e4   :  { %v1001_v41 = vadd.f32 %v1000_v47, %v5614_v18 }
 0x1e5   :  { %v1237_v38 = vpop.f32.mrf.mxu0  ;;  %4269 = vmatmul.mubr.bf16.gmra.mxu0 %v2370_v14  ;;  %v3939_v7 = vpop.f32.mrf.mxu1 }
 0x1e6   :  { %v5832_v24 = vadd.f32 %v1237_v38, %v998_v49  ;;  %4272 = vmatprep.mubr.msk.bf16.mxu0 %vm4580_vm0, %v6207_v3  ;;  %v4575_v49 = vld [vmem:[#allocation2 + $0x58] sm:$0xff]  }
 0x1e7   :  { %v4006_v26 = vpop.f32.mrf.mxu0  ;;  %v1005_v4 = vpop.f32.mrf.mxu1  ;;  %4205 = vmatmul.mubr.bf16.gmra.mxu1 %v6224_v34 }
 0x1e8   :  { %4208 = vmatprep.mubr.msk.bf16.mxu1 %vm4580_vm0, %v6207_v3  ;;  %v1006_v42 = vadd.f32 %v1005_v4, %v5622_v31  ;;  %v2373_v31 = vrot.slane %v4575_v49, 2 }
 0x1e9   :  { %v1240_v60 = vpop.f32.mrf.mxu0  ;;  %v3942_v39 = vpop.f32.mrf.mxu1 }
 0x1ea   :  { %v5840_v40 = vadd.f32 %v1240_v60, %v1001_v41  ;;  %v2374_v7 = vsel %vm2006_vm6, %v2371_v35, %v2373_v31  ;;  %v6226_v60 = vld [vmem:[#allocation7_spill] sm:$0xff]  ;;  %v4576_v39 = vld [vmem:[#allocation2 + $0x60] sm:$0xff]   ;;  %v2271_v35 = vld [vmem:[#allocation2 + $0x6c] sm:$0x3] }
 0x1eb   :  { %v4007_v2 = vpop.f32.mrf.mxu0  ;;  %v1008_v18 = vpop.f32.mrf.mxu1 }
 0x1ec   :  { %v1009_v56 = vadd.f32 %v1008_v18, %v5631_v33 }
 0x1ed   :  { %v1245_v32 = vpop.f32.mrf.mxu0  ;;  %4273 = vmatmul.mubr.bf16.gmra.mxu0 %v2372_v22  ;;  %v3943_v27 = vpop.f32.mrf.mxu1 }
 0x1ee   :  { %v5844_v37 = vadd.f32 %v1245_v32, %v1006_v42  ;;  %4276 = vmatprep.mubr.msk.bf16.mxu0 %vm4580_vm0, %v6207_v3  ;;  %v2375_v42 = vrot.slane %v4576_v39, 2  ;;  %v4577_v27 = vld [vmem:[#allocation2 + $0x68] sm:$0xf] }
 0x1ef   :  { %v4010_v11 = vpop.f32.mrf.mxu0  ;;  %v1013_v48 = vpop.f32.mrf.mxu1  ;;  %4209 = vmatmul.mubr.bf16.gmra.mxu1 %v6225_v57 }
 0x1f0   :  { %4212 = vmatprep.mubr.msk.bf16.mxu1 %vm4580_vm0, %v6207_v3  ;;  %v1014_v14 = vadd.f32 %v1013_v48, %v5639_v30  ;;  %v2376_v32 = vsel %vm2006_vm6, %v2373_v31, %v2375_v42 }
 0x1f1   :  { %v1248_v29 = vpop.f32.mrf.mxu0  ;;  %v3946_v46 = vpop.f32.mrf.mxu1 }
 0x1f2   :  { %v5852_v47 = vadd.f32 %v1248_v29, %v1009_v56  ;;  %v3480_v56 = vcombine.low %v4577_v27, %v2271_v35  ;;  %v6227_v29 = vld [vmem:[#allocation8_spill] sm:$0xff] }
 0x1f3   :  { %v4011_v38 = vpop.f32.mrf.mxu0  ;;  %v1016_v33 = vpop.f32.mrf.mxu1 }
 0x1f5   :  { %v1253_v41 = vpop.f32.mrf.mxu0  ;;  %4277 = vmatmul.mubr.bf16.gmra.mxu0 %v2374_v7  ;;  %v3947_v26 = vpop.f32.mrf.mxu1 }
 0x1f6   :  { %v5856_v4 = vadd.f32 %v1253_v41, %v1014_v14  ;;  %4280 = vmatprep.mubr.msk.bf16.mxu0 %vm4580_vm0, %v6207_v3  ;;  %v2377_v14 = vrot.slane %v3480_v56, 2 }
 0x1f7   :  { %v4014_v34 = vpop.f32.mrf.mxu0  ;;  %v1020_v20 = vpop.f32.mrf.mxu1  ;;  %4213 = vmatmul.mubr.bf16.gmra.mxu1 %v6226_v60 }
 0x1f8   :  { %4216 = vmatprep.mubr.msk.bf16.mxu1 %vm4580_vm0, %v6207_v3  ;;  %v2378_v41 = vsel %vm2006_vm6, %v2375_v42, %v2377_v14 }
 0x1f9   :  { %v1256_v30 = vpop.f32.mrf.mxu0  ;;  %v3950_v2 = vpop.f32.mrf.mxu1 }
 0x1fa   :  { %v6228_v30 = vrot.slane %v5114_v9, 2 }
 0x1fb   :  { %v4015_v18 = vpop.f32.mrf.mxu0  ;;  %v1022_v22 = vpop.f32.mrf.mxu1 }
 0x1fd   :  { %v1260_v11 = vpop.f32.mrf.mxu0  ;;  %4281 = vmatmul.mubr.bf16.gmra.mxu0 %v2376_v32  ;;  %v3951_v48 = vpop.f32.mrf.mxu1 }
 0x1fe   :  { %4284 = vmatprep.mubr.msk.bf16.mxu0 %vm4580_vm0, %v6207_v3 }
 0x1ff   :  { %v4018_v57 = vpop.f32.mrf.mxu0  ;;  %v1514_v49 = vpop.f32.mrf.mxu1  ;;  %4217 = vmatmul.mubr.bf16.gmra.mxu1 %v6227_v29 }
 0x200   :  { %v1612_v46 = vadd.f32 %v1514_v49, %v5670_v10  ;;  %4220 = vmatprep.mubr.msk.bf16.mxu1 %vm4580_vm0, %v6207_v3 }
 0x201   :  { %v1262_v38 = vpop.f32.mrf.mxu0  ;;  %v4038_v31 = vpop.f32.mrf.mxu1 }
 0x202   :  { %v6229_v31 = vld [vmem:[#allocation10_spill] sm:$0xff] }
 0x203   :  { %v4019_v33 = vpop.f32.mrf.mxu0  ;;  %v1517_v7 = vpop.f32.mrf.mxu1 }
 0x204   :  { %v1613_v26 = vadd.f32 %v1517_v7, %v5677_v8 }
 0x205   :  { %v1866_v34 = vpop.f32.mrf.mxu0  ;;  %4285 = vmatmul.mubr.bf16.gmra.mxu0 %v2378_v41  ;;  %v4039_v20 = vpop.f32.mrf.mxu1 }
 0x206   :  { %v5872_v60 = vadd.f32 %v1866_v34, %v1612_v46  ;;  %4288 = vmatprep.mubr.msk.bf16.mxu0 %vm4580_vm0, %v6207_v3 }
 0x207   :  { %v4106_v10 = vpop.f32.mrf.mxu0  ;;  %v1522_v39 = vpop.f32.mrf.mxu1  ;;  %4221 = vmatmul.mubr.bf16.gmra.mxu1 %v6228_v30 }
 0x208   :  { %v1614_v2 = vadd.f32 %v1522_v39, %v5683_v45  ;;  %4308 = vmatprep.mubr.msk.bf16.mxu1 %vm4580_vm0, %v6207_v3 }
 0x209   :  { %v1869_v42 = vpop.f32.mrf.mxu0  ;;  %v4042_v8 = vpop.f32.mrf.mxu1 }
 0x20a   :  { %v5881_v35 = vadd.f32 %v1869_v42, %v1613_v26 }
 0x20b   :  { %v4107_v18 = vpop.f32.mrf.mxu0  ;;  %v1525_v22 = vpop.f32.mrf.mxu1 }
 0x20c   :  { %v1615_v32 = vadd.f32 %v1525_v22, %v5695_v54  ;;  %v6231_v18 = vld [vmem:[#allocation13_spill] sm:$0xff] }
 0x20d   :  { %v1874_v27 = vpop.f32.mrf.mxu0  ;;  %4289 = vmatmul.mubr.bf16.gmra.mxu0 %v2377_v14  ;;  %v4043_v56 = vpop.f32.mrf.mxu1 }
 0x20e   :  { %v5884_v11 = vadd.f32 %v1874_v27, %v1614_v2  ;;  %4376 = vmatprep.mubr.msk.bf16.mxu0 %vm4580_vm0, %v6207_v3  ;;  %v6230_v2 = vld [vmem:[#allocation9_spill] sm:$0xff] }
 0x20f   :  { %v4110_v9 = vpop.f32.mrf.mxu0  ;;  %v1530_v45 = vpop.f32.mrf.mxu1  ;;  %4309 = vmatmul.mubr.bf16.vlgmr.msra.gmra.mxu1 %v5241_v51 }
 0x210   :  { %v1616_v48 = vadd.f32 %v1530_v45, %v5707_v25  ;;  %4312 = vmatprep.mubr.msk.bf16.mxu1 %vm4580_vm0, %v6207_v3 }
 0x211   :  { %v1877_v57 = vpop.f32.mrf.mxu0  ;;  %v4046_v49 = vpop.f32.mrf.mxu1 }
 0x212   :  { %v5892_v54 = vadd.f32 %v1877_v57, %v1615_v32  ;;  %v6232_v57 = vld [vmem:[#allocation11_spill] sm:$0xff] }
 0x213   :  { %v4111_v29 = vpop.f32.mrf.mxu0  ;;  %v1533_v46 = vpop.f32.mrf.mxu1 }
 0x214   :  { %v1617_v14 = vadd.f32 %v1533_v46, %v5723_v12 }
 0x215   :  { %v1882_v38 = vpop.f32.mrf.mxu0  ;;  %4377 = vmatmul.mubr.bf16.vlgmr.msra.gmra.mxu0 %v6229_v31  ;;  %v4047_v33 = vpop.f32.mrf.mxu1 }
 0x216   :  { %v5896_v7 = vadd.f32 %v1882_v38, %v1616_v48  ;;  %4380 = vmatprep.mubr.msk.bf16.mxu0 %vm4580_vm0, %v6207_v3 }
 0x217   :  { %v4114_v51 = vpop.f32.mrf.mxu0  ;;  %v1538_v25 = vpop.f32.mrf.mxu1  ;;  %4313 = vmatmul.mubr.bf16.gmra.mxu1 %v5249_v17 }
 0x218   :  { %v1618_v41 = vadd.f32 %v1538_v25, %v5735_v28  ;;  %4316 = vmatprep.mubr.msk.bf16.mxu1 %vm4580_vm0, %v6207_v3 }
 0x219   :  { %v1885_v26 = vpop.f32.mrf.mxu0  ;;  %v4050_v12 = vpop.f32.mrf.mxu1 }
 0x21a   :  { %v5904_v34 = vadd.f32 %v1885_v26, %v1617_v14  ;;  %v6233_v14 = vld [vmem:[#allocation14_spill] sm:$0xff] }
 0x21b   :  { %v4115_v20 = vpop.f32.mrf.mxu0  ;;  %v1541_v10 = vpop.f32.mrf.mxu1 }
 0x21c   :  { %v1619_v39 = vadd.f32 %v1541_v10, %v5751_v62 }
 0x21d   :  { %v1890_v30 = vpop.f32.mrf.mxu0  ;;  %4381 = vmatmul.mubr.bf16.gmra.mxu0 %v6230_v2  ;;  %v4051_v42 = vpop.f32.mrf.mxu1 }
 0x21e   :  { %v5908_v8 = vadd.f32 %v1890_v30, %v1618_v41  ;;  %4384 = vmatprep.mubr.msk.bf16.mxu0 %vm4580_vm0, %v6207_v3  ;;  %v6234_v41 = vld [vmem:[#allocation12_spill] sm:$0xff] }
 0x21f   :  { %v4118_v17 = vpop.f32.mrf.mxu0  ;;  %v1546_v28 = vpop.f32.mrf.mxu1  ;;  %4317 = vmatmul.mubr.bf16.gmra.mxu1 %v6231_v18  ;;  %v6235_v18 = vld [vmem:[#allocation15_spill] sm:$0xff] }
 0x220   :  { %v1620_v22 = vadd.f32 %v1546_v28, %v5763_v44  ;;  %4320 = vmatprep.mubr.msk.bf16.mxu1 %vm4580_vm0, %v6207_v3 }
 0x221   :  { %v1893_v32 = vpop.f32.mrf.mxu0  ;;  %v4054_v62 = vpop.f32.mrf.mxu1 }
 0x222   :  { %v5916_v27 = vadd.f32 %v1893_v32, %v1619_v39 }
 0x223   :  { %v4119_v56 = vpop.f32.mrf.mxu0  ;;  %v1549_v9 = vpop.f32.mrf.mxu1 }
 0x224   :  { %v1621_v45 = vadd.f32 %v1549_v9, %v5778_v61 }
 0x225   :  { %v1898_v48 = vpop.f32.mrf.mxu0  ;;  %4385 = vmatmul.mubr.bf16.gmra.mxu0 %v6232_v57  ;;  %v4055_v49 = vpop.f32.mrf.mxu1 }
 0x226   :  { %v5920_v29 = vadd.f32 %v1898_v48, %v1620_v22  ;;  %4388 = vmatprep.mubr.msk.bf16.mxu0 %vm4580_vm0, %v6207_v3 }
 0x227   :  { %v4122_v44 = vpop.f32.mrf.mxu0  ;;  %v1554_v46 = vpop.f32.mrf.mxu1  ;;  %4321 = vmatmul.mubr.bf16.gmra.mxu1 %v6233_v14 }
 0x228   :  { %4324 = vmatprep.mubr.msk.bf16.mxu1 %vm4580_vm0, %v6207_v3  ;;  %v6236_v44 = vld [vmem:[#allocation16_spill] sm:$0xff] }
 0x229   :  { %v1901_v38 = vpop.f32.mrf.mxu0  ;;  %v4058_v31 = vpop.f32.mrf.mxu1 }
 0x22a   :  { %v5927_v33 = vadd.f32 %v1901_v38, %v1621_v45 }
 0x22b   :  { %v4123_v61 = vpop.f32.mrf.mxu0  ;;  %v1556_v51 = vpop.f32.mrf.mxu1 }
 0x22d   :  { %v1906_v25 = vpop.f32.mrf.mxu0  ;;  %4389 = vmatmul.mubr.bf16.gmra.mxu0 %v6234_v41  ;;  %v4059_v26 = vpop.f32.mrf.mxu1 }
 0x22e   :  { %4392 = vmatprep.mubr.msk.bf16.mxu0 %vm4580_vm0, %v6207_v3 }
 0x22f   :  { %v4126_v12 = vpop.f32.mrf.mxu0  ;;  %v1560_v20 = vpop.f32.mrf.mxu1  ;;  %4325 = vmatmul.mubr.bf16.gmra.mxu1 %v5302_v36 }
 0x230   :  { %v1622_v10 = vadd.f32 %v1560_v20, %v5797_v1  ;;  %4328 = vmatprep.mubr.msk.bf16.mxu1 %vm4580_vm0, %v6207_v3  ;;  %v6237_v12 = vld [vmem:[#allocation17_spill] sm:$0xff] }
 0x231   :  { %v1908_v39 = vpop.f32.mrf.mxu0  ;;  %v4062_v30 = vpop.f32.mrf.mxu1 }
 0x232   :  { %v6238_v39 = vld [vmem:[#allocation19_spill] sm:$0xff] }
 0x233   :  { %v4127_v2 = vpop.f32.mrf.mxu0  ;;  %v1563_v42 = vpop.f32.mrf.mxu1 }
 0x234   :  { %v1623_v17 = vadd.f32 %v1563_v42, %v5804_v13 }
 0x235   :  { %v1912_v28 = vpop.f32.mrf.mxu0  ;;  %4393 = vmatmul.mubr.bf16.gmra.mxu0 %v6235_v18  ;;  %v4063_v22 = vpop.f32.mrf.mxu1 }
 0x236   :  { %v5938_v32 = vadd.f32 %v1912_v28, %v1622_v10  ;;  %4396 = vmatprep.mubr.msk.bf16.mxu0 %vm4580_vm0, %v6207_v3 }
 0x237   :  { %v4130_v36 = vpop.f32.mrf.mxu0  ;;  %v1568_v1 = vpop.f32.mrf.mxu1  ;;  %4329 = vmatmul.mubr.bf16.gmra.mxu1 %v5310_v21 }
 0x238   :  { %v1624_v62 = vadd.f32 %v1568_v1, %v5808_v52  ;;  %4332 = vmatprep.mubr.msk.bf16.mxu1 %vm4580_vm0, %v6207_v3  ;;  %v6239_v36 = vld [vmem:[#allocation18_spill] sm:$0xff] }
 0x239   :  { %v1915_v56 = vpop.f32.mrf.mxu0  ;;  %v4066_v13 = vpop.f32.mrf.mxu1 }
 0x23a   :  { %v5946_v9 = vadd.f32 %v1915_v56, %v1623_v17 }
 0x23b   :  { %v4131_v45 = vpop.f32.mrf.mxu0  ;;  %v1571_v48 = vpop.f32.mrf.mxu1 }
 0x23c   :  { %v1625_v57 = vadd.f32 %v1571_v48, %v5816_v53 }
 0x23d   :  { %v1920_v49 = vpop.f32.mrf.mxu0  ;;  %4397 = vmatmul.mubr.bf16.gmra.mxu0 %v6236_v44  ;;  %v4067_v46 = vpop.f32.mrf.mxu1 }
 0x23e   :  { %v5950_v14 = vadd.f32 %v1920_v49, %v1624_v62  ;;  %4400 = vmatprep.mubr.msk.bf16.mxu0 %vm4580_vm0, %v6207_v3 }
 0x23f   :  { %v4134_v21 = vpop.f32.mrf.mxu0  ;;  %v1576_v52 = vpop.f32.mrf.mxu1  ;;  %4333 = vmatmul.mubr.bf16.gmra.mxu1 %v5330_v16 }
 0x240   :  { %v1626_v38 = vadd.f32 %v1576_v52, %v5820_v50  ;;  %4336 = vmatprep.mubr.msk.bf16.mxu1 %vm4580_vm0, %v6207_v3 }
 0x241   :  { %v1923_v31 = vpop.f32.mrf.mxu0  ;;  %v4070_v53 = vpop.f32.mrf.mxu1 }
 0x242   :  { %v5958_v61 = vadd.f32 %v1923_v31, %v1625_v57 }
 0x243   :  { %v4135_v51 = vpop.f32.mrf.mxu0  ;;  %v1579_v25 = vpop.f32.mrf.mxu1 }
 0x244   :  { %v1627_v41 = vadd.f32 %v1579_v25, %v5828_v19 }
 0x245   :  { %v1928_v26 = vpop.f32.mrf.mxu0  ;;  %4401 = vmatmul.mubr.bf16.gmra.mxu0 %v6237_v12  ;;  %v4071_v20 = vpop.f32.mrf.mxu1 }
 0x246   :  { %v5962_v10 = vadd.f32 %v1928_v26, %v1626_v38  ;;  %4404 = vmatprep.mubr.msk.bf16.mxu0 %vm4580_vm0, %v6207_v3 }
 0x247   :  { %v4138_v16 = vpop.f32.mrf.mxu0  ;;  %v1584_v50 = vpop.f32.mrf.mxu1  ;;  %4337 = vmatmul.mubr.bf16.gmra.mxu1 %v6238_v39 }
 0x248   :  { %v1628_v30 = vadd.f32 %v1584_v50, %v5832_v24  ;;  %4340 = vmatprep.mubr.msk.bf16.mxu1 %vm4580_vm0, %v6207_v3 }
 0x249   :  { %v1931_v2 = vpop.f32.mrf.mxu0  ;;  %v4074_v19 = vpop.f32.mrf.mxu1 }
 0x24a   :  { %v5970_v42 = vadd.f32 %v1931_v2, %v1627_v41 }
 0x24b   :  { %v4139_v17 = vpop.f32.mrf.mxu0  ;;  %v1587_v28 = vpop.f32.mrf.mxu1 }
 0x24c   :  { %v1629_v18 = vadd.f32 %v1587_v28, %v5840_v40 }
 0x24d   :  { %v1936_v22 = vpop.f32.mrf.mxu0  ;;  %4405 = vmatmul.mubr.bf16.gmra.mxu0 %v6239_v36  ;;  %v4075_v1 = vpop.f32.mrf.mxu1 }
 0x24e   :  { %v5974_v62 = vadd.f32 %v1936_v22, %v1628_v30  ;;  %4408 = vmatprep.mubr.msk.bf16.mxu0 %vm4580_vm0, %v6207_v3 }
 0x24f   :  { %v4142_v24 = vpop.f32.mrf.mxu0  ;;  %v1592_v56 = vpop.f32.mrf.mxu1  ;;  %4341 = vmatmul.mubr.bf16.gmra.mxu1 %v5352_v59 }
 0x250   :  { %v1630_v13 = vadd.f32 %v1592_v56, %v5844_v37  ;;  %4344 = vmatprep.mubr.msk.bf16.mxu1 %vm4580_vm0, %v6207_v3 }
 0x251   :  { %v1939_v45 = vpop.f32.mrf.mxu0  ;;  %v4078_v40 = vpop.f32.mrf.mxu1 }
 0x252   :  { %v5982_v48 = vadd.f32 %v1939_v45, %v1629_v18 }
 0x253   :  { %v4143_v57 = vpop.f32.mrf.mxu0  ;;  %v1595_v49 = vpop.f32.mrf.mxu1 }
 0x254   :  { %v1631_v44 = vadd.f32 %v1595_v49, %v5852_v47  ;;  %v6240_v49 = vrot.slane %v5092_v58, 3 }
 0x255   :  { %v1944_v46 = vpop.f32.mrf.mxu0  ;;  %4409 = vmatmul.mubr.bf16.gmra.mxu0 %v5341_v15  ;;  %v4079_v21 = vpop.f32.mrf.mxu1 }
 0x256   :  { %v5986_v52 = vadd.f32 %v1944_v46, %v1630_v13  ;;  %4412 = vmatprep.mubr.msk.bf16.mxu0 %vm4580_vm0, %v6207_v3 }
 0x257   :  { %v4146_v59 = vpop.f32.mrf.mxu0  ;;  %v1600_v37 = vpop.f32.mrf.mxu1  ;;  %4345 = vmatmul.mubr.bf16.gmra.mxu1 %v5364_v43 }
 0x258   :  { %v1632_v38 = vadd.f32 %v1600_v37, %v5856_v4  ;;  %4348 = vmatprep.mubr.msk.bf16.mxu1 %vm4580_vm0, %v6207_v3 }
 0x259   :  { %v1947_v31 = vpop.f32.mrf.mxu0  ;;  %v4082_v47 = vpop.f32.mrf.mxu1 }
 0x25a   :  { %v5994_v53 = vadd.f32 %v1947_v31, %v1631_v44 }
 0x25b   :  { %v4147_v15 = vpop.f32.mrf.mxu0  ;;  %v1603_v51 = vpop.f32.mrf.mxu1 }
 0x25d   :  { %v1952_v25 = vpop.f32.mrf.mxu0  ;;  %4413 = vmatmul.mubr.bf16.gmra.mxu0 %v5345_v6  ;;  %v4083_v41 = vpop.f32.mrf.mxu1 }
 0x25e   :  { %v5997_v26 = vadd.f32 %v1952_v25, %v1632_v38  ;;  %4416 = vmatprep.mubr.msk.bf16.mxu0 %vm4580_vm0, %v6207_v3 }
 0x25f   :  { %v4150_v43 = vpop.f32.mrf.mxu0  ;;  %v1607_v4 = vpop.f32.mrf.mxu1  ;;  %4349 = vmatmul.mubr.bf16.gmra.mxu1 %v5383_v23 }
 0x260   :  { %4352 = vmatprep.mubr.msk.bf16.mxu1 %vm4580_vm0, %v6207_v3 }
 0x261   :  { %v1955_v12 = vpop.f32.mrf.mxu0  ;;  %v4086_v20 = vpop.f32.mrf.mxu1 }
 0x263   :  { %v4151_v16 = vpop.f32.mrf.mxu0  ;;  %v1609_v50 = vpop.f32.mrf.mxu1 }
 0x265   :  { %v1959_v39 = vpop.f32.mrf.mxu0  ;;  %4417 = vmatmul.mubr.bf16.gmra.mxu0 %v5367_v0  ;;  %v4087_v6 = vpop.f32.mrf.mxu1 }
 0x266   :  { %4420 = vmatprep.mubr.msk.bf16.mxu0 %vm4580_vm0, %v6207_v3 }
 0x267   :  { %v4154_v30 = vpop.f32.mrf.mxu0  ;;  %v2127_v2 = vpop.f32.mrf.mxu1  ;;  %4353 = vmatmul.mubr.bf16.gmra.mxu1 %v5387_v55 }
 0x268   :  { %v2225_v23 = vadd.f32 %v2127_v2, %v5872_v60  ;;  %4356 = vmatprep.mubr.msk.bf16.mxu1 %vm4580_vm0, %v6207_v3 }
 0x269   :  { %v1961_v19 = vpop.f32.mrf.mxu0  ;;  %v4174_v17 = vpop.f32.mrf.mxu1 }
 0x26b   :  { %v4155_v28 = vpop.f32.mrf.mxu0  ;;  %v2130_v18 = vpop.f32.mrf.mxu1 }
 0x26c   :  { %v2226_v22 = vadd.f32 %v2130_v18, %v5881_v35 }
 0x26d   :  { %v2474_v0 = vpop.f32.mrf.mxu0  ;;  %4421 = vmatmul.mubr.bf16.gmra.mxu0 %v5372_v5  ;;  %v4175_v36 = vpop.f32.mrf.mxu1 }
 0x26e   :  { %v6013_v1 = vadd.f32 %v2474_v0, %v2225_v23  ;;  %4424 = vmatprep.mubr.msk.bf16.mxu0 %vm4580_vm0, %v6207_v3 }
 0x26f   :  { %v4242_v55 = vpop.f32.mrf.mxu0  ;;  %v2135_v60 = vpop.f32.mrf.mxu1  ;;  %4357 = vmatmul.mubr.bf16.gmra.mxu1 %v5356_v63 }
 0x270   :  { %v2227_v24 = vadd.f32 %v2135_v60, %v5884_v11 }
 0x271   :  { %v2477_v56 = vpop.f32.mrf.mxu0  ;;  %v4178_v13 = vpop.f32.mrf.mxu1 }
 0x272   :  { %v6019_v45 = vadd.f32 %v2477_v56, %v2226_v22 }
 0x273   :  { %v4243_v35 = vpop.f32.mrf.mxu0  ;;  %v2138_v40 = vpop.f32.mrf.mxu1 }
 0x274   :  { %v2228_v5 = vadd.f32 %v2138_v40, %v5892_v54 }
 0x275   :  { %v2482_v57 = vpop.f32.mrf.mxu0  ;;  %4425 = vmatmul.mubr.bf16.gmra.mxu0 %v6240_v49  ;;  %v4179_v44 = vpop.f32.mrf.mxu1 }
 0x276   :  { %v6024_v3 = vadd.f32 %v2482_v57, %v2227_v24 }
 0x277   :  { %v4246_v46 = vpop.f32.mrf.mxu0  ;;  %v2143_v21 = vpop.f32.mrf.mxu1 }
 0x278   :  { %v2229_v63 = vadd.f32 %v2143_v21, %v5896_v7 }
 0x279   :  { %v2485_v11 = vpop.f32.mrf.mxu0  ;;  %v4182_v59 = vpop.f32.mrf.mxu1 }
 0x27a   :  { %v6027_v37 = vadd.f32 %v2485_v11, %v2228_v5 }
 0x27b   :  { %v4247_v38 = vpop.f32.mrf.mxu0  ;;  %v2146_v31 = vpop.f32.mrf.mxu1 }
 0x27c   :  { %v2230_v47 = vadd.f32 %v2146_v31, %v5904_v34 }
 0x27d   :  { %v2490_v54 = vpop.f32.mrf.mxu0  ;;  %v4183_v15 = vpop.f32.mrf.mxu1 }
 0x27e   :  { %v6030_v51 = vadd.f32 %v2490_v54, %v2229_v63 }
 0x27f   :  { %v4250_v58 = vpop.f32.mrf.mxu0  ;;  %v2151_v25 = vpop.f32.mrf.mxu1 }
 0x280   :  { %v2231_v41 = vadd.f32 %v2151_v25, %v5908_v8 }
 0x281   :  { %v2493_v43 = vpop.f32.mrf.mxu0  ;;  %v4186_v4 = vpop.f32.mrf.mxu1 }
 0x282   :  { %v6033_v12 = vadd.f32 %v2493_v43, %v2230_v47 }
 0x283   :  { %v4251_v7 = vpop.f32.mrf.mxu0  ;;  %v2154_v20 = vpop.f32.mrf.mxu1 }
 0x284   :  { %v2232_v16 = vadd.f32 %v2154_v20, %v5916_v27 }
 0x285   :  { %v2498_v50 = vpop.f32.mrf.mxu0  ;;  %v4187_v39 = vpop.f32.mrf.mxu1 }
 0x286   :  { %v6036_v6 = vadd.f32 %v2498_v50, %v2231_v41 }
 0x287   :  { %v4254_v34 = vpop.f32.mrf.mxu0  ;;  %v2159_v30 = vpop.f32.mrf.mxu1 }
 0x288   :  { %v2233_v2 = vadd.f32 %v2159_v30, %v5920_v29 }
 0x289   :  { %v2501_v23 = vpop.f32.mrf.mxu0  ;;  %v4190_v19 = vpop.f32.mrf.mxu1 }
 0x28a   :  { %v6039_v17 = vadd.f32 %v2501_v23, %v2232_v16 }
 0x28b   :  { %v4255_v8 = vpop.f32.mrf.mxu0  ;;  %v2162_v28 = vpop.f32.mrf.mxu1 }
 0x28c   :  { %v2234_v18 = vadd.f32 %v2162_v28, %v5927_v33 }
 0x28d   :  { %v2506_v22 = vpop.f32.mrf.mxu0  ;;  %v4191_v0 = vpop.f32.mrf.mxu1 }
 0x28e   :  { %v6042_v36 = vadd.f32 %v2506_v22, %v2233_v2 }
 0x28f   :  { %v4258_v27 = vpop.f32.mrf.mxu0  ;;  %v2167_v55 = vpop.f32.mrf.mxu1 }
 0x291   :  { %v2509_v60 = vpop.f32.mrf.mxu0  ;;  %v4194_v24 = vpop.f32.mrf.mxu1 }
 0x292   :  { %v6044_v56 = vadd.f32 %v2509_v60, %v2234_v18 }
 0x293   :  { %v4259_v13 = vpop.f32.mrf.mxu0  ;;  %v2169_v29 = vpop.f32.mrf.mxu1 }
 0x295   :  { %v2514_v35 = vpop.f32.mrf.mxu0  ;;  %v4195_v40 = vpop.f32.mrf.mxu1 }
 0x297   :  { %v4262_v5 = vpop.f32.mrf.mxu0  ;;  %v2173_v57 = vpop.f32.mrf.mxu1 }
 0x298   :  { %v2235_v49 = vadd.f32 %v2173_v57, %v5938_v32 }
 0x299   :  { %v2516_v44 = vpop.f32.mrf.mxu0  ;;  %v4198_v33 = vpop.f32.mrf.mxu1 }
 0x29b   :  { %v4263_v46 = vpop.f32.mrf.mxu0  ;;  %v2176_v21 = vpop.f32.mrf.mxu1 }
 0x29c   :  { %v2236_v63 = vadd.f32 %v2176_v21, %v5946_v9 }
 0x29d   :  { %v2520_v11 = vpop.f32.mrf.mxu0  ;;  %v4199_v59 = vpop.f32.mrf.mxu1 }
 0x29e   :  { %v6048_v38 = vadd.f32 %v2520_v11, %v2235_v49 }
 0x29f   :  { %v4266_v31 = vpop.f32.mrf.mxu0  ;;  %v2181_v47 = vpop.f32.mrf.mxu1 }
 0x2a0   :  { %v2237_v54 = vadd.f32 %v2181_v47, %v5950_v14 }
 0x2a1   :  { %v2523_v15 = vpop.f32.mrf.mxu0  ;;  %v4202_v58 = vpop.f32.mrf.mxu1 }
 0x2a2   :  { %v6051_v25 = vadd.f32 %v2523_v15, %v2236_v63 }
 0x2a3   :  { %v4267_v41 = vpop.f32.mrf.mxu0  ;;  %v2184_v32 = vpop.f32.mrf.mxu1 }
 0x2a4   :  { %v2238_v43 = vadd.f32 %v2184_v32, %v5958_v61 }
 0x2a5   :  { %v2528_v4 = vpop.f32.mrf.mxu0  ;;  %v4203_v7 = vpop.f32.mrf.mxu1 }
 0x2a6   :  { %v6054_v20 = vadd.f32 %v2528_v4, %v2237_v54 }
 0x2a7   :  { %v4270_v9 = vpop.f32.mrf.mxu0  ;;  %v2189_v16 = vpop.f32.mrf.mxu1 }
 0x2a8   :  { %v2239_v50 = vadd.f32 %v2189_v16, %v5962_v10 }
 0x2a9   :  { %v2531_v39 = vpop.f32.mrf.mxu0  ;;  %v4206_v34 = vpop.f32.mrf.mxu1 }
 0x2aa   :  { %v6057_v30 = vadd.f32 %v2531_v39, %v2238_v43 }
 0x2ab   :  { %v4271_v14 = vpop.f32.mrf.mxu0  ;;  %v2192_v2 = vpop.f32.mrf.mxu1 }
 0x2ac   :  { %v2240_v23 = vadd.f32 %v2192_v2, %v5970_v42 }
 0x2ad   :  { %v2536_v19 = vpop.f32.mrf.mxu0  ;;  %v4207_v8 = vpop.f32.mrf.mxu1 }
 0x2ae   :  { %v6060_v28 = vadd.f32 %v2536_v19, %v2239_v50 }
 0x2af   :  { %v4274_v61 = vpop.f32.mrf.mxu0  ;;  %v2197_v18 = vpop.f32.mrf.mxu1 }
 0x2b0   :  { %v2241_v22 = vadd.f32 %v2197_v18, %v5974_v62 }
 0x2b1   :  { %v2539_v0 = vpop.f32.mrf.mxu0  ;;  %v4210_v27 = vpop.f32.mrf.mxu1 }
 0x2b2   :  { %v6063_v55 = vadd.f32 %v2539_v0, %v2240_v23 }
 0x2b3   :  { %v4275_v10 = vpop.f32.mrf.mxu0  ;;  %v2200_v60 = vpop.f32.mrf.mxu1 }
 0x2b4   :  { %v2242_v24 = vadd.f32 %v2200_v60, %v5982_v48 }
 0x2b5   :  { %v2544_v13 = vpop.f32.mrf.mxu0  ;;  %v4211_v29 = vpop.f32.mrf.mxu1 }
 0x2b6   :  { %v6066_v35 = vadd.f32 %v2544_v13, %v2241_v22 }
 0x2b7   :  { %v4278_v42 = vpop.f32.mrf.mxu0  ;;  %v2205_v40 = vpop.f32.mrf.mxu1 }
 0x2b8   :  { %v2243_v5 = vadd.f32 %v2205_v40, %v5986_v52 }
 0x2b9   :  { %v2547_v57 = vpop.f32.mrf.mxu0  ;;  %v4214_v49 = vpop.f32.mrf.mxu1 }
 0x2ba   :  { %v6069_v44 = vadd.f32 %v2547_v57, %v2242_v24 }
 0x2bb   :  { %v4279_v62 = vpop.f32.mrf.mxu0  ;;  %v2208_v33 = vpop.f32.mrf.mxu1 }
 0x2bc   :  { %v2244_v46 = vadd.f32 %v2208_v33, %v5994_v53 }
 0x2bd   :  { %v2552_v21 = vpop.f32.mrf.mxu0  ;;  %v4215_v63 = vpop.f32.mrf.mxu1 }
 0x2be   :  { %v6072_v11 = vadd.f32 %v2552_v21, %v2243_v5 }
 0x2bf   :  { %v4282_v48 = vpop.f32.mrf.mxu0  ;;  %v2213_v59 = vpop.f32.mrf.mxu1 }
 0x2c0   :  { %v2245_v31 = vadd.f32 %v2213_v59, %v5997_v26 }
 0x2c1   :  { %v2555_v47 = vpop.f32.mrf.mxu0  ;;  %v4218_v54 = vpop.f32.mrf.mxu1 }
 0x2c2   :  { %v6075_v15 = vadd.f32 %v2555_v47, %v2244_v46 }
 0x2c3   :  { %v4283_v52 = vpop.f32.mrf.mxu0  ;;  %v2216_v58 = vpop.f32.mrf.mxu1 }
 0x2c5   :  { %v2560_v41 = vpop.f32.mrf.mxu0  ;;  %v4219_v32 = vpop.f32.mrf.mxu1 }
 0x2c6   :  { %v6077_v43 = vadd.f32 %v2560_v41, %v2245_v31 }
 0x2c7   :  { %v4286_v4 = vpop.f32.mrf.mxu0  ;;  %v2220_v53 = vpop.f32.mrf.mxu1 }
 0x2c9   :  { %v2563_v7 = vpop.f32.mrf.mxu0  ;;  %v4222_v9 = vpop.f32.mrf.mxu1 }
 0x2cb   :  { %v4287_v16 = vpop.f32.mrf.mxu0  ;;  %v2222_v50 = vpop.f32.mrf.mxu1 }
 0x2cd   :  { %v2567_v39 = vpop.f32.mrf.mxu0  ;;  %v4223_v34 = vpop.f32.mrf.mxu1 }
 0x2cf   :  { %v4290_v14 = vpop.f32.mrf.mxu0  ;;  %v2826_v26 = vpop.f32.mrf.mxu1 }
 0x2d0   :  { %v2924_v19 = vadd.f32 %v2826_v26, %v6013_v1 }
 0x2d1   :  { %v2569_v2 = vpop.f32.mrf.mxu0  ;;  %v4310_v23 = vpop.f32.mrf.mxu1 }
 0x2d3   :  { %v4291_v8 = vpop.f32.mrf.mxu0  ;;  %v2829_v61 = vpop.f32.mrf.mxu1 }
 0x2d4   :  { %v2925_v27 = vadd.f32 %v2829_v61, %v6019_v45 }
 0x2d5   :  { %v3087_v18 = vpop.f32.mrf.mxu0  ;;  %v4311_v22 = vpop.f32.mrf.mxu1 }
 0x2d6   :  { %v3185_v0 = vadd.f32 %v3087_v18, %v2924_v19 }
 0x2d7   :  { %v4378_v10 = vpop.f32.mrf.mxu0  ;;  %v2834_v60 = vpop.f32.mrf.mxu1 }
 0x2d8   :  { %3206 = vst [vmem:[%s6189_s5] sm:$0xff] %v3185_v0  ;;  %v2926_v42 = vadd.f32 %v2834_v60, %v6024_v3 }
 0x2d9   :  { %v3090_v24 = vpop.f32.mrf.mxu0  ;;  %v4314_v13 = vpop.f32.mrf.mxu1 }
 0x2da   :  { %v3186_v29 = vadd.f32 %v3090_v24, %v2925_v27 }
 0x2db   :  { %v4379_v40 = vpop.f32.mrf.mxu0  ;;  %v2837_v1 = vpop.f32.mrf.mxu1 }
 0x2dc   :  { %3539 = vst [vmem:[%s6189_s5 + $0x6] sm:$0xfc] %v3186_v29  ;;  %v2927_v49 = vadd.f32 %v2837_v1, %v6027_v37 }
 0x2dd   :  { %v3095_v5 = vpop.f32.mrf.mxu0  ;;  %v4315_v57 = vpop.f32.mrf.mxu1 }
 0x2de   :  { %v3187_v45 = vadd.f32 %v3095_v5, %v2926_v42 }
 0x2df   :  { %v4382_v62 = vpop.f32.mrf.mxu0  ;;  %v2842_v33 = vpop.f32.mrf.mxu1 }
 0x2e0   :  { %3540 = vst [vmem:[%s6189_s5 + $0xe] sm:$0x3] %v3187_v45  ;;  %3541 = vst [vmem:[%s6189_s5 + $0xc] sm:$0xf0] %v3187_v45  ;;  %v2928_v63 = vadd.f32 %v2842_v33, %v6030_v51 }
 0x2e1   :  { %v3098_v3 = vpop.f32.mrf.mxu0  ;;  %v4318_v46 = vpop.f32.mrf.mxu1 }
 0x2e2   :  { %v3188_v21 = vadd.f32 %v3098_v3, %v2927_v49 }
 0x2e3   :  { %v4383_v48 = vpop.f32.mrf.mxu0  ;;  %v2845_v59 = vpop.f32.mrf.mxu1 }
 0x2e4   :  { %3542 = vst [vmem:[%s6189_s5 + $0x14] sm:$0xf] %v3188_v21  ;;  %3543 = vst [vmem:[%s6189_s5 + $0x12] sm:$0xc0] %v3188_v21  ;;  %v2929_v54 = vadd.f32 %v2845_v59, %v6033_v12 }
 0x2e5   :  { %v3103_v37 = vpop.f32.mrf.mxu0  ;;  %v4319_v31 = vpop.f32.mrf.mxu1 }
 0x2e6   :  { %v3189_v47 = vadd.f32 %v3103_v37, %v2928_v63 }
 0x2e7   :  { %v4386_v52 = vpop.f32.mrf.mxu0  ;;  %v2850_v58 = vpop.f32.mrf.mxu1 }
 0x2e8   :  { %3544 = vst [vmem:[%s6189_s5 + $0x1a] sm:$0x3f] %v3189_v47  ;;  %v2930_v4 = vadd.f32 %v2850_v58, %v6036_v6 }
 0x2e9   :  { %v3106_v51 = vpop.f32.mrf.mxu0  ;;  %v4322_v41 = vpop.f32.mrf.mxu1 }
 0x2ea   :  { %v3190_v32 = vadd.f32 %v3106_v51, %v2929_v54 }
 0x2eb   :  { %v4387_v53 = vpop.f32.mrf.mxu0  ;;  %v2853_v7 = vpop.f32.mrf.mxu1 }
 0x2ec   :  { %3545 = vst [vmem:[%s6189_s5 + $0x20] sm:$0xff] %v3190_v32  ;;  %v2931_v50 = vadd.f32 %v2853_v7, %v6039_v17 }
 0x2ed   :  { %v3111_v9 = vpop.f32.mrf.mxu0  ;;  %v4323_v16 = vpop.f32.mrf.mxu1 }
 0x2ee   :  { %v3191_v12 = vadd.f32 %v3111_v9, %v2930_v4 }
 0x2ef   :  { %v4390_v39 = vpop.f32.mrf.mxu0  ;;  %v2858_v34 = vpop.f32.mrf.mxu1 }
 0x2f0   :  { %3546 = vst [vmem:[%s6189_s5 + $0x26] sm:$0xfc] %v3191_v12  ;;  %v2932_v2 = vadd.f32 %v2858_v34, %v6042_v36 }
 0x2f1   :  { %v3114_v14 = vpop.f32.mrf.mxu0  ;;  %v4326_v26 = vpop.f32.mrf.mxu1 }
 0x2f2   :  { %v3192_v6 = vadd.f32 %v3114_v14, %v2931_v50 }
 0x2f3   :  { %v4391_v23 = vpop.f32.mrf.mxu0  ;;  %v2861_v19 = vpop.f32.mrf.mxu1 }
 0x2f4   :  { %3547 = vst [vmem:[%s6189_s5 + $0x2e] sm:$0x3] %v3192_v6  ;;  %3548 = vst [vmem:[%s6189_s5 + $0x2c] sm:$0xf0] %v3192_v6  ;;  %v2933_v18 = vadd.f32 %v2861_v19, %v6044_v56 }
 0x2f5   :  { %v3119_v17 = vpop.f32.mrf.mxu0  ;;  %v4327_v8 = vpop.f32.mrf.mxu1 }
 0x2f6   :  { %v3193_v61 = vadd.f32 %v3119_v17, %v2932_v2 }
 0x2f7   :  { %v4394_v22 = vpop.f32.mrf.mxu0  ;;  %v2866_v0 = vpop.f32.mrf.mxu1 }
 0x2f8   :  { %3549 = vst [vmem:[%s6189_s5 + $0x34] sm:$0xf] %v3193_v61  ;;  %3550 = vst [vmem:[%s6189_s5 + $0x32] sm:$0xc0] %v3193_v61 }
 0x2f9   :  { %v3122_v36 = vpop.f32.mrf.mxu0  ;;  %v4330_v27 = vpop.f32.mrf.mxu1 }
 0x2fa   :  { %v3194_v10 = vadd.f32 %v3122_v36, %v2933_v18 }
 0x2fb   :  { %v4395_v60 = vpop.f32.mrf.mxu0  ;;  %v2868_v24 = vpop.f32.mrf.mxu1 }
 0x2fc   :  { %3551 = vst [vmem:[%s6189_s5 + $0x3a] sm:$0x3f] %v3194_v10 }
 0x2fd   :  { %v3127_v56 = vpop.f32.mrf.mxu0  ;;  %v4331_v13 = vpop.f32.mrf.mxu1 }
 0x2ff   :  { %v4398_v29 = vpop.f32.mrf.mxu0  ;;  %v2872_v42 = vpop.f32.mrf.mxu1 }
 0x300   :  { %v2934_v5 = vadd.f32 %v2872_v42, %v6048_v38 }
 0x301   :  { %v3129_v40 = vpop.f32.mrf.mxu0  ;;  %v4334_v1 = vpop.f32.mrf.mxu1 }
 0x303   :  { %v4399_v57 = vpop.f32.mrf.mxu0  ;;  %v2875_v45 = vpop.f32.mrf.mxu1 }
 0x304   :  { %v2935_v3 = vadd.f32 %v2875_v45, %v6051_v25 }
 0x305   :  { %v3133_v49 = vpop.f32.mrf.mxu0  ;;  %v4335_v62 = vpop.f32.mrf.mxu1 }
 0x306   :  { %v3195_v33 = vadd.f32 %v3133_v49, %v2934_v5 }
 0x307   :  { %v4402_v46 = vpop.f32.mrf.mxu0  ;;  %v2880_v21 = vpop.f32.mrf.mxu1 }
 0x308   :  { %3552 = vst [vmem:[%s6189_s5 + $0x3c] sm:$0xf0] %v3195_v33  ;;  %v2936_v37 = vadd.f32 %v2880_v21, %v6054_v20 }
 0x309   :  { %v3136_v63 = vpop.f32.mrf.mxu0  ;;  %v4338_v48 = vpop.f32.mrf.mxu1 }
 0x30a   :  { %v3196_v59 = vadd.f32 %v3136_v63, %v2935_v3 }
 0x30b   :  { %v4403_v31 = vpop.f32.mrf.mxu0  ;;  %v2883_v38 = vpop.f32.mrf.mxu1 }
 0x30c   :  { %3553 = vst [vmem:[%s6189_s5 + $0x44] sm:$0xf] %v3196_v59  ;;  %3554 = vst [vmem:[%s6189_s5 + $0x42] sm:$0xc0] %v3196_v59  ;;  %v2937_v52 = vadd.f32 %v2883_v38, %v6057_v30 }
 0x30d   :  { %v3141_v25 = vpop.f32.mrf.mxu0  ;;  %v4339_v47 = vpop.f32.mrf.mxu1 }
 0x30e   :  { %v3197_v54 = vadd.f32 %v3141_v25, %v2936_v37 }
 0x30f   :  { %v4406_v58 = vpop.f32.mrf.mxu0  ;;  %v2888_v51 = vpop.f32.mrf.mxu1 }
 0x310   :  { %3555 = vst [vmem:[%s6189_s5 + $0x4a] sm:$0x3f] %v3197_v54  ;;  %v2938_v4 = vadd.f32 %v2888_v51, %v6060_v28 }
 0x311   :  { %v3144_v20 = vpop.f32.mrf.mxu0  ;;  %v4342_v41 = vpop.f32.mrf.mxu1 }
 0x312   :  { %v3198_v32 = vadd.f32 %v3144_v20, %v2937_v52 }
 0x313   :  { %v4407_v53 = vpop.f32.mrf.mxu0  ;;  %v2891_v7 = vpop.f32.mrf.mxu1 }
 0x314   :  { %3556 = vst [vmem:[%s6189_s5 + $0x50] sm:$0xff] %v3198_v32  ;;  %v2939_v12 = vadd.f32 %v2891_v7, %v6063_v55 }
 0x315   :  { %v3149_v9 = vpop.f32.mrf.mxu0  ;;  %v4343_v16 = vpop.f32.mrf.mxu1 }
 0x316   :  { %v3199_v30 = vadd.f32 %v3149_v9, %v2938_v4 }
 0x317   :  { %v4410_v50 = vpop.f32.mrf.mxu0  ;;  %v2896_v39 = vpop.f32.mrf.mxu1 }
 0x318   :  { %3557 = vst [vmem:[%s6189_s5 + $0x56] sm:$0xfc] %v3199_v30  ;;  %v2940_v26 = vadd.f32 %v2896_v39, %v6066_v35 }
 0x319   :  { %v3152_v34 = vpop.f32.mrf.mxu0  ;;  %v4346_v14 = vpop.f32.mrf.mxu1 }
 0x31a   :  { %v3200_v28 = vadd.f32 %v3152_v34, %v2939_v12 }
 0x31b   :  { %v4411_v6 = vpop.f32.mrf.mxu0  ;;  %v2899_v2 = vpop.f32.mrf.mxu1 }
 0x31c   :  { %3558 = vst [vmem:[%s6189_s5 + $0x5e] sm:$0x3] %v3200_v28  ;;  %3559 = vst [vmem:[%s6189_s5 + $0x5c] sm:$0xf0] %v3200_v28  ;;  %v2941_v17 = vadd.f32 %v2899_v2, %v6069_v44 }
 0x31d   :  { %v3157_v55 = vpop.f32.mrf.mxu0  ;;  %v4347_v23 = vpop.f32.mrf.mxu1 }
 0x31e   :  { %v3201_v19 = vadd.f32 %v3157_v55, %v2940_v26 }
 0x31f   :  { %v4414_v8 = vpop.f32.mrf.mxu0  ;;  %v2904_v61 = vpop.f32.mrf.mxu1 }
 0x320   :  { %3560 = vst [vmem:[%s6189_s5 + $0x64] sm:$0xf] %v3201_v19  ;;  %3561 = vst [vmem:[%s6189_s5 + $0x62] sm:$0xc0] %v3201_v19  ;;  %v2942_v0 = vadd.f32 %v2904_v61, %v6072_v11 }
 0x321   :  { %v3160_v35 = vpop.f32.mrf.mxu0  ;;  %v4350_v18 = vpop.f32.mrf.mxu1 }
 0x322   :  { %v3202_v22 = vadd.f32 %v3160_v35, %v2941_v17 }
 0x323   :  { %v4415_v36 = vpop.f32.mrf.mxu0  ;;  %v2907_v27 = vpop.f32.mrf.mxu1 }
 0x324   :  { %3562 = vst [vmem:[%s6189_s5 + $0x6a] sm:$0x3f] %v3202_v22  ;;  %v2943_v24 = vadd.f32 %v2907_v27, %v6075_v15 }
 0x325   :  { %v3165_v44 = vpop.f32.mrf.mxu0  ;;  %v4351_v10 = vpop.f32.mrf.mxu1 }
 0x326   :  { %v3203_v60 = vadd.f32 %v3165_v44, %v2942_v0 }
 0x327   :  { %v4418_v56 = vpop.f32.mrf.mxu0  ;;  %v2912_v13 = vpop.f32.mrf.mxu1 }
 0x328   :  { %3563 = vst [vmem:[%s6189_s5 + $0x70] sm:$0xff] %v3203_v60  ;;  %v2944_v40 = vadd.f32 %v2912_v13, %v6077_v43 }
 0x329   :  { %v3168_v29 = vpop.f32.mrf.mxu0  ;;  %v4354_v42 = vpop.f32.mrf.mxu1 }
 0x32a   :  { %v3204_v11 = vadd.f32 %v3168_v29, %v2943_v24 }
 0x32b   :  { %v4419_v1 = vpop.f32.mrf.mxu0  ;;  %v2915_v5 = vpop.f32.mrf.mxu1 }
 0x32c   :  { %3564 = vst [vmem:[%s6189_s5 + $0x76] sm:$0xfc] %v3204_v11 }
 0x32d   :  { %v3173_v57 = vpop.f32.mrf.mxu0  ;;  %v4355_v45 = vpop.f32.mrf.mxu1 }
 0x32e   :  { %v3205_v15 = vadd.f32 %v3173_v57, %v2944_v40 }
 0x32f   :  { %v4422_v49 = vpop.f32.mrf.mxu0  ;;  %v2919_v62 = vpop.f32.mrf.mxu1 }
 0x330   :  { %3565 = vst [vmem:[%s6189_s5 + $0x7e] sm:$0x3] %v3205_v15 }
 0x331   :  { %v3176_v33 = vpop.f32.mrf.mxu0  ;;  %v4358_v3 = vpop.f32.mrf.mxu1 }
 0x333   :  { %v4423_v46 = vpop.f32.mrf.mxu0  ;;  %v2921_v21 = vpop.f32.mrf.mxu1 }
 0x335   :  { %v3180_v43 = vpop.f32.mrf.mxu0  ;;  %v4359_v63 = vpop.f32.mrf.mxu1 }
 0x337   :  { %v4426_v48 = vpop.f32.mrf.mxu0 }
 0x339   :  { %v3182_v59 = vpop.f32.mrf.mxu0 }
 0x33b   :  { %v4427_v37 = vpop.f32.mrf.mxu0 }

// kernel: bottleneck_forward.2
= control target key start
LH: loop header
LB: loop body
LE: loop exit
PB: predicated region body
PF: predicated region fallthrough
CT: control target
= control target key end

     0   :  { %v5675_v0 = vmov 0   ;;  %v7955_v5 = vmov 0.0   ;;  %vm5677_vm0 = vmmov 0   ;;  %vm228_vm1 = vsmask.f32 256  ;;  %s7949_s3 = inlined_call_operand.vmem [shape: f32[81,1], index: 3, kind: input, shape index: {}]   ;;  %s7950_s4 = inlined_call_operand.vmem [shape: bf16[9,128,128], index: 4, kind: input, shape index: {}]   ;;  %s7951_s0 = inlined_call_operand.vmem [shape: f32[2,4,81,128], index: 0, kind: input, shape index: {}]   ;;  %s7952_s1 = inlined_call_operand.vmem [shape: f32[1,128], index: 1, kind: input, shape index: {}]   ;;  %s7953_s2 = inlined_call_operand.vmem [shape: f32[1,128], index: 2, kind: input, shape index: {}]   ;;  %s7954_s5 = inlined_call_operand.vmem [shape: f32[2,8,8,128], index: 5, kind: output, shape index: {}]  }
   0x1   :  { %5528 = vset.pattern.permute.xlu1 %v5675_v0  ;;  %25 = vst [vmem:[#allocation2 + $0x50] sm:$0xe] %v5675_v0  ;;  %26 = vst [vmem:[#allocation2 + $0x54] sm:$0xf] %v5675_v0  ;;  %5527 = vset.pattern.permute.xlu0 %v5675_v0  ;;  %v41_v1 = vld [vmem:[%s7949_s3 + $0x10] sm:$0xff]  ;;  %v39_v2 = vld [vmem:[%s7949_s3] sm:$0xff] }
   0x2   :  { %28 = vst [vmem:[#allocation2 + $0xac] sm:$0xe] %v5675_v0  ;;  %29 = vst [vmem:[#allocation2 + $0xb0] sm:$0xf] %v5675_v0  ;;  %68 = vperm.xlu1 %5528, %v41_v1   ;;  %58 = vperm.xlu0 %5527, %v39_v2   ;;  %v42_v3 = vld [vmem:[%s7949_s3 + $0x18] sm:$0xff]  ;;  %v40_v4 = vld [vmem:[%s7949_s3 + $0x8] sm:$0xff] }
   0x3   :  { %31 = vst [vmem:[#allocation2 + $0x108] sm:$0xe] %v5675_v0  ;;  %32 = vst [vmem:[#allocation2 + $0x10c] sm:$0xf] %v5675_v0  ;;  %4968 = vmatprep.subr.bf16.mxu0 %v7955_v5  ;;  %5508 = vmatprep.subr.bf16.mxu1 %v7955_v5  ;;  %v5529_v6 = vld [vmem:[%s7950_s4 + $0x78] sm:$0xff]   ;;  %v44_v7 = vld [vmem:[%s7949_s3 + $0x28] sm:$0xff] }
   0x4   :  { %34 = vst [vmem:[#allocation2 + $0x164] sm:$0xe] %v5675_v0  ;;  %35 = vst [vmem:[#allocation2 + $0x168] sm:$0xf] %v5675_v0  ;;  %v43_v8 = vld [vmem:[%s7949_s3 + $0x20] sm:$0xff]  ;;  %4969 = vmatpush3.bf16.msra.mxu0 %v5529_v6  ;;  %5516 = vmatpush3.bf16.msra.mxu1 %v5529_v6  ;;  %v46_v9 = vld [vmem:[%s7949_s3 + $0x38] sm:$0xff] }
   0x5   :  { %4970 = vmatprep.subr.bf16.mxu0 %v7955_v5  ;;  %5509 = vmatprep.subr.bf16.mxu1 %v7955_v5  ;;  %v45_v10 = vld [vmem:[%s7949_s3 + $0x30] sm:$0xff]  ;;  %v48_v12 = vld [vmem:[%s7949_s3 + $0x48] sm:$0xff]  ;;  %v47_v13 = vld [vmem:[%s7949_s3 + $0x40] sm:$0xff]  ;;  %vm624_vm2 = vsmask.f32 4368  ;;  %vm227_vm4 = vcmask 1040384  }
   0x6   :  { %73 = vperm.xlu1 %5528, %v42_v3   ;;  %63 = vperm.xlu0 %5527, %v40_v4   ;;  %v5530_v11 = vld [vmem:[%s7950_s4 + $0x70] sm:$0xff]   ;;  %v5531_v15 = vld [vmem:[%s7950_s4 + $0x68] sm:$0xff]   ;;  %v5532_v16 = vld [vmem:[%s7950_s4 + $0x60] sm:$0xff]   ;;  %vm730_vm5 = vcmask 1043456   ;;  %vm731_vm6 = vsmask.f32 7938 }
   0x7   :  { %v49_v14 = vld [vmem:[%s7949_s3 + $0x50] sm:$0x1]  ;;  %v5533_v17 = vld [vmem:[%s7950_s4 + $0x58] sm:$0xff]   ;;  %v5535_v19 = vld [vmem:[%s7950_s4 + $0x48] sm:$0xff]   ;;  %4984 = vmatprep.mubr.msk.bf16.mxu0 %vm5677_vm0, %v7955_v5  ;;  %5008 = vmatprep.mubr.msk.bf16.mxu1 %vm5677_vm0, %v7955_v5  ;;  %vm1464_vm8 = vsmask.f32 7424 }
   0x8   :  { %4971 = vmatpush3.bf16.msra.mxu0 %v5530_v11  ;;  %5517 = vmatpush3.bf16.msra.mxu1 %v5530_v11  ;;  %v5534_v18 = vld [vmem:[%s7950_s4 + $0x50] sm:$0xff]   ;;  %v5536_v20 = vld [vmem:[%s7950_s4 + $0x40] sm:$0xff]   ;;  %v4153_v23 = vld [vmem:[%s7951_s0 + $0x68] sm:$0xff]  ;;  %vm2723_vm10 = vcmask 1046528  }
   0x9   :  { %4972 = vmatprep.subr.bf16.mxu0 %v7955_v5  ;;  %5510 = vmatprep.subr.bf16.mxu1 %v7955_v5  ;;  %v5784_v21 = vld [vmem:[%s7952_s1] ss:$0 sm:$0xff]  ;;  %v124_v22 = vld [vmem:[%s7951_s0 + $0x10] sm:$0xff]  ;;  %v4197_v25 = vld [vmem:[%s7951_s0 + $0x118] sm:$0xff] }
   0xa   :  { %83 = vperm.xlu1 %5528, %v44_v7   ;;  %78 = vperm.xlu0 %5527, %v43_v8   ;;  %v4175_v24 = vld [vmem:[%s7951_s0 + $0xc0] sm:$0xff]  ;;  %v4219_v26 = vld [vmem:[%s7951_s0 + $0x170] sm:$0xff]  ;;  %v4241_v27 = vld [vmem:[%s7951_s0 + $0x1c8] sm:$0xff]  ;;  %v5840_v37 = vmul.f32 %v5784_v21, %v124_v22  ;;  %v5843_v38 = vmul.f32 %v4153_v23, %v5784_v21  ;;  %v5849_v40 = vmul.f32 %v4197_v25, %v5784_v21 }
   0xb   :  { %v4263_v28 = vld [vmem:[%s7951_s0 + $0x220] sm:$0xff]  ;;  %v4285_v29 = vld [vmem:[%s7951_s0 + $0x278] sm:$0xff]  ;;  %v4173_v32 = vld [vmem:[%s7951_s0 + $0xb0] sm:$0xff]  ;;  %v5846_v39 = vmul.f32 %v4175_v24, %v5784_v21  ;;  %v5861_v45 = vmul.f32 %v4219_v26, %v5784_v21  ;;  %v5864_v46 = vmul.f32 %v4241_v27, %v5784_v21 }
   0xc   :  { %4973 = vmatpush3.bf16.msra.mxu0 %v5531_v15  ;;  %5518 = vmatpush3.bf16.msra.mxu1 %v5531_v15  ;;  %v122_v30 = vld [vmem:[%s7951_s0] sm:$0xff]  ;;  %v4195_v33 = vld [vmem:[%s7951_s0 + $0x108] sm:$0xff]  ;;  %v4239_v35 = vld [vmem:[%s7951_s0 + $0x1b8] sm:$0xff]  ;;  %v5867_v47 = vmul.f32 %v4263_v28, %v5784_v21  ;;  %v5870_v48 = vmul.f32 %v4285_v29, %v5784_v21  ;;  %v5885_v53 = vmul.f32 %v4173_v32, %v5784_v21 }
   0xd   :  { %4974 = vmatprep.subr.bf16.mxu0 %v7955_v5  ;;  %5511 = vmatprep.subr.bf16.mxu1 %v7955_v5  ;;  %v5818_v31 = vld [vmem:[%s7953_s2] ss:$0 sm:$0xff]  ;;  %v4261_v36 = vld [vmem:[%s7951_s0 + $0x210] sm:$0xff]  ;;  %v4283_v42 = vld [vmem:[%s7951_s0 + $0x268] sm:$0xff]  ;;  %7964 = vst [vmem:[#allocation3_spill] sm:$0xff] %v5861_v45  ;;  %v5882_v52 = vmul.f32 %v5784_v21, %v122_v30  ;;  %v453_v54 = vmul.f32 %v4195_v33, %v5784_v21 }
   0xe   :  { %93 = vperm.xlu1 %5528, %v46_v9   ;;  %88 = vperm.xlu0 %5527, %v45_v10   ;;  %v4217_v34 = vld [vmem:[%s7951_s0 + $0x160] sm:$0xff]  ;;  %v125_v43 = vld [vmem:[%s7951_s0 + $0x18] sm:$0xff]  ;;  %v4154_v44 = vld [vmem:[%s7951_s0 + $0x70] sm:$0xff]  ;;  %v5904_v60 = vmul.f32 %v4239_v35, %v5784_v21  ;;  %v5907_v61 = vmul.f32 %v4261_v36, %v5784_v21  ;;  %v5919_v1 = vmul.f32 %v4283_v42, %v5784_v21 }
   0xf   :  { %v4176_v49 = vld [vmem:[%s7951_s0 + $0xc8] sm:$0xff]  ;;  %v4198_v50 = vld [vmem:[%s7951_s0 + $0x120] sm:$0xff]  ;;  %v4220_v51 = vld [vmem:[%s7951_s0 + $0x178] sm:$0xff]  ;;  %v5901_v59 = vmul.f32 %v4217_v34, %v5784_v21  ;;  %v5922_v2 = vmul.f32 %v5784_v21, %v125_v43  ;;  %v5925_v3 = vmul.f32 %v4154_v44, %v5784_v21 }
  0x10   :  { %4975 = vmatpush3.bf16.msra.mxu0 %v5532_v16  ;;  %5519 = vmatpush3.bf16.msra.mxu1 %v5532_v16  ;;  %v4242_v55 = vld [vmem:[%s7951_s0 + $0x1d0] sm:$0xff]  ;;  %v4264_v56 = vld [vmem:[%s7951_s0 + $0x228] sm:$0xff]  ;;  %v4286_v57 = vld [vmem:[%s7951_s0 + $0x280] sm:$0xff]  ;;  %v5928_v4 = vmul.f32 %v4176_v49, %v5784_v21  ;;  %v5940_v9 = vmul.f32 %v4198_v50, %v5784_v21  ;;  %v5943_v10 = vmul.f32 %v4220_v51, %v5784_v21 }
  0x11   :  { %4976 = vmatprep.subr.bf16.mxu0 %v7955_v5  ;;  %5512 = vmatprep.subr.bf16.mxu1 %v7955_v5  ;;  %v123_v62 = vld [vmem:[%s7951_s0 + $0x8] sm:$0xff]  ;;  %v4152_v63 = vld [vmem:[%s7951_s0 + $0x60] sm:$0xff]  ;;  %v4174_v0 = vld [vmem:[%s7951_s0 + $0xb8] sm:$0xff]  ;;  %v5946_v11 = vmul.f32 %v4242_v55, %v5784_v21  ;;  %v5961_v16 = vmul.f32 %v4286_v57, %v5784_v21 }
  0x12   :  { %103 = vperm.xlu1 %5528, %v48_v12   ;;  %98 = vperm.xlu0 %5527, %v47_v13   ;;  %v4196_v6 = vld [vmem:[%s7951_s0 + $0x110] sm:$0xff]  ;;  %v4218_v7 = vld [vmem:[%s7951_s0 + $0x168] sm:$0xff]  ;;  %v4240_v8 = vld [vmem:[%s7951_s0 + $0x1c0] sm:$0xff]  ;;  %7965 = vst [vmem:[#allocation4_spill] sm:$0xff] %v5943_v10  ;;  %v5949_v12 = vmul.f32 %v4264_v56, %v5784_v21 }
  0x13   :  { %v4262_v13 = vld [vmem:[%s7951_s0 + $0x218] sm:$0xff]  ;;  %v127_v15 = vld [vmem:[%s7951_s0 + $0x28] sm:$0xff]  ;;  %v4200_v23 = vld [vmem:[%s7951_s0 + $0x130] sm:$0xff]  ;;  %v5983_v25 = vmul.f32 %v4196_v6, %v5784_v21  ;;  %v5986_v26 = vmul.f32 %v4218_v7, %v5784_v21  ;;  %v5998_v32 = vmul.f32 %v4240_v8, %v5784_v21 }
  0x14   :  { %4977 = vmatpush3.bf16.msra.mxu0 %v5533_v17  ;;  %5520 = vmatpush3.bf16.msra.mxu1 %v5533_v17  ;;  %v5964_v17 = vmul.f32 %v5784_v21, %v123_v62  ;;  %v4178_v22 = vld [vmem:[%s7951_s0 + $0xd8] sm:$0xff]  ;;  %v4244_v27 = vld [vmem:[%s7951_s0 + $0x1e0] sm:$0xff]  ;;  %v4288_v29 = vld [vmem:[%s7951_s0 + $0x290] sm:$0xff]  ;;  %v6001_v33 = vmul.f32 %v4262_v13, %v5784_v21  ;;  %v6007_v35 = vmul.f32 %v5784_v21, %v127_v15 }
  0x15   :  { %4978 = vmatprep.subr.bf16.mxu0 %v7955_v5  ;;  %5513 = vmatprep.subr.bf16.mxu1 %v7955_v5  ;;  %v4266_v28 = vld [vmem:[%s7951_s0 + $0x238] sm:$0xff]  ;;  %v126_v36 = vld [vmem:[%s7951_s0 + $0x20] sm:$0xff]  ;;  %v4177_v42 = vld [vmem:[%s7951_s0 + $0xd0] sm:$0xff]  ;;  %v6022_v49 = vmul.f32 %v4178_v22, %v5784_v21  ;;  %v6034_v55 = vmul.f32 %v4200_v23, %v5784_v21  ;;  %v6037_v56 = vmul.f32 %v4244_v27, %v5784_v21 }
  0x16   :  { %108 = vperm.xlu0 %5527, %v49_v14   ;;  %v4284_v14 = vld [vmem:[%s7951_s0 + $0x270] sm:$0xff]  ;;  %v4199_v50 = vld [vmem:[%s7951_s0 + $0x128] sm:$0xff]  ;;  %v4243_v51 = vld [vmem:[%s7951_s0 + $0x1d8] sm:$0xff]  ;;  %v6040_v57 = vmul.f32 %v4266_v28, %v5784_v21  ;;  %v6043_v62 = vmul.f32 %v4288_v29, %v5784_v21  ;;  %v6058_v8 = vmul.f32 %v5784_v21, %v126_v36 }
  0x17   :  { %v6004_v34 = vmul.f32 %v4284_v14, %v5784_v21  ;;  %7966 = vst [vmem:[#allocation5_spill] sm:$0xff] %v6034_v55  ;;  %v4158_v6 = vld [vmem:[%s7951_s0 + $0x90] sm:$0xff]  ;;  %v6064_v14 = vmul.f32 %v4177_v42, %v5784_v21  ;;  %v4180_v15 = vld [vmem:[%s7951_s0 + $0xe8] sm:$0xff]  ;;  %v6079_v27 = vmul.f32 %v4243_v51, %v5784_v21  ;;  %v4290_v29 = vld [vmem:[%s7951_s0 + $0x2a0] sm:$0xff] }
  0x18   :  { %4979 = vmatpush3.bf16.msra.mxu0 %v5534_v18  ;;  %5521 = vmatpush3.bf16.msra.mxu1 %v5534_v18  ;;  %v5967_v18 = vmul.f32 %v4152_v63, %v5784_v21  ;;  %v4287_v63 = vld [vmem:[%s7951_s0 + $0x288] sm:$0xff]  ;;  %v4246_v22 = vld [vmem:[%s7951_s0 + $0x1f0] sm:$0xff]  ;;  %v6102_v51 = vmul.f32 %v4158_v6, %v5784_v21  ;;  %vm6225_vm3 = vmor %vm228_vm1, %vm624_vm2 }
  0x19   :  { %4980 = vmatprep.subr.bf16.mxu0 %v7955_v5  ;;  %5514 = vmatprep.subr.bf16.mxu1 %v7955_v5  ;;  %v4268_v28 = vld [vmem:[%s7951_s0 + $0x248] sm:$0xff]  ;;  %vm6660_vm7 = vmand %vm227_vm4, %vm228_vm1 }
  0x1a   :  { %7969 = vst [vmem:[#allocation8_spill] sm:$0xff] %v6102_v51  ;;  %vm6711_vm9 = vmand %vm730_vm5, %vm731_vm6 }
  0x1c   :  { %4981 = vmatpush3.bf16.msra.mxu0 %v5535_v19  ;;  %5522 = vmatpush3.bf16.msra.mxu1 %v5535_v19  ;;  %v5970_v19 = vmul.f32 %v4174_v0, %v5784_v21  ;;  %v129_v0 = vld [vmem:[%s7951_s0 + $0x38] sm:$0xff] }
  0x1d   :  { %4982 = vmatprep.subr.bf16.mxu0 %v7955_v5  ;;  %5515 = vmatprep.subr.bf16.mxu1 %v7955_v5  ;;  %v6096_v42 = vmul.f32 %v5784_v21, %v129_v0  ;;  %v4157_v0 = vld [vmem:[%s7951_s0 + $0x88] sm:$0xff] }
  0x1e   :  { %v6146_v45 = vmul.f32 %v4157_v0, %v5784_v21 }
  0x20   :  { %4983 = vmatpush3.bf16.msra.mxu0 %v5536_v20  ;;  %5523 = vmatpush3.bf16.msra.mxu1 %v5536_v20  ;;  %v4156_v20 = vld [vmem:[%s7951_s0 + $0x80] sm:$0xff]  ;;  %7975 = vst [vmem:[#allocation14_spill] sm:$0xff] %v6146_v45 }
  0x21   :  { %5088 = vmatprep.subr.bf16.mxu0 %v7955_v5  ;;  %5028 = vmatprep.subr.bf16.mxu1 %v7955_v5  ;;  %v6019_v44 = vmul.f32 %v4156_v20, %v5784_v21  ;;  %v4202_v20 = vld [vmem:[%s7951_s0 + $0x140] sm:$0xff]  ;;  %v6121_v5 = vmul.f32 %v4268_v28, %v5784_v21 }
  0x23   :  { %7971 = vst [vmem:[#allocation10_spill] sm:$0xff] %v6121_v5 }
  0x7d   :  { %v59_v41 = vpop.permute.xlu0 %58  ;;  %v69_v30 = vpop.permute.xlu1 %68 }
  0x7e   :  { %v5898_v58 = vmul.f32 %v5818_v31, %v59_v41  ;;  %v4155_v41 = vld [vmem:[%s7951_s0 + $0x78] sm:$0xff]  ;;  %v6055_v7 = vmul.f32 %v5818_v31, %v69_v30 }
  0x7f   :  { %v6061_v13 = vmul.f32 %v4155_v41, %v5784_v21  ;;  %v6093_v41 = vmul.f32 %v4287_v63, %v5784_v21  ;;  %v6111_v63 = vmul.f32 %v4246_v22, %v5784_v21 }
  0x80   :  { %v464_v24 = vadd.f32 %v453_v54, %v5898_v58  ;;  %v4265_v54 = vld [vmem:[%s7951_s0 + $0x230] sm:$0xff]  ;;  %7967 = vst [vmem:[#allocation6_spill] sm:$0xff] %v6055_v7  ;;  %v769_v30 = vadd.f32 %v5904_v60, %v5898_v58  ;;  %v6105_v60 = vmul.f32 %v4180_v15, %v5784_v21  ;;  %v967_v6 = vadd.f32 %v5867_v47, %v6055_v7 }
  0x81   :  { %v6090_v36 = vmul.f32 %v4265_v54, %v5784_v21  ;;  %v6108_v54 = vmul.f32 %v4202_v20, %v5784_v21  ;;  %v6124_v15 = vmul.f32 %v4290_v29, %v5784_v21  ;;  %v4179_v20 = vld [vmem:[%s7951_s0 + $0xe0] sm:$0xff]  ;;  %v1163_v22 = vadd.f32 %v5870_v48, %v6055_v7  ;;  %v4201_v48 = vld [vmem:[%s7951_s0 + $0x138] sm:$0xff] }
  0x82   :  { %v475_v43 = vmax.f32 %v464_v24, 0.0  ;;  %v6076_v24 = vmul.f32 %v4199_v50, %v5784_v21  ;;  %v74_v50 = vpop.permute.xlu1 %73  ;;  %v780_v10 = vmax.f32 %v769_v30, 0.0  ;;  %v152_v47 = vadd.f32 %v5840_v37, %v6055_v7 }
  0x83   :  { %7968 = vst [vmem:[#allocation7_spill] sm:$0xff] %v6090_v36  ;;  %7970 = vst [vmem:[#allocation9_spill] sm:$0xff] %v6108_v54  ;;  %v6140_v28 = vadd.f32 %v5843_v38, %v6055_v7  ;;  %v6143_v29 = vmul.f32 %v5818_v31, %v74_v50  ;;  %v6154_v37 = vmul.f32 %v4179_v20, %v5784_v21  ;;  %v978_v51 = vmax.f32 %v967_v6, 0.0 }
  0x84   :  { %v4636_v23 = vpack.c.bf16 %v475_v43, %v475_v43  ;;  %v128_v43 = vld [vmem:[%s7951_s0 + $0x30] sm:$0xff]  ;;  %7972 = vst [vmem:[#allocation11_spill] sm:$0xff] %v6124_v15  ;;  %v4658_v30 = vpack.c.bf16 %v780_v10, %v780_v10  ;;  %v6162_v5 = vadd.f32 %v5849_v40, %v6055_v7  ;;  %v1174_v55 = vmax.f32 %v1163_v22, 0.0 }
  0x85   :  { %v6134_v54 = vmul.f32 %v5784_v21, %v128_v43  ;;  %7974 = vst [vmem:[#allocation13_spill] sm:$0xff] %v6143_v29  ;;  %7976 = vst [vmem:[#allocation15_spill] sm:$0xff] %v6154_v37  ;;  %v153_v50 = vadd.f32 %v5922_v2, %v6143_v29  ;;  %v363_v0 = vadd.f32 %v5928_v4, %v6143_v29  ;;  %v163_v10 = vmax.f32 %v152_v47, 0.0 }
  0x86   :  { %532 = vst [vmem:[#allocation2 + $0x114] sm:$0xf] %v4636_v23  ;;  %v771_v23 = vadd.f32 %v5864_v46, %v6055_v7  ;;  %v1161_v46 = vadd.f32 %v5919_v1, %v5898_v58  ;;  %v362_v1 = vadd.f32 %v5846_v39, %v6055_v7  ;;  %v826_v45 = vshrl.u32 %v4658_v30, 16 }
  0x87   :  { %7973 = vst [vmem:[#allocation12_spill] sm:$0xff] %v6134_v54  ;;  %v6165_v39 = vmul.f32 %v4201_v48, %v5784_v21  ;;  %v269_v20 = vmax.f32 %v6140_v28, 0.0  ;;  %v164_v6 = vmax.f32 %v153_v50, 0.0  ;;  %v829_v54 = vshll.u32 %v4658_v30, 16 }
  0x88   :  { %v1172_v43 = vmax.f32 %v1161_v46, 0.0  ;;  %v782_v38 = vmax.f32 %v771_v23, 0.0  ;;  %v64_v46 = vpop.permute.xlu0 %63  ;;  %v373_v37 = vmax.f32 %v362_v1, 0.0  ;;  %v6168_v2 = vrot.slane %v826_v45, 7 }
  0x89   :  { %7977 = vst [vmem:[#allocation16_spill] sm:$0xff] %v6165_v39  ;;  %v374_v4 = vmax.f32 %v363_v0, 0.0  ;;  %v6172_v40 = vpack.c.bf16 %v978_v51, %v978_v51  ;;  %v150_v22 = vadd.f32 %v5882_v52, %v5898_v58  ;;  %v477_v47 = vmax.f32 %v6162_v5, 0.0 }
  0x8a   :  { %v4680_v23 = vpack.c.bf16 %v1172_v43, %v1172_v43  ;;  %v6170_v15 = vpack.c.bf16 %v782_v38, %v782_v38  ;;  %v6177_v7 = vpack.c.bf16 %v1174_v55, %v1174_v55  ;;  %v6180_v28 = vor.u32 %v829_v54, %v6168_v2 }
  0x8b   :  { %v6183_v45 = vmul.f32 %v5818_v31, %v64_v46  ;;  %v4699_v30 = vpack.c.bf16 %v164_v6, %v163_v10  ;;  %v4744_v43 = vpack.c.bf16 %v374_v4, %v373_v37  ;;  %v360_v52 = vadd.f32 %v5885_v53, %v5898_v58 }
  0x8c   :  { %v1218_v48 = vshrl.u32 %v4680_v23, 16  ;;  %7978 = vst [vmem:[#allocation17_spill] sm:$0xff] %v6180_v28  ;;  %v1221_v51 = vshll.u32 %v4680_v23, 16  ;;  %v772_v5 = vadd.f32 %v5946_v11, %v6143_v29  ;;  %v968_v55 = vadd.f32 %v5949_v12, %v6143_v29 }
  0x8d   :  { %v1164_v54 = vadd.f32 %v5961_v16, %v6143_v29  ;;  %v843_v38 = vshrl.u32 %v6170_v15, 16  ;;  %v1039_v50 = vshrl.u32 %v6172_v40, 16  ;;  %v161_v0 = vmax.f32 %v150_v22, 0.0  ;;  %4781 = vst [vmem:[#allocation2 + $0x8] sm:$0xff] %v4699_v30   ;;  %4789 = vst [vmem:[#allocation2 + $0xc0] sm:$0xff] %v4744_v43  }
  0x8e   :  { %v6185_v1 = vrot.slane %v1218_v48, 7  ;;  %v1235_v53 = vshrl.u32 %v6177_v7, 16  ;;  %v783_v37 = vmax.f32 %v772_v5, 0.0  ;;  %v979_v11 = vmax.f32 %v968_v55, 0.0 }
  0x8f   :  { %v1175_v23 = vmax.f32 %v1164_v54, 0.0  ;;  %v151_v12 = vadd.f32 %v5964_v17, %v6183_v45  ;;  %v257_v16 = vadd.f32 %v5967_v18, %v6183_v45  ;;  %v361_v6 = vadd.f32 %v5970_v19, %v6183_v45 }
  0x90   :  { %v6198_v10 = vor.u32 %v1221_v51, %v6185_v1  ;;  %v465_v46 = vadd.f32 %v5983_v25, %v6183_v45  ;;  %v371_v4 = vmax.f32 %v360_v52, 0.0  ;;  %v4661_v22 = vpack.c.bf16 %v783_v37, %v783_v37  ;;  %v4245_v25 = vld [vmem:[%s7951_s0 + $0x1e8] sm:$0xff]  ;;  %v4267_v52 = vld [vmem:[%s7951_s0 + $0x240] sm:$0xff] }
  0x91   :  { %v4672_v48 = vpack.c.bf16 %v979_v11, %v979_v11  ;;  %v4683_v51 = vpack.c.bf16 %v1175_v23, %v1175_v23  ;;  %v162_v30 = vmax.f32 %v151_v12, 0.0  ;;  %v268_v43 = vmax.f32 %v257_v16, 0.0 }
  0x92   :  { %7979 = vst [vmem:[#allocation18_spill] sm:$0xff] %v6198_v10  ;;  %v372_v5 = vmax.f32 %v361_v6, 0.0  ;;  %v476_v55 = vmax.f32 %v465_v46, 0.0  ;;  %v6209_v54 = vrot.slane %v843_v38, 7  ;;  %v6211_v17 = vrot.slane %v1039_v50, 7  ;;  %v4289_v46 = vld [vmem:[%s7951_s0 + $0x298] sm:$0xff] }
  0x93   :  { %v6213_v10 = vrot.slane %v1235_v53, 7  ;;  %v852_v18 = vshrl.u32 %v4661_v22, 16  ;;  %v855_v28 = vshll.u32 %v4661_v22, 16  ;;  %v1048_v19 = vshrl.u32 %v4672_v48, 16 }
  0x94   :  { %v1051_v39 = vshll.u32 %v4672_v48, 16  ;;  %v1244_v36 = vshrl.u32 %v4683_v51, 16  ;;  %v1247_v38 = vshll.u32 %v4683_v51, 16  ;;  %v4694_v50 = vpack.c.bf16 %v162_v30, %v161_v0  ;;  %v4160_v30 = vld [vmem:[%s7951_s0 + $0xa0] sm:$0xff] }
  0x95   :  { %v6221_v37 = vrot.slane %v852_v18, 7  ;;  %v4719_v11 = vpack.c.bf16 %v269_v20, %v268_v43  ;;  %v6229_v23 = vrot.slane %v1048_v19, 7  ;;  %v4739_v16 = vpack.c.bf16 %v372_v5, %v371_v4  ;;  %v4182_v43 = vld [vmem:[%s7951_s0 + $0xf8] sm:$0xff]  ;;  %v4204_v19 = vld [vmem:[%s7951_s0 + $0x150] sm:$0xff] }
  0x96   :  { %v6231_v12 = vrot.slane %v1244_v36, 7  ;;  %v4764_v6 = vpack.c.bf16 %v477_v47, %v476_v55  ;;  %v850_v22 = vrot.slane %v6209_v54, 4  ;;  %4695 = vst [vmem:[#allocation2] sm:$0xff] %v4694_v50   ;;  %v6239_v0 = vmul.f32 %v4245_v25, %v5784_v21  ;;  %v131_v36 = vld [vmem:[%s7951_s0 + $0x48] sm:$0xff] }
  0x97   :  { %v857_v20 = vor.u32 %v855_v28, %v6221_v37  ;;  %4785 = vst [vmem:[#allocation2 + $0x60] sm:$0xff] %v4719_v11   ;;  %v6242_v48 = vmul.f32 %v4267_v52, %v5784_v21  ;;  %v1046_v47 = vrot.slane %v6211_v17, 4  ;;  %v1242_v4 = vrot.slane %v6213_v10, 4  ;;  %4740 = vst [vmem:[#allocation2 + $0xb8] sm:$0xff] %v4739_v16   ;;  %v4226_v25 = vld [vmem:[%s7951_s0 + $0x1a8] sm:$0xff]  ;;  %v84_v16 = vpop.permute.xlu1 %83 }
  0x98   :  { %v1053_v51 = vor.u32 %v1051_v39, %v6229_v23  ;;  %v1249_v28 = vor.u32 %v1247_v38, %v6231_v12  ;;  %4793 = vst [vmem:[#allocation2 + $0x118] sm:$0xff] %v4764_v6   ;;  %v770_v55 = vadd.f32 %v5998_v32, %v6183_v45  ;;  %v966_v39 = vadd.f32 %v6001_v33, %v6183_v45 }
  0x99   :  { %v858_v5 = vsel %vm6225_vm3, %v850_v22, %v857_v20  ;;  %v6264_v18 = vmul.f32 %v4289_v46, %v5784_v21  ;;  %v1162_v33 = vadd.f32 %v6004_v34, %v6183_v45  ;;  %v6279_v38 = vmul.f32 %v5784_v21, %v131_v36  ;;  %v4248_v22 = vld [vmem:[%s7951_s0 + $0x200] sm:$0xff] }
  0x9a   :  { %934 = vst [vmem:[#allocation2 + $0x90] sm:$0xf] %v858_v5  ;;  %v1054_v52 = vsel %vm6225_vm3, %v1046_v47, %v1053_v51  ;;  %v1250_v32 = vsel %vm6225_vm3, %v1242_v4, %v1249_v28  ;;  %v781_v50 = vmax.f32 %v770_v55, 0.0  ;;  %v977_v11 = vmax.f32 %v966_v39, 0.0 }
  0x9b   :  { %1130 = vst [vmem:[#allocation2 + $0xec] sm:$0xf] %v1054_v52  ;;  %1326 = vst [vmem:[#allocation2 + $0x148] sm:$0xf] %v1250_v32  ;;  %v6282_v6 = vmul.f32 %v4160_v30, %v5784_v21  ;;  %v6285_v46 = vmul.f32 %v4182_v43, %v5784_v21  ;;  %v846_v34 = vshll.u32 %v6170_v15, 16  ;;  %v1173_v20 = vmax.f32 %v1162_v33, 0.0 }
  0x9c   :  { %v6292_v36 = vmul.f32 %v4204_v19, %v5784_v21  ;;  %v6295_v47 = vmul.f32 %v4226_v25, %v5784_v21  ;;  %v1042_v4 = vshll.u32 %v6172_v40, 16  ;;  %v1238_v51 = vshll.u32 %v6177_v7, 16  ;;  %v79_v25 = vpop.permute.xlu0 %78 }
  0x9d   :  { %v4659_v28 = vpack.c.bf16 %v781_v50, %v781_v50  ;;  %v4670_v30 = vpack.c.bf16 %v977_v11, %v977_v11  ;;  %v6301_v43 = vadd.f32 %v5901_v59, %v5898_v58  ;;  %v4681_v5 = vpack.c.bf16 %v1173_v20, %v1173_v20 }
  0x9e   :  { %v6304_v15 = vmul.f32 %v5818_v31, %v84_v16  ;;  %v6307_v55 = vmul.f32 %v4248_v22, %v5784_v21  ;;  %v848_v39 = vor.u32 %v846_v34, %v6209_v54  ;;  %v1044_v19 = vor.u32 %v1042_v4, %v6211_v17  ;;  %v4270_v54 = vld [vmem:[%s7951_s0 + $0x258] sm:$0xff] }
  0x9f   :  { %v1240_v40 = vor.u32 %v1238_v51, %v6213_v10  ;;  %v834_v7 = vshrl.u32 %v4659_v28, 16  ;;  %v832_v52 = vrot.slane %v6168_v2, 4  ;;  %v1224_v59 = vrot.slane %v6185_v1, 4  ;;  %v4292_v10 = vld [vmem:[%s7951_s0 + $0x2b0] sm:$0xff] }
  0xa0   :  { %7982 = vst [vmem:[#allocation19_spill] sm:$0xff] %v6304_v15  ;;  %v1030_v32 = vshrl.u32 %v4670_v30, 16  ;;  %v1226_v33 = vshrl.u32 %v4681_v5, 16  ;;  %v837_v11 = vshll.u32 %v4659_v28, 16  ;;  %v1033_v16 = vshll.u32 %v4670_v30, 16 }
  0xa1   :  { %v836_v50 = vrot.slane %v834_v7, 7  ;;  %v1229_v20 = vshll.u32 %v4681_v5, 16  ;;  %v155_v2 = vadd.f32 %v6007_v35, %v6304_v15  ;;  %v6323_v1 = vmul.f32 %v5818_v31, %v79_v25  ;;  %v130_v35 = vld [vmem:[%s7951_s0 + $0x40] sm:$0xff] }
  0xa2   :  { %v1032_v17 = vrot.slane %v1030_v32, 7  ;;  %v1228_v22 = vrot.slane %v1226_v33, 7  ;;  %v774_v51 = vadd.f32 %v6037_v56, %v6304_v15  ;;  %v1166_v28 = vadd.f32 %v6043_v62, %v6304_v15 }
  0xa3   :  { %7983 = vst [vmem:[#allocation20_spill] sm:$0xff] %v6323_v1  ;;  %v839_v34 = vor.u32 %v837_v11, %v836_v50  ;;  %v841_v4 = vrot.slane %v836_v50, 4  ;;  %v6339_v56 = vmul.f32 %v4270_v54, %v5784_v21  ;;  %v6342_v62 = vmul.f32 %v4292_v10, %v5784_v21 }
  0xa4   :  { %v6329_v30 = vor.u32 %v1033_v16, %v1032_v17  ;;  %v1037_v5 = vrot.slane %v1032_v17, 4  ;;  %v1231_v7 = vor.u32 %v1229_v20, %v1228_v22  ;;  %v1233_v32 = vrot.slane %v1228_v22, 4  ;;  %v4159_v16 = vld [vmem:[%s7951_s0 + $0x98] sm:$0xff]  ;;  %v4181_v20 = vld [vmem:[%s7951_s0 + $0xf0] sm:$0xff] }
  0xa5   :  { %v840_v25 = vsel %vm6225_vm3, %v832_v52, %v839_v34  ;;  %v849_v33 = vsel %vm6225_vm3, %v841_v4, %v848_v39  ;;  %v259_v50 = vadd.f32 %v5925_v3, %v6143_v29  ;;  %v579_v3 = vmax.f32 %v6301_v43, 0.0 }
  0xa6   :  { %7984 = vst [vmem:[#allocation21_spill] sm:$0xff] %v6329_v30  ;;  %932 = vst [vmem:[#allocation2 + $0x88] sm:$0xf] %v840_v25  ;;  %v1045_v11 = vsel %vm6225_vm3, %v1037_v5, %v1044_v19  ;;  %v1232_v52 = vsel %vm6225_vm3, %v1224_v59, %v1231_v7  ;;  %v1241_v39 = vsel %vm6225_vm3, %v1233_v32, %v1240_v40  ;;  %v785_v59 = vmax.f32 %v774_v51, 0.0  ;;  %v4203_v40 = vld [vmem:[%s7951_s0 + $0x148] sm:$0xff] }
  0xa7   :  { %933 = vst [vmem:[#allocation2 + $0x8c] sm:$0xf] %v849_v33  ;;  %1129 = vst [vmem:[#allocation2 + $0xe8] sm:$0xf] %v1045_v11  ;;  %v365_v19 = vadd.f32 %v6022_v49, %v6304_v15  ;;  %v6362_v54 = vmul.f32 %v5784_v21, %v130_v35  ;;  %v166_v10 = vmax.f32 %v155_v2, 0.0  ;;  %v1177_v17 = vmax.f32 %v1166_v28, 0.0 }
  0xa8   :  { %1324 = vst [vmem:[#allocation2 + $0x140] sm:$0xf] %v1232_v52  ;;  %1325 = vst [vmem:[#allocation2 + $0x144] sm:$0xf] %v1241_v39  ;;  %v154_v22 = vadd.f32 %v6058_v8, %v6323_v1  ;;  %v260_v43 = vadd.f32 %v6061_v13, %v6323_v1  ;;  %v4247_v49 = vld [vmem:[%s7951_s0 + $0x1f8] sm:$0xff]  ;;  %v965_v34 = vadd.f32 %v5907_v61, %v5898_v58  ;;  %v4269_v8 = vld [vmem:[%s7951_s0 + $0x250] sm:$0xff] }
  0xa9   :  { %v364_v4 = vadd.f32 %v6064_v14, %v6323_v1  ;;  %v6379_v51 = vmul.f32 %v4159_v16, %v5784_v21  ;;  %v6382_v2 = vmul.f32 %v4181_v20, %v5784_v21  ;;  %v132_v13 = vld [vmem:[%s7951_s0 + $0x50] sm:$0x1]  ;;  %v270_v28 = vmax.f32 %v259_v50, 0.0  ;;  %v4291_v14 = vld [vmem:[%s7951_s0 + $0x2a8] sm:$0xff]  ;;  %v4183_v50 = vld [vmem:[%s7951_s0 + $0x100] sm:$0x1] }
  0xaa   :  { %v165_v5 = vmax.f32 %v154_v22, 0.0  ;;  %v271_v58 = vmax.f32 %v260_v43, 0.0  ;;  %v6391_v61 = vmul.f32 %v4203_v40, %v5784_v21  ;;  %v6396_v7 = vpack.c.bf16 %v579_v3, %v579_v3  ;;  %v4161_v33 = vld [vmem:[%s7951_s0 + $0xa8] sm:$0x1]  ;;  %v4205_v20 = vld [vmem:[%s7951_s0 + $0x158] sm:$0x1] }
  0xab   :  { %v376_v32 = vmax.f32 %v365_v19, 0.0  ;;  %v4663_v35 = vpack.c.bf16 %v785_v59, %v785_v59  ;;  %v6399_v25 = vmul.f32 %v4247_v49, %v5784_v21  ;;  %v467_v11 = vadd.f32 %v5940_v9, %v6143_v29  ;;  %v4227_v3 = vld [vmem:[%s7951_s0 + $0x1b0] sm:$0x1]  ;;  %v4249_v9 = vld [vmem:[%s7951_s0 + $0x208] sm:$0x1] }
  0xac   :  { %7985 = vst [vmem:[#allocation22_spill] sm:$0xff] %v6396_v7  ;;  %v4685_v52 = vpack.c.bf16 %v1177_v17, %v1177_v17  ;;  %v4704_v39 = vpack.c.bf16 %v166_v10, %v165_v5  ;;  %v4724_v16 = vpack.c.bf16 %v271_v58, %v270_v28  ;;  %v976_v19 = vmax.f32 %v965_v34, 0.0  ;;  %v4271_v34 = vld [vmem:[%s7951_s0 + $0x260] sm:$0x1] }
  0xad   :  { %v375_v59 = vmax.f32 %v364_v4, 0.0  ;;  %v6416_v40 = vmul.f32 %v4269_v8, %v5784_v21  ;;  %v6419_v22 = vmul.f32 %v4291_v14, %v5784_v21  ;;  %v468_v10 = vadd.f32 %v6076_v24, %v6323_v1  ;;  %v4293_v4 = vld [vmem:[%s7951_s0 + $0x2b8] sm:$0x1] }
  0xae   :  { %4782 = vst [vmem:[#allocation2 + $0x10] sm:$0xff] %v4704_v39   ;;  %4786 = vst [vmem:[#allocation2 + $0x68] sm:$0xff] %v4724_v16   ;;  %v6427_v17 = vmul.f32 %v5784_v21, %v132_v13  ;;  %v6430_v43 = vmul.f32 %v4161_v33, %v5784_v21  ;;  %v6433_v49 = vmul.f32 %v4183_v50, %v5784_v21  ;;  %v627_v8 = vshrl.u32 %v6396_v7, 16 }
  0xaf   :  { %v870_v24 = vshrl.u32 %v4663_v35, 16  ;;  %v4749_v28 = vpack.c.bf16 %v376_v32, %v375_v59  ;;  %v773_v13 = vadd.f32 %v6079_v27, %v6323_v1  ;;  %v478_v5 = vmax.f32 %v467_v11, 0.0  ;;  %v94_v59 = vpop.permute.xlu1 %93 }
  0xb0   :  { %v1262_v58 = vshrl.u32 %v4685_v52, 16  ;;  %v479_v14 = vmax.f32 %v468_v10, 0.0  ;;  %v1165_v33 = vadd.f32 %v6093_v41, %v6323_v1  ;;  %v6446_v50 = vpack.c.bf16 %v976_v19, %v976_v19 }
  0xb1   :  { %4790 = vst [vmem:[#allocation2 + $0xc8] sm:$0xff] %v4749_v28   ;;  %v784_v39 = vmax.f32 %v773_v13, 0.0  ;;  %v6449_v16 = vmul.f32 %v4205_v20, %v5784_v21  ;;  %v6452_v29 = vmul.f32 %v4227_v3, %v5784_v21  ;;  %v970_v32 = vadd.f32 %v6040_v57, %v6304_v15 }
  0xb2   :  { %v4769_v27 = vpack.c.bf16 %v479_v14, %v478_v5  ;;  %v1176_v11 = vmax.f32 %v1165_v33, 0.0  ;;  %v6457_v10 = vmul.f32 %v4249_v9, %v5784_v21  ;;  %v6459_v41 = vrot.slane %v870_v24, 7 }
  0xb3   :  { %v4662_v19 = vpack.c.bf16 %v784_v39, %v784_v39  ;;  %v6462_v28 = vmul.f32 %v4271_v34, %v5784_v21  ;;  %v6465_v20 = vmul.f32 %v4293_v4, %v5784_v21  ;;  %v6467_v3 = vrot.slane %v627_v8, 7  ;;  %v89_v39 = vpop.permute.xlu0 %88 }
  0xb4   :  { %v569_v57 = vadd.f32 %v5986_v26, %v6183_v45  ;;  %v6471_v13 = vrot.slane %v1262_v58, 7  ;;  %4794 = vst [vmem:[#allocation2 + $0x120] sm:$0xff] %v4769_v27   ;;  %v4684_v5 = vpack.c.bf16 %v1176_v11, %v1176_v11  ;;  %v1022_v9 = vshrl.u32 %v6446_v50, 16 }
  0xb5   :  { %7986 = vst [vmem:[#allocation23_spill] sm:$0xff] %v6467_v3  ;;  %v873_v24 = vshll.u32 %v4663_v35, 16  ;;  %v861_v14 = vshrl.u32 %v4662_v19, 16  ;;  %v6475_v33 = vmul.f32 %v5818_v31, %v94_v59  ;;  %v859_v34 = vrot.slane %v6221_v37, 4 }
  0xb6   :  { %v981_v21 = vmax.f32 %v970_v32, 0.0  ;;  %v1265_v4 = vshll.u32 %v4685_v52, 16  ;;  %v1253_v8 = vshrl.u32 %v4684_v5, 16  ;;  %v1251_v3 = vrot.slane %v6231_v12, 4 }
  0xb7   :  { %v875_v26 = vor.u32 %v873_v24, %v6459_v41  ;;  %v863_v45 = vrot.slane %v861_v14, 7  ;;  %v864_v58 = vshll.u32 %v4662_v19, 16  ;;  %v580_v27 = vmax.f32 %v569_v57, 0.0 }
  0xb8   :  { %v1267_v11 = vor.u32 %v1265_v4, %v6471_v13  ;;  %v1255_v35 = vrot.slane %v1253_v8, 7  ;;  %v1256_v30 = vshll.u32 %v4684_v5, 16  ;;  %v157_v37 = vadd.f32 %v6096_v42, %v6475_v33  ;;  %v7987_v4 = vld [vmem:[#allocation7_spill] sm:$0xff] }
  0xb9   :  { %v866_v7 = vor.u32 %v864_v58, %v863_v45  ;;  %v868_v59 = vrot.slane %v863_v45, 4  ;;  %v6484_v52 = vmul.f32 %v5818_v31, %v89_v39  ;;  %v261_v12 = vadd.f32 %v6019_v44, %v6304_v15 }
  0xba   :  { %v4674_v32 = vpack.c.bf16 %v981_v21, %v981_v21  ;;  %v1258_v24 = vor.u32 %v1256_v30, %v1255_v35  ;;  %v1260_v14 = vrot.slane %v1255_v35, 4  ;;  %v367_v5 = vadd.f32 %v6105_v60, %v6475_v33 }
  0xbb   :  { %v867_v19 = vsel %vm6225_vm3, %v859_v34, %v866_v7  ;;  %v876_v57 = vsel %vm6225_vm3, %v868_v59, %v875_v26  ;;  %v776_v42 = vadd.f32 %v6111_v63, %v6475_v33  ;;  %v969_v44 = vadd.f32 %v7987_v4, %v6323_v1  ;;  %v7988_v34 = vld [vmem:[#allocation11_spill] sm:$0xff]  ;;  %v7989_v63 = vld [vmem:[#allocation12_spill] sm:$0xff]  ;;  %v7990_v26 = vld [vmem:[#allocation14_spill] sm:$0xff] }
  0xbc   :  { %935 = vst [vmem:[#allocation2 + $0x94] sm:$0xf] %v867_v19  ;;  %936 = vst [vmem:[#allocation2 + $0x98] sm:$0xf] %v876_v57  ;;  %v1259_v30 = vsel %vm6225_vm3, %v1251_v3, %v1258_v24  ;;  %v1268_v7 = vsel %vm6225_vm3, %v1260_v14, %v1267_v11  ;;  %v1168_v21 = vadd.f32 %v7988_v34, %v6475_v33  ;;  %v168_v60 = vmax.f32 %v157_v37, 0.0  ;;  %v7991_v3 = vld [vmem:[#allocation5_spill] sm:$0xff]  ;;  %v104_v34 = vpop.permute.xlu1 %103 }
  0xbd   :  { %1327 = vst [vmem:[#allocation2 + $0x14c] sm:$0xf] %v1259_v30  ;;  %1328 = vst [vmem:[#allocation2 + $0x150] sm:$0xf] %v1268_v7  ;;  %v787_v8 = vmax.f32 %v776_v42, 0.0  ;;  %v156_v39 = vadd.f32 %v7989_v63, %v6484_v52  ;;  %v262_v45 = vadd.f32 %v7990_v26, %v6484_v52  ;;  %v6508_v58 = vpack.c.bf16 %v580_v27, %v580_v27  ;;  %v7992_v11 = vld [vmem:[#allocation15_spill] sm:$0xff] }
  0xbe   :  { %v469_v35 = vadd.f32 %v7991_v3, %v6304_v15  ;;  %v1066_v59 = vshrl.u32 %v4674_v32, 16  ;;  %v366_v24 = vadd.f32 %v7992_v11, %v6484_v52  ;;  %v6514_v14 = vrot.slane %v1022_v9, 7  ;;  %v7994_v7 = vld [vmem:[#allocation16_spill] sm:$0xff] }
  0xbf   :  { %v378_v19 = vmax.f32 %v367_v5, 0.0  ;;  %v167_v57 = vmax.f32 %v156_v39, 0.0  ;;  %v1179_v42 = vmax.f32 %v1168_v21, 0.0  ;;  %v273_v4 = vmax.f32 %v262_v45, 0.0  ;;  %v7995_v21 = vld [vmem:[#allocation10_spill] sm:$0xff] }
  0xc0   :  { %7993 = vst [vmem:[#allocation7_spill] sm:$0xff] %v6514_v14  ;;  %v377_v30 = vmax.f32 %v366_v24, 0.0  ;;  %v470_v27 = vadd.f32 %v7994_v7, %v6484_v52  ;;  %v272_v63 = vmax.f32 %v261_v12, 0.0  ;;  %v980_v26 = vmax.f32 %v969_v44, 0.0  ;;  %v7996_v12 = vld [vmem:[#allocation8_spill] sm:$0xff]  ;;  %v7998_v7 = vld [vmem:[#allocation3_spill] sm:$0xff] }
  0xc1   :  { %v4665_v3 = vpack.c.bf16 %v787_v8, %v787_v8  ;;  %v4709_v1 = vpack.c.bf16 %v168_v60, %v167_v57  ;;  %v1055_v15 = vrot.slane %v6229_v23, 4  ;;  %v480_v11 = vmax.f32 %v469_v35, 0.0 }
  0xc2   :  { %v6521_v14 = vrot.slane %v1066_v59, 7  ;;  %v1069_v5 = vshll.u32 %v4674_v32, 16  ;;  %v972_v39 = vadd.f32 %v7995_v21, %v6475_v33  ;;  %v4729_v45 = vpack.c.bf16 %v273_v4, %v272_v63  ;;  %v7997_v4 = vld [vmem:[#allocation6_spill] sm:$0xff] }
  0xc3   :  { %4783 = vst [vmem:[#allocation2 + $0x18] sm:$0xff] %v4709_v1   ;;  %v6526_v24 = vmul.f32 %v5818_v31, %v104_v34  ;;  %v6530_v44 = vadd.f32 %v7996_v12, %v6475_v33  ;;  %v4687_v60 = vpack.c.bf16 %v1179_v42, %v1179_v42  ;;  %v4754_v8 = vpack.c.bf16 %v378_v19, %v377_v30 }
  0xc4   :  { %v481_v57 = vmax.f32 %v470_v27, 0.0  ;;  %v877_v35 = vrot.slane %v6459_v41, 4  ;;  %v6533_v59 = vpack.c.bf16 %v980_v26, %v980_v26  ;;  %v888_v32 = vshrl.u32 %v4665_v3, 16  ;;  %4787 = vst [vmem:[#allocation2 + $0x70] sm:$0xff] %v4729_v45  }
  0xc5   :  { %v775_v1 = vadd.f32 %v6239_v0, %v6484_v52  ;;  %v6539_v31 = vadd.f32 %v7998_v7, %v7997_v4  ;;  %v6542_v34 = vor.u32 %v1069_v5, %v6521_v14  ;;  %v1269_v19 = vrot.slane %v6471_v13, 4  ;;  %4791 = vst [vmem:[#allocation2 + $0xd0] sm:$0xff] %v4754_v8  }
  0xc6   :  { %v983_v41 = vmax.f32 %v972_v39, 0.0  ;;  %v4774_v30 = vpack.c.bf16 %v481_v57, %v480_v11  ;;  %v971_v63 = vadd.f32 %v6242_v48, %v6484_v52  ;;  %v274_v0 = vmax.f32 %v6530_v44, 0.0  ;;  %v7999_v39 = vld [vmem:[#allocation9_spill] sm:$0xff] }
  0xc7   :  { %v786_v27 = vmax.f32 %v775_v1, 0.0  ;;  %v1280_v26 = vshrl.u32 %v4687_v60, 16  ;;  %v1167_v21 = vadd.f32 %v6264_v18, %v6484_v52  ;;  %v265_v5 = vadd.f32 %v6282_v6, %v6526_v24 }
  0xc8   :  { %v1057_v45 = vshrl.u32 %v6533_v59, 16  ;;  %v6554_v12 = vrot.slane %v888_v32, 7  ;;  %4795 = vst [vmem:[#allocation2 + $0x128] sm:$0xff] %v4774_v30   ;;  %v473_v11 = vadd.f32 %v6292_v36, %v6526_v24  ;;  %v1060_v48 = vshll.u32 %v6533_v59, 16 }
  0xc9   :  { %v4664_v13 = vpack.c.bf16 %v786_v27, %v786_v27  ;;  %v6561_v8 = vadd.f32 %v7999_v39, %v6475_v33  ;;  %v1178_v57 = vmax.f32 %v1167_v21, 0.0  ;;  %v276_v18 = vmax.f32 %v265_v5, 0.0 }
  0xca   :  { %v891_v1 = vshll.u32 %v4665_v3, 16  ;;  %v6563_v4 = vpack.c.bf16 %v983_v41, %v983_v41  ;;  %v982_v7 = vmax.f32 %v971_v63, 0.0  ;;  %v6565_v32 = vrot.slane %v1280_v26, 7 }
  0xcb   :  { %v879_v6 = vshrl.u32 %v4664_v13, 16  ;;  %v4686_v30 = vpack.c.bf16 %v1178_v57, %v1178_v57  ;;  %v4623_v27 = vpack.c.bf16 %v276_v18, %v276_v18  ;;  %v484_v42 = vmax.f32 %v473_v11, 0.0 }
  0xcc   :  { %v893_v36 = vor.u32 %v891_v1, %v6554_v12  ;;  %v882_v59 = vshll.u32 %v4664_v13, 16  ;;  %v778_v39 = vadd.f32 %v6307_v55, %v6526_v24  ;;  %v6570_v37 = vrot.slane %v1057_v45, 7 }
  0xcd   :  { %v881_v9 = vrot.slane %v879_v6, 7  ;;  %v482_v3 = vmax.f32 %v6561_v8, 0.0  ;;  %v1283_v41 = vshll.u32 %v4687_v60, 16  ;;  %v1271_v21 = vshrl.u32 %v4686_v30, 16  ;;  %333 = vst [vmem:[#allocation2 + $0x80] sm:$0xf] %v4623_v27  ;;  %v99_v27 = vpop.permute.xlu0 %98 }
  0xce   :  { %v4675_v5 = vpack.c.bf16 %v982_v7, %v982_v7  ;;  %v577_v11 = vadd.f32 %v6295_v47, %v6526_v24  ;;  %v1274_v13 = vshll.u32 %v4686_v30, 16  ;;  %v4645_v1 = vpack.c.bf16 %v484_v42, %v484_v42 }
  0xcf   :  { %v884_v63 = vor.u32 %v882_v59, %v881_v9  ;;  %v886_v26 = vrot.slane %v881_v9, 4  ;;  %v1285_v57 = vor.u32 %v1283_v41, %v6565_v32  ;;  %v1273_v18 = vrot.slane %v1271_v21, 7  ;;  %v7016_v53 = vld [vmem:[#allocation2 + $0x124] sm:$0xff]  }
  0xd0   :  { %v1084_v55 = vshrl.u32 %v6563_v4, 16  ;;  %v789_v6 = vmax.f32 %v778_v39, 0.0  ;;  %v159_v47 = vadd.f32 %v6279_v38, %v6526_v24  ;;  %541 = vst [vmem:[#allocation2 + $0x138] sm:$0xf] %v4645_v1  ;;  %v974_v42 = vadd.f32 %v6339_v56, %v6526_v24  ;;  %v5670_v38 = vld [vmem:[%s7953_s2] ss:$0 sm:$0xff] }
  0xd1   :  { %v885_v45 = vsel %vm6225_vm3, %v877_v35, %v884_v63  ;;  %v894_v60 = vsel %vm6225_vm3, %v886_v26, %v893_v36  ;;  %v1276_v9 = vor.u32 %v1274_v13, %v1273_v18  ;;  %v1278_v7 = vrot.slane %v1273_v18, 4 }
  0xd2   :  { %937 = vst [vmem:[#allocation2 + $0x9c] sm:$0xf] %v885_v45  ;;  %938 = vst [vmem:[#allocation2 + $0xa0] sm:$0xf] %v894_v60  ;;  %v6586_v30 = vor.u32 %v1060_v48, %v6570_v37  ;;  %v1075_v35 = vshrl.u32 %v4675_v5, 16  ;;  %v588_v59 = vmax.f32 %v577_v11, 0.0  ;;  %v1170_v36 = vadd.f32 %v6342_v62, %v6526_v24  ;;  %v109_v45 = vpop.permute.xlu0 %108 }
  0xd3   :  { %v1277_v39 = vsel %vm6225_vm3, %v1269_v19, %v1276_v9  ;;  %v1286_v41 = vsel %vm6225_vm3, %v1278_v7, %v1285_v57  ;;  %v4667_v21 = vpack.c.bf16 %v789_v6, %v789_v6  ;;  %v6597_v56 = vmul.f32 %v5670_v38, %v99_v27 }
  0xd4   :  { %v1064_v48 = vrot.slane %v6570_v37, 4  ;;  %v6600_v63 = vrot.slane %v1084_v55, 7  ;;  %v1087_v26 = vshll.u32 %v6563_v4, 16  ;;  %1329 = vst [vmem:[#allocation2 + $0x154] sm:$0xf] %v1277_v39  ;;  %v369_v62 = vadd.f32 %v6285_v46, %v6526_v24 }
  0xd5   :  { %1330 = vst [vmem:[#allocation2 + $0x158] sm:$0xf] %v1286_v41  ;;  %v170_v19 = vmax.f32 %v159_v47, 0.0  ;;  %v985_v11 = vmax.f32 %v974_v42, 0.0  ;;  %v1181_v57 = vmax.f32 %v1170_v36, 0.0  ;;  %v158_v18 = vadd.f32 %v6362_v54, %v6597_v56 }
  0xd6   :  { %v6607_v13 = vpack.c.bf16 %v588_v59, %v588_v59  ;;  %v264_v1 = vadd.f32 %v6379_v51, %v6597_v56  ;;  %v368_v55 = vadd.f32 %v6382_v2, %v6597_v56  ;;  %v472_v4 = vadd.f32 %v6391_v61, %v6597_v56 }
  0xd7   :  { %v895_v46 = vrot.slane %v6554_v12, 4  ;;  %v6616_v24 = vrot.slane %v1075_v35, 7  ;;  %v906_v60 = vshrl.u32 %v4667_v21, 16  ;;  %v169_v6 = vmax.f32 %v158_v18, 0.0 }
  0xd8   :  { %v6619_v54 = vor.u32 %v1087_v26, %v6600_v63  ;;  %v1287_v27 = vrot.slane %v6565_v32, 4  ;;  %v380_v51 = vmax.f32 %v369_v62, 0.0  ;;  %v4689_v9 = vpack.c.bf16 %v1181_v57, %v1181_v57 }
  0xd9   :  { %v1078_v7 = vshll.u32 %v4675_v5, 16  ;;  %v6622_v2 = vpack.c.bf16 %v985_v11, %v985_v11  ;;  %v4714_v47 = vpack.c.bf16 %v170_v19, %v169_v6  ;;  %v6624_v61 = vmul.f32 %v5670_v38, %v109_v45 }
  0xda   :  { %v707_v42 = vshrl.u32 %v6607_v13, 16  ;;  %v275_v35 = vmax.f32 %v264_v1, 0.0  ;;  %v379_v59 = vmax.f32 %v368_v55, 0.0  ;;  %v483_v36 = vmax.f32 %v472_v4, 0.0 }
  0xdb   :  { %v6628_v39 = vor.u32 %v1078_v7, %v6616_v24  ;;  %v1082_v41 = vrot.slane %v6616_v24, 4  ;;  %v6631_v26 = vrot.slane %v906_v60, 7  ;;  %4784 = vst [vmem:[#allocation2 + $0x20] sm:$0xff] %v4714_v47   ;;  %v777_v5 = vadd.f32 %v6399_v25, %v6597_v56 }
  0xdc   :  { %v1298_v62 = vshrl.u32 %v4689_v9, 16  ;;  %v4734_v38 = vpack.c.bf16 %v275_v35, %v274_v0  ;;  %v4759_v19 = vpack.c.bf16 %v380_v51, %v379_v59  ;;  %v4779_v11 = vpack.c.bf16 %v483_v36, %v482_v3 }
  0xdd   :  { %v909_v57 = vshll.u32 %v4667_v21, 16  ;;  %v1102_v18 = vshrl.u32 %v6622_v2, 16  ;;  %v788_v1 = vmax.f32 %v777_v5, 0.0  ;;  %v973_v55 = vadd.f32 %v6416_v40, %v6597_v56 }
  0xde   :  { %v6642_v4 = vrot.slane %v707_v42, 7  ;;  %4788 = vst [vmem:[#allocation2 + $0x78] sm:$0xff] %v4734_v38   ;;  %4792 = vst [vmem:[#allocation2 + $0xd8] sm:$0xff] %v4759_v19   ;;  %v1169_v25 = vadd.f32 %v6419_v22, %v6597_v56  ;;  %v160_v44 = vadd.f32 %v6427_v17, %v6624_v61  ;;  %v266_v0 = vadd.f32 %v6430_v43, %v6624_v61 }
  0xdf   :  { %4796 = vst [vmem:[#allocation2 + $0x130] sm:$0xff] %v4779_v11   ;;  %v1105_v8 = vshll.u32 %v6622_v2, 16  ;;  %v4666_v3 = vpack.c.bf16 %v788_v1, %v788_v1  ;;  %v984_v21 = vmax.f32 %v973_v55, 0.0  ;;  %v370_v40 = vadd.f32 %v6433_v49, %v6624_v61  ;;  %v230_v49 = vld [vmem:[#allocation2 + $0x28] sm:$0x1] }
  0xe0   :  { %v911_v45 = vor.u32 %v909_v57, %v6631_v26  ;;  %v6654_v60 = vrot.slane %v1298_v62, 7  ;;  %v1180_v6 = vmax.f32 %v1169_v25, 0.0  ;;  %v171_v51 = vmax.f32 %v160_v44, 0.0  ;;  %v334_v62 = vld [vmem:[#allocation2 + $0x84] sm:$0x1] }
  0xe1   :  { %v6656_v22 = vrot.slane %v1102_v18, 7  ;;  %v1301_v7 = vshll.u32 %v4689_v9, 16  ;;  %v897_v17 = vshrl.u32 %v4666_v3, 16  ;;  %v277_v43 = vmax.f32 %v266_v0, 0.0  ;;  %v438_v1 = vld [vmem:[#allocation2 + $0xe0] sm:$0x1] }
  0xe2   :  { %v4688_v47 = vpack.c.bf16 %v1180_v6, %v1180_v6  ;;  %v4613_v42 = vpack.c.bf16 %v171_v51, %v171_v51  ;;  %v381_v35 = vmax.f32 %v370_v40, 0.0  ;;  %v474_v59 = vadd.f32 %v6449_v16, %v6624_v61 }
  0xe3   :  { %v899_v36 = vrot.slane %v897_v17, 7  ;;  %v900_v5 = vshll.u32 %v4666_v3, 16  ;;  %v6666_v9 = vpack.c.bf16 %v984_v21, %v984_v21  ;;  %v4624_v38 = vpack.c.bf16 %v277_v43, %v277_v43  ;;  %v542_v43 = vld [vmem:[#allocation2 + $0x13c] sm:$0x1] }
  0xe4   :  { %v714_v19 = vrot.slane %v6642_v4, 4  ;;  %v913_v11 = vrot.slane %v6631_v26, 4  ;;  %v1303_v57 = vor.u32 %v1301_v7, %v6654_v60  ;;  %v1289_v18 = vshrl.u32 %v4688_v47, 16  ;;  %v5540_v26 = vld [vmem:[%s7950_s4 + $0xb0] sm:$0xff]  }
  0xe5   :  { %v902_v55 = vor.u32 %v900_v5, %v899_v36  ;;  %v904_v25 = vrot.slane %v899_v36, 4  ;;  %v1292_v44 = vshll.u32 %v4688_v47, 16  ;;  %v231_v16 = vsel %vm6660_vm7, %v4613_v42, %v230_v49  ;;  %v6685_v47 = vld [vmem:[#allocation2 + $0xc0] sm:$0xff]  }
  0xe6   :  { %v1291_v0 = vrot.slane %v1289_v18, 7  ;;  %232 = vst [vmem:[#allocation2 + $0x28] sm:$0x1] %v231_v16  ;;  %v335_v3 = vsel %vm6660_vm7, %v4624_v38, %v334_v62  ;;  %v4635_v21 = vpack.c.bf16 %v381_v35, %v381_v35  ;;  %v485_v40 = vmax.f32 %v474_v59, 0.0  ;;  %v5537_v35 = vld [vmem:[#allocation2 + $0xb8] sm:$0xff]  }
  0xe7   :  { %v6676_v6 = vor.u32 %v1105_v8, %v6656_v22  ;;  %v903_v51 = vsel %vm6225_vm3, %v895_v46, %v902_v55  ;;  %v912_v7 = vsel %vm6225_vm3, %v904_v25, %v911_v45  ;;  %v1093_v17 = vshrl.u32 %v6666_v9, 16  ;;  %336 = vst [vmem:[#allocation2 + $0x84] sm:$0x1] %v335_v3  ;;  %v6717_v3 = vld [vmem:[#allocation2 + $0xc8] sm:$0xff]  }
  0xe8   :  { %939 = vst [vmem:[#allocation2 + $0xa4] sm:$0xf] %v903_v51  ;;  %940 = vst [vmem:[#allocation2 + $0xa8] sm:$0xf] %v912_v7  ;;  %v1294_v49 = vor.u32 %v1292_v44, %v1291_v0  ;;  %v1296_v8 = vrot.slane %v1291_v0, 4  ;;  %v439_v12 = vsel %vm6660_vm7, %v4635_v21, %v438_v1  ;;  %v4646_v42 = vpack.c.bf16 %v485_v40, %v485_v40  ;;  %v8004_v7 = vld [vmem:[#allocation17_spill] sm:$0xff] }
  0xe9   :  { %440 = vst [vmem:[#allocation2 + $0xe0] sm:$0x1] %v439_v12  ;;  %v578_v46 = vadd.f32 %v6452_v29, %v6624_v61  ;;  %v779_v45 = vadd.f32 %v6457_v10, %v6624_v61  ;;  %v975_v59 = vadd.f32 %v6462_v28, %v6624_v61  ;;  %v1171_v36 = vadd.f32 %v6465_v20, %v6624_v61  ;;  %v5539_v12 = vld [vmem:[%s7950_s4 + $0xb8] sm:$0xff]  }
  0xea   :  { %v1109_v5 = vrot.slane %v6656_v22, 4  ;;  %v1295_v62 = vsel %vm6225_vm3, %v1287_v27, %v1294_v49  ;;  %v1304_v38 = vsel %vm6225_vm3, %v1296_v8, %v1303_v57  ;;  %v543_v29 = vsel %vm6660_vm7, %v4646_v42, %v542_v43 }
  0xeb   :  { %1331 = vst [vmem:[#allocation2 + $0x15c] sm:$0xf] %v1295_v62  ;;  %1332 = vst [vmem:[#allocation2 + $0x160] sm:$0xf] %v1304_v38  ;;  %v589_v10 = vmax.f32 %v578_v46, 0.0  ;;  %v790_v28 = vmax.f32 %v779_v45, 0.0  ;;  %v1063_v21 = vsel %vm6225_vm3, %v1055_v15, %v6586_v30  ;;  %v1072_v23 = vsel %vm6225_vm3, %v1064_v48, %v6542_v34 }
  0xec   :  { %544 = vst [vmem:[#allocation2 + $0x13c] sm:$0x1] %v543_v29  ;;  %v986_v18 = vmax.f32 %v975_v59, 0.0  ;;  %v1182_v20 = vmax.f32 %v1171_v36, 0.0  ;;  %v1305_v61 = vrot.slane %v6654_v60, 4  ;;  %v6707_v22 = vrot.slane %v1093_v17, 7 }
  0xed   :  { %v1468_v27 = vshll.u32 %v5537_v35, 16  ;;  %v1473_v2 = vshll.u32 %v6685_v47, 16  ;;  %v4657_v57 = vpack.c.bf16 %v589_v10, %v589_v10  ;;  %v4668_v1 = vpack.c.bf16 %v790_v28, %v790_v28  ;;  %1131 = vst [vmem:[#allocation2 + $0xf0] sm:$0xf] %v1063_v21  ;;  %v6735_v15 = vld [vmem:[#allocation2 + $0xe8] sm:$0xff]   ;;  %v8005_v45 = vld [vmem:[#allocation7_spill] sm:$0xff] }
  0xee   :  { %v4679_v55 = vpack.c.bf16 %v986_v18, %v986_v18  ;;  %v4690_v25 = vpack.c.bf16 %v1182_v20, %v1182_v20  ;;  %v1096_v44 = vshll.u32 %v6666_v9, 16  ;;  %v929_v16 = vld [vmem:[#allocation2 + $0x84] sm:$0xf]  ;;  %v1466_v0 = vshrl.u32 %v5537_v35, 16  ;;  %1132 = vst [vmem:[#allocation2 + $0xf4] sm:$0xf] %v1072_v23 }
  0xef   :  { %v1470_v60 = vrot.slane %v1468_v27, 1  ;;  %v716_v40 = vshll.u32 %v4657_v57, 16  ;;  %v915_v51 = vshll.u32 %v4668_v1, 16  ;;  %v930_v17 = vsel %vm6711_vm9, %v8004_v7, %v929_v16  ;;  %v4222_v62 = vld [vmem:[%s7951_s0 + $0x188] sm:$0xff] }
  0xf0   :  { %v1111_v43 = vshll.u32 %v4679_v55, 16  ;;  %931 = vst [vmem:[#allocation2 + $0x84] sm:$0xf] %v930_v17  ;;  %v1307_v9 = vshll.u32 %v4690_v25, 16  ;;  %v1475_v8 = vrot.slane %v1473_v2, 1  ;;  %v1098_v30 = vor.u32 %v1096_v44, %v6707_v22  ;;  %v8007_v29 = vld [vmem:[#allocation18_spill] sm:$0xff] }
  0xf1   :  { %v1471_v49 = vor.u32 %v1470_v60, %v1466_v0  ;;  %v718_v42 = vsel %vm6225_vm3, %v714_v19, %v716_v40  ;;  %v917_v35 = vsel %vm6225_vm3, %v913_v11, %v915_v51  ;;  %v1100_v34 = vrot.slane %v6707_v22, 4  ;;  %v1125_v28 = vld [vmem:[#allocation2 + $0xe0] sm:$0xf]  ;;  %v8011_v57 = vld [vmem:[#allocation22_spill] sm:$0xff]  ;;  %v4224_v25 = vld [vmem:[%s7951_s0 + $0x198] sm:$0xff] }
  0xf2   :  { %v1113_v37 = vsel %vm6225_vm3, %v1109_v5, %v1111_v43  ;;  %745 = vst [vmem:[#allocation2 + $0x50] sm:$0x1] %v718_v42  ;;  %941 = vst [vmem:[#allocation2 + $0xac] sm:$0x1] %v917_v35  ;;  %v1309_v48 = vsel %vm6225_vm3, %v1305_v61, %v1307_v9  ;;  %v1481_v11 = vshll.u32 %v6717_v3, 16  ;;  %v8006_v59 = vshll.u32 %v6446_v50, 16 }
  0xf3   :  { %1137 = vst [vmem:[#allocation2 + $0x108] sm:$0x1] %v1113_v37  ;;  %v1321_v46 = vld [vmem:[#allocation2 + $0x13c] sm:$0xf]  ;;  %v1476_v19 = vsel %vm1464_vm8, %v1471_v49, %v1475_v8  ;;  %v1028_v5 = vrot.slane %v8005_v45, 4  ;;  %v1091_v38 = vrot.slane %v6600_v63, 4  ;;  %v1090_v2 = vsel %vm6225_vm3, %v1082_v41, %v6619_v54 }
  0xf4   :  { %v1027_v36 = vor.u32 %v8006_v59, %v8005_v45  ;;  %v1322_v10 = vsel %vm6711_vm9, %v8007_v29, %v1321_v46  ;;  %1333 = vst [vmem:[#allocation2 + $0x164] sm:$0x1] %v1309_v48  ;;  %4985 = vmatmul.mubr.bf16.vlgmr.msra.gmra.mxu0 %v1476_v19  ;;  %v8008_v18 = vshrl.u32 %v6508_v58, 16  ;;  %v4221_v50 = vld [vmem:[%s7951_s0 + $0x180] sm:$0xff]  ;;  %v8009_v61 = vmov 0.0   ;;  %v6796_v54 = vld [vmem:[#allocation2 + $0xd0] sm:$0xff]  }
  0xf5   :  { %1323 = vst [vmem:[#allocation2 + $0x13c] sm:$0xf] %v1322_v10  ;;  %5089 = vmatpush3.bf16.msra.mxu0 %v5539_v12  ;;  %4988 = vmatprep.mubr.msk.bf16.mxu0 %vm5677_vm0, %v8009_v61  ;;  %v1513_v63 = vshll.u32 %v6735_v15, 16  ;;  %v8010_v22 = vrot.slane %v6521_v14, 4  ;;  %v630_v1 = vshll.u32 %v8011_v57, 16  ;;  %v638_v55 = vshll.u32 %v6508_v58, 16 }
  0xf6   :  { %v6769_v20 = vrot.slane %v8008_v18, 7  ;;  %5090 = vmatprep.subr.bf16.mxu0 %v8009_v61  ;;  %v1477_v14 = vshrl.u32 %v6685_v47, 16  ;;  %1134 = vst [vmem:[#allocation2 + $0xfc] sm:$0xf] %v1090_v2  ;;  %v1099_v24 = vsel %vm6225_vm3, %v1091_v38, %v1098_v30  ;;  %v1483_v44 = vrot.slane %v1481_v11, 1  ;;  %v8012_v41 = vld [vmem:[#allocation21_spill] sm:$0xff] }
  0xf7   :  { %v1081_v27 = vsel %vm6225_vm3, %v8010_v22, %v6628_v39  ;;  %v733_v39 = vld [vmem:[#allocation2 + $0x28] sm:$0xf]  ;;  %v1108_v58 = vsel %vm6225_vm3, %v1100_v34, %v6676_v6  ;;  %1135 = vst [vmem:[#allocation2 + $0x100] sm:$0xf] %v1099_v24  ;;  %v1036_v16 = vsel %vm6225_vm3, %v1028_v5, %v8012_v41  ;;  %v1126_v47 = vsel %vm6711_vm9, %v1027_v36, %v1125_v28  ;;  %v8013_v60 = vld [vmem:[#allocation23_spill] sm:$0xff]  ;;  %v8014_v40 = vld [vmem:[#allocation13_spill] sm:$0xff] }
  0xf8   :  { %1133 = vst [vmem:[#allocation2 + $0xf8] sm:$0xf] %v1081_v27  ;;  %v581_v0 = vmax.f32 %v6539_v31, 0.0  ;;  %v632_v21 = vor.u32 %v630_v1, %v8013_v60  ;;  %v8015_v51 = vld [vmem:[#allocation4_spill] sm:$0xff]  ;;  %v4223_v17 = vld [vmem:[%s7951_s0 + $0x190] sm:$0xff]  ;;  %v640_v6 = vor.u32 %v638_v55, %v6769_v20  ;;  %v1479_v31 = vor.u32 %v1477_v14, %v1475_v8  ;;  %v5545_v23 = vld [vmem:[%s7950_s4 + $0xa8] sm:$0xff]  }
  0xf9   :  { %v571_v7 = vadd.f32 %v8015_v51, %v8014_v40  ;;  %1136 = vst [vmem:[#allocation2 + $0x104] sm:$0xf] %v1108_v58  ;;  %1127 = vst [vmem:[#allocation2 + $0xe0] sm:$0xf] %v1126_v47  ;;  %v5671_v43 = vld [vmem:[%s7952_s1] ss:$0 sm:$0xff]  ;;  %5091 = vmatpush3.bf16.msra.mxu0 %v5540_v26 }
  0xfa   :  { %1128 = vst [vmem:[#allocation2 + $0xe4] sm:$0xf] %v1036_v16  ;;  %v562_v9 = vmul.f32 %v5671_v43, %v4222_v62  ;;  %v6817_v49 = vld [vmem:[#allocation2 + $0xf0] sm:$0xff]   ;;  %v6819_v12 = vrot.slane %v1513_v63, 1  ;;  %v633_v30 = vrot.slane %v8013_v60, 4  ;;  %v561_v42 = vmul.f32 %v5671_v43, %v4221_v50  ;;  %v4225_v37 = vld [vmem:[%s7951_s0 + $0x1a0] sm:$0xff]  ;;  %5092 = vmatprep.subr.bf16.mxu0 %v8009_v61 }
  0xfb   :  { %v564_v35 = vmul.f32 %v5671_v43, %v4224_v25  ;;  %v734_v8 = vsel %vm6711_vm9, %v632_v21, %v733_v39  ;;  %v1484_v34 = vsel %vm1464_vm8, %v1479_v31, %v1483_v44  ;;  %v1517_v48 = vshrl.u32 %v6735_v15, 16  ;;  %v5544_v59 = vld [vmem:[%s7950_s4 + $0x38] sm:$0xff]   ;;  %v8016_v38 = vld [vmem:[#allocation19_spill] sm:$0xff]  ;;  %v5550_v50 = vld [vmem:[%s7950_s4 + $0xa0] sm:$0xff]  }
  0xfc   :  { %v1521_v46 = vshll.u32 %v6817_v49, 16  ;;  %v1489_v19 = vshll.u32 %v6796_v54, 16  ;;  %735 = vst [vmem:[#allocation2 + $0x28] sm:$0xf] %v734_v8  ;;  %v6835_v26 = vpack.c.bf16 %v581_v0, %v581_v0  ;;  %v582_v11 = vmax.f32 %v571_v7, 0.0  ;;  %4989 = vmatmul.mubr.bf16.gmra.mxu0 %v1484_v34  ;;  %v8017_v10 = vld [vmem:[#allocation20_spill] sm:$0xff] }
  0xfd   :  { %v563_v45 = vmul.f32 %v5671_v43, %v4223_v17  ;;  %v565_v32 = vmul.f32 %v5671_v43, %v4225_v37  ;;  %v1519_v36 = vor.u32 %v1517_v48, %v6819_v12  ;;  %5093 = vmatpush3.bf16.msra.mxu0 %v5545_v23  ;;  %4992 = vmatprep.mubr.msk.bf16.mxu0 %vm5677_vm0, %v8009_v61  ;;  %v1485_v22 = vshrl.u32 %v6717_v3, 16  ;;  %v6857_v57 = vld [vmem:[#allocation2 + $0xd8] sm:$0xff]   ;;  %v5546_v14 = vld [vmem:[%s7950_s4 + $0x30] sm:$0xff]   ;;  %v5549_v21 = vld [vmem:[%s7950_s4 + $0x28] sm:$0xff]  }
  0xfe   :  { %v1523_v5 = vrot.slane %v1521_v46, 1  ;;  %v641_v62 = vsel %vm6225_vm3, %v633_v30, %v640_v6  ;;  %v573_v29 = vadd.f32 %v562_v9, %v8016_v38  ;;  %v572_v28 = vadd.f32 %v561_v42, %v8017_v10  ;;  %5094 = vmatprep.subr.bf16.mxu0 %v8009_v61  ;;  %v5556_v9 = vld [vmem:[%s7950_s4 + $0x90] sm:$0xff]  }
  0xff   :  { %v6843_v15 = vld [vmem:[#allocation2 + $0xf8] sm:$0xff]   ;;  %v575_v18 = vadd.f32 %v564_v35, %v6475_v33  ;;  %736 = vst [vmem:[#allocation2 + $0x2c] sm:$0xf] %v641_v62  ;;  %v1491_v27 = vrot.slane %v1489_v19, 1  ;;  %v644_v1 = vshrl.u32 %v6835_v26, 16  ;;  %v574_v33 = vadd.f32 %v563_v45, %v6484_v52  ;;  %v5552_v19 = vld [vmem:[%s7950_s4 + $0x20] sm:$0xff]  }
 0x100   :  { %v1524_v63 = vsel %vm1464_vm8, %v1519_v36, %v1523_v5  ;;  %v1529_v2 = vshll.u32 %v6843_v15, 16  ;;  %v6861_v55 = vpack.c.bf16 %v582_v11, %v582_v11  ;;  %v576_v25 = vadd.f32 %v565_v32, %v6597_v56  ;;  %v5554_v52 = vld [vmem:[%s7950_s4 + $0x98] sm:$0xff]   ;;  %v6877_v47 = vld [vmem:[#allocation2 + $0x100] sm:$0xff]  }
 0x101   :  { %5009 = vmatmul.mubr.bf16.vlgmr.msra.gmra.mxu1 %v1524_v63  ;;  %v1487_v3 = vor.u32 %v1485_v22, %v1483_v44  ;;  %v584_v24 = vmax.f32 %v573_v29, 0.0  ;;  %v583_v39 = vmax.f32 %v572_v28, 0.0  ;;  %v586_v58 = vmax.f32 %v575_v18, 0.0  ;;  %5095 = vmatpush3.bf16.msra.mxu0 %v5550_v50  ;;  %v6901_v42 = vld [vmem:[#allocation2 + $0xe0] sm:$0xff]  }
 0x102   :  { %5029 = vmatpush3.bf16.msra.mxu1 %v5544_v59  ;;  %5012 = vmatprep.mubr.msk.bf16.mxu1 %vm5677_vm0, %v8009_v61  ;;  %v1525_v41 = vshrl.u32 %v6817_v49, 16  ;;  %v1531_v16 = vrot.slane %v1529_v2, 1  ;;  %v1497_v44 = vshll.u32 %v6857_v57, 16  ;;  %v6879_v0 = vrot.slane %v644_v1, 7  ;;  %v5560_v59 = vld [vmem:[%s7950_s4 + $0x88] sm:$0xff]   ;;  %v5562_v2 = vld [vmem:[%s7950_s4 + $0x80] sm:$0xff]  }
 0x103   :  { %5030 = vmatprep.subr.bf16.mxu1 %v8009_v61  ;;  %v1492_v56 = vsel %vm1464_vm8, %v1487_v3, %v1491_v27  ;;  %5096 = vmatprep.subr.bf16.mxu0 %v8009_v61  ;;  %v585_v60 = vmax.f32 %v574_v33, 0.0  ;;  %v653_v40 = vshrl.u32 %v6861_v55, 16  ;;  %v587_v51 = vmax.f32 %v576_v25, 0.0  ;;  %v6929_v29 = vld [vmem:[#allocation2 + $0x108] ss:$0 sps:$4 sm:$0x33]  }
 0x104   :  { %4993 = vmatmul.mubr.bf16.gmra.mxu0 %v1492_v56  ;;  %v1527_v7 = vor.u32 %v1525_v41, %v1523_v5  ;;  %v6887_v17 = vpack.c.bf16 %v584_v24, %v584_v24  ;;  %v6889_v6 = vpack.c.bf16 %v583_v39, %v583_v39  ;;  %v6891_v43 = vpack.c.bf16 %v586_v58, %v586_v58  ;;  %v5559_v56 = vld [vmem:[%s7950_s4 + $0x10] sm:$0xff]  }
 0x105   :  { %4996 = vmatprep.mubr.msk.bf16.mxu0 %vm5677_vm0, %v8009_v61  ;;  %5097 = vmatpush3.bf16.msra.mxu0 %v5554_v52  ;;  %v1493_v49 = vshrl.u32 %v6796_v54, 16  ;;  %v1499_v23 = vrot.slane %v1497_v44, 1  ;;  %v1537_v30 = vshll.u32 %v6877_v47, 16  ;;  %v647_v35 = vshll.u32 %v6835_v26, 16 }
 0x106   :  { %5031 = vmatpush3.bf16.msra.mxu1 %v5546_v14  ;;  %v1532_v31 = vsel %vm1464_vm8, %v1527_v7, %v1531_v16  ;;  %5098 = vmatprep.subr.bf16.mxu0 %v8009_v61  ;;  %v651_v37 = vrot.slane %v6879_v0, 4  ;;  %v6905_v8 = vpack.c.bf16 %v585_v60, %v585_v60  ;;  %v6907_v34 = vrot.slane %v653_v40, 7 }
 0x107   :  { %5032 = vmatprep.subr.bf16.mxu1 %v8009_v61  ;;  %v656_v48 = vshll.u32 %v6861_v55, 16  ;;  %v6910_v46 = vpack.c.bf16 %v587_v51, %v587_v51  ;;  %v1495_v54 = vor.u32 %v1493_v49, %v1491_v27  ;;  %v671_v26 = vshrl.u32 %v6887_v17, 16  ;;  %v5561_v49 = vld [vmem:[%s7950_s4 + $0x8] sm:$0xff]  }
 0x108   :  { %v662_v11 = vshrl.u32 %v6889_v6, 16  ;;  %v689_v45 = vshrl.u32 %v6891_v43, 16  ;;  %v1533_v36 = vshrl.u32 %v6843_v15, 16  ;;  %v1539_v5 = vrot.slane %v1537_v30, 1  ;;  %v5555_v15 = vld [vmem:[%s7950_s4 + $0x18] sm:$0xff]  }
 0x109   :  { %5013 = vmatmul.mubr.bf16.gmra.mxu1 %v1532_v31  ;;  %5099 = vmatpush3.bf16.msra.mxu0 %v5556_v9  ;;  %v1500_v32 = vsel %vm1464_vm8, %v1495_v54, %v1499_v23  ;;  %v1505_v62 = vshll.u32 %v6901_v42, 16  ;;  %v680_v38 = vshrl.u32 %v6905_v8, 16  ;;  %v649_v10 = vor.u32 %v647_v35, %v6879_v0  ;;  %v6973_v30 = vld [vmem:[#allocation2 + $0x114] sm:$0xff]  }
 0x10a   :  { %5033 = vmatpush3.bf16.msra.mxu1 %v5549_v21  ;;  %5016 = vmatprep.mubr.msk.bf16.mxu1 %vm5677_vm0, %v8009_v61  ;;  %v698_v28 = vshrl.u32 %v6910_v46, 16  ;;  %v1535_v18 = vor.u32 %v1533_v36, %v1531_v16  ;;  %v658_v50 = vor.u32 %v656_v48, %v6907_v34  ;;  %v660_v63 = vrot.slane %v6907_v34, 4 }
 0x10b   :  { %5034 = vmatprep.subr.bf16.mxu1 %v8009_v61  ;;  %5100 = vmatprep.subr.bf16.mxu0 %v8009_v61  ;;  %v6940_v22 = vrot.slane %v671_v26, 7  ;;  %v664_v27 = vrot.slane %v662_v11, 7  ;;  %v642_v1 = vrot.slane %v6769_v20, 4  ;;  %v1501_v55 = vshrl.u32 %v6857_v57, 16  ;;  %v6987_v26 = vld [vmem:[#allocation2 + $0x11c] sm:$0xff]  }
 0x10c   :  { %4997 = vmatmul.mubr.bf16.gmra.mxu0 %v1500_v32  ;;  %v1540_v33 = vsel %vm1464_vm8, %v1535_v18, %v1539_v5  ;;  %v1507_v25 = vrot.slane %v1505_v62, 1  ;;  %v674_v14 = vshll.u32 %v6887_v17, 16  ;;  %v665_v3 = vshll.u32 %v6889_v6, 16 }
 0x10d   :  { %5000 = vmatprep.mubr.msk.bf16.mxu0 %vm5677_vm0, %v8009_v61  ;;  %5101 = vmatpush3.bf16.msra.mxu0 %v5560_v59  ;;  %v691_v24 = vrot.slane %v689_v45, 7  ;;  %v682_v39 = vrot.slane %v680_v38, 7  ;;  %v700_v58 = vrot.slane %v698_v28, 7  ;;  %v1503_v52 = vor.u32 %v1501_v55, %v1499_v23  ;;  %v7010_v38 = vld [vmem:[#allocation2 + $0x64] sm:$0xf] }
 0x10e   :  { %5035 = vmatpush3.bf16.msra.mxu1 %v5552_v19  ;;  %5102 = vmatprep.subr.bf16.mxu0 %v8009_v61  ;;  %v1541_v20 = vshrl.u32 %v6877_v47, 16  ;;  %v1545_v57 = vshll.u32 %v6929_v29, 16  ;;  %v676_v41 = vor.u32 %v674_v14, %v6940_v22  ;;  %v667_v16 = vor.u32 %v665_v3, %v664_v27  ;;  %v5566_v3 = vld [vmem:[%s7950_s4 + $0xf8] sm:$0xff]  }
 0x10f   :  { %5036 = vmatprep.subr.bf16.mxu1 %v8009_v61  ;;  %v692_v44 = vshll.u32 %v6891_v43, 16  ;;  %v683_v60 = vshll.u32 %v6905_v8, 16  ;;  %v669_v21 = vrot.slane %v664_v27, 4  ;;  %v701_v40 = vshll.u32 %v6910_v46, 16  ;;  %v5567_v27 = vld [vmem:[%s7950_s4 + $0x138] sm:$0xff]  }
 0x110   :  { %v1508_v47 = vsel %vm1464_vm8, %v1503_v52, %v1507_v25  ;;  %v1543_v51 = vor.u32 %v1541_v20, %v1539_v5  ;;  %v687_v6 = vrot.slane %v682_v39, 4  ;;  %v710_v9 = vshll.u32 %v6607_v13, 16  ;;  %v7048_v52 = vld [vmem:[#allocation2 + $0x88] sm:$0xff]  }
 0x111   :  { %5017 = vmatmul.mubr.bf16.gmra.mxu1 %v1540_v33  ;;  %5103 = vmatpush3.bf16.msra.mxu0 %v5562_v2  ;;  %v694_v7 = vor.u32 %v692_v44, %v691_v24  ;;  %v685_v17 = vor.u32 %v683_v60, %v682_v39  ;;  %v703_v43 = vor.u32 %v701_v40, %v700_v58  ;;  %v1547_v31 = vrot.slane %v1545_v57, 1  ;;  %v5569_v60 = vld [vmem:[%s7950_s4 + $0xf0] sm:$0xff]  }
 0x112   :  { %5037 = vmatpush3.bf16.msra.mxu1 %v5555_v15  ;;  %5020 = vmatprep.mubr.msk.bf16.mxu1 %vm5677_vm0, %v8009_v61  ;;  %v1509_v23 = vshrl.u32 %v6901_v42, 16  ;;  %v650_v35 = vsel %vm6225_vm3, %v642_v1, %v649_v10  ;;  %v678_v13 = vrot.slane %v6940_v22, 4  ;;  %v696_v8 = vrot.slane %v691_v24, 4  ;;  %v2939_v10 = vld [vmem:[#allocation2 + $0x60] sm:$0xe] }
 0x113   :  { %5038 = vmatprep.subr.bf16.mxu1 %v8009_v61  ;;  %5208 = vmatprep.subr.bf16.mxu0 %v8009_v61  ;;  %737 = vst [vmem:[#allocation2 + $0x30] sm:$0xf] %v650_v35  ;;  %v659_v34 = vsel %vm6225_vm3, %v651_v37, %v658_v50  ;;  %v668_v48 = vsel %vm6225_vm3, %v660_v63, %v667_v16  ;;  %v705_v46 = vrot.slane %v700_v58, 4  ;;  %v1981_v11 = vshll.u32 %v6973_v30, 16  ;;  %v7018_v50 = vld [vmem:[#allocation2 + $0x68] sm:$0xff]   ;;  %v7021_v63 = vld [vmem:[#allocation2 + $0x70] sm:$0xff]  }
 0x114   :  { %5001 = vmatmul.mubr.bf16.gmra.mxu0 %v1508_v47  ;;  %v712_v42 = vor.u32 %v710_v9, %v6642_v4  ;;  %v1548_v54 = vsel %vm1464_vm8, %v1543_v51, %v1547_v31  ;;  %v1511_v19 = vor.u32 %v1509_v23, %v1507_v25  ;;  %738 = vst [vmem:[#allocation2 + $0x34] sm:$0xf] %v659_v34  ;;  %739 = vst [vmem:[#allocation2 + $0x38] sm:$0xf] %v668_v48  ;;  %v5563_v4 = vld [vmem:[%s7950_s4] sm:$0xff]   ;;  %v7031_v25 = vld [vmem:[#allocation2 + $0x78] sm:$0xff]  }
 0x115   :  { %5004 = vmatprep.mubr.msk.bf16.mxu0 %vm5677_vm0, %v8009_v61  ;;  %v677_v0 = vsel %vm6225_vm3, %v669_v21, %v676_v41  ;;  %v686_v37 = vsel %vm6225_vm3, %v678_v13, %v685_v17  ;;  %v695_v45 = vsel %vm6225_vm3, %v687_v6, %v694_v7  ;;  %v704_v59 = vsel %vm6225_vm3, %v696_v8, %v703_v43  ;;  %v7039_v24 = vld [vmem:[#allocation2 + $0x80] sm:$0xff]   ;;  %v5570_v58 = vld [vmem:[%s7950_s4 + $0x130] sm:$0xff]   ;;  %v5573_v47 = vld [vmem:[%s7950_s4 + $0x128] sm:$0xff]  }
 0x116   :  { %5039 = vmatpush3.bf16.msra.mxu1 %v5559_v56  ;;  %740 = vst [vmem:[#allocation2 + $0x3c] sm:$0xf] %v677_v0  ;;  %741 = vst [vmem:[#allocation2 + $0x40] sm:$0xf] %v686_v37  ;;  %v1516_v32 = vsel %vm1464_vm8, %v1511_v19, %v6819_v12  ;;  %v1986_v36 = vshll.u32 %v6987_v26, 16  ;;  %v713_v5 = vsel %vm6225_vm3, %v705_v46, %v712_v42  ;;  %v1549_v62 = vshrl.u32 %v6929_v29, 16 }
 0x117   :  { %5040 = vmatprep.subr.bf16.mxu1 %v8009_v61  ;;  %742 = vst [vmem:[#allocation2 + $0x44] sm:$0xf] %v695_v45  ;;  %743 = vst [vmem:[#allocation2 + $0x48] sm:$0xf] %v704_v59  ;;  %v1983_v28 = vrot.slane %v1981_v11, 1  ;;  %v1979_v12 = vshrl.u32 %v6973_v30, 16  ;;  %v4470_v29 = vcombine.low %v2939_v10, %v7010_v38 }
 0x118   :  { %744 = vst [vmem:[#allocation2 + $0x4c] sm:$0xf] %v713_v5  ;;  %v1551_v18 = vor.u32 %v1549_v62, %v1547_v31  ;;  %v1988_v15 = vrot.slane %v1986_v36, 1  ;;  %v1994_v1 = vshll.u32 %v7016_v53, 16  ;;  %v2961_v55 = vrot.slane %v7018_v50, 1  ;;  %v7054_v41 = vld [vmem:[#allocation2 + $0x12c] sm:$0xff]  }
 0x119   :  { %5021 = vmatmul.mubr.bf16.gmra.mxu1 %v1548_v54  ;;  %v1984_v22 = vor.u32 %v1983_v28, %v1979_v12  ;;  %v2960_v33 = vrot.slane %v4470_v29, 1  ;;  %v2963_v14 = vrot.slane %v7021_v63, 1  ;;  %v1990_v57 = vshrl.u32 %v6987_v26, 16  ;;  %v7063_v21 = vld [vmem:[#allocation2 + $0x90] sm:$0xff]   ;;  %v7070_v51 = vld [vmem:[#allocation2 + $0x98] sm:$0xff]   ;;  %v7090_v23 = vld [vmem:[#allocation2 + $0xa0] sm:$0xff]  }
 0x11a   :  { %5041 = vmatpush3.bf16.msra.mxu1 %v5561_v49  ;;  %5024 = vmatprep.mubr.msk.bf16.mxu1 %vm5677_vm0, %v8009_v61  ;;  %v1996_v56 = vrot.slane %v1994_v1, 1  ;;  %v2965_v16 = vrot.slane %v7031_v25, 1  ;;  %v2967_v40 = vrot.slane %v7039_v24, 1  ;;  %v2969_v17 = vrot.slane %v7048_v52, 1  ;;  %v5572_v49 = vld [vmem:[%s7950_s4 + $0xe8] sm:$0xff]   ;;  %v5577_v13 = vld [vmem:[%s7950_s4 + $0x120] sm:$0xff]  }
 0x11b   :  { %5042 = vmatprep.subr.bf16.mxu1 %v8009_v61  ;;  %v1989_v2 = vsel %vm1464_vm8, %v1984_v22, %v1988_v15  ;;  %v7042_v39 = vsel %vm2723_vm10, %v2960_v33, %v2961_v55  ;;  %v7051_v20 = vsel %vm2723_vm10, %v2961_v55, %v2963_v14  ;;  %v1992_v44 = vor.u32 %v1990_v57, %v1988_v15  ;;  %v7099_v8 = vld [vmem:[#allocation2 + $0x11c] sm:$0xf]  ;;  %v3853_v48 = vld [vmem:[#allocation2 + $0x118] sm:$0xe]  ;;  %v5576_v11 = vld [vmem:[%s7950_s4 + $0xe0] sm:$0xff]  }
 0x11c   :  { %5005 = vmatmul.mubr.bf16.gmra.mxu0 %v1516_v32  ;;  %v7073_v7 = vsel %vm2723_vm10, %v2963_v14, %v2965_v16  ;;  %v2002_v9 = vshll.u32 %v7054_v41, 16  ;;  %v7080_v43 = vsel %vm2723_vm10, %v2965_v16, %v2967_v40  ;;  %v7083_v31 = vsel %vm2723_vm10, %v2967_v40, %v2969_v17  ;;  %v7108_v19 = vld [vmem:[#allocation2 + $0xb0] ss:$0 sps:$4 sm:$0x33]   ;;  %v7120_v45 = vld [vmem:[#allocation2 + $0x120] sm:$0xff]   ;;  %v5580_v36 = vld [vmem:[%s7950_s4 + $0x118] sm:$0xff]  }
 0x11d   :  { %5104 = vmatprep.mubr.msk.bf16.mxu0 %vm5677_vm0, %v8009_v61  ;;  %v1997_v6 = vsel %vm1464_vm8, %v1992_v44, %v1996_v56  ;;  %v2971_v35 = vrot.slane %v7063_v21, 1  ;;  %v2973_v34 = vrot.slane %v7070_v51, 1  ;;  %v1998_v42 = vshrl.u32 %v7016_v53, 16  ;;  %v7129_v5 = vld [vmem:[#allocation2 + $0x128] sm:$0xff]   ;;  %v7133_v10 = vld [vmem:[#allocation2 + $0x130] sm:$0xff]   ;;  %v7141_v12 = vld [vmem:[#allocation2 + $0x138] sm:$0xff]  }
 0x11e   :  { %5043 = vmatpush3.bf16.msra.mxu1 %v5563_v4  ;;  %v2004_v46 = vrot.slane %v2002_v9, 1  ;;  %v7115_v4 = vld [vmem:[#allocation2 + $0x134] sm:$0xff]   ;;  %v4565_v32 = vcombine.low %v3853_v48, %v7099_v8  ;;  %v2979_v15 = vrot.slane %v7108_v19, 1  ;;  %v2006_v29 = vshrl.u32 %v7054_v41, 16  ;;  %v7158_v14 = vld [vmem:[#allocation2 + $0x148] sm:$0xff]  }
 0x11f   :  { %5148 = vmatprep.subr.bf16.mxu1 %v8009_v61  ;;  %v7105_v54 = vsel %vm2723_vm10, %v2969_v17, %v2971_v35  ;;  %v7111_v0 = vsel %vm2723_vm10, %v2971_v35, %v2973_v34  ;;  %v2000_v37 = vor.u32 %v1998_v42, %v1996_v56  ;;  %v2010_v22 = vshll.u32 %v7115_v4, 16  ;;  %v5584_v55 = vld [vmem:[%s7950_s4 + $0x110] sm:$0xff]   ;;  %v7166_v56 = vld [vmem:[#allocation2 + $0x13c] sm:$0xff]  }
 0x120   :  { %v3874_v1 = vrot.slane %v4565_v32, 1  ;;  %v3875_v33 = vrot.slane %v7120_v45, 1  ;;  %v2008_v57 = vor.u32 %v2006_v29, %v2004_v46  ;;  %v7169_v16 = vld [vmem:[#allocation2 + $0x150] sm:$0xff]   ;;  %v7176_v40 = vld [vmem:[#allocation2 + $0x158] sm:$0xff]   ;;  %v3881_v17 = vrot.slane %v7141_v12, 1 }
 0x121   :  { %5025 = vmatmul.mubr.bf16.gmra.mxu1 %v1551_v18  ;;  %v2005_v62 = vsel %vm1464_vm8, %v2000_v37, %v2004_v46  ;;  %v5583_v9 = vld [vmem:[%s7950_s4 + $0xd0] sm:$0xff]   ;;  %v3885_v42 = vrot.slane %v7158_v14, 1  ;;  %v2018_v37 = vshll.u32 %v7166_v56, 16  ;;  %v3889_v32 = vrot.slane %v7176_v40, 1 }
 0x122   :  { %5044 = vmatprep.mubr.msk.bf16.mxu1 %vm5677_vm0, %v8009_v61  ;;  %v7172_v44 = vsel %vm2723_vm10, %v3874_v1, %v3875_v33 }
 0x124   :  { %5105 = vmatmul.mubr.bf16.vlgmr.msra.gmra.mxu0 %v1989_v2  ;;  %v7151_v2 = vld [vmem:[#allocation2 + $0x140] sm:$0xff]  }
 0x125   :  { %5209 = vmatpush3.bf16.msra.mxu0 %v5567_v27  ;;  %5108 = vmatprep.mubr.msk.bf16.mxu0 %vm5677_vm0, %v8009_v61  ;;  %v5579_v27 = vld [vmem:[%s7950_s4 + $0xd8] sm:$0xff]   ;;  %v3883_v35 = vrot.slane %v7151_v2, 1 }
 0x126   :  { %5210 = vmatprep.subr.bf16.mxu0 %v8009_v61 }
 0x129   :  { %5045 = vmatmul.mubr.bf16.vlgmr.msra.gmra.mxu1 %v6973_v30  ;;  %5211 = vmatpush3.bf16.msra.mxu0 %v5570_v58  ;;  %v7092_v30 = vld [vmem:[#allocation2 + $0xa8] sm:$0xff]   ;;  %v3877_v58 = vrot.slane %v7129_v5, 1 }
 0x12a   :  { %5149 = vmatpush3.bf16.msra.mxu1 %v5566_v3  ;;  %5048 = vmatprep.mubr.msk.bf16.mxu1 %vm5677_vm0, %v8009_v61  ;;  %v2977_v59 = vrot.slane %v7092_v30, 1 }
 0x12b   :  { %5150 = vmatprep.subr.bf16.mxu1 %v8009_v61  ;;  %5212 = vmatprep.subr.bf16.mxu0 %v8009_v61 }
 0x12c   :  { %5109 = vmatmul.mubr.bf16.gmra.mxu0 %v1997_v6  ;;  %v7163_v3 = vsel %vm2723_vm10, %v2977_v59, %v2979_v15  ;;  %v2012_v6 = vrot.slane %v2010_v22, 1  ;;  %v5590_v22 = vld [vmem:[%s7950_s4 + $0x100] sm:$0xff]  }
 0x12d   :  { %5112 = vmatprep.mubr.msk.bf16.mxu0 %vm5677_vm0, %v8009_v61  ;;  %5213 = vmatpush3.bf16.msra.mxu0 %v5573_v47  ;;  %v7179_v47 = vsel %vm2723_vm10, %v3875_v33, %v3877_v58  ;;  %v2014_v33 = vshrl.u32 %v7115_v4, 16 }
 0x12e   :  { %5151 = vmatpush3.bf16.msra.mxu1 %v5569_v60  ;;  %5214 = vmatprep.subr.bf16.mxu0 %v8009_v61  ;;  %v3879_v60 = vrot.slane %v7133_v10, 1  ;;  %v2013_v46 = vsel %vm1464_vm8, %v2008_v57, %v2012_v6 }
 0x12f   :  { %5152 = vmatprep.subr.bf16.mxu1 %v8009_v61 }
 0x130   :  { %v7200_v48 = vsel %vm2723_vm10, %v3879_v60, %v3881_v17 }
 0x131   :  { %5049 = vmatmul.mubr.bf16.gmra.mxu1 %v6987_v26  ;;  %v2975_v26 = vrot.slane %v7090_v23, 1  ;;  %5215 = vmatpush3.bf16.msra.mxu0 %v5577_v13  ;;  %v5587_v13 = vld [vmem:[%s7950_s4 + $0x108] sm:$0xff]  }
 0x132   :  { %5052 = vmatprep.mubr.msk.bf16.mxu1 %vm5677_vm0, %v8009_v61  ;;  %5153 = vmatpush3.bf16.msra.mxu1 %v5572_v49  ;;  %v7187_v49 = vld [vmem:[#allocation2 + $0x160] sm:$0xff]  }
 0x133   :  { %5154 = vmatprep.subr.bf16.mxu1 %v8009_v61  ;;  %5216 = vmatprep.subr.bf16.mxu0 %v8009_v61  ;;  %v7136_v28 = vsel %vm2723_vm10, %v2973_v34, %v2975_v26  ;;  %v7139_v18 = vsel %vm2723_vm10, %v2975_v26, %v2977_v59  ;;  %v7197_v34 = vld [vmem:[#allocation2 + $0x168] ss:$0 sps:$4 sm:$0x33]   ;;  %v3887_v26 = vrot.slane %v7169_v16, 1  ;;  %v7211_v59 = vsel %vm2723_vm10, %v3883_v35, %v3885_v42 }
 0x134   :  { %5113 = vmatmul.mubr.bf16.gmra.mxu0 %v2005_v62  ;;  %v3891_v29 = vrot.slane %v7187_v49, 1  ;;  %v3893_v1 = vrot.slane %v7197_v34, 1 }
 0x135   :  { %5116 = vmatprep.mubr.msk.bf16.mxu0 %vm5677_vm0, %v8009_v61  ;;  %5217 = vmatpush3.bf16.msra.mxu0 %v5580_v36  ;;  %v5586_v36 = vld [vmem:[%s7950_s4 + $0xc8] sm:$0xff]   ;;  %v7220_v62 = vsel %vm2723_vm10, %v3885_v42, %v3887_v26 }
 0x136   :  { %5155 = vmatpush3.bf16.msra.mxu1 %v5576_v11  ;;  %5218 = vmatprep.subr.bf16.mxu0 %v8009_v61  ;;  %v7207_v11 = vsel %vm2723_vm10, %v3881_v17, %v3883_v35  ;;  %v7240_v57 = vsel %vm2723_vm10, %v3891_v29, %v3893_v1  ;;  %v5578_v17 = vld [vmem:[#allocation2 + $0x144] sm:$0xff]   ;;  %v2022_v35 = vshrl.u32 %v7166_v56, 16  ;;  %v5581_v42 = vld [vmem:[#allocation2 + $0x14c] sm:$0xff]  }
 0x137   :  { %5156 = vmatprep.subr.bf16.mxu1 %v8009_v61 }
 0x139   :  { %5053 = vmatmul.mubr.bf16.gmra.mxu1 %v7016_v53  ;;  %v7190_v53 = vsel %vm2723_vm10, %v3877_v58, %v3879_v60  ;;  %5219 = vmatpush3.bf16.msra.mxu0 %v5584_v55  ;;  %v2020_v55 = vrot.slane %v2018_v37, 1  ;;  %v7234_v58 = vsel %vm2723_vm10, %v3889_v32, %v3891_v29  ;;  %v2016_v60 = vor.u32 %v2014_v33, %v2012_v6  ;;  %v5582_v29 = vld [vmem:[#allocation2 + $0x154] sm:$0xff]  }
 0x13a   :  { %5056 = vmatprep.mubr.msk.bf16.mxu1 %vm5677_vm0, %v8009_v61  ;;  %5157 = vmatpush3.bf16.msra.mxu1 %v5579_v27  ;;  %v7228_v27 = vsel %vm2723_vm10, %v3887_v26, %v3889_v32  ;;  %v2026_v6 = vshll.u32 %v5578_v17, 16  ;;  %v2034_v26 = vshll.u32 %v5581_v42, 16  ;;  %v2030_v32 = vshrl.u32 %v5578_v17, 16 }
 0x13b   :  { %5158 = vmatprep.subr.bf16.mxu1 %v8009_v61  ;;  %5220 = vmatprep.subr.bf16.mxu0 %v8009_v61  ;;  %v2042_v33 = vshll.u32 %v5582_v29, 16 }
 0x13c   :  { %5117 = vmatmul.mubr.bf16.gmra.mxu0 %v2013_v46  ;;  %v2028_v46 = vrot.slane %v2026_v6, 1  ;;  %v2046_v6 = vshrl.u32 %v5582_v29, 16 }
 0x13d   :  { %5120 = vmatprep.mubr.msk.bf16.mxu0 %vm5677_vm0, %v8009_v61  ;;  %5221 = vmatpush3.bf16.msra.mxu0 %v5587_v13  ;;  %v2024_v13 = vor.u32 %v2022_v35, %v2020_v55 }
 0x13e   :  { %5159 = vmatpush3.bf16.msra.mxu1 %v5583_v9  ;;  %5222 = vmatprep.subr.bf16.mxu0 %v8009_v61  ;;  %v5589_v9 = vld [vmem:[%s7950_s4 + $0xc0] sm:$0xff]  }
 0x13f   :  { %5160 = vmatprep.subr.bf16.mxu1 %v8009_v61  ;;  %v2029_v37 = vsel %vm1464_vm8, %v2024_v13, %v2028_v46 }
 0x141   :  { %5057 = vmatmul.mubr.bf16.gmra.mxu1 %v7054_v41  ;;  %5223 = vmatpush3.bf16.msra.mxu0 %v5590_v22  ;;  %v2021_v41 = vsel %vm1464_vm8, %v2016_v60, %v2020_v55  ;;  %v2038_v55 = vshrl.u32 %v5581_v42, 16  ;;  %v2044_v60 = vrot.slane %v2042_v33, 1 }
 0x142   :  { %5060 = vmatprep.mubr.msk.bf16.mxu1 %vm5677_vm0, %v8009_v61  ;;  %5161 = vmatpush3.bf16.msra.mxu1 %v5586_v36  ;;  %v2036_v36 = vrot.slane %v2034_v26, 1 }
 0x143   :  { %5162 = vmatprep.subr.bf16.mxu1 %v8009_v61  ;;  %5328 = vmatprep.subr.bf16.mxu0 %v8009_v61 }
 0x144   :  { %5121 = vmatmul.mubr.bf16.gmra.mxu0 %v2021_v41  ;;  %v2040_v41 = vor.u32 %v2038_v55, %v2036_v36 }
 0x145   :  { %5124 = vmatprep.mubr.msk.bf16.mxu0 %vm5677_vm0, %v8009_v61 }
 0x146   :  { %5163 = vmatpush3.bf16.msra.mxu1 %v5589_v9  ;;  %v5585_v9 = vld [vmem:[#allocation2 + $0x15c] sm:$0xff]  }
 0x147   :  { %5268 = vmatprep.subr.bf16.mxu1 %v8009_v61  ;;  %v2050_v35 = vshll.u32 %v5585_v9, 16  ;;  %v2054_v26 = vshrl.u32 %v5585_v9, 16 }
 0x149   :  { %5061 = vmatmul.mubr.bf16.gmra.mxu1 %v7115_v4  ;;  %v2032_v4 = vor.u32 %v2030_v32, %v2028_v46  ;;  %v2052_v13 = vrot.slane %v2050_v35, 1  ;;  %v2048_v46 = vor.u32 %v2046_v6, %v2044_v60  ;;  %v5591_v35 = vld [vmem:[#allocation2 + $0x164] ss:$0 sps:$4 sm:$0x11]  }
 0x14a   :  { %5064 = vmatprep.mubr.msk.bf16.mxu1 %vm5677_vm0, %v8009_v61 }
 0x14b   :  { %v2037_v22 = vsel %vm1464_vm8, %v2032_v4, %v2036_v36  ;;  %v2056_v36 = vor.u32 %v2054_v26, %v2052_v13 }
 0x14c   :  { %5125 = vmatmul.mubr.bf16.gmra.mxu0 %v2029_v37  ;;  %v5588_v37 = vld [vmem:[#allocation2 + $0x164] ss:$0 sps:$4 sm:$0x33]  }
 0x14d   :  { %5128 = vmatprep.mubr.msk.bf16.mxu0 %vm5677_vm0, %v8009_v61  ;;  %v2058_v32 = vshll.u32 %v5588_v37, 16  ;;  %v2062_v55 = vshrl.u32 %v5588_v37, 16  ;;  %v5597_v37 = vld [vmem:[%s7950_s4 + $0x1b8] sm:$0xff]  }
 0x14f   :  { %v2060_v4 = vrot.slane %v2058_v32, 1 }
 0x151   :  { %5065 = vmatmul.mubr.bf16.gmra.mxu1 %v7166_v56  ;;  %v2045_v56 = vsel %vm1464_vm8, %v2040_v41, %v2044_v60  ;;  %v2064_v60 = vor.u32 %v2062_v55, %v2060_v4  ;;  %v2367_v55 = vshll.u32 %v7021_v63, 16 }
 0x152   :  { %5068 = vmatprep.mubr.msk.bf16.mxu1 %vm5677_vm0, %v8009_v61 }
 0x154   :  { %5129 = vmatmul.mubr.bf16.gmra.mxu0 %v2037_v22  ;;  %v2260_v22 = vld [vmem:[#allocation2 + $0x60] sm:$0xf] }
 0x155   :  { %5132 = vmatprep.mubr.msk.bf16.mxu0 %vm5677_vm0, %v8009_v61  ;;  %v4400_v33 = vcombine.low %v2260_v22, %v7010_v38 }
 0x157   :  { %v2354_v41 = vshll.u32 %v4400_v33, 16 }
 0x159   :  { %5069 = vmatmul.mubr.bf16.gmra.mxu1 %v5578_v17  ;;  %v2053_v17 = vsel %vm1464_vm8, %v2048_v46, %v2052_v13  ;;  %v2356_v13 = vrot.slane %v2354_v41, 1  ;;  %v2359_v46 = vshll.u32 %v7018_v50, 16 }
 0x15a   :  { %5072 = vmatprep.mubr.msk.bf16.mxu1 %vm5677_vm0, %v8009_v61 }
 0x15b   :  { %v2361_v32 = vrot.slane %v2359_v46, 1 }
 0x15c   :  { %5133 = vmatmul.mubr.bf16.gmra.mxu0 %v2045_v56  ;;  %v5592_v56 = vld [vmem:[#allocation2 + $0x4] sm:$0xfe]  }
 0x15d   :  { %5136 = vmatprep.mubr.msk.bf16.mxu0 %vm5677_vm0, %v8009_v61  ;;  %v2724_v38 = vrot.slane %v5592_v56, 1  ;;  %v2363_v56 = vshrl.u32 %v7018_v50, 16  ;;  %v5611_v50 = vld [vmem:[%s7950_s4 + $0x1a0] sm:$0xff]  }
 0x15f   :  { %v2365_v46 = vor.u32 %v2363_v56, %v2361_v32  ;;  %v5625_v56 = vld [vmem:[%s7950_s4 + $0x188] sm:$0xff]  }
 0x161   :  { %5073 = vmatmul.mubr.bf16.gmra.mxu1 %v5581_v42  ;;  %v2061_v42 = vsel %vm1464_vm8, %v2056_v36, %v2060_v4  ;;  %v5598_v36 = vld [vmem:[#allocation2 + $0x14] sm:$0xff]  }
 0x162   :  { %5076 = vmatprep.mubr.msk.bf16.mxu1 %vm5677_vm0, %v8009_v61  ;;  %v5596_v4 = vld [vmem:[%s7950_s4 + $0x178] sm:$0xff]  }
 0x164   :  { %5137 = vmatmul.mubr.bf16.gmra.mxu0 %v2053_v17 }
 0x165   :  { %5140 = vmatprep.mubr.msk.bf16.mxu0 %vm5677_vm0, %v8009_v61 }
 0x169   :  { %5077 = vmatmul.mubr.bf16.gmra.mxu1 %v5582_v29  ;;  %v5593_v29 = vld [vmem:[#allocation2 + $0xc] sm:$0xff]  }
 0x16a   :  { %5080 = vmatprep.mubr.msk.bf16.mxu1 %vm5677_vm0, %v8009_v61  ;;  %v2725_v6 = vrot.slane %v5593_v29, 1  ;;  %v5605_v29 = vld [vmem:[%s7950_s4 + $0x1a8] sm:$0xff]  }
 0x16c   :  { %5141 = vmatmul.mubr.bf16.gmra.mxu0 %v2061_v42  ;;  %v2726_v17 = vsel %vm2723_vm10, %v2724_v38, %v2725_v6  ;;  %v5601_v42 = vld [vmem:[%s7950_s4 + $0x1b0] sm:$0xff]   ;;  %v5604_v38 = vld [vmem:[%s7950_s4 + $0x168] sm:$0xff]  }
 0x16d   :  { %5144 = vmatprep.mubr.msk.bf16.mxu0 %vm5677_vm0, %v8009_v61 }
 0x171   :  { %5081 = vmatmul.mubr.bf16.gmra.mxu1 %v5585_v9  ;;  %v2352_v9 = vshrl.u32 %v4400_v33, 16  ;;  %v2727_v33 = vrot.slane %v5598_v36, 1  ;;  %v2371_v36 = vshrl.u32 %v7021_v63, 16  ;;  %v5620_v63 = vld [vmem:[%s7950_s4 + $0x190] sm:$0xff]  }
 0x172   :  { %5084 = vmatprep.mubr.msk.bf16.mxu1 %vm5677_vm0, %v8009_v61 }
 0x173   :  { %v2357_v26 = vor.u32 %v2356_v13, %v2352_v9  ;;  %v2728_v41 = vsel %vm2723_vm10, %v2725_v6, %v2727_v33  ;;  %v5602_v13 = vld [vmem:[#allocation2 + $0x1c] sm:$0xff]  }
 0x174   :  { %5145 = vmatmul.mubr.bf16.gmra.mxu0 %v2064_v60  ;;  %v5600_v60 = vld [vmem:[%s7950_s4 + $0x170] sm:$0xff]   ;;  %v2729_v9 = vrot.slane %v5602_v13, 1  ;;  %v2379_v13 = vshrl.u32 %v7031_v25, 16 }
 0x175   :  { %5224 = vmatprep.mubr.msk.bf16.mxu0 %vm5677_vm0, %v8009_v61  ;;  %v2362_v22 = vsel %vm1464_vm8, %v2357_v26, %v2361_v32  ;;  %v5615_v26 = vld [vmem:[%s7950_s4 + $0x198] sm:$0xff]  }
 0x176   :  { %v2730_v32 = vsel %vm2723_vm10, %v2727_v33, %v2729_v9 }
 0x179   :  { %5085 = vmatmul.mubr.bf16.gmra.mxu1 %v5591_v35  ;;  %v2369_v35 = vrot.slane %v2367_v55, 1  ;;  %v5614_v55 = vld [vmem:[%s7950_s4 + $0x158] sm:$0xff]  }
 0x17a   :  { %5164 = vmatprep.mubr.msk.bf16.mxu1 %vm5677_vm0, %v8009_v61 }
 0x17b   :  { %v2370_v6 = vsel %vm1464_vm8, %v2365_v46, %v2369_v35 }
 0x17c   :  { %5225 = vmatmul.mubr.bf16.vlgmr.msra.gmra.mxu0 %v2726_v17  ;;  %v5610_v17 = vld [vmem:[%s7950_s4 + $0x160] sm:$0xff]  }
 0x17d   :  { %5329 = vmatpush3.bf16.msra.mxu0 %v5597_v37  ;;  %5228 = vmatprep.mubr.msk.bf16.mxu0 %vm5677_vm0, %v8009_v61  ;;  %v2375_v37 = vshll.u32 %v7031_v25, 16  ;;  %v5629_v25 = vld [vmem:[%s7950_s4 + $0x180] sm:$0xff]  }
 0x17e   :  { %5330 = vmatprep.subr.bf16.mxu0 %v8009_v61 }
 0x181   :  { %5165 = vmatmul.mubr.bf16.vlgmr.msra.gmra.mxu1 %v2362_v22  ;;  %5331 = vmatpush3.bf16.msra.mxu0 %v5601_v42  ;;  %v5606_v42 = vld [vmem:[#allocation2 + $0x24] sm:$0xff]   ;;  %v2373_v22 = vor.u32 %v2371_v36, %v2369_v35 }
 0x182   :  { %5269 = vmatpush3.bf16.msra.mxu1 %v5596_v4  ;;  %5168 = vmatprep.mubr.msk.bf16.mxu1 %vm5677_vm0, %v8009_v61  ;;  %v2377_v4 = vrot.slane %v2375_v37, 1 }
 0x183   :  { %5270 = vmatprep.subr.bf16.mxu1 %v8009_v61  ;;  %5332 = vmatprep.subr.bf16.mxu0 %v8009_v61 }
 0x184   :  { %5229 = vmatmul.mubr.bf16.gmra.mxu0 %v2728_v41  ;;  %v2378_v33 = vsel %vm1464_vm8, %v2373_v22, %v2377_v4  ;;  %v5619_v41 = vld [vmem:[%s7950_s4 + $0x150] sm:$0xff]  }
 0x185   :  { %5232 = vmatprep.mubr.msk.bf16.mxu0 %vm5677_vm0, %v8009_v61  ;;  %5333 = vmatpush3.bf16.msra.mxu0 %v5605_v29  ;;  %v2383_v29 = vshll.u32 %v7039_v24, 16 }
 0x186   :  { %5271 = vmatpush3.bf16.msra.mxu1 %v5600_v60  ;;  %5334 = vmatprep.subr.bf16.mxu0 %v8009_v61  ;;  %v2731_v60 = vrot.slane %v5606_v42, 1  ;;  %v5612_v42 = vld [vmem:[#allocation2 + $0x34] sm:$0xff]  }
 0x187   :  { %5272 = vmatprep.subr.bf16.mxu1 %v8009_v61  ;;  %v2385_v46 = vrot.slane %v2383_v29, 1 }
 0x188   :  { %v2732_v35 = vsel %vm2723_vm10, %v2729_v9, %v2731_v60 }
 0x189   :  { %5169 = vmatmul.mubr.bf16.gmra.mxu1 %v2370_v6  ;;  %5335 = vmatpush3.bf16.msra.mxu0 %v5611_v50  ;;  %v5608_v50 = vld [vmem:[#allocation2 + $0x2c] sm:$0xff]  }
 0x18a   :  { %5172 = vmatprep.mubr.msk.bf16.mxu1 %vm5677_vm0, %v8009_v61  ;;  %5273 = vmatpush3.bf16.msra.mxu1 %v5604_v38  ;;  %v2381_v38 = vor.u32 %v2379_v13, %v2377_v4  ;;  %v5624_v6 = vld [vmem:[%s7950_s4 + $0x148] sm:$0xff]   ;;  %v2733_v37 = vrot.slane %v5608_v50, 1 }
 0x18b   :  { %5274 = vmatprep.subr.bf16.mxu1 %v8009_v61  ;;  %5336 = vmatprep.subr.bf16.mxu0 %v8009_v61 }
 0x18c   :  { %5233 = vmatmul.mubr.bf16.gmra.mxu0 %v2730_v32  ;;  %v2386_v9 = vsel %vm1464_vm8, %v2381_v38, %v2385_v46  ;;  %v5628_v32 = vld [vmem:[%s7950_s4 + $0x140] sm:$0xff]   ;;  %v2734_v36 = vsel %vm2723_vm10, %v2731_v60, %v2733_v37  ;;  %v2395_v60 = vshrl.u32 %v7048_v52, 16 }
 0x18d   :  { %5236 = vmatprep.mubr.msk.bf16.mxu0 %vm5677_vm0, %v8009_v61  ;;  %5337 = vmatpush3.bf16.msra.mxu0 %v5615_v26  ;;  %v2391_v26 = vshll.u32 %v7048_v52, 16  ;;  %v2403_v52 = vshrl.u32 %v7063_v21, 16 }
 0x18e   :  { %5275 = vmatpush3.bf16.msra.mxu1 %v5610_v17  ;;  %5338 = vmatprep.subr.bf16.mxu0 %v8009_v61  ;;  %v2387_v17 = vshrl.u32 %v7039_v24, 16 }
 0x18f   :  { %5276 = vmatprep.subr.bf16.mxu1 %v8009_v61  ;;  %v2393_v22 = vrot.slane %v2391_v26, 1 }
 0x190   :  { %v2389_v4 = vor.u32 %v2387_v17, %v2385_v46  ;;  %v2407_v46 = vshll.u32 %v7070_v51, 16  ;;  %v2415_v17 = vshll.u32 %v7090_v23, 16 }
 0x191   :  { %5173 = vmatmul.mubr.bf16.gmra.mxu1 %v2378_v33  ;;  %5339 = vmatpush3.bf16.msra.mxu0 %v5620_v63  ;;  %v2399_v63 = vshll.u32 %v7063_v21, 16  ;;  %v2411_v21 = vshrl.u32 %v7070_v51, 16  ;;  %v2419_v51 = vshrl.u32 %v7090_v23, 16  ;;  %v2431_v23 = vshll.u32 %v7108_v19, 16 }
 0x192   :  { %5176 = vmatprep.mubr.msk.bf16.mxu1 %vm5677_vm0, %v8009_v61  ;;  %5277 = vmatpush3.bf16.msra.mxu1 %v5614_v55  ;;  %v2394_v24 = vsel %vm1464_vm8, %v2389_v4, %v2393_v22  ;;  %v2735_v55 = vrot.slane %v5612_v42, 1  ;;  %v2409_v50 = vrot.slane %v2407_v46, 1 }
 0x193   :  { %5278 = vmatprep.subr.bf16.mxu1 %v8009_v61  ;;  %5340 = vmatprep.subr.bf16.mxu0 %v8009_v61  ;;  %v2401_v29 = vrot.slane %v2399_v63, 1 }
 0x194   :  { %5237 = vmatmul.mubr.bf16.gmra.mxu0 %v2732_v35  ;;  %v2736_v33 = vsel %vm2723_vm10, %v2733_v37, %v2735_v55  ;;  %v2413_v42 = vor.u32 %v2411_v21, %v2409_v50 }
 0x195   :  { %5240 = vmatprep.mubr.msk.bf16.mxu0 %vm5677_vm0, %v8009_v61  ;;  %5341 = vmatpush3.bf16.msra.mxu0 %v5625_v56  ;;  %v2397_v56 = vor.u32 %v2395_v60, %v2393_v22 }
 0x196   :  { %5279 = vmatpush3.bf16.msra.mxu1 %v5619_v41  ;;  %5342 = vmatprep.subr.bf16.mxu0 %v8009_v61  ;;  %v5616_v41 = vld [vmem:[#allocation2 + $0x3c] sm:$0xff]  }
 0x197   :  { %5280 = vmatprep.subr.bf16.mxu1 %v8009_v61  ;;  %v2402_v35 = vsel %vm1464_vm8, %v2397_v56, %v2401_v29  ;;  %v2737_v13 = vrot.slane %v5616_v41, 1  ;;  %v5626_v56 = vld [vmem:[#allocation2 + $0x54] ss:$0 sps:$4 sm:$0x33]  }
 0x199   :  { %5177 = vmatmul.mubr.bf16.gmra.mxu1 %v2386_v9  ;;  %5343 = vmatpush3.bf16.msra.mxu0 %v5629_v25  ;;  %v2738_v38 = vsel %vm2723_vm10, %v2735_v55, %v2737_v13  ;;  %v2405_v25 = vor.u32 %v2403_v52, %v2401_v29  ;;  %v2743_v52 = vrot.slane %v5626_v56, 1 }
 0x19a   :  { %5180 = vmatprep.mubr.msk.bf16.mxu1 %vm5677_vm0, %v8009_v61  ;;  %5281 = vmatpush3.bf16.msra.mxu1 %v5624_v6  ;;  %v5618_v6 = vld [vmem:[#allocation2 + $0x44] sm:$0xff]  }
 0x19b   :  { %5282 = vmatprep.subr.bf16.mxu1 %v8009_v61  ;;  %5448 = vmatprep.subr.bf16.mxu0 %v8009_v61  ;;  %v2410_v9 = vsel %vm1464_vm8, %v2405_v25, %v2409_v50  ;;  %v2739_v37 = vrot.slane %v5618_v6, 1  ;;  %v3175_v25 = vld [vmem:[#allocation2 + $0x118] sm:$0xf] }
 0x19c   :  { %5241 = vmatmul.mubr.bf16.gmra.mxu0 %v2734_v36  ;;  %v5622_v36 = vld [vmem:[#allocation2 + $0x4c] sm:$0xff]  }
 0x19d   :  { %5244 = vmatprep.mubr.msk.bf16.mxu0 %vm5677_vm0, %v8009_v61  ;;  %v2740_v26 = vsel %vm2723_vm10, %v2737_v13, %v2739_v37  ;;  %v2741_v55 = vrot.slane %v5622_v36, 1  ;;  %v4495_v36 = vcombine.low %v3175_v25, %v7099_v8  ;;  %v2435_v8 = vshrl.u32 %v7108_v19, 16 }
 0x19e   :  { %5283 = vmatpush3.bf16.msra.mxu1 %v5628_v32  ;;  %v2417_v32 = vrot.slane %v2415_v17, 1 }
 0x19f   :  { %5388 = vmatprep.subr.bf16.mxu1 %v8009_v61  ;;  %v2742_v29 = vsel %vm2723_vm10, %v2739_v37, %v2741_v55  ;;  %v3267_v25 = vshrl.u32 %v4495_v36, 16 }
 0x1a0   :  { %v2421_v41 = vor.u32 %v2419_v51, %v2417_v32 }
 0x1a1   :  { %5181 = vmatmul.mubr.bf16.gmra.mxu1 %v2394_v24  ;;  %v2418_v24 = vsel %vm1464_vm8, %v2413_v42, %v2417_v32  ;;  %v2433_v32 = vrot.slane %v2431_v23, 1 }
 0x1a2   :  { %5184 = vmatprep.mubr.msk.bf16.mxu1 %vm5677_vm0, %v8009_v61 }
 0x1a3   :  { %v2437_v23 = vor.u32 %v2435_v8, %v2433_v32 }
 0x1a4   :  { %5245 = vmatmul.mubr.bf16.gmra.mxu0 %v2736_v33  ;;  %v2423_v33 = vshll.u32 %v7092_v30, 16 }
 0x1a5   :  { %5248 = vmatprep.mubr.msk.bf16.mxu0 %vm5677_vm0, %v8009_v61 }
 0x1a6   :  { %v2425_v13 = vrot.slane %v2423_v33, 1  ;;  %v3269_v33 = vshll.u32 %v4495_v36, 16 }
 0x1a8   :  { %v3271_v56 = vrot.slane %v3269_v33, 1 }
 0x1a9   :  { %5185 = vmatmul.mubr.bf16.gmra.mxu1 %v2402_v35 }
 0x1aa   :  { %5188 = vmatprep.mubr.msk.bf16.mxu1 %vm5677_vm0, %v8009_v61 }
 0x1ac   :  { %5249 = vmatmul.mubr.bf16.gmra.mxu0 %v2738_v38  ;;  %v2426_v38 = vsel %vm1464_vm8, %v2421_v41, %v2425_v13 }
 0x1ad   :  { %5252 = vmatprep.mubr.msk.bf16.mxu0 %vm5677_vm0, %v8009_v61 }
 0x1b1   :  { %5189 = vmatmul.mubr.bf16.gmra.mxu1 %v2410_v9  ;;  %v2427_v9 = vshrl.u32 %v7092_v30, 16 }
 0x1b2   :  { %5192 = vmatprep.mubr.msk.bf16.mxu1 %vm5677_vm0, %v8009_v61 }
 0x1b3   :  { %v2429_v21 = vor.u32 %v2427_v9, %v2425_v13  ;;  %v3274_v13 = vshll.u32 %v7120_v45, 16 }
 0x1b4   :  { %v7410_v4 = vpop.f32.mrf.mxu0  ;;  %5253 = vmatmul.mubr.bf16.gmra.mxu0 %v2740_v26  ;;  %v2744_v26 = vsel %vm2723_vm10, %v2741_v55, %v2743_v52 }
 0x1b5   :  { %5256 = vmatprep.mubr.msk.bf16.mxu0 %vm5677_vm0, %v8009_v61  ;;  %v2434_v30 = vsel %vm1464_vm8, %v2429_v21, %v2433_v32 }
 0x1b6   :  { %v4986_v22 = vpop.f32.mrf.mxu0 }
 0x1b8   :  { %v7415_v63 = vpop.f32.mrf.mxu0 }
 0x1b9   :  { %5193 = vmatmul.mubr.bf16.gmra.mxu1 %v2418_v24 }
 0x1ba   :  { %5196 = vmatprep.mubr.msk.bf16.mxu1 %vm5677_vm0, %v8009_v61  ;;  %v4987_v60 = vpop.f32.mrf.mxu0 }
 0x1bc   :  { %v7422_v35 = vpop.f32.mrf.mxu0  ;;  %5257 = vmatmul.mubr.bf16.gmra.mxu0 %v2742_v29 }
 0x1bd   :  { %5260 = vmatprep.mubr.msk.bf16.mxu0 %vm5677_vm0, %v8009_v61 }
 0x1be   :  { %v4990_v46 = vpop.f32.mrf.mxu0 }
 0x1c0   :  { %v7430_v6 = vpop.f32.mrf.mxu0 }
 0x1c1   :  { %v7428_v50 = vpop.f32.mrf.mxu1  ;;  %5197 = vmatmul.mubr.bf16.gmra.mxu1 %v2426_v38 }
 0x1c2   :  { %5200 = vmatprep.mubr.msk.bf16.mxu1 %vm5677_vm0, %v8009_v61  ;;  %v4991_v17 = vpop.f32.mrf.mxu0 }
 0x1c3   :  { %v5010_v37 = vpop.f32.mrf.mxu1  ;;  %v3272_v17 = vor.u32 %v3271_v56, %v3267_v25 }
 0x1c4   :  { %v7439_v22 = vpop.f32.mrf.mxu0  ;;  %5261 = vmatmul.mubr.bf16.gmra.mxu0 %v2744_v26  ;;  %v3276_v26 = vrot.slane %v3274_v13, 1  ;;  %v5637_v13 = vld [vmem:[%s7950_s4 + $0x230] sm:$0xff]  }
 0x1c5   :  { %v7437_v42 = vpop.f32.mrf.mxu1  ;;  %5264 = vmatprep.mubr.msk.bf16.mxu0 %vm5677_vm0, %v8009_v61 }
 0x1c6   :  { %v4994_v51 = vpop.f32.mrf.mxu0  ;;  %v3277_v36 = vsel %vm1464_vm8, %v3272_v17, %v3276_v26 }
 0x1c7   :  { %v5011_v24 = vpop.f32.mrf.mxu1 }
 0x1c8   :  { %v7446_v55 = vpop.f32.mrf.mxu0 }
 0x1c9   :  { %v7444_v60 = vpop.f32.mrf.mxu1  ;;  %5201 = vmatmul.mubr.bf16.gmra.mxu1 %v2434_v30  ;;  %v3282_v30 = vshll.u32 %v7129_v5, 16 }
 0x1ca   :  { %5204 = vmatprep.mubr.msk.bf16.mxu1 %vm5677_vm0, %v8009_v61  ;;  %v4995_v41 = vpop.f32.mrf.mxu0 }
 0x1cb   :  { %v5014_v29 = vpop.f32.mrf.mxu1  ;;  %v3284_v25 = vrot.slane %v3282_v30, 1 }
 0x1cc   :  { %v7454_v38 = vpop.f32.mrf.mxu0  ;;  %5265 = vmatmul.mubr.bf16.gmra.mxu0 %v2743_v52  ;;  %v5634_v52 = vld [vmem:[%s7950_s4 + $0x238] sm:$0xff]  }
 0x1cd   :  { %v7452_v46 = vpop.f32.mrf.mxu1  ;;  %5344 = vmatprep.mubr.msk.bf16.mxu0 %vm5677_vm0, %v8009_v61  ;;  %v5633_v29 = vld [vmem:[%s7950_s4 + $0x1f8] sm:$0xff]  }
 0x1ce   :  { %v4998_v37 = vpop.f32.mrf.mxu0 }
 0x1cf   :  { %v5015_v9 = vpop.f32.mrf.mxu1 }
 0x1d0   :  { %v7460_v24 = vpop.f32.mrf.mxu0 }
 0x1d1   :  { %v7458_v21 = vpop.f32.mrf.mxu1  ;;  %5205 = vmatmul.mubr.bf16.gmra.mxu1 %v2437_v23  ;;  %v3278_v23 = vshrl.u32 %v7120_v45, 16  ;;  %v5640_v45 = vld [vmem:[%s7950_s4 + $0x228] sm:$0xff]  }
 0x1d2   :  { %5284 = vmatprep.mubr.msk.bf16.mxu1 %vm5677_vm0, %v8009_v61  ;;  %v4999_v51 = vpop.f32.mrf.mxu0 }
 0x1d3   :  { %v5018_v32 = vpop.f32.mrf.mxu1  ;;  %v3280_v17 = vor.u32 %v3278_v23, %v3276_v26  ;;  %v3286_v23 = vshrl.u32 %v7129_v5, 16 }
 0x1d4   :  { %v7471_v8 = vpop.f32.mrf.mxu0  ;;  %5345 = vmatmul.mubr.bf16.vlgmr.msra.gmra.mxu0 %v3277_v36  ;;  %v3290_v36 = vshll.u32 %v7133_v10, 16 }
 0x1d5   :  { %v7469_v33 = vpop.f32.mrf.mxu1  ;;  %5449 = vmatpush3.bf16.msra.mxu0 %v5634_v52  ;;  %5348 = vmatprep.mubr.msk.bf16.mxu0 %vm5677_vm0, %v8009_v61  ;;  %v5636_v52 = vld [vmem:[%s7950_s4 + $0x1f0] sm:$0xff]  }
 0x1d6   :  { %v5002_v56 = vpop.f32.mrf.mxu0  ;;  %5450 = vmatprep.subr.bf16.mxu0 %v8009_v61 }
 0x1d7   :  { %v5019_v41 = vpop.f32.mrf.mxu1 }
 0x1d8   :  { %v1680_v37 = vpop.f32.mrf.mxu0 }
 0x1d9   :  { %v7483_v9 = vpop.f32.mrf.mxu1  ;;  %5285 = vmatmul.mubr.bf16.vlgmr.msra.gmra.mxu1 %v7042_v39  ;;  %5451 = vmatpush3.bf16.msra.mxu0 %v5637_v13  ;;  %v3285_v39 = vsel %vm1464_vm8, %v3280_v17, %v3284_v25  ;;  %v5644_v13 = vld [vmem:[%s7950_s4 + $0x220] sm:$0xff]   ;;  %v3292_v37 = vrot.slane %v3290_v36, 1  ;;  %v3298_v36 = vshll.u32 %v7141_v12, 16 }
 0x1da   :  { %5389 = vmatpush3.bf16.msra.mxu1 %v5633_v29  ;;  %5288 = vmatprep.mubr.msk.bf16.mxu1 %vm5677_vm0, %v8009_v61  ;;  %v5003_v51 = vpop.f32.mrf.mxu0  ;;  %v5639_v29 = vld [vmem:[%s7950_s4 + $0x1e8] sm:$0xff]  }
 0x1db   :  { %v5022_v32 = vpop.f32.mrf.mxu1  ;;  %5390 = vmatprep.subr.bf16.mxu1 %v8009_v61  ;;  %5452 = vmatprep.subr.bf16.mxu0 %v8009_v61  ;;  %v5643_v51 = vld [vmem:[%s7950_s4 + $0x1e0] sm:$0xff]  }
 0x1dc   :  { %v7498_v30 = vpop.f32.mrf.mxu0  ;;  %5349 = vmatmul.mubr.bf16.gmra.mxu0 %v3285_v39  ;;  %v3288_v32 = vor.u32 %v3286_v23, %v3284_v25  ;;  %v3294_v23 = vshrl.u32 %v7133_v10, 16 }
 0x1dd   :  { %v1719_v26 = vpop.f32.mrf.mxu1  ;;  %5352 = vmatprep.mubr.msk.bf16.mxu0 %vm5677_vm0, %v8009_v61  ;;  %5453 = vmatpush3.bf16.msra.mxu0 %v5640_v45 }
 0x1de   :  { %5391 = vmatpush3.bf16.msra.mxu1 %v5636_v52  ;;  %v5006_v56 = vpop.f32.mrf.mxu0  ;;  %5454 = vmatprep.subr.bf16.mxu0 %v8009_v61  ;;  %v3293_v5 = vsel %vm1464_vm8, %v3288_v32, %v3292_v37 }
 0x1df   :  { %v5023_v41 = vpop.f32.mrf.mxu1  ;;  %5392 = vmatprep.subr.bf16.mxu1 %v8009_v61 }
 0x1e0   :  { %v7512_v52 = vpop.f32.mrf.mxu0 }
 0x1e1   :  { %v1723_v17 = vpop.f32.mrf.mxu1  ;;  %5289 = vmatmul.mubr.bf16.gmra.mxu1 %v7051_v20  ;;  %5455 = vmatpush3.bf16.msra.mxu0 %v5644_v13  ;;  %v5647_v20 = vld [vmem:[%s7950_s4 + $0x218] sm:$0xff]   ;;  %v5651_v13 = vld [vmem:[%s7950_s4 + $0x210] sm:$0xff]  }
 0x1e2   :  { %5292 = vmatprep.mubr.msk.bf16.mxu1 %vm5677_vm0, %v8009_v61  ;;  %5393 = vmatpush3.bf16.msra.mxu1 %v5639_v29  ;;  %v5007_v39 = vpop.f32.mrf.mxu0  ;;  %v5646_v29 = vld [vmem:[%s7950_s4 + $0x1d8] sm:$0xff]   ;;  %v3300_v17 = vrot.slane %v3298_v36, 1 }
 0x1e3   :  { %v5026_v45 = vpop.f32.mrf.mxu1  ;;  %5394 = vmatprep.subr.bf16.mxu1 %v8009_v61  ;;  %5456 = vmatprep.subr.bf16.mxu0 %v8009_v61  ;;  %v3296_v39 = vor.u32 %v3294_v23, %v3292_v37 }
 0x1e4   :  { %v2158_v26 = vpop.f32.mrf.mxu0  ;;  %5353 = vmatmul.mubr.bf16.gmra.mxu0 %v3293_v5 }
 0x1e5   :  { %v1725_v25 = vpop.f32.mrf.mxu1  ;;  %5356 = vmatprep.mubr.msk.bf16.mxu0 %vm5677_vm0, %v8009_v61  ;;  %5457 = vmatpush3.bf16.msra.mxu0 %v5647_v20  ;;  %v5650_v20 = vld [vmem:[%s7950_s4 + $0x1d0] sm:$0xff]  }
 0x1e6   :  { %5395 = vmatpush3.bf16.msra.mxu1 %v5643_v51  ;;  %v5106_v56 = vpop.f32.mrf.mxu0  ;;  %5458 = vmatprep.subr.bf16.mxu0 %v8009_v61 }
 0x1e7   :  { %v5027_v41 = vpop.f32.mrf.mxu1  ;;  %5396 = vmatprep.subr.bf16.mxu1 %v8009_v61  ;;  %v3306_v56 = vshll.u32 %v7151_v2, 16 }
 0x1e8   :  { %v2161_v51 = vpop.f32.mrf.mxu0  ;;  %v3302_v41 = vshrl.u32 %v7141_v12, 16 }
 0x1e9   :  { %v1874_v32 = vpop.f32.mrf.mxu1  ;;  %5293 = vmatmul.mubr.bf16.gmra.mxu1 %v7073_v7  ;;  %5459 = vmatpush3.bf16.msra.mxu0 %v5651_v13  ;;  %v5654_v7 = vld [vmem:[%s7950_s4 + $0x208] sm:$0xff]  }
 0x1ea   :  { %v1875_v45 = vadd.f32 %v1874_v32, %v7410_v4  ;;  %5296 = vmatprep.mubr.msk.bf16.mxu1 %vm5677_vm0, %v8009_v61  ;;  %5397 = vmatpush3.bf16.msra.mxu1 %v5646_v29  ;;  %v5107_v10 = vpop.f32.mrf.mxu0  ;;  %v3301_v4 = vsel %vm1464_vm8, %v3296_v39, %v3300_v17  ;;  %v5653_v13 = vld [vmem:[%s7950_s4 + $0x1c8] sm:$0xff]   ;;  %v3304_v32 = vor.u32 %v3302_v41, %v3300_v17 }
 0x1eb   :  { %v5046_v5 = vpop.f32.mrf.mxu1  ;;  %5398 = vmatprep.subr.bf16.mxu1 %v8009_v61  ;;  %5460 = vmatprep.subr.bf16.mxu0 %v8009_v61  ;;  %v5656_v10 = vld [vmem:[%s7950_s4 + $0x1c0] sm:$0xff]  }
 0x1ec   :  { %v7550_v36 = vadd.f32 %v2158_v26, %v1875_v45  ;;  %v2166_v25 = vpop.f32.mrf.mxu0  ;;  %5357 = vmatmul.mubr.bf16.gmra.mxu0 %v3301_v4  ;;  %v3308_v5 = vrot.slane %v3306_v56, 1 }
 0x1ed   :  { %v1877_v37 = vpop.f32.mrf.mxu1  ;;  %5360 = vmatprep.mubr.msk.bf16.mxu0 %vm5677_vm0, %v8009_v61  ;;  %5461 = vmatpush3.bf16.msra.mxu0 %v5654_v7 }
 0x1ee   :  { %v1878_v29 = vadd.f32 %v1877_v37, %v7415_v63  ;;  %5399 = vmatpush3.bf16.msra.mxu1 %v5650_v20  ;;  %v5110_v26 = vpop.f32.mrf.mxu0  ;;  %v5657_v63 = vld [vmem:[%s7950_s4 + $0x200] sm:$0xff]   ;;  %5462 = vmatprep.subr.bf16.mxu0 %v8009_v61 }
 0x1ef   :  { %v5047_v23 = vpop.f32.mrf.mxu1  ;;  %5400 = vmatprep.subr.bf16.mxu1 %v8009_v61 }
 0x1f0   :  { %v7565_v12 = vadd.f32 %v2161_v51, %v1878_v29  ;;  %v2169_v39 = vpop.f32.mrf.mxu0  ;;  %v3309_v51 = vsel %vm1464_vm8, %v3304_v32, %v3308_v5 }
 0x1f1   :  { %v1882_v45 = vpop.f32.mrf.mxu1  ;;  %5297 = vmatmul.mubr.bf16.gmra.mxu1 %v7080_v43  ;;  %5463 = vmatpush3.bf16.msra.mxu0 %v5657_v63  ;;  %v3314_v43 = vshll.u32 %v7158_v14, 16 }
 0x1f2   :  { %v1883_v20 = vadd.f32 %v1882_v45, %v7422_v35  ;;  %5300 = vmatprep.mubr.msk.bf16.mxu1 %vm5677_vm0, %v8009_v61  ;;  %5401 = vmatpush3.bf16.msra.mxu1 %v5653_v13  ;;  %v5111_v7 = vpop.f32.mrf.mxu0  ;;  %v3310_v13 = vshrl.u32 %v7151_v2, 16 }
 0x1f3   :  { %v5050_v17 = vpop.f32.mrf.mxu1  ;;  %5402 = vmatprep.subr.bf16.mxu1 %v8009_v61  ;;  %v3316_v23 = vrot.slane %v3314_v43, 1 }
 0x1f4   :  { %v7577_v4 = vadd.f32 %v2166_v25, %v1883_v20  ;;  %v2174_v37 = vpop.f32.mrf.mxu0  ;;  %5361 = vmatmul.mubr.bf16.gmra.mxu0 %v3309_v51  ;;  %v3322_v17 = vshll.u32 %v7169_v16, 16 }
 0x1f5   :  { %v1885_v35 = vpop.f32.mrf.mxu1  ;;  %5364 = vmatprep.mubr.msk.bf16.mxu0 %vm5677_vm0, %v8009_v61 }
 0x1f6   :  { %v1886_v29 = vadd.f32 %v1885_v35, %v7430_v6  ;;  %5403 = vmatpush3.bf16.msra.mxu1 %v5656_v10  ;;  %v5114_v56 = vpop.f32.mrf.mxu0  ;;  %v3312_v6 = vor.u32 %v3310_v13, %v3308_v5  ;;  %v3318_v5 = vshrl.u32 %v7158_v14, 16  ;;  %v3324_v43 = vrot.slane %v3322_v17, 1 }
 0x1f7   :  { %v5051_v41 = vpop.f32.mrf.mxu1 }
 0x1f8   :  { %v7583_v26 = vadd.f32 %v2169_v39, %v1886_v29  ;;  %v2177_v25 = vpop.f32.mrf.mxu0  ;;  %v3317_v10 = vsel %vm1464_vm8, %v3312_v6, %v3316_v23 }
 0x1f9   :  { %v1890_v63 = vpop.f32.mrf.mxu1  ;;  %5301 = vmatmul.mubr.bf16.gmra.mxu1 %v7083_v31 }
 0x1fa   :  { %v1891_v32 = vadd.f32 %v1890_v63, %v7439_v22  ;;  %5304 = vmatprep.mubr.msk.bf16.mxu1 %vm5677_vm0, %v8009_v61  ;;  %v5115_v20 = vpop.f32.mrf.mxu0 }
 0x1fb   :  { %v5054_v45 = vpop.f32.mrf.mxu1 }
 0x1fc   :  { %v7591_v2 = vadd.f32 %v2174_v37, %v1891_v32  ;;  %v2182_v7 = vpop.f32.mrf.mxu0  ;;  %5365 = vmatmul.mubr.bf16.gmra.mxu0 %v3317_v10  ;;  %v3330_v32 = vshll.u32 %v7176_v40, 16 }
 0x1fd   :  { %v1893_v39 = vpop.f32.mrf.mxu1  ;;  %5368 = vmatprep.mubr.msk.bf16.mxu0 %vm5677_vm0, %v8009_v61 }
 0x1fe   :  { %v1894_v31 = vadd.f32 %v1893_v39, %v7446_v55  ;;  %v5118_v51 = vpop.f32.mrf.mxu0  ;;  %v3320_v55 = vor.u32 %v3318_v5, %v3316_v23  ;;  %v3326_v23 = vshrl.u32 %v7169_v16, 16  ;;  %v3332_v20 = vrot.slane %v3330_v32, 1 }
 0x1ff   :  { %v5055_v22 = vpop.f32.mrf.mxu1 }
 0x200   :  { %v7597_v35 = vadd.f32 %v2177_v25, %v1894_v31  ;;  %v2185_v37 = vpop.f32.mrf.mxu0  ;;  %v3325_v63 = vsel %vm1464_vm8, %v3320_v55, %v3324_v43 }
 0x201   :  { %v1898_v29 = vpop.f32.mrf.mxu1  ;;  %5305 = vmatmul.mubr.bf16.gmra.mxu1 %v7105_v54 }
 0x202   :  { %v1899_v41 = vadd.f32 %v1898_v29, %v7454_v38  ;;  %5308 = vmatprep.mubr.msk.bf16.mxu1 %vm5677_vm0, %v8009_v61  ;;  %v5119_v13 = vpop.f32.mrf.mxu0 }
 0x203   :  { %v5058_v56 = vpop.f32.mrf.mxu1 }
 0x204   :  { %v7605_v14 = vadd.f32 %v2182_v7, %v1899_v41  ;;  %v2190_v6 = vpop.f32.mrf.mxu0  ;;  %5369 = vmatmul.mubr.bf16.gmra.mxu0 %v3325_v63 }
 0x205   :  { %v1901_v25 = vpop.f32.mrf.mxu1  ;;  %5372 = vmatprep.mubr.msk.bf16.mxu0 %vm5677_vm0, %v8009_v61 }
 0x206   :  { %v1902_v54 = vadd.f32 %v1901_v25, %v7460_v24  ;;  %v5122_v45 = vpop.f32.mrf.mxu0  ;;  %v3328_v24 = vor.u32 %v3326_v23, %v3324_v43 }
 0x207   :  { %v5059_v38 = vpop.f32.mrf.mxu1 }
 0x208   :  { %v7611_v10 = vadd.f32 %v2185_v37, %v1902_v54  ;;  %v2193_v40 = vpop.f32.mrf.mxu0  ;;  %v3333_v22 = vsel %vm1464_vm8, %v3328_v24, %v3332_v20  ;;  %v5673_v54 = vld [vmem:[#allocation2 + $0x168] ss:$0 sps:$4 sm:$0x33]  }
 0x209   :  { %v1906_v17 = vpop.f32.mrf.mxu1  ;;  %5309 = vmatmul.mubr.bf16.gmra.mxu1 %v7111_v0  ;;  %v5672_v0 = vld [vmem:[#allocation2 + $0x158] sm:$0xff]   ;;  %v3346_v38 = vshll.u32 %v5673_v54, 16 }
 0x20a   :  { %v1907_v39 = vadd.f32 %v1906_v17, %v7471_v8  ;;  %5312 = vmatprep.mubr.msk.bf16.mxu1 %vm5677_vm0, %v8009_v61  ;;  %v5123_v31 = vpop.f32.mrf.mxu0  ;;  %v3334_v29 = vshrl.u32 %v5672_v0, 16  ;;  %v3338_v8 = vshll.u32 %v7187_v49, 16 }
 0x20b   :  { %v5062_v7 = vpop.f32.mrf.mxu1  ;;  %v3348_v24 = vrot.slane %v3346_v38, 1 }
 0x20c   :  { %v7618_v51 = vadd.f32 %v2190_v6, %v1907_v39  ;;  %v2197_v5 = vpop.f32.mrf.mxu0  ;;  %5373 = vmatmul.mubr.bf16.gmra.mxu0 %v3333_v22  ;;  %v3336_v55 = vor.u32 %v3334_v29, %v3332_v20  ;;  %v3340_v63 = vrot.slane %v3338_v8, 1 }
 0x20d   :  { %v1909_v16 = vpop.f32.mrf.mxu1  ;;  %5376 = vmatprep.mubr.msk.bf16.mxu0 %vm5677_vm0, %v8009_v61 }
 0x20e   :  { %v5126_v41 = vpop.f32.mrf.mxu0  ;;  %v3341_v6 = vsel %vm1464_vm8, %v3336_v55, %v3340_v63 }
 0x20f   :  { %v5063_v37 = vpop.f32.mrf.mxu1  ;;  %v3350_v41 = vshrl.u32 %v5673_v54, 16 }
 0x210   :  { %v2200_v56 = vpop.f32.mrf.mxu0 }
 0x211   :  { %v1913_v43 = vpop.f32.mrf.mxu1  ;;  %5313 = vmatmul.mubr.bf16.gmra.mxu1 %v7136_v28 }
 0x212   :  { %v1914_v13 = vadd.f32 %v1913_v43, %v7498_v30  ;;  %5316 = vmatprep.mubr.msk.bf16.mxu1 %vm5677_vm0, %v8009_v61  ;;  %v5127_v25 = vpop.f32.mrf.mxu0  ;;  %v5674_v30 = vld [vmem:[#allocation2 + $0x160] sm:$0xff]  }
 0x213   :  { %v5066_v32 = vpop.f32.mrf.mxu1  ;;  %v3342_v20 = vshrl.u32 %v5674_v30, 16 }
 0x214   :  { %v7628_v49 = vadd.f32 %v2197_v5, %v1914_v13  ;;  %v2205_v23 = vpop.f32.mrf.mxu0  ;;  %5377 = vmatmul.mubr.bf16.gmra.mxu0 %v3341_v6 }
 0x215   :  { %v1916_v45 = vpop.f32.mrf.mxu1  ;;  %5380 = vmatprep.mubr.msk.bf16.mxu0 %vm5677_vm0, %v8009_v61  ;;  %v3344_v39 = vor.u32 %v3342_v20, %v3340_v63  ;;  %v3352_v63 = vor.u32 %v3350_v41, %v3348_v24 }
 0x216   :  { %v1917_v28 = vadd.f32 %v1916_v45, %v7512_v52  ;;  %v5130_v40 = vpop.f32.mrf.mxu0 }
 0x217   :  { %v5067_v17 = vpop.f32.mrf.mxu1  ;;  %v3349_v0 = vsel %vm1464_vm8, %v3344_v39, %v3348_v24  ;;  %v5659_v40 = vld [vmem:[#allocation2 + $0xbc] sm:$0xfe]  }
 0x218   :  { %v7633_v7 = vadd.f32 %v2200_v56, %v1917_v28  ;;  %v2208_v22 = vpop.f32.mrf.mxu0  ;;  %v5660_v28 = vld [vmem:[#allocation2 + $0xc4] sm:$0xff]   ;;  %v3638_v19 = vrot.slane %v5659_v40, 1 }
 0x219   :  { %v1921_v31 = vpop.f32.mrf.mxu1  ;;  %5317 = vmatmul.mubr.bf16.gmra.mxu1 %v7139_v18  ;;  %v3639_v24 = vrot.slane %v5660_v28, 1 }
 0x21a   :  { %v1922_v16 = vadd.f32 %v1921_v31, %v7428_v50  ;;  %5320 = vmatprep.mubr.msk.bf16.mxu1 %vm5677_vm0, %v8009_v61  ;;  %v5131_v5 = vpop.f32.mrf.mxu0 }
 0x21b   :  { %v5070_v52 = vpop.f32.mrf.mxu1  ;;  %v3640_v5 = vsel %vm2723_vm10, %v3638_v19, %v3639_v24 }
 0x21c   :  { %v7640_v29 = vadd.f32 %v2205_v23, %v1922_v16  ;;  %v2213_v37 = vpop.f32.mrf.mxu0  ;;  %5381 = vmatmul.mubr.bf16.gmra.mxu0 %v3349_v0  ;;  %v5661_v0 = vld [vmem:[#allocation2 + $0xcc] sm:$0xff]  }
 0x21d   :  { %v1924_v8 = vpop.f32.mrf.mxu1  ;;  %5384 = vmatprep.mubr.msk.bf16.mxu0 %vm5677_vm0, %v8009_v61 }
 0x21e   :  { %v1925_v55 = vadd.f32 %v1924_v8, %v7437_v42  ;;  %v5134_v50 = vpop.f32.mrf.mxu0 }
 0x21f   :  { %v5071_v18 = vpop.f32.mrf.mxu1 }
 0x220   :  { %v7645_v43 = vadd.f32 %v2208_v22, %v1925_v55  ;;  %v2216_v13 = vpop.f32.mrf.mxu0  ;;  %v3641_v18 = vrot.slane %v5661_v0, 1 }
 0x221   :  { %v1929_v56 = vpop.f32.mrf.mxu1  ;;  %5321 = vmatmul.mubr.bf16.gmra.mxu1 %v7163_v3 }
 0x222   :  { %v1930_v32 = vadd.f32 %v1929_v56, %v7444_v60  ;;  %5324 = vmatprep.mubr.msk.bf16.mxu1 %vm5677_vm0, %v8009_v61  ;;  %v5135_v6 = vpop.f32.mrf.mxu0 }
 0x223   :  { %v5074_v25 = vpop.f32.mrf.mxu1 }
 0x224   :  { %v7651_v42 = vadd.f32 %v2213_v37, %v1930_v32  ;;  %v2221_v38 = vpop.f32.mrf.mxu0  ;;  %5385 = vmatmul.mubr.bf16.gmra.mxu0 %v3352_v63  ;;  %v3642_v25 = vsel %vm2723_vm10, %v3639_v24, %v3641_v18 }
 0x225   :  { %v1932_v54 = vpop.f32.mrf.mxu1  ;;  %5464 = vmatprep.mubr.msk.bf16.mxu0 %vm5677_vm0, %v8009_v61 }
 0x226   :  { %v1933_v45 = vadd.f32 %v1932_v54, %v7452_v46  ;;  %v5138_v23 = vpop.f32.mrf.mxu0 }
 0x227   :  { %v5075_v3 = vpop.f32.mrf.mxu1 }
 0x228   :  { %v7656_v30 = vadd.f32 %v2216_v13, %v1933_v45  ;;  %v2224_v20 = vpop.f32.mrf.mxu0 }
 0x229   :  { %v1937_v60 = vpop.f32.mrf.mxu1  ;;  %5325 = vmatmul.mubr.bf16.gmra.mxu1 %v2979_v15 }
 0x22a   :  { %v1938_v17 = vadd.f32 %v1937_v60, %v7458_v21  ;;  %5404 = vmatprep.mubr.msk.bf16.mxu1 %vm5677_vm0, %v8009_v61  ;;  %v5139_v39 = vpop.f32.mrf.mxu0 }
 0x22b   :  { %v5078_v46 = vpop.f32.mrf.mxu1 }
 0x22c   :  { %v7663_v31 = vadd.f32 %v2221_v38, %v1938_v17  ;;  %v2229_v16 = vpop.f32.mrf.mxu0  ;;  %5465 = vmatmul.mubr.bf16.vlgmr.msra.gmra.mxu0 %v7172_v44  ;;  %v5663_v17 = vld [vmem:[#allocation2 + $0xdc] sm:$0xff]  }
 0x22d   :  { %v1940_v22 = vpop.f32.mrf.mxu1  ;;  %5468 = vmatprep.mubr.msk.bf16.mxu0 %vm5677_vm0, %v8009_v61 }
 0x22e   :  { %v1941_v52 = vadd.f32 %v1940_v22, %v7469_v33  ;;  %v5142_v21 = vpop.f32.mrf.mxu0 }
 0x22f   :  { %v5079_v15 = vpop.f32.mrf.mxu1 }
 0x230   :  { %v7670_v8 = vadd.f32 %v2224_v20, %v1941_v52  ;;  %v2232_v41 = vpop.f32.mrf.mxu0 }
 0x231   :  { %v1945_v37 = vpop.f32.mrf.mxu1  ;;  %5405 = vmatmul.mubr.bf16.vlgmr.msra.gmra.mxu1 %v3640_v5 }
 0x232   :  { %v1946_v55 = vadd.f32 %v1945_v37, %v7483_v9  ;;  %5408 = vmatprep.mubr.msk.bf16.mxu1 %vm5677_vm0, %v8009_v61  ;;  %v5143_v33 = vpop.f32.mrf.mxu0  ;;  %v5662_v9 = vld [vmem:[#allocation2 + $0xd4] sm:$0xff]  }
 0x233   :  { %v5082_v44 = vpop.f32.mrf.mxu1  ;;  %v3643_v3 = vrot.slane %v5662_v9, 1  ;;  %v5665_v9 = vld [vmem:[#allocation2 + $0xec] sm:$0xff]  }
 0x234   :  { %v7675_v50 = vadd.f32 %v2229_v16, %v1946_v55  ;;  %v2236_v13 = vpop.f32.mrf.mxu0  ;;  %5469 = vmatmul.mubr.bf16.gmra.mxu0 %v7179_v47  ;;  %v3645_v16 = vrot.slane %v5663_v17, 1 }
 0x235   :  { %v1948_v56 = vpop.f32.mrf.mxu1  ;;  %5472 = vmatprep.mubr.msk.bf16.mxu0 %vm5677_vm0, %v8009_v61  ;;  %v3644_v20 = vsel %vm2723_vm10, %v3641_v18, %v3643_v3 }
 0x236   :  { %v5146_v32 = vpop.f32.mrf.mxu0 }
 0x237   :  { %v5083_v63 = vpop.f32.mrf.mxu1 }
 0x238   :  { %v2238_v54 = vpop.f32.mrf.mxu0 }
 0x239   :  { %v1952_v6 = vpop.f32.mrf.mxu1  ;;  %5409 = vmatmul.mubr.bf16.gmra.mxu1 %v3642_v25 }
 0x23a   :  { %5412 = vmatprep.mubr.msk.bf16.mxu1 %vm5677_vm0, %v8009_v61  ;;  %v5147_v45 = vpop.f32.mrf.mxu0 }
 0x23b   :  { %v5086_v38 = vpop.f32.mrf.mxu1 }
 0x23c   :  { %v2838_v28 = vpop.f32.mrf.mxu0  ;;  %5473 = vmatmul.mubr.bf16.gmra.mxu0 %v7190_v53 }
 0x23d   :  { %v1954_v23 = vpop.f32.mrf.mxu1  ;;  %5476 = vmatprep.mubr.msk.bf16.mxu0 %vm5677_vm0, %v8009_v61 }
 0x23e   :  { %v5226_v60 = vpop.f32.mrf.mxu0 }
 0x23f   :  { %v5087_v47 = vpop.f32.mrf.mxu1 }
 0x240   :  { %v2841_v46 = vpop.f32.mrf.mxu0 }
 0x241   :  { %v2531_v40 = vpop.f32.mrf.mxu1  ;;  %5413 = vmatmul.mubr.bf16.gmra.mxu1 %v3644_v20 }
 0x242   :  { %v2614_v39 = vadd.f32 %v2531_v40, %v7550_v36  ;;  %5416 = vmatprep.mubr.msk.bf16.mxu1 %vm5677_vm0, %v8009_v61  ;;  %v5227_v22 = vpop.f32.mrf.mxu0  ;;  %v3646_v36 = vsel %vm2723_vm10, %v3643_v3, %v3645_v16  ;;  %v3649_v3 = vrot.slane %v5665_v9, 1  ;;  %v5666_v40 = vld [vmem:[#allocation2 + $0xf4] sm:$0xff]  }
 0x243   :  { %v5166_v24 = vpop.f32.mrf.mxu1 }
 0x244   :  { %v7690_v53 = vadd.f32 %v2838_v28, %v2614_v39  ;;  %v2846_v19 = vpop.f32.mrf.mxu0  ;;  %5477 = vmatmul.mubr.bf16.gmra.mxu0 %v7200_v48  ;;  %v5664_v48 = vld [vmem:[#allocation2 + $0xe4] sm:$0xff]  }
 0x245   :  { %v2534_v52 = vpop.f32.mrf.mxu1  ;;  %5480 = vmatprep.mubr.msk.bf16.mxu0 %vm5677_vm0, %v8009_v61  ;;  %v3647_v63 = vrot.slane %v5664_v48, 1 }
 0x246   :  { %v2615_v15 = vadd.f32 %v2534_v52, %v7565_v12  ;;  %v5230_v5 = vpop.f32.mrf.mxu0 }
 0x247   :  { %v5167_v21 = vpop.f32.mrf.mxu1  ;;  %v3648_v25 = vsel %vm2723_vm10, %v3645_v16, %v3647_v63  ;;  %v3651_v16 = vrot.slane %v5666_v40, 1 }
 0x248   :  { %v7697_v0 = vadd.f32 %v2841_v46, %v2615_v15  ;;  %v2849_v41 = vpop.f32.mrf.mxu0 }
 0x249   :  { %v2539_v37 = vpop.f32.mrf.mxu1  ;;  %5417 = vmatmul.mubr.bf16.gmra.mxu1 %v3646_v36 }
 0x24a   :  { %v2616_v55 = vadd.f32 %v2539_v37, %v7577_v4  ;;  %5420 = vmatprep.mubr.msk.bf16.mxu1 %vm5677_vm0, %v8009_v61  ;;  %v5231_v12 = vpop.f32.mrf.mxu0  ;;  %v5667_v37 = vld [vmem:[#allocation2 + $0xfc] sm:$0xff]  }
 0x24b   :  { %v5170_v44 = vpop.f32.mrf.mxu1  ;;  %v3653_v12 = vrot.slane %v5667_v37, 1 }
 0x24c   :  { %v7702_v33 = vadd.f32 %v2846_v19, %v2616_v55  ;;  %v2854_v56 = vpop.f32.mrf.mxu0  ;;  %5481 = vmatmul.mubr.bf16.gmra.mxu0 %v7207_v11 }
 0x24d   :  { %v2542_v18 = vpop.f32.mrf.mxu1  ;;  %5484 = vmatprep.mubr.msk.bf16.mxu0 %vm5677_vm0, %v8009_v61 }
 0x24e   :  { %v2617_v13 = vadd.f32 %v2542_v18, %v7583_v26  ;;  %v5234_v4 = vpop.f32.mrf.mxu0 }
 0x24f   :  { %v5171_v32 = vpop.f32.mrf.mxu1  ;;  %v3654_v4 = vsel %vm2723_vm10, %v3651_v16, %v3653_v12 }
 0x250   :  { %v7709_v6 = vadd.f32 %v2849_v41, %v2617_v13  ;;  %v2857_v38 = vpop.f32.mrf.mxu0 }
 0x251   :  { %v2547_v54 = vpop.f32.mrf.mxu1  ;;  %5421 = vmatmul.mubr.bf16.gmra.mxu1 %v3648_v25 }
 0x252   :  { %v2618_v45 = vadd.f32 %v2547_v54, %v7591_v2  ;;  %5424 = vmatprep.mubr.msk.bf16.mxu1 %vm5677_vm0, %v8009_v61  ;;  %v5235_v26 = vpop.f32.mrf.mxu0  ;;  %v3650_v2 = vsel %vm2723_vm10, %v3647_v63, %v3649_v3 }
 0x253   :  { %v5174_v11 = vpop.f32.mrf.mxu1 }
 0x254   :  { %v7714_v23 = vadd.f32 %v2854_v56, %v2618_v45  ;;  %v2862_v47 = vpop.f32.mrf.mxu0  ;;  %5485 = vmatmul.mubr.bf16.gmra.mxu0 %v7211_v59 }
 0x255   :  { %v2550_v28 = vpop.f32.mrf.mxu1  ;;  %5488 = vmatprep.mubr.msk.bf16.mxu0 %vm5677_vm0, %v8009_v61 }
 0x256   :  { %v2619_v60 = vadd.f32 %v2550_v28, %v7597_v35  ;;  %v5238_v17 = vpop.f32.mrf.mxu0 }
 0x257   :  { %v5175_v20 = vpop.f32.mrf.mxu1 }
 0x258   :  { %v7721_v46 = vadd.f32 %v2857_v38, %v2619_v60  ;;  %v2865_v24 = vpop.f32.mrf.mxu0  ;;  %v5669_v20 = vld [vmem:[#allocation2 + $0x10c] ss:$0 sps:$4 sm:$0x33]  }
 0x259   :  { %v2555_v39 = vpop.f32.mrf.mxu1  ;;  %5425 = vmatmul.mubr.bf16.gmra.mxu1 %v3650_v2 }
 0x25a   :  { %v2620_v22 = vadd.f32 %v2555_v39, %v7605_v14  ;;  %5428 = vmatprep.mubr.msk.bf16.mxu1 %vm5677_vm0, %v8009_v61  ;;  %v5239_v35 = vpop.f32.mrf.mxu0  ;;  %v3652_v14 = vsel %vm2723_vm10, %v3649_v3, %v3651_v16 }
 0x25b   :  { %v5178_v59 = vpop.f32.mrf.mxu1 }
 0x25c   :  { %v7726_v52 = vadd.f32 %v2862_v47, %v2620_v22  ;;  %v2870_v15 = vpop.f32.mrf.mxu0  ;;  %5489 = vmatmul.mubr.bf16.gmra.mxu0 %v7220_v62 }
 0x25d   :  { %v2558_v19 = vpop.f32.mrf.mxu1  ;;  %5492 = vmatprep.mubr.msk.bf16.mxu0 %vm5677_vm0, %v8009_v61 }
 0x25e   :  { %v2621_v21 = vadd.f32 %v2558_v19, %v7611_v10  ;;  %v5242_v36 = vpop.f32.mrf.mxu0 }
 0x25f   :  { %v5179_v5 = vpop.f32.mrf.mxu1 }
 0x260   :  { %v7733_v41 = vadd.f32 %v2865_v24, %v2621_v21  ;;  %v2873_v48 = vpop.f32.mrf.mxu0  ;;  %v3657_v24 = vrot.slane %v5669_v20, 1 }
 0x261   :  { %v2563_v55 = vpop.f32.mrf.mxu1  ;;  %5429 = vmatmul.mubr.bf16.gmra.mxu1 %v3652_v14 }
 0x262   :  { %v2622_v44 = vadd.f32 %v2563_v55, %v7618_v51  ;;  %5432 = vmatprep.mubr.msk.bf16.mxu1 %vm5677_vm0, %v8009_v61  ;;  %v5243_v10 = vpop.f32.mrf.mxu0  ;;  %v5668_v51 = vld [vmem:[#allocation2 + $0x104] sm:$0xff]  }
 0x263   :  { %v5182_v62 = vpop.f32.mrf.mxu1  ;;  %v3655_v11 = vrot.slane %v5668_v51, 1 }
 0x264   :  { %v7738_v18 = vadd.f32 %v2870_v15, %v2622_v44  ;;  %v2877_v13 = vpop.f32.mrf.mxu0  ;;  %5493 = vmatmul.mubr.bf16.gmra.mxu0 %v7228_v27 }
 0x265   :  { %v2566_v56 = vpop.f32.mrf.mxu1  ;;  %5496 = vmatprep.mubr.msk.bf16.mxu0 %vm5677_vm0, %v8009_v61 }
 0x266   :  { %v5246_v32 = vpop.f32.mrf.mxu0 }
 0x267   :  { %v5183_v63 = vpop.f32.mrf.mxu1 }
 0x268   :  { %v2880_v9 = vpop.f32.mrf.mxu0 }
 0x269   :  { %v2570_v25 = vpop.f32.mrf.mxu1  ;;  %5433 = vmatmul.mubr.bf16.gmra.mxu1 %v3654_v4 }
 0x26a   :  { %v2623_v54 = vadd.f32 %v2570_v25, %v7628_v49  ;;  %5436 = vmatprep.mubr.msk.bf16.mxu1 %vm5677_vm0, %v8009_v61  ;;  %v5247_v45 = vpop.f32.mrf.mxu0  ;;  %v3656_v49 = vsel %vm2723_vm10, %v3653_v12, %v3655_v11 }
 0x26b   :  { %v5186_v38 = vpop.f32.mrf.mxu1 }
 0x26c   :  { %v7747_v27 = vadd.f32 %v2877_v13, %v2623_v54  ;;  %v2885_v3 = vpop.f32.mrf.mxu0  ;;  %5497 = vmatmul.mubr.bf16.gmra.mxu0 %v7234_v58 }
 0x26d   :  { %v2573_v26 = vpop.f32.mrf.mxu1  ;;  %5500 = vmatprep.mubr.msk.bf16.mxu0 %vm5677_vm0, %v8009_v61 }
 0x26e   :  { %v2624_v28 = vadd.f32 %v2573_v26, %v7633_v7  ;;  %v5250_v60 = vpop.f32.mrf.mxu0 }
 0x26f   :  { %v5187_v47 = vpop.f32.mrf.mxu1 }
 0x270   :  { %v7754_v17 = vadd.f32 %v2880_v9, %v2624_v28  ;;  %v2888_v40 = vpop.f32.mrf.mxu0 }
 0x271   :  { %v2578_v2 = vpop.f32.mrf.mxu1  ;;  %5437 = vmatmul.mubr.bf16.gmra.mxu1 %v3656_v49 }
 0x272   :  { %v2625_v39 = vadd.f32 %v2578_v2, %v7640_v29  ;;  %5440 = vmatprep.mubr.msk.bf16.mxu1 %vm5677_vm0, %v8009_v61  ;;  %v5251_v7 = vpop.f32.mrf.mxu0  ;;  %v3658_v29 = vsel %vm2723_vm10, %v3655_v11, %v3657_v24 }
 0x273   :  { %v5190_v58 = vpop.f32.mrf.mxu1 }
 0x274   :  { %v7759_v22 = vadd.f32 %v2885_v3, %v2625_v39  ;;  %v2893_v35 = vpop.f32.mrf.mxu0  ;;  %5501 = vmatmul.mubr.bf16.gmra.mxu0 %v7240_v57 }
 0x275   :  { %v2581_v59 = vpop.f32.mrf.mxu1  ;;  %5504 = vmatprep.mubr.msk.bf16.mxu0 %vm5677_vm0, %v8009_v61 }
 0x276   :  { %v2626_v16 = vadd.f32 %v2581_v59, %v7645_v43  ;;  %v5254_v15 = vpop.f32.mrf.mxu0 }
 0x277   :  { %v5191_v19 = vpop.f32.mrf.mxu1 }
 0x278   :  { %v7766_v21 = vadd.f32 %v2888_v40, %v2626_v16  ;;  %v2896_v36 = vpop.f32.mrf.mxu0 }
 0x279   :  { %v2586_v5 = vpop.f32.mrf.mxu1  ;;  %5441 = vmatmul.mubr.bf16.gmra.mxu1 %v3658_v29 }
 0x27a   :  { %v2627_v14 = vadd.f32 %v2586_v5, %v7651_v42  ;;  %5444 = vmatprep.mubr.msk.bf16.mxu1 %vm5677_vm0, %v8009_v61  ;;  %v5255_v37 = vpop.f32.mrf.mxu0 }
 0x27b   :  { %v5194_v57 = vpop.f32.mrf.mxu1 }
 0x27c   :  { %v7771_v43 = vadd.f32 %v2893_v35, %v2627_v14  ;;  %v2901_v48 = vpop.f32.mrf.mxu0  ;;  %5505 = vmatmul.mubr.bf16.gmra.mxu0 %v3893_v1 }
 0x27d   :  { %v2589_v55 = vpop.f32.mrf.mxu1 }
 0x27e   :  { %v2628_v44 = vadd.f32 %v2589_v55, %v7656_v30  ;;  %v5258_v10 = vpop.f32.mrf.mxu0 }
 0x27f   :  { %v5195_v62 = vpop.f32.mrf.mxu1 }
 0x280   :  { %v7776_v12 = vadd.f32 %v2896_v36, %v2628_v44  ;;  %v2904_v42 = vpop.f32.mrf.mxu0 }
 0x281   :  { %v2594_v56 = vpop.f32.mrf.mxu1  ;;  %5445 = vmatmul.mubr.bf16.gmra.mxu1 %v3657_v24 }
 0x282   :  { %v2629_v61 = vadd.f32 %v2594_v56, %v7663_v31  ;;  %v5259_v63 = vpop.f32.mrf.mxu0 }
 0x283   :  { %v5198_v13 = vpop.f32.mrf.mxu1 }
 0x284   :  { %v7779_v32 = vadd.f32 %v2901_v48, %v2629_v61  ;;  %v2909_v51 = vpop.f32.mrf.mxu0 }
 0x285   :  { %v2597_v4 = vpop.f32.mrf.mxu1 }
 0x286   :  { %v2630_v34 = vadd.f32 %v2597_v4, %v7670_v8  ;;  %v5262_v25 = vpop.f32.mrf.mxu0 }
 0x287   :  { %v5199_v1 = vpop.f32.mrf.mxu1 }
 0x288   :  { %v7782_v30 = vadd.f32 %v2904_v42, %v2630_v34  ;;  %v2912_v54 = vpop.f32.mrf.mxu0 }
 0x289   :  { %v2602_v9 = vpop.f32.mrf.mxu1 }
 0x28a   :  { %v2631_v38 = vadd.f32 %v2602_v9, %v7675_v50  ;;  %v5263_v11 = vpop.f32.mrf.mxu0 }
 0x28b   :  { %v5202_v45 = vpop.f32.mrf.mxu1 }
 0x28c   :  { %v7785_v26 = vadd.f32 %v2909_v51, %v2631_v38  ;;  %v2916_v3 = vpop.f32.mrf.mxu0 }
 0x28d   :  { %v2605_v31 = vpop.f32.mrf.mxu1 }
 0x28e   :  { %v5266_v47 = vpop.f32.mrf.mxu0 }
 0x28f   :  { %v5203_v28 = vpop.f32.mrf.mxu1 }
 0x290   :  { %v2918_v49 = vpop.f32.mrf.mxu0 }
 0x291   :  { %v2609_v60 = vpop.f32.mrf.mxu1 }
 0x292   :  { %v5267_v8 = vpop.f32.mrf.mxu0 }
 0x293   :  { %v5206_v20 = vpop.f32.mrf.mxu1 }
 0x294   :  { %v3446_v40 = vpop.f32.mrf.mxu0 }
 0x295   :  { %v2611_v2 = vpop.f32.mrf.mxu1 }
 0x296   :  { %v5346_v58 = vpop.f32.mrf.mxu0 }
 0x297   :  { %v5207_v39 = vpop.f32.mrf.mxu1 }
 0x298   :  { %v3449_v24 = vpop.f32.mrf.mxu0 }
 0x299   :  { %v3074_v7 = vpop.f32.mrf.mxu1 }
 0x29a   :  { %v3157_v50 = vadd.f32 %v3074_v7, %v7690_v53  ;;  %v5347_v35 = vpop.f32.mrf.mxu0 }
 0x29b   :  { %v5286_v59 = vpop.f32.mrf.mxu1 }
 0x29c   :  { %v7788_v16 = vadd.f32 %v3446_v40, %v3157_v50  ;;  %v3454_v15 = vpop.f32.mrf.mxu0 }
 0x29d   :  { %v3077_v19 = vpop.f32.mrf.mxu1 }
 0x29e   :  { %v3158_v29 = vadd.f32 %v3077_v19, %v7697_v0  ;;  %v5350_v36 = vpop.f32.mrf.mxu0 }
 0x29f   :  { %v5287_v5 = vpop.f32.mrf.mxu1 }
 0x2a0   :  { %v7791_v14 = vadd.f32 %v3449_v24, %v3158_v29  ;;  %v3457_v37 = vpop.f32.mrf.mxu0 }
 0x2a1   :  { %v3082_v57 = vpop.f32.mrf.mxu1 }
 0x2a2   :  { %v3159_v55 = vadd.f32 %v3082_v57, %v7702_v33  ;;  %v5351_v44 = vpop.f32.mrf.mxu0 }
 0x2a3   :  { %v5290_v48 = vpop.f32.mrf.mxu1 }
 0x2a4   :  { %v7794_v62 = vadd.f32 %v3454_v15, %v3159_v55  ;;  %v3462_v10 = vpop.f32.mrf.mxu0 }
 0x2a5   :  { %v3085_v53 = vpop.f32.mrf.mxu1 }
 0x2a6   :  { %v3160_v56 = vadd.f32 %v3085_v53, %v7709_v6  ;;  %v5354_v61 = vpop.f32.mrf.mxu0 }
 0x2a7   :  { %v5291_v42 = vpop.f32.mrf.mxu1 }
 0x2a8   :  { %v7797_v13 = vadd.f32 %v3457_v37, %v3160_v56  ;;  %v3465_v63 = vpop.f32.mrf.mxu0 }
 0x2a9   :  { %v3090_v0 = vpop.f32.mrf.mxu1 }
 0x2aa   :  { %v3161_v4 = vadd.f32 %v3090_v0, %v7714_v23  ;;  %v5355_v34 = vpop.f32.mrf.mxu0 }
 0x2ab   :  { %v5294_v51 = vpop.f32.mrf.mxu1 }
 0x2ac   :  { %v7800_v1 = vadd.f32 %v3462_v10, %v3161_v4  ;;  %v3470_v25 = vpop.f32.mrf.mxu0 }
 0x2ad   :  { %v3093_v33 = vpop.f32.mrf.mxu1 }
 0x2ae   :  { %v3162_v9 = vadd.f32 %v3093_v33, %v7721_v46  ;;  %v5358_v38 = vpop.f32.mrf.mxu0 }
 0x2af   :  { %v5295_v54 = vpop.f32.mrf.mxu1 }
 0x2b0   :  { %v7803_v45 = vadd.f32 %v3465_v63, %v3162_v9  ;;  %v3473_v11 = vpop.f32.mrf.mxu0 }
 0x2b1   :  { %v3098_v6 = vpop.f32.mrf.mxu1 }
 0x2b2   :  { %v3163_v31 = vadd.f32 %v3098_v6, %v7726_v52  ;;  %v5359_v28 = vpop.f32.mrf.mxu0 }
 0x2b3   :  { %v5298_v3 = vpop.f32.mrf.mxu1 }
 0x2b4   :  { %v7806_v47 = vadd.f32 %v3470_v25, %v3163_v31  ;;  %v3478_v60 = vpop.f32.mrf.mxu0 }
 0x2b5   :  { %v3101_v23 = vpop.f32.mrf.mxu1 }
 0x2b6   :  { %v3164_v49 = vadd.f32 %v3101_v23, %v7733_v41  ;;  %v5362_v8 = vpop.f32.mrf.mxu0 }
 0x2b7   :  { %v5299_v20 = vpop.f32.mrf.mxu1 }
 0x2b8   :  { %v7809_v2 = vadd.f32 %v3473_v11, %v3164_v49  ;;  %v3481_v40 = vpop.f32.mrf.mxu0 }
 0x2b9   :  { %v3106_v46 = vpop.f32.mrf.mxu1 }
 0x2ba   :  { %v3165_v39 = vadd.f32 %v3106_v46, %v7738_v18  ;;  %v5363_v7 = vpop.f32.mrf.mxu0 }
 0x2bb   :  { %v5302_v58 = vpop.f32.mrf.mxu1 }
 0x2bc   :  { %v7812_v24 = vadd.f32 %v3478_v60, %v3165_v39  ;;  %v3485_v50 = vpop.f32.mrf.mxu0 }
 0x2bd   :  { %v3109_v52 = vpop.f32.mrf.mxu1 }
 0x2be   :  { %v5366_v35 = vpop.f32.mrf.mxu0 }
 0x2bf   :  { %v5303_v59 = vpop.f32.mrf.mxu1 }
 0x2c0   :  { %v3488_v15 = vpop.f32.mrf.mxu0 }
 0x2c1   :  { %v3113_v19 = vpop.f32.mrf.mxu1 }
 0x2c2   :  { %v3166_v41 = vadd.f32 %v3113_v19, %v7747_v27  ;;  %v5367_v5 = vpop.f32.mrf.mxu0 }
 0x2c3   :  { %v5306_v29 = vpop.f32.mrf.mxu1 }
 0x2c4   :  { %v7815_v36 = vadd.f32 %v3485_v50, %v3166_v41  ;;  %v3493_v37 = vpop.f32.mrf.mxu0 }
 0x2c5   :  { %v3116_v57 = vpop.f32.mrf.mxu1 }
 0x2c6   :  { %v3167_v18 = vadd.f32 %v3116_v57, %v7754_v17  ;;  %v5370_v48 = vpop.f32.mrf.mxu0 }
 0x2c7   :  { %v5307_v55 = vpop.f32.mrf.mxu1 }
 0x2c8   :  { %v7818_v44 = vadd.f32 %v3488_v15, %v3167_v18  ;;  %v3496_v10 = vpop.f32.mrf.mxu0 }
 0x2c9   :  { %v3121_v53 = vpop.f32.mrf.mxu1 }
 0x2ca   :  { %v3168_v56 = vadd.f32 %v3121_v53, %v7759_v22  ;;  %v5371_v61 = vpop.f32.mrf.mxu0 }
 0x2cb   :  { %v5310_v42 = vpop.f32.mrf.mxu1 }
 0x2cc   :  { %v7821_v0 = vadd.f32 %v3493_v37, %v3168_v56  ;;  %v3501_v63 = vpop.f32.mrf.mxu0 }
 0x2cd   :  { %v3124_v27 = vpop.f32.mrf.mxu1 }
 0x2ce   :  { %v3169_v4 = vadd.f32 %v3124_v27, %v7766_v21  ;;  %v5374_v34 = vpop.f32.mrf.mxu0 }
 0x2cf   :  { %v5311_v51 = vpop.f32.mrf.mxu1 }
 0x2d0   :  { %v7824_v33 = vadd.f32 %v3496_v10, %v3169_v4  ;;  %v3504_v25 = vpop.f32.mrf.mxu0 }
 0x2d1   :  { %v3129_v17 = vpop.f32.mrf.mxu1 }
 0x2d2   :  { %v3170_v9 = vadd.f32 %v3129_v17, %v7771_v43  ;;  %v5375_v38 = vpop.f32.mrf.mxu0 }
 0x2d3   :  { %v5314_v54 = vpop.f32.mrf.mxu1 }
 0x2d4   :  { %v7827_v6 = vadd.f32 %v3501_v63, %v3170_v9  ;;  %v3509_v11 = vpop.f32.mrf.mxu0 }
 0x2d5   :  { %v3132_v22 = vpop.f32.mrf.mxu1 }
 0x2d6   :  { %v3171_v31 = vadd.f32 %v3132_v22, %v7776_v12  ;;  %v5378_v28 = vpop.f32.mrf.mxu0 }
 0x2d7   :  { %v5315_v3 = vpop.f32.mrf.mxu1 }
 0x2d8   :  { %v7830_v23 = vadd.f32 %v3504_v25, %v3171_v31  ;;  %v3512_v60 = vpop.f32.mrf.mxu0 }
 0x2d9   :  { %v3137_v21 = vpop.f32.mrf.mxu1 }
 0x2da   :  { %v3172_v49 = vadd.f32 %v3137_v21, %v7779_v32  ;;  %v5379_v8 = vpop.f32.mrf.mxu0 }
 0x2db   :  { %v5318_v20 = vpop.f32.mrf.mxu1 }
 0x2dc   :  { %v7833_v46 = vadd.f32 %v3509_v11, %v3172_v49  ;;  %v3517_v40 = vpop.f32.mrf.mxu0 }
 0x2dd   :  { %v3140_v43 = vpop.f32.mrf.mxu1 }
 0x2de   :  { %v3173_v39 = vadd.f32 %v3140_v43, %v7782_v30  ;;  %v5382_v7 = vpop.f32.mrf.mxu0 }
 0x2df   :  { %v5319_v58 = vpop.f32.mrf.mxu1 }
 0x2e0   :  { %v7836_v52 = vadd.f32 %v3512_v60, %v3173_v39  ;;  %v3520_v50 = vpop.f32.mrf.mxu0 }
 0x2e1   :  { %v3145_v12 = vpop.f32.mrf.mxu1 }
 0x2e2   :  { %v3174_v59 = vadd.f32 %v3145_v12, %v7785_v26  ;;  %v5383_v19 = vpop.f32.mrf.mxu0 }
 0x2e3   :  { %v5322_v35 = vpop.f32.mrf.mxu1 }
 0x2e4   :  { %v7839_v15 = vadd.f32 %v3517_v40, %v3174_v59  ;;  %v3524_v41 = vpop.f32.mrf.mxu0 }
 0x2e5   :  { %v3148_v32 = vpop.f32.mrf.mxu1 }
 0x2e6   :  { %v5386_v5 = vpop.f32.mrf.mxu0 }
 0x2e7   :  { %v5323_v29 = vpop.f32.mrf.mxu1 }
 0x2e8   :  { %v3526_v37 = vpop.f32.mrf.mxu0 }
 0x2e9   :  { %v3152_v57 = vpop.f32.mrf.mxu1 }
 0x2ea   :  { %v5387_v30 = vpop.f32.mrf.mxu0 }
 0x2eb   :  { %v5326_v18 = vpop.f32.mrf.mxu1 }
 0x2ec   :  { %v3988_v48 = vpop.f32.mrf.mxu0 }
 0x2ed   :  { %v3154_v55 = vpop.f32.mrf.mxu1 }
 0x2ee   :  { %v5466_v10 = vpop.f32.mrf.mxu0 }
 0x2ef   :  { %v5327_v53 = vpop.f32.mrf.mxu1 }
 0x2f0   :  { %v3991_v42 = vpop.f32.mrf.mxu0 }
 0x2f1   :  { %v3752_v56 = vpop.f32.mrf.mxu1 }
 0x2f2   :  { %v3835_v26 = vadd.f32 %v3752_v56, %v7788_v16  ;;  %v5467_v27 = vpop.f32.mrf.mxu0 }
 0x2f3   :  { %v5406_v61 = vpop.f32.mrf.mxu1 }
 0x2f4   :  { %v4071_v63 = vadd.f32 %v3988_v48, %v3835_v26  ;;  %v3996_v51 = vpop.f32.mrf.mxu0 }
 0x2f5   :  { %v3755_v4 = vpop.f32.mrf.mxu1 }
 0x2f6   :  { %4089 = vst [vmem:[%s7954_s5] sm:$0xff] %v4071_v63  ;;  %v3836_v34 = vadd.f32 %v3755_v4, %v7791_v14  ;;  %v5470_v25 = vpop.f32.mrf.mxu0 }
 0x2f7   :  { %v5407_v17 = vpop.f32.mrf.mxu1 }
 0x2f8   :  { %v4072_v9 = vadd.f32 %v3991_v42, %v3836_v34  ;;  %v3999_v38 = vpop.f32.mrf.mxu0 }
 0x2f9   :  { %v3760_v54 = vpop.f32.mrf.mxu1 }
 0x2fa   :  { %4574 = vst [vmem:[%s7954_s5 + $0x7] sm:$0xfe] %v4072_v9  ;;  %v3837_v16 = vadd.f32 %v3760_v54, %v7794_v62  ;;  %v5471_v11 = vpop.f32.mrf.mxu0 }
 0x2fb   :  { %v5410_v22 = vpop.f32.mrf.mxu1 }
 0x2fc   :  { %v4073_v31 = vadd.f32 %v3996_v51, %v3837_v16  ;;  %v4004_v28 = vpop.f32.mrf.mxu0 }
 0x2fd   :  { %v3763_v3 = vpop.f32.mrf.mxu1 }
 0x2fe   :  { %4575 = vst [vmem:[%s7954_s5 + $0xf] sm:$0x1] %v4073_v31  ;;  %4576 = vst [vmem:[%s7954_s5 + $0xe] sm:$0xfc] %v4073_v31  ;;  %v3838_v14 = vadd.f32 %v3763_v3, %v7797_v13  ;;  %v5474_v60 = vpop.f32.mrf.mxu0 }
 0x2ff   :  { %v5411_v21 = vpop.f32.mrf.mxu1 }
 0x300   :  { %v4074_v49 = vadd.f32 %v3999_v38, %v3838_v14  ;;  %v4007_v62 = vpop.f32.mrf.mxu0 }
 0x301   :  { %v3768_v20 = vpop.f32.mrf.mxu1 }
 0x302   :  { %4577 = vst [vmem:[%s7954_s5 + $0x16] sm:$0x3] %v4074_v49  ;;  %4578 = vst [vmem:[%s7954_s5 + $0x15] sm:$0xf8] %v4074_v49  ;;  %v3839_v8 = vadd.f32 %v3768_v20, %v7800_v1  ;;  %v5475_v40 = vpop.f32.mrf.mxu0 }
 0x303   :  { %v5414_v43 = vpop.f32.mrf.mxu1 }
 0x304   :  { %v4075_v39 = vadd.f32 %v4004_v28, %v3839_v8  ;;  %v4012_v13 = vpop.f32.mrf.mxu0 }
 0x305   :  { %v3771_v58 = vpop.f32.mrf.mxu1 }
 0x306   :  { %4579 = vst [vmem:[%s7954_s5 + $0x1d] sm:$0x7] %v4075_v39  ;;  %4580 = vst [vmem:[%s7954_s5 + $0x1c] sm:$0xf0] %v4075_v39  ;;  %v3840_v7 = vadd.f32 %v3771_v58, %v7803_v45  ;;  %v5478_v50 = vpop.f32.mrf.mxu0 }
 0x307   :  { %v5415_v12 = vpop.f32.mrf.mxu1 }
 0x308   :  { %v4076_v59 = vadd.f32 %v4007_v62, %v3840_v7  ;;  %v4015_v1 = vpop.f32.mrf.mxu0 }
 0x309   :  { %v3776_v35 = vpop.f32.mrf.mxu1 }
 0x30a   :  { %4581 = vst [vmem:[%s7954_s5 + $0x24] sm:$0xf] %v4076_v59  ;;  %4582 = vst [vmem:[%s7954_s5 + $0x23] sm:$0xe0] %v4076_v59  ;;  %v3841_v19 = vadd.f32 %v3776_v35, %v7806_v47  ;;  %v5479_v41 = vpop.f32.mrf.mxu0 }
 0x30b   :  { %v5418_v32 = vpop.f32.mrf.mxu1 }
 0x30c   :  { %v4077_v29 = vadd.f32 %v4012_v13, %v3841_v19  ;;  %v4020_v45 = vpop.f32.mrf.mxu0 }
 0x30d   :  { %v3779_v5 = vpop.f32.mrf.mxu1 }
 0x30e   :  { %4583 = vst [vmem:[%s7954_s5 + $0x2b] sm:$0x1f] %v4077_v29  ;;  %4584 = vst [vmem:[%s7954_s5 + $0x2a] sm:$0xc0] %v4077_v29  ;;  %v3842_v57 = vadd.f32 %v3779_v5, %v7809_v2  ;;  %v5482_v18 = vpop.f32.mrf.mxu0 }
 0x30f   :  { %v5419_v37 = vpop.f32.mrf.mxu1 }
 0x310   :  { %v4078_v30 = vadd.f32 %v4015_v1, %v3842_v57  ;;  %v4023_v47 = vpop.f32.mrf.mxu0 }
 0x311   :  { %v3784_v55 = vpop.f32.mrf.mxu1 }
 0x312   :  { %4585 = vst [vmem:[%s7954_s5 + $0x32] sm:$0x3f] %v4078_v30  ;;  %4586 = vst [vmem:[%s7954_s5 + $0x31] sm:$0x80] %v4078_v30  ;;  %v3843_v48 = vadd.f32 %v3784_v55, %v7812_v24  ;;  %v5483_v10 = vpop.f32.mrf.mxu0 }
 0x313   :  { %v5422_v53 = vpop.f32.mrf.mxu1 }
 0x314   :  { %v4079_v56 = vadd.f32 %v4020_v45, %v3843_v48  ;;  %v4027_v2 = vpop.f32.mrf.mxu0 }
 0x315   :  { %v3787_v42 = vpop.f32.mrf.mxu1 }
 0x316   :  { %4587 = vst [vmem:[%s7954_s5 + $0x39] sm:$0x7f] %v4079_v56  ;;  %v5486_v61 = vpop.f32.mrf.mxu0 }
 0x317   :  { %v5423_v26 = vpop.f32.mrf.mxu1 }
 0x318   :  { %v4030_v63 = vpop.f32.mrf.mxu0 }
 0x319   :  { %v3791_v27 = vpop.f32.mrf.mxu1 }
 0x31a   :  { %v3844_v4 = vadd.f32 %v3791_v27, %v7815_v36  ;;  %v5487_v34 = vpop.f32.mrf.mxu0 }
 0x31b   :  { %v5426_v51 = vpop.f32.mrf.mxu1 }
 0x31c   :  { %v4080_v17 = vadd.f32 %v4027_v2, %v3844_v4  ;;  %v4035_v24 = vpop.f32.mrf.mxu0 }
 0x31d   :  { %v3794_v25 = vpop.f32.mrf.mxu1 }
 0x31e   :  { %4588 = vst [vmem:[%s7954_s5 + $0x3f] sm:$0xfe] %v4080_v17  ;;  %v3845_v9 = vadd.f32 %v3794_v25, %v7818_v44  ;;  %v5490_v38 = vpop.f32.mrf.mxu0 }
 0x31f   :  { %v5427_v54 = vpop.f32.mrf.mxu1 }
 0x320   :  { %v4081_v16 = vadd.f32 %v4030_v63, %v3845_v9  ;;  %v4038_v11 = vpop.f32.mrf.mxu0 }
 0x321   :  { %v3799_v22 = vpop.f32.mrf.mxu1 }
 0x322   :  { %4589 = vst [vmem:[%s7954_s5 + $0x47] sm:$0x1] %v4081_v16  ;;  %4590 = vst [vmem:[%s7954_s5 + $0x46] sm:$0xfc] %v4081_v16  ;;  %v3846_v36 = vadd.f32 %v3799_v22, %v7821_v0  ;;  %v5491_v3 = vpop.f32.mrf.mxu0 }
 0x323   :  { %v5430_v31 = vpop.f32.mrf.mxu1 }
 0x324   :  { %v4082_v28 = vadd.f32 %v4035_v24, %v3846_v36  ;;  %v4043_v44 = vpop.f32.mrf.mxu0 }
 0x325   :  { %v3802_v14 = vpop.f32.mrf.mxu1 }
 0x326   :  { %4591 = vst [vmem:[%s7954_s5 + $0x4e] sm:$0x3] %v4082_v28  ;;  %4592 = vst [vmem:[%s7954_s5 + $0x4d] sm:$0xf8] %v4082_v28  ;;  %v3847_v21 = vadd.f32 %v3802_v14, %v7824_v33  ;;  %v5494_v49 = vpop.f32.mrf.mxu0 }
 0x327   :  { %v5431_v60 = vpop.f32.mrf.mxu1 }
 0x328   :  { %v4083_v20 = vadd.f32 %v4038_v11, %v3847_v21  ;;  %v4046_v0 = vpop.f32.mrf.mxu0 }
 0x329   :  { %v3807_v62 = vpop.f32.mrf.mxu1 }
 0x32a   :  { %4593 = vst [vmem:[%s7954_s5 + $0x55] sm:$0x7] %v4083_v20  ;;  %4594 = vst [vmem:[%s7954_s5 + $0x54] sm:$0xf0] %v4083_v20  ;;  %v3848_v8 = vadd.f32 %v3807_v62, %v7827_v6  ;;  %v5495_v40 = vpop.f32.mrf.mxu0 }
 0x32b   :  { %v5434_v43 = vpop.f32.mrf.mxu1 }
 0x32c   :  { %v4084_v39 = vadd.f32 %v4043_v44, %v3848_v8  ;;  %v4051_v33 = vpop.f32.mrf.mxu0 }
 0x32d   :  { %v3810_v58 = vpop.f32.mrf.mxu1 }
 0x32e   :  { %4595 = vst [vmem:[%s7954_s5 + $0x5c] sm:$0xf] %v4084_v39  ;;  %4596 = vst [vmem:[%s7954_s5 + $0x5b] sm:$0xe0] %v4084_v39  ;;  %v3849_v13 = vadd.f32 %v3810_v58, %v7830_v23  ;;  %v5498_v12 = vpop.f32.mrf.mxu0 }
 0x32f   :  { %v5435_v7 = vpop.f32.mrf.mxu1 }
 0x330   :  { %v4085_v50 = vadd.f32 %v4046_v0, %v3849_v13  ;;  %v4054_v6 = vpop.f32.mrf.mxu0 }
 0x331   :  { %v3815_v59 = vpop.f32.mrf.mxu1 }
 0x332   :  { %4597 = vst [vmem:[%s7954_s5 + $0x63] sm:$0x1f] %v4085_v50  ;;  %4598 = vst [vmem:[%s7954_s5 + $0x62] sm:$0xc0] %v4085_v50  ;;  %v3850_v35 = vadd.f32 %v3815_v59, %v7833_v46  ;;  %v5499_v19 = vpop.f32.mrf.mxu0 }
 0x333   :  { %v5438_v1 = vpop.f32.mrf.mxu1 }
 0x334   :  { %v4086_v32 = vadd.f32 %v4051_v33, %v3850_v35  ;;  %v4059_v23 = vpop.f32.mrf.mxu0 }
 0x335   :  { %v3818_v41 = vpop.f32.mrf.mxu1 }
 0x336   :  { %4599 = vst [vmem:[%s7954_s5 + $0x6a] sm:$0x3f] %v4086_v32  ;;  %4600 = vst [vmem:[%s7954_s5 + $0x69] sm:$0x80] %v4086_v32  ;;  %v3851_v29 = vadd.f32 %v3818_v41, %v7836_v52  ;;  %v5502_v45 = vpop.f32.mrf.mxu0 }
 0x337   :  { %v5439_v5 = vpop.f32.mrf.mxu1 }
 0x338   :  { %v4087_v57 = vadd.f32 %v4054_v6, %v3851_v29  ;;  %v4062_v46 = vpop.f32.mrf.mxu0 }
 0x339   :  { %v3823_v37 = vpop.f32.mrf.mxu1 }
 0x33a   :  { %4601 = vst [vmem:[%s7954_s5 + $0x71] sm:$0x7f] %v4087_v57  ;;  %v3852_v18 = vadd.f32 %v3823_v37, %v7839_v15  ;;  %v5503_v55 = vpop.f32.mrf.mxu0 }
 0x33b   :  { %v5442_v30 = vpop.f32.mrf.mxu1 }
 0x33c   :  { %v4088_v47 = vadd.f32 %v4059_v23, %v3852_v18  ;;  %v4066_v53 = vpop.f32.mrf.mxu0 }
 0x33d   :  { %v3826_v48 = vpop.f32.mrf.mxu1 }
 0x33e   :  { %4602 = vst [vmem:[%s7954_s5 + $0x78] sm:$0xff] %v4088_v47  ;;  %v5506_v10 = vpop.f32.mrf.mxu0 }
 0x33f   :  { %v5443_v52 = vpop.f32.mrf.mxu1 }
 0x340   :  { %v4068_v42 = vpop.f32.mrf.mxu0 }
 0x341   :  { %v3830_v56 = vpop.f32.mrf.mxu1 }
 0x342   :  { %v5507_v26 = vpop.f32.mrf.mxu0 }
 0x343   :  { %v5446_v2 = vpop.f32.mrf.mxu1 }
 0x345   :  { %v3832_v61 = vpop.f32.mrf.mxu1 }
 0x347   :  { %v5447_v27 = vpop.f32.mrf.mxu1 }

</bundles_post_ra>
